<compile_context>
chip_gen: v5e
topology: v5e:2x2
jax: 0.10.0
libtpu: 0.0.40
codegen_flags: <defaults>
</compile_context>

<pallas_src>
import functools

import jax
import jax.numpy as jnp
from jax.experimental import pallas as pl
from jax.experimental.pallas import tpu as pltpu

_BN_EPS = 1e-5
_LANE = 128


def _round_up(x, m):
    return (x + m - 1) // m * m


@functools.lru_cache(maxsize=None)
def _vmem_limit_bytes():
    # Generation-dependent VMEM budget: v5e/v6e have 128 MiB per TensorCore,
    # v7x has 64 MiB.  Leave ~16 MiB headroom for Mosaic-internal scratch.
    cap = 64 * 1024 * 1024
    try:
        cap = int(getattr(pltpu.get_tpu_info(), "vmem_capacity_bytes", cap))
    except Exception:
        pass
    return max(32 * 1024 * 1024, min(cap - 16 * 1024 * 1024, 112 * 1024 * 1024))


def _compiler_params():
    return pltpu.CompilerParams(
        dimension_semantics=("parallel",),       # batch grid -> both TCs on v7x
        vmem_limit_bytes=_vmem_limit_bytes())


# ------------------------------ in-kernel math ------------------------------

def _gelu(x):
    # tanh-form GELU: one EUP tanh + a few VPU FMAs.  |err| vs exact GELU is
    # < 1.5e-3, far inside the bf16 noise floor of the MXU matmuls.
    c = 0.7978845608028654                      # sqrt(2/pi)
    return 0.5 * x * (1.0 + jnp.tanh(c * (x + 0.044715 * x * x * x)))


def _conv3x3_kpacked(h1, wk_ref, q_ref):
    """3x3 'same' conv with the kh taps packed into the contraction (K) axis.

    h1     : (H, W, C) bf16 activation (no halo).
    wk_ref : (3, 3*C, Cout) bf16; wk_ref[kw][kh*C + ci, co] == w[kh, kw, ci, co].
    q_ref  : (H, W + 9, 3*C) bf16 VMEM scratch.  Columns [8, 8+W) hold three
             row-shifted copies of h1 (one per kh) packed along the lane/K
             axis; the 8-column left halo keeps the big interior store
             sublane-aligned (dense vst), tap reads use offsets 7/8/9.
    Returns a traced (H*W, Cout) f32 accumulator: 3 matmuls with K = 3*C and
    3 adds -- no per-tap accumulator Ref round-trips.
    """
    hh, ww, c = h1.shape
    c3 = 3 * c
    cout = wk_ref.shape[-1]

    # Zero only the halo cells that are actually read and never overwritten.
    # (Re-zeroed every step: VMEM scratch is per-core and not zero-initialised,
    #  and with a "parallel" batch grid program_id==0 never runs on core 1.)
    zcol = jnp.zeros((hh, 1, c3), jnp.bfloat16)
    q_ref[:, pl.ds(7, 1), :] = zcol                       # w = -1 column (kw=0)
    q_ref[:, pl.ds(8 + ww, 1), :] = zcol                  # w =  W column (kw=2)
    zrow = jnp.zeros((ww, c), jnp.bfloat16)
    q_ref[0, pl.ds(8, ww), pl.ds(0, c)] = zrow            # h = -1 row (kh=0)
    q_ref[hh - 1, pl.ds(8, ww), pl.ds(2 * c, c)] = zrow   # h =  H row (kh=2)

    # Interior: three row-shifted copies of h1 packed along the lane/K axis.
    # Sublane offset 8 and width W keep these stores dense/unmasked.
    q_ref[pl.ds(1, hh - 1), pl.ds(8, ww), pl.ds(0, c)] = h1[: hh - 1]
    q_ref[pl.ds(0, hh), pl.ds(8, ww), pl.ds(c, c)] = h1
    q_ref[pl.ds(0, hh - 1), pl.ds(8, ww), pl.ds(2 * c, c)] = h1[1:]

    acc = jnp.zeros((hh * ww, cout), jnp.float32)
    for kw in range(3):                                   # 3 matmuls, K = 3*C
        lhs = q_ref[:, pl.ds(7 + kw, ww), :].reshape(hh * ww, c3)
        acc = acc + jnp.dot(lhs, wk_ref[kw], preferred_element_type=jnp.float32)
    return acc


def _stats_from_acc(acc):
    s1 = jnp.sum(acc, axis=0, keepdims=True)
    s2 = jnp.sum(acc * acc, axis=0, keepdims=True)
    return jnp.concatenate([s1, s2], axis=0)              # (2, C)


# --------------------------------- kernels -----------------------------------

def _conv1_kernel(x_ref, wk_ref, a_ref, stats_ref, q_ref):
    """Compact-input 3x3 conv (bias dropped: cancels in training BN) + stats.

    x_ref    : (1, H, W, Cin) bf16       compact NHWC input (no HBM padding)
    wk_ref   : (3, 3*Cin, Cout_p) bf16   kh-packed weights, VMEM-resident
    a_ref    : (1, H, W, Cout_p) bf16    raw (pre-BN) conv output
    stats_ref: (1, 2, Cout_p) f32        per-image [sum, sum-of-squares]
    q_ref    : (H, W+9, 3*Cin) bf16      K-packing scratch
    """
    hh, ww, cout = a_ref.shape[1], a_ref.shape[2], a_ref.shape[3]
    acc = _conv3x3_kpacked(x_ref[0], wk_ref, q_ref)
    a_ref[0] = acc.reshape(hh, ww, cout).astype(a_ref.dtype)
    stats_ref[0] = _stats_from_acc(acc)


def _conv2_kernel(a1_ref, scale_ref, shift_ref, wk_ref, a2_ref, stats_ref, q_ref):
    """Fused BN1+GELU prologue -> K-packed 3x3 conv2 -> batch-stat partials.

    a1_ref    : (1, H, W, Cp) bf16       raw conv1 output
    scale_ref : (1, Cp) f32              BN1 folded: gamma*rsqrt(var+eps)
    shift_ref : (1, Cp) f32              BN1 folded: beta - mean*scale
    wk_ref    : (3, 3*Cp, Cp) bf16       kh-packed weights
    a2_ref    : (1, H, W, Cp) bf16       raw (pre-BN) conv2 output
    stats_ref : (1, 2, Cp) f32
    q_ref     : (H, W+9, 3*Cp) bf16      K-packing scratch
    """
    hh, ww, cp = a1_ref.shape[1], a1_ref.shape[2], a1_ref.shape[3]
    h1 = _gelu(a1_ref[0].astype(jnp.float32) * scale_ref[...] + shift_ref[...])
    acc = _conv3x3_kpacked(h1.astype(jnp.bfloat16), wk_ref, q_ref)
    a2_ref[0] = acc.reshape(hh, ww, cp).astype(a2_ref.dtype)
    stats_ref[0] = _stats_from_acc(acc)


def _bn_gelu_pool_kernel(a2_ref, scale_ref, shift_ref, o_ref):
    """Fused BN2 + GELU + MaxPool2d(2).

    a2_ref : (1, H/2, 2, W/2, 2*Cp) bf16  raw conv2 with the 2x2 pool window
             folded into dim 2 (h parity) and the lane axis (w parity); the
             lane split sits at Cp (a 128 multiple) so :Cp / Cp: slices land
             on vreg boundaries -- no cross-lane shuffles, lane-dense store.
    scale_ref / shift_ref: (1, 2*Cp) f32  per-channel BN2 scale/shift, tiled x2
    o_ref  : (1, H/2, W/2, Cp) f32
    """
    cp = o_ref.shape[-1]
    y = _gelu(a2_ref[0].astype(jnp.float32) * scale_ref[...] + shift_ref[...])
    m = jnp.maximum(y[..., :cp], y[..., cp:])       # max over w parity
    o_ref[0] = jnp.maximum(m[:, 0], m[:, 1])        # max over h parity


# ------------------------------ pallas_call wrappers -------------------------

def _conv1_call(x, wk1):
    b, hh, ww, cin = x.shape
    cp = wk1.shape[-1]
    n = b * hh * ww
    cost = pl.CostEstimate(
        flops=2 * n * 9 * cin * cp, transcendentals=0,
        bytes_accessed=n * cin * 2 + wk1.size * 2 + n * cp * 2 + b * 2 * cp * 4)
    return pl.pallas_call(
        _conv1_kernel,
        grid=(b,),
        in_specs=[
            pl.BlockSpec((1, hh, ww, cin), lambda i: (i, 0, 0, 0)),
            pl.BlockSpec((3, 3 * cin, cp), lambda i: (0, 0, 0)),
        ],
        out_specs=[
            pl.BlockSpec((1, hh, ww, cp), lambda i: (i, 0, 0, 0)),
            pl.BlockSpec((1, 2, cp), lambda i: (i, 0, 0)),
        ],
        out_shape=[
            jax.ShapeDtypeStruct((b, hh, ww, cp), jnp.bfloat16),
            jax.ShapeDtypeStruct((b, 2, cp), jnp.float32),
        ],
        scratch_shapes=[pltpu.VMEM((hh, ww + 9, 3 * cin), jnp.bfloat16)],
        compiler_params=_compiler_params(),
        cost_estimate=cost,
    )(x, wk1)


def _conv2_call(a1, scale1, shift1, wk2):
    b, hh, ww, cp = a1.shape
    n = b * hh * ww
    cost = pl.CostEstimate(
        flops=2 * n * 9 * cp * cp, transcendentals=n * cp,
        bytes_accessed=2 * n * cp * 2 + wk2.size * 2 + b * 2 * cp * 4)
    return pl.pallas_call(
        _conv2_kernel,
        grid=(b,),
        in_specs=[
            pl.BlockSpec((1, hh, ww, cp), lambda i: (i, 0, 0, 0)),
            pl.BlockSpec((1, cp), lambda i: (0, 0)),
            pl.BlockSpec((1, cp), lambda i: (0, 0)),
            pl.BlockSpec((3, 3 * cp, cp), lambda i: (0, 0, 0)),
        ],
        out_specs=[
            pl.BlockSpec((1, hh, ww, cp), lambda i: (i, 0, 0, 0)),
            pl.BlockSpec((1, 2, cp), lambda i: (i, 0, 0)),
        ],
        out_shape=[
            jax.ShapeDtypeStruct((b, hh, ww, cp), jnp.bfloat16),
            jax.ShapeDtypeStruct((b, 2, cp), jnp.float32),
        ],
        scratch_shapes=[pltpu.VMEM((hh, ww + 9, 3 * cp), jnp.bfloat16)],
        compiler_params=_compiler_params(),
        cost_estimate=cost,
    )(a1, scale1, shift1, wk2)


def _bn_gelu_pool_call(a2_folded, scale2, shift2):
    b, h2, _, w2, c2 = a2_folded.shape
    cp = c2 // 2
    n = b * h2 * 2 * w2 * c2
    cost = pl.CostEstimate(flops=12 * n, transcendentals=n,
                           bytes_accessed=n * 2 + b * h2 * w2 * cp * 4)
    return pl.pallas_call(
        _bn_gelu_pool_kernel,
        grid=(b,),
        in_specs=[
            pl.BlockSpec((1, h2, 2, w2, c2), lambda i: (i, 0, 0, 0, 0)),
            pl.BlockSpec((1, c2), lambda i: (0, 0)),
            pl.BlockSpec((1, c2), lambda i: (0, 0)),
        ],
        out_specs=pl.BlockSpec((1, h2, w2, cp), lambda i: (i, 0, 0, 0)),
        out_shape=jax.ShapeDtypeStruct((b, h2, w2, cp), jnp.float32),
        compiler_params=_compiler_params(),
        cost_estimate=cost,
    )(a2_folded, scale2, shift2)


# ----------------------------------- glue ------------------------------------

def _bn_scale_shift(stats, gamma, beta, n):
    # stats: (B, 2, Cp) per-image [sum, sumsq]; single-pass batch statistics.
    s1 = jnp.sum(stats[:, 0, :], axis=0)
    s2 = jnp.sum(stats[:, 1, :], axis=0)
    mean = s1 / n
    var = jnp.maximum(s2 / n - mean * mean, 0.0)          # biased variance
    scale = gamma * jax.lax.rsqrt(var + _BN_EPS)
    shift = beta - mean * scale
    return scale.reshape(1, -1), shift.reshape(1, -1)


def _pack_weight_k(w):
    # (3, 3, Cin, Cout) HWIO  ->  (3, 3*Cin, Cout) with wk[kw][kh*Cin+ci, co]
    # == w[kh, kw, ci, co] so the kh taps sit in the contraction axis.
    kh, kw, cin, cout = w.shape
    return jnp.transpose(w, (1, 0, 2, 3)).reshape(kw, kh * cin, cout)


def init_unet_down_params(key, in_channels, out_channels):
    k1, k2, k3, k4 = jax.random.split(key, 4)
    # Conv weights kept in HWIO; PyTorch's OIHW weight == transpose(3, 2, 0, 1).
    w1 = 0.1 * jax.random.normal(k1, (3, 3, in_channels, out_channels), jnp.float32)
    b1 = 0.1 * jax.random.normal(k2, (out_channels,), jnp.float32)
    w2 = 0.1 * jax.random.normal(k3, (3, 3, out_channels, out_channels), jnp.float32)
    b2 = 0.1 * jax.random.normal(k4, (out_channels,), jnp.float32)
    ones = jnp.ones((out_channels,), jnp.float32)
    zeros = jnp.zeros((out_channels,), jnp.float32)
    return dict(w1=w1, b1=b1, gamma1=ones, beta1=zeros,
                w2=w2, b2=b2, gamma2=ones, beta2=zeros)


@jax.jit
def unet_down_forward(x_nchw, params):
    b, cin, hh, ww = x_nchw.shape
    cout = params["w1"].shape[-1]
    cp = _round_up(cout, _LANE)
    n = b * hh * ww

    # NCHW -> NHWC in bf16.  NO channel padding to 128 and NO halo in HBM --
    # the halo / zero padding is done in a VMEM scratch inside the kernels.
    x = jnp.transpose(x_nchw, (0, 2, 3, 1)).astype(jnp.bfloat16)

    # kh-packed weights (K = 3*Cin per matmul); conv2 channels padded to 128.
    wk1 = _pack_weight_k(params["w1"])
    wk1 = jnp.pad(wk1, ((0, 0), (0, 0), (0, cp - cout))).astype(jnp.bfloat16)
    w2p = jnp.pad(params["w2"], ((0, 0), (0, 0), (0, cp - cout), (0, cp - cout)))
    wk2 = _pack_weight_k(w2p).astype(jnp.bfloat16)

    gamma1 = jnp.pad(params["gamma1"], (0, cp - cout), constant_values=1.0)
    gamma2 = jnp.pad(params["gamma2"], (0, cp - cout), constant_values=1.0)
    beta1 = jnp.pad(params["beta1"], (0, cp - cout))
    beta2 = jnp.pad(params["beta2"], (0, cp - cout))
    # NOTE: conv biases b1/b2 are intentionally never applied -- training-mode
    # BatchNorm subtracts the batch mean, so a per-channel bias cancels exactly.

    # Pass 1: raw conv1 (bf16 out) + batch-stat partials; fold BN1 into one FMA.
    a1, stats1 = _conv1_call(x, wk1)
    scale1, shift1 = _bn_scale_shift(stats1, gamma1, beta1, n)

    # BN1+GELU fused as conv2's prologue; raw conv2 (bf16) + batch-stat partials.
    a2, stats2 = _conv2_call(a1, scale1, shift1, wk2)
    scale2, shift2 = _bn_scale_shift(stats2, gamma2, beta2, n)

    # BN2 + GELU + 2x2 maxpool fused; fold the pool window into dim 2 (h parity)
    # and the lane axis (w parity) with a layout-preserving (free) reshape.
    a2_folded = a2.reshape(b, hh // 2, 2, ww // 2, 2 * cp)
    scale2t = jnp.concatenate([scale2, scale2], axis=-1)
    shift2t = jnp.concatenate([shift2, shift2], axis=-1)
    pooled = _bn_gelu_pool_call(a2_folded, scale2t, shift2t)   # (B, H/2, W/2, Cp)

    pooled = pooled[..., :cout]                   # drop padded channels
    return jnp.transpose(pooled, (0, 3, 1, 2))    # NHWC -> NCHW


# ------------------------------ pure-JAX reference ----------------------------

def _reference_forward(x_nchw, params):
    def conv_bn_gelu(x, w, bias, gamma, beta):
        y = jax.lax.conv_general_dilated(
            x, w, window_strides=(1, 1), padding="SAME",
            dimension_numbers=("NHWC", "HWIO", "NHWC"),
            precision=jax.lax.Precision.HIGHEST) + bias
        mean = jnp.mean(y, axis=(0, 1, 2))
        var = jnp.mean((y - mean) ** 2, axis=(0, 1, 2))     # biased
        y = (y - mean) * jax.lax.rsqrt(var + _BN_EPS) * gamma + beta
        return jax.nn.gelu(y, approximate=False)

    x = jnp.transpose(x_nchw, (0, 2, 3, 1)).astype(jnp.float32)
    h1 = conv_bn_gelu(x, params["w1"], params["b1"], params["gamma1"], params["beta1"])
    h2 = conv_bn_gelu(h1, params["w2"], params["b2"], params["gamma2"], params["beta2"])
    b, hh, ww, c = h2.shape
    pooled = jnp.max(h2.reshape(b, hh // 2, 2, ww // 2, 2, c), axis=(2, 4))
    return jnp.transpose(pooled, (0, 3, 1, 2))


if __name__ == "__main__":
    key = jax.random.PRNGKey(0)
    kx, kp = jax.random.split(key)
    B, CIN, COUT, H, W = 2, 4, 8, 16, 16
    x = jax.random.normal(kx, (B, CIN, H, W), jnp.float32)
    params = init_unet_down_params(kp, CIN, COUT)

    out = jax.block_until_ready(unet_down_forward(x, params))
    assert out.shape == (B, COUT, H // 2, W // 2), out.shape
    assert bool(jnp.all(jnp.isfinite(out)))

    ref = _reference_forward(x, params)
    max_err = float(jnp.max(jnp.abs(out - ref)))
    assert max_err < 0.15, f"max |err| vs reference = {max_err}"
    print("KERNEL_OK")
</pallas_src>

<mosaic_0001>
module attributes {stable_mosaic.version = 11 : i64} {
  func.func @_conv1_kernel(%arg0: i32, %arg1: memref<1x16x16x4xbf16, #tpu.memory_space<vmem>>, %arg2: memref<3x12x128xbf16, #tpu.memory_space<vmem>>, %arg3: memref<1x16x16x128xbf16, #tpu.memory_space<vmem>>, %arg4: memref<1x2x128xf32, #tpu.memory_space<vmem>>, %arg5: memref<16x25x12xbf16, #tpu.memory_space<vmem>>) attributes {dimension_semantics = [#tpu.dimension_semantics<parallel>], iteration_bounds = array<i64: 2>, scalar_prefetch = 0 : i64, scratch_operands = 1 : i64, tpu.core_type = #tpu.core_type<tc>, window_params = [{transform_indices = @transform_0, window_bounds = array<i64: 1, 16, 16, 4>}, {pipeline_mode = #tpu.pipeline_mode<synchronous>, transform_indices = @transform_1, window_bounds = array<i64: 3, 12, 128>}, {transform_indices = @transform_2, window_bounds = array<i64: 1, 16, 16, 128>}, {transform_indices = @transform_3, window_bounds = array<i64: 1, 2, 128>}]} {
    %c0 = arith.constant 0 : index
    %c0_0 = arith.constant 0 : index
    %c0_1 = arith.constant 0 : index
    %c0_2 = arith.constant 0 : index
    %0 = vector.load %arg1[%c0, %c0_0, %c0_1, %c0_2] : memref<1x16x16x4xbf16, #tpu.memory_space<vmem>>, vector<1x16x16x4xbf16>
    %1 = vector.shape_cast %0 : vector<1x16x16x4xbf16> to vector<16x16x4xbf16>
    %cst = arith.constant 0.000000e+00 : bf16
    %2 = vector.broadcast %cst : bf16 to vector<16x1x12xbf16>
    %c0_3 = arith.constant 0 : index
    %c7 = arith.constant 7 : index
    %c0_4 = arith.constant 0 : index
    %3 = vector.load %arg5[%c0_3, %c7, %c0_4] : memref<16x25x12xbf16, #tpu.memory_space<vmem>>, vector<16x1x12xbf16>
    tpu.vector_store %arg5[%c0_3, %c7, %c0_4], %2 {strides = array<i32>} : memref<16x25x12xbf16, #tpu.memory_space<vmem>>, vector<16x1x12xbf16>,
    %c0_5 = arith.constant 0 : index
    %c24 = arith.constant 24 : index
    %c0_6 = arith.constant 0 : index
    %4 = vector.load %arg5[%c0_5, %c24, %c0_6] : memref<16x25x12xbf16, #tpu.memory_space<vmem>>, vector<16x1x12xbf16>
    tpu.vector_store %arg5[%c0_5, %c24, %c0_6], %2 {strides = array<i32>} : memref<16x25x12xbf16, #tpu.memory_space<vmem>>, vector<16x1x12xbf16>,
    %cst_7 = arith.constant 0.000000e+00 : bf16
    %5 = vector.broadcast %cst_7 : bf16 to vector<16x4xbf16>
    %c0_8 = arith.constant 0 : index
    %c8 = arith.constant 8 : index
    %c0_9 = arith.constant 0 : index
    %6 = vector.load %arg5[%c0_8, %c8, %c0_9] : memref<16x25x12xbf16, #tpu.memory_space<vmem>>, vector<1x16x4xbf16>
    %7 = vector.shape_cast %6 : vector<1x16x4xbf16> to vector<16x4xbf16>
    %8 = vector.shape_cast %5 : vector<16x4xbf16> to vector<1x16x4xbf16>
    tpu.vector_store %arg5[%c0_8, %c8, %c0_9], %8 {strides = array<i32>} : memref<16x25x12xbf16, #tpu.memory_space<vmem>>, vector<1x16x4xbf16>,
    %c15 = arith.constant 15 : index
    %c8_10 = arith.constant 8 : index
    %c8_11 = arith.constant 8 : index
    %9 = vector.load %arg5[%c15, %c8_10, %c8_11] : memref<16x25x12xbf16, #tpu.memory_space<vmem>>, vector<1x16x4xbf16>
    %10 = vector.shape_cast %9 : vector<1x16x4xbf16> to vector<16x4xbf16>
    %11 = vector.shape_cast %5 : vector<16x4xbf16> to vector<1x16x4xbf16>
    tpu.vector_store %arg5[%c15, %c8_10, %c8_11], %11 {strides = array<i32>} : memref<16x25x12xbf16, #tpu.memory_space<vmem>>, vector<1x16x4xbf16>,
    %12 = vector.extract_strided_slice %1 {offsets = [0, 0, 0], sizes = [15, 16, 4], strides = [1, 1, 1]} : vector<16x16x4xbf16> to vector<15x16x4xbf16>
    %c1 = arith.constant 1 : index
    %c8_12 = arith.constant 8 : index
    %c0_13 = arith.constant 0 : index
    %13 = vector.load %arg5[%c1, %c8_12, %c0_13] : memref<16x25x12xbf16, #tpu.memory_space<vmem>>, vector<15x16x4xbf16>
    tpu.vector_store %arg5[%c1, %c8_12, %c0_13], %12 {strides = array<i32>} : memref<16x25x12xbf16, #tpu.memory_space<vmem>>, vector<15x16x4xbf16>,
    %c0_14 = arith.constant 0 : index
    %c8_15 = arith.constant 8 : index
    %c4 = arith.constant 4 : index
    %14 = vector.load %arg5[%c0_14, %c8_15, %c4] : memref<16x25x12xbf16, #tpu.memory_space<vmem>>, vector<16x16x4xbf16>
    tpu.vector_store %arg5[%c0_14, %c8_15, %c4], %1 {strides = array<i32>} : memref<16x25x12xbf16, #tpu.memory_space<vmem>>, vector<16x16x4xbf16>,
    %15 = vector.extract_strided_slice %1 {offsets = [1, 0, 0], sizes = [15, 16, 4], strides = [1, 1, 1]} : vector<16x16x4xbf16> to vector<15x16x4xbf16>
    %c0_16 = arith.constant 0 : index
    %c8_17 = arith.constant 8 : index
    %c8_18 = arith.constant 8 : index
    %16 = vector.load %arg5[%c0_16, %c8_17, %c8_18] : memref<16x25x12xbf16, #tpu.memory_space<vmem>>, vector<15x16x4xbf16>
    tpu.vector_store %arg5[%c0_16, %c8_17, %c8_18], %15 {strides = array<i32>} : memref<16x25x12xbf16, #tpu.memory_space<vmem>>, vector<15x16x4xbf16>,
    %cst_19 = arith.constant 0.000000e+00 : f32
    %17 = vector.broadcast %cst_19 : f32 to vector<256x128xf32>
    %c0_20 = arith.constant 0 : index
    %c7_21 = arith.constant 7 : index
    %c0_22 = arith.constant 0 : index
    %18 = vector.load %arg5[%c0_20, %c7_21, %c0_22] : memref<16x25x12xbf16, #tpu.memory_space<vmem>>, vector<16x16x12xbf16>
    %19 = vector.shape_cast %18 : vector<16x16x12xbf16> to vector<256x12xbf16>
    %c0_23 = arith.constant 0 : index
    %c0_24 = arith.constant 0 : index
    %c0_25 = arith.constant 0 : index
    %20 = vector.load %arg2[%c0_23, %c0_24, %c0_25] : memref<3x12x128xbf16, #tpu.memory_space<vmem>>, vector<1x12x128xbf16>
    %21 = vector.shape_cast %20 : vector<1x12x128xbf16> to vector<12x128xbf16>
    %cst_26 = arith.constant dense<0.000000e+00> : vector<256x128xf32>
    %22 = tpu.matmul %19, %21, %cst_26 {dimension_numbers = #tpu.dot_dimension_numbers<[1], [0], [0], [1], [0, 0, 1, 1], [], []>} : vector<256x12xbf16>, vector<12x128xbf16>, vector<256x128xf32> -> vector<256x128xf32>
    %23 = arith.addf %17, %22 : vector<256x128xf32>
    %c0_27 = arith.constant 0 : index
    %c8_28 = arith.constant 8 : index
    %c0_29 = arith.constant 0 : index
    %24 = vector.load %arg5[%c0_27, %c8_28, %c0_29] : memref<16x25x12xbf16, #tpu.memory_space<vmem>>, vector<16x16x12xbf16>
    %25 = vector.shape_cast %24 : vector<16x16x12xbf16> to vector<256x12xbf16>
    %c1_30 = arith.constant 1 : index
    %c0_31 = arith.constant 0 : index
    %c0_32 = arith.constant 0 : index
    %26 = vector.load %arg2[%c1_30, %c0_31, %c0_32] : memref<3x12x128xbf16, #tpu.memory_space<vmem>>, vector<1x12x128xbf16>
    %27 = vector.shape_cast %26 : vector<1x12x128xbf16> to vector<12x128xbf16>
    %cst_33 = arith.constant dense<0.000000e+00> : vector<256x128xf32>
    %28 = tpu.matmul %25, %27, %cst_33 {dimension_numbers = #tpu.dot_dimension_numbers<[1], [0], [0], [1], [0, 0, 1, 1], [], []>} : vector<256x12xbf16>, vector<12x128xbf16>, vector<256x128xf32> -> vector<256x128xf32>
    %29 = arith.addf %23, %28 : vector<256x128xf32>
    %c0_34 = arith.constant 0 : index
    %c9 = arith.constant 9 : index
    %c0_35 = arith.constant 0 : index
    %30 = vector.load %arg5[%c0_34, %c9, %c0_35] : memref<16x25x12xbf16, #tpu.memory_space<vmem>>, vector<16x16x12xbf16>
    %31 = vector.shape_cast %30 : vector<16x16x12xbf16> to vector<256x12xbf16>
    %c2 = arith.constant 2 : index
    %c0_36 = arith.constant 0 : index
    %c0_37 = arith.constant 0 : index
    %32 = vector.load %arg2[%c2, %c0_36, %c0_37] : memref<3x12x128xbf16, #tpu.memory_space<vmem>>, vector<1x12x128xbf16>
    %33 = vector.shape_cast %32 : vector<1x12x128xbf16> to vector<12x128xbf16>
    %cst_38 = arith.constant dense<0.000000e+00> : vector<256x128xf32>
    %34 = tpu.matmul %31, %33, %cst_38 {dimension_numbers = #tpu.dot_dimension_numbers<[1], [0], [0], [1], [0, 0, 1, 1], [], []>} : vector<256x12xbf16>, vector<12x128xbf16>, vector<256x128xf32> -> vector<256x128xf32>
    %35 = arith.addf %29, %34 : vector<256x128xf32>
    %36 = vector.shape_cast %35 : vector<256x128xf32> to vector<16x16x128xf32>
    %37 = arith.truncf %36 : vector<16x16x128xf32> to vector<16x16x128xbf16>
    %c0_39 = arith.constant 0 : index
    %c0_40 = arith.constant 0 : index
    %c0_41 = arith.constant 0 : index
    %c0_42 = arith.constant 0 : index
    %38 = vector.load %arg3[%c0_39, %c0_40, %c0_41, %c0_42] : memref<1x16x16x128xbf16, #tpu.memory_space<vmem>>, vector<1x16x16x128xbf16>
    %39 = vector.shape_cast %38 : vector<1x16x16x128xbf16> to vector<16x16x128xbf16>
    %40 = vector.shape_cast %37 : vector<16x16x128xbf16> to vector<1x16x16x128xbf16>
    tpu.vector_store %arg3[%c0_39, %c0_40, %c0_41, %c0_42], %40 {strides = array<i32>} : memref<1x16x16x128xbf16, #tpu.memory_space<vmem>>, vector<1x16x16x128xbf16>,
    %cst_43 = arith.constant dense<0.000000e+00> : vector<128xf32>
    %41 = vector.multi_reduction <add>, %35, %cst_43 [0] : vector<256x128xf32> to vector<128xf32>
    %42 = vector.shape_cast %41 : vector<128xf32> to vector<1x128xf32>
    %43 = arith.mulf %35, %35 : vector<256x128xf32>
    %cst_44 = arith.constant dense<0.000000e+00> : vector<128xf32>
    %44 = vector.multi_reduction <add>, %43, %cst_44 [0] : vector<256x128xf32> to vector<128xf32>
    %45 = vector.shape_cast %44 : vector<128xf32> to vector<1x128xf32>
    %46 = tpu.concatenate %42, %45 in 0 : vector<1x128xf32>, vector<1x128xf32> -> vector<2x128xf32>
    %c0_45 = arith.constant 0 : index
    %c0_46 = arith.constant 0 : index
    %c0_47 = arith.constant 0 : index
    %47 = vector.load %arg4[%c0_45, %c0_46, %c0_47] : memref<1x2x128xf32, #tpu.memory_space<vmem>>, vector<1x2x128xf32>
    %48 = vector.shape_cast %47 : vector<1x2x128xf32> to vector<2x128xf32>
    %49 = vector.shape_cast %46 : vector<2x128xf32> to vector<1x2x128xf32>
    tpu.vector_store %arg4[%c0_45, %c0_46, %c0_47], %49 {strides = array<i32>} : memref<1x2x128xf32, #tpu.memory_space<vmem>>, vector<1x2x128xf32>,
    return
  }
  func.func @transform_0(%arg0: i32) -> (i32, i32, i32, i32) {
    %c0_i32 = arith.constant 0 : i32
    %c0_i32_0 = arith.constant 0 : i32
    %c0_i32_1 = arith.constant 0 : i32
    %c0_i32_2 = arith.constant 0 : i32
    return %arg0, %c0_i32, %c0_i32_0, %c0_i32_1 : i32, i32, i32, i32
  }
  func.func @transform_1(%arg0: i32) -> (i32, i32, i32) {
    %c0_i32 = arith.constant 0 : i32
    %c0_i32_0 = arith.constant 0 : i32
    %c0_i32_1 = arith.constant 0 : i32
    %c0_i32_2 = arith.constant 0 : i32
    return %c0_i32, %c0_i32_0, %c0_i32_1 : i32, i32, i32
  }
  func.func @transform_2(%arg0: i32) -> (i32, i32, i32, i32) {
    %c0_i32 = arith.constant 0 : i32
    %c0_i32_0 = arith.constant 0 : i32
    %c0_i32_1 = arith.constant 0 : i32
    %c0_i32_2 = arith.constant 0 : i32
    return %arg0, %c0_i32, %c0_i32_0, %c0_i32_1 : i32, i32, i32, i32
  }
  func.func @transform_3(%arg0: i32) -> (i32, i32, i32) {
    %c0_i32 = arith.constant 0 : i32
    %c0_i32_0 = arith.constant 0 : i32
    %c0_i32_1 = arith.constant 0 : i32
    return %arg0, %c0_i32, %c0_i32_0 : i32, i32, i32
  }
}

module attributes {stable_mosaic.version = 11 : i64} {
  func.func @_conv2_kernel(%arg0: i32, %arg1: memref<1x16x16x128xbf16, #tpu.memory_space<vmem>>, %arg2: memref<1x128xf32, #tpu.memory_space<vmem>>, %arg3: memref<1x128xf32, #tpu.memory_space<vmem>>, %arg4: memref<3x384x128xbf16, #tpu.memory_space<vmem>>, %arg5: memref<1x16x16x128xbf16, #tpu.memory_space<vmem>>, %arg6: memref<1x2x128xf32, #tpu.memory_space<vmem>>, %arg7: memref<16x25x384xbf16, #tpu.memory_space<vmem>>) attributes {dimension_semantics = [#tpu.dimension_semantics<parallel>], iteration_bounds = array<i64: 2>, scalar_prefetch = 0 : i64, scratch_operands = 1 : i64, tpu.core_type = #tpu.core_type<tc>, window_params = [{transform_indices = @transform_0, window_bounds = array<i64: 1, 16, 16, 128>}, {pipeline_mode = #tpu.pipeline_mode<synchronous>, transform_indices = @transform_1, window_bounds = array<i64: 1, 128>}, {pipeline_mode = #tpu.pipeline_mode<synchronous>, transform_indices = @transform_2, window_bounds = array<i64: 1, 128>}, {pipeline_mode = #tpu.pipeline_mode<synchronous>, transform_indices = @transform_3, window_bounds = array<i64: 3, 384, 128>}, {transform_indices = @transform_4, window_bounds = array<i64: 1, 16, 16, 128>}, {transform_indices = @transform_5, window_bounds = array<i64: 1, 2, 128>}]} {
    %c0 = arith.constant 0 : index
    %c0_0 = arith.constant 0 : index
    %c0_1 = arith.constant 0 : index
    %c0_2 = arith.constant 0 : index
    %0 = vector.load %arg1[%c0, %c0_0, %c0_1, %c0_2] : memref<1x16x16x128xbf16, #tpu.memory_space<vmem>>, vector<1x16x16x128xbf16>
    %1 = vector.shape_cast %0 : vector<1x16x16x128xbf16> to vector<16x16x128xbf16>
    %2 = arith.extf %1 : vector<16x16x128xbf16> to vector<16x16x128xf32>
    %c0_3 = arith.constant 0 : index
    %c0_4 = arith.constant 0 : index
    %3 = vector.load %arg2[%c0_3, %c0_4] : memref<1x128xf32, #tpu.memory_space<vmem>>, vector<1x128xf32>
    %4 = vector.shape_cast %3 : vector<1x128xf32> to vector<1x1x128xf32>
    %5 = vector.broadcast %4 : vector<1x1x128xf32> to vector<16x16x128xf32>
    %6 = arith.mulf %2, %5 : vector<16x16x128xf32>
    %c0_5 = arith.constant 0 : index
    %c0_6 = arith.constant 0 : index
    %7 = vector.load %arg3[%c0_5, %c0_6] : memref<1x128xf32, #tpu.memory_space<vmem>>, vector<1x128xf32>
    %8 = vector.shape_cast %7 : vector<1x128xf32> to vector<1x1x128xf32>
    %9 = vector.broadcast %8 : vector<1x1x128xf32> to vector<16x16x128xf32>
    %10 = arith.addf %6, %9 : vector<16x16x128xf32>
    %cst = arith.constant 5.000000e-01 : f32
    %11 = vector.broadcast %cst : f32 to vector<16x16x128xf32>
    %12 = arith.mulf %11, %10 : vector<16x16x128xf32>
    %cst_7 = arith.constant 4.471500e-02 : f32
    %13 = vector.broadcast %cst_7 : f32 to vector<16x16x128xf32>
    %14 = arith.mulf %13, %10 : vector<16x16x128xf32>
    %15 = arith.mulf %14, %10 : vector<16x16x128xf32>
    %16 = arith.mulf %15, %10 : vector<16x16x128xf32>
    %17 = arith.addf %10, %16 : vector<16x16x128xf32>
    %cst_8 = arith.constant 0.797884583 : f32
    %18 = vector.broadcast %cst_8 : f32 to vector<16x16x128xf32>
    %19 = arith.mulf %18, %17 : vector<16x16x128xf32>
    %20 = math.tanh %19 : vector<16x16x128xf32>
    %cst_9 = arith.constant 1.000000e+00 : f32
    %21 = vector.broadcast %cst_9 : f32 to vector<16x16x128xf32>
    %22 = arith.addf %21, %20 : vector<16x16x128xf32>
    %23 = arith.mulf %12, %22 : vector<16x16x128xf32>
    %24 = arith.truncf %23 : vector<16x16x128xf32> to vector<16x16x128xbf16>
    %cst_10 = arith.constant 0.000000e+00 : bf16
    %25 = vector.broadcast %cst_10 : bf16 to vector<16x1x384xbf16>
    %c0_11 = arith.constant 0 : index
    %c7 = arith.constant 7 : index
    %c0_12 = arith.constant 0 : index
    %26 = vector.load %arg7[%c0_11, %c7, %c0_12] : memref<16x25x384xbf16, #tpu.memory_space<vmem>>, vector<16x1x384xbf16>
    tpu.vector_store %arg7[%c0_11, %c7, %c0_12], %25 {strides = array<i32>} : memref<16x25x384xbf16, #tpu.memory_space<vmem>>, vector<16x1x384xbf16>,
    %c0_13 = arith.constant 0 : index
    %c24 = arith.constant 24 : index
    %c0_14 = arith.constant 0 : index
    %27 = vector.load %arg7[%c0_13, %c24, %c0_14] : memref<16x25x384xbf16, #tpu.memory_space<vmem>>, vector<16x1x384xbf16>
    tpu.vector_store %arg7[%c0_13, %c24, %c0_14], %25 {strides = array<i32>} : memref<16x25x384xbf16, #tpu.memory_space<vmem>>, vector<16x1x384xbf16>,
    %cst_15 = arith.constant 0.000000e+00 : bf16
    %28 = vector.broadcast %cst_15 : bf16 to vector<16x128xbf16>
    %c0_16 = arith.constant 0 : index
    %c8 = arith.constant 8 : index
    %c0_17 = arith.constant 0 : index
    %29 = vector.load %arg7[%c0_16, %c8, %c0_17] : memref<16x25x384xbf16, #tpu.memory_space<vmem>>, vector<1x16x128xbf16>
    %30 = vector.shape_cast %29 : vector<1x16x128xbf16> to vector<16x128xbf16>
    %31 = vector.shape_cast %28 : vector<16x128xbf16> to vector<1x16x128xbf16>
    tpu.vector_store %arg7[%c0_16, %c8, %c0_17], %31 {strides = array<i32>} : memref<16x25x384xbf16, #tpu.memory_space<vmem>>, vector<1x16x128xbf16>,
    %c15 = arith.constant 15 : index
    %c8_18 = arith.constant 8 : index
    %c256 = arith.constant 256 : index
    %32 = vector.load %arg7[%c15, %c8_18, %c256] : memref<16x25x384xbf16, #tpu.memory_space<vmem>>, vector<1x16x128xbf16>
    %33 = vector.shape_cast %32 : vector<1x16x128xbf16> to vector<16x128xbf16>
    %34 = vector.shape_cast %28 : vector<16x128xbf16> to vector<1x16x128xbf16>
    tpu.vector_store %arg7[%c15, %c8_18, %c256], %34 {strides = array<i32>} : memref<16x25x384xbf16, #tpu.memory_space<vmem>>, vector<1x16x128xbf16>,
    %35 = vector.extract_strided_slice %24 {offsets = [0, 0, 0], sizes = [15, 16, 128], strides = [1, 1, 1]} : vector<16x16x128xbf16> to vector<15x16x128xbf16>
    %c1 = arith.constant 1 : index
    %c8_19 = arith.constant 8 : index
    %c0_20 = arith.constant 0 : index
    %36 = vector.load %arg7[%c1, %c8_19, %c0_20] : memref<16x25x384xbf16, #tpu.memory_space<vmem>>, vector<15x16x128xbf16>
    tpu.vector_store %arg7[%c1, %c8_19, %c0_20], %35 {strides = array<i32>} : memref<16x25x384xbf16, #tpu.memory_space<vmem>>, vector<15x16x128xbf16>,
    %c0_21 = arith.constant 0 : index
    %c8_22 = arith.constant 8 : index
    %c128 = arith.constant 128 : index
    %37 = vector.load %arg7[%c0_21, %c8_22, %c128] : memref<16x25x384xbf16, #tpu.memory_space<vmem>>, vector<16x16x128xbf16>
    tpu.vector_store %arg7[%c0_21, %c8_22, %c128], %24 {strides = array<i32>} : memref<16x25x384xbf16, #tpu.memory_space<vmem>>, vector<16x16x128xbf16>,
    %38 = vector.extract_strided_slice %24 {offsets = [1, 0, 0], sizes = [15, 16, 128], strides = [1, 1, 1]} : vector<16x16x128xbf16> to vector<15x16x128xbf16>
    %c0_23 = arith.constant 0 : index
    %c8_24 = arith.constant 8 : index
    %c256_25 = arith.constant 256 : index
    %39 = vector.load %arg7[%c0_23, %c8_24, %c256_25] : memref<16x25x384xbf16, #tpu.memory_space<vmem>>, vector<15x16x128xbf16>
    tpu.vector_store %arg7[%c0_23, %c8_24, %c256_25], %38 {strides = array<i32>} : memref<16x25x384xbf16, #tpu.memory_space<vmem>>, vector<15x16x128xbf16>,
    %cst_26 = arith.constant 0.000000e+00 : f32
    %40 = vector.broadcast %cst_26 : f32 to vector<256x128xf32>
    %c0_27 = arith.constant 0 : index
    %c7_28 = arith.constant 7 : index
    %c0_29 = arith.constant 0 : index
    %41 = vector.load %arg7[%c0_27, %c7_28, %c0_29] : memref<16x25x384xbf16, #tpu.memory_space<vmem>>, vector<16x16x384xbf16>
    %42 = vector.shape_cast %41 : vector<16x16x384xbf16> to vector<256x384xbf16>
    %c0_30 = arith.constant 0 : index
    %c0_31 = arith.constant 0 : index
    %c0_32 = arith.constant 0 : index
    %43 = vector.load %arg4[%c0_30, %c0_31, %c0_32] : memref<3x384x128xbf16, #tpu.memory_space<vmem>>, vector<1x384x128xbf16>
    %44 = vector.shape_cast %43 : vector<1x384x128xbf16> to vector<384x128xbf16>
    %cst_33 = arith.constant dense<0.000000e+00> : vector<256x128xf32>
    %45 = tpu.matmul %42, %44, %cst_33 {dimension_numbers = #tpu.dot_dimension_numbers<[1], [0], [0], [1], [0, 0, 1, 1], [], []>} : vector<256x384xbf16>, vector<384x128xbf16>, vector<256x128xf32> -> vector<256x128xf32>
    %46 = arith.addf %40, %45 : vector<256x128xf32>
    %c0_34 = arith.constant 0 : index
    %c8_35 = arith.constant 8 : index
    %c0_36 = arith.constant 0 : index
    %47 = vector.load %arg7[%c0_34, %c8_35, %c0_36] : memref<16x25x384xbf16, #tpu.memory_space<vmem>>, vector<16x16x384xbf16>
    %48 = vector.shape_cast %47 : vector<16x16x384xbf16> to vector<256x384xbf16>
    %c1_37 = arith.constant 1 : index
    %c0_38 = arith.constant 0 : index
    %c0_39 = arith.constant 0 : index
    %49 = vector.load %arg4[%c1_37, %c0_38, %c0_39] : memref<3x384x128xbf16, #tpu.memory_space<vmem>>, vector<1x384x128xbf16>
    %50 = vector.shape_cast %49 : vector<1x384x128xbf16> to vector<384x128xbf16>
    %cst_40 = arith.constant dense<0.000000e+00> : vector<256x128xf32>
    %51 = tpu.matmul %48, %50, %cst_40 {dimension_numbers = #tpu.dot_dimension_numbers<[1], [0], [0], [1], [0, 0, 1, 1], [], []>} : vector<256x384xbf16>, vector<384x128xbf16>, vector<256x128xf32> -> vector<256x128xf32>
    %52 = arith.addf %46, %51 : vector<256x128xf32>
    %c0_41 = arith.constant 0 : index
    %c9 = arith.constant 9 : index
    %c0_42 = arith.constant 0 : index
    %53 = vector.load %arg7[%c0_41, %c9, %c0_42] : memref<16x25x384xbf16, #tpu.memory_space<vmem>>, vector<16x16x384xbf16>
    %54 = vector.shape_cast %53 : vector<16x16x384xbf16> to vector<256x384xbf16>
    %c2 = arith.constant 2 : index
    %c0_43 = arith.constant 0 : index
    %c0_44 = arith.constant 0 : index
    %55 = vector.load %arg4[%c2, %c0_43, %c0_44] : memref<3x384x128xbf16, #tpu.memory_space<vmem>>, vector<1x384x128xbf16>
    %56 = vector.shape_cast %55 : vector<1x384x128xbf16> to vector<384x128xbf16>
    %cst_45 = arith.constant dense<0.000000e+00> : vector<256x128xf32>
    %57 = tpu.matmul %54, %56, %cst_45 {dimension_numbers = #tpu.dot_dimension_numbers<[1], [0], [0], [1], [0, 0, 1, 1], [], []>} : vector<256x384xbf16>, vector<384x128xbf16>, vector<256x128xf32> -> vector<256x128xf32>
    %58 = arith.addf %52, %57 : vector<256x128xf32>
    %59 = vector.shape_cast %58 : vector<256x128xf32> to vector<16x16x128xf32>
    %60 = arith.truncf %59 : vector<16x16x128xf32> to vector<16x16x128xbf16>
    %c0_46 = arith.constant 0 : index
    %c0_47 = arith.constant 0 : index
    %c0_48 = arith.constant 0 : index
    %c0_49 = arith.constant 0 : index
    %61 = vector.load %arg5[%c0_46, %c0_47, %c0_48, %c0_49] : memref<1x16x16x128xbf16, #tpu.memory_space<vmem>>, vector<1x16x16x128xbf16>
    %62 = vector.shape_cast %61 : vector<1x16x16x128xbf16> to vector<16x16x128xbf16>
    %63 = vector.shape_cast %60 : vector<16x16x128xbf16> to vector<1x16x16x128xbf16>
    tpu.vector_store %arg5[%c0_46, %c0_47, %c0_48, %c0_49], %63 {strides = array<i32>} : memref<1x16x16x128xbf16, #tpu.memory_space<vmem>>, vector<1x16x16x128xbf16>,
    %cst_50 = arith.constant dense<0.000000e+00> : vector<128xf32>
    %64 = vector.multi_reduction <add>, %58, %cst_50 [0] : vector<256x128xf32> to vector<128xf32>
    %65 = vector.shape_cast %64 : vector<128xf32> to vector<1x128xf32>
    %66 = arith.mulf %58, %58 : vector<256x128xf32>
    %cst_51 = arith.constant dense<0.000000e+00> : vector<128xf32>
    %67 = vector.multi_reduction <add>, %66, %cst_51 [0] : vector<256x128xf32> to vector<128xf32>
    %68 = vector.shape_cast %67 : vector<128xf32> to vector<1x128xf32>
    %69 = tpu.concatenate %65, %68 in 0 : vector<1x128xf32>, vector<1x128xf32> -> vector<2x128xf32>
    %c0_52 = arith.constant 0 : index
    %c0_53 = arith.constant 0 : index
    %c0_54 = arith.constant 0 : index
    %70 = vector.load %arg6[%c0_52, %c0_53, %c0_54] : memref<1x2x128xf32, #tpu.memory_space<vmem>>, vector<1x2x128xf32>
    %71 = vector.shape_cast %70 : vector<1x2x128xf32> to vector<2x128xf32>
    %72 = vector.shape_cast %69 : vector<2x128xf32> to vector<1x2x128xf32>
    tpu.vector_store %arg6[%c0_52, %c0_53, %c0_54], %72 {strides = array<i32>} : memref<1x2x128xf32, #tpu.memory_space<vmem>>, vector<1x2x128xf32>,
    return
  }
  func.func @transform_0(%arg0: i32) -> (i32, i32, i32, i32) {
    %c0_i32 = arith.constant 0 : i32
    %c0_i32_0 = arith.constant 0 : i32
    %c0_i32_1 = arith.constant 0 : i32
    %c0_i32_2 = arith.constant 0 : i32
    return %arg0, %c0_i32, %c0_i32_0, %c0_i32_1 : i32, i32, i32, i32
  }
  func.func @transform_1(%arg0: i32) -> (i32, i32) {
    %c0_i32 = arith.constant 0 : i32
    %c0_i32_0 = arith.constant 0 : i32
    %c0_i32_1 = arith.constant 0 : i32
    return %c0_i32, %c0_i32_0 : i32, i32
  }
  func.func @transform_2(%arg0: i32) -> (i32, i32) {
    %c0_i32 = arith.constant 0 : i32
    %c0_i32_0 = arith.constant 0 : i32
    %c0_i32_1 = arith.constant 0 : i32
    return %c0_i32, %c0_i32_0 : i32, i32
  }
  func.func @transform_3(%arg0: i32) -> (i32, i32, i32) {
    %c0_i32 = arith.constant 0 : i32
    %c0_i32_0 = arith.constant 0 : i32
    %c0_i32_1 = arith.constant 0 : i32
    %c0_i32_2 = arith.constant 0 : i32
    return %c0_i32, %c0_i32_0, %c0_i32_1 : i32, i32, i32
  }
  func.func @transform_4(%arg0: i32) -> (i32, i32, i32, i32) {
    %c0_i32 = arith.constant 0 : i32
    %c0_i32_0 = arith.constant 0 : i32
    %c0_i32_1 = arith.constant 0 : i32
    %c0_i32_2 = arith.constant 0 : i32
    return %arg0, %c0_i32, %c0_i32_0, %c0_i32_1 : i32, i32, i32, i32
  }
  func.func @transform_5(%arg0: i32) -> (i32, i32, i32) {
    %c0_i32 = arith.constant 0 : i32
    %c0_i32_0 = arith.constant 0 : i32
    %c0_i32_1 = arith.constant 0 : i32
    return %arg0, %c0_i32, %c0_i32_0 : i32, i32, i32
  }
}

module attributes {stable_mosaic.version = 11 : i64} {
  func.func @_bn_gelu_pool_kernel(%arg0: i32, %arg1: memref<1x8x2x8x256xbf16, #tpu.memory_space<vmem>>, %arg2: memref<1x256xf32, #tpu.memory_space<vmem>>, %arg3: memref<1x256xf32, #tpu.memory_space<vmem>>, %arg4: memref<1x8x8x128xf32, #tpu.memory_space<vmem>>) attributes {dimension_semantics = [#tpu.dimension_semantics<parallel>], iteration_bounds = array<i64: 2>, scalar_prefetch = 0 : i64, scratch_operands = 0 : i64, tpu.core_type = #tpu.core_type<tc>, window_params = [{transform_indices = @transform_0, window_bounds = array<i64: 1, 8, 2, 8, 256>}, {pipeline_mode = #tpu.pipeline_mode<synchronous>, transform_indices = @transform_1, window_bounds = array<i64: 1, 256>}, {pipeline_mode = #tpu.pipeline_mode<synchronous>, transform_indices = @transform_2, window_bounds = array<i64: 1, 256>}, {transform_indices = @transform_3, window_bounds = array<i64: 1, 8, 8, 128>}]} {
    %c0 = arith.constant 0 : index
    %c0_0 = arith.constant 0 : index
    %c0_1 = arith.constant 0 : index
    %c0_2 = arith.constant 0 : index
    %c0_3 = arith.constant 0 : index
    %0 = vector.load %arg1[%c0, %c0_0, %c0_1, %c0_2, %c0_3] : memref<1x8x2x8x256xbf16, #tpu.memory_space<vmem>>, vector<1x8x2x8x256xbf16>
    %1 = vector.shape_cast %0 : vector<1x8x2x8x256xbf16> to vector<8x2x8x256xbf16>
    %2 = arith.extf %1 : vector<8x2x8x256xbf16> to vector<8x2x8x256xf32>
    %c0_4 = arith.constant 0 : index
    %c0_5 = arith.constant 0 : index
    %3 = vector.load %arg2[%c0_4, %c0_5] : memref<1x256xf32, #tpu.memory_space<vmem>>, vector<1x256xf32>
    %4 = vector.shape_cast %3 : vector<1x256xf32> to vector<1x1x1x256xf32>
    %5 = vector.broadcast %4 : vector<1x1x1x256xf32> to vector<8x2x8x256xf32>
    %6 = arith.mulf %2, %5 : vector<8x2x8x256xf32>
    %c0_6 = arith.constant 0 : index
    %c0_7 = arith.constant 0 : index
    %7 = vector.load %arg3[%c0_6, %c0_7] : memref<1x256xf32, #tpu.memory_space<vmem>>, vector<1x256xf32>
    %8 = vector.shape_cast %7 : vector<1x256xf32> to vector<1x1x1x256xf32>
    %9 = vector.broadcast %8 : vector<1x1x1x256xf32> to vector<8x2x8x256xf32>
    %10 = arith.addf %6, %9 : vector<8x2x8x256xf32>
    %cst = arith.constant 5.000000e-01 : f32
    %11 = vector.broadcast %cst : f32 to vector<8x2x8x256xf32>
    %12 = arith.mulf %11, %10 : vector<8x2x8x256xf32>
    %cst_8 = arith.constant 4.471500e-02 : f32
    %13 = vector.broadcast %cst_8 : f32 to vector<8x2x8x256xf32>
    %14 = arith.mulf %13, %10 : vector<8x2x8x256xf32>
    %15 = arith.mulf %14, %10 : vector<8x2x8x256xf32>
    %16 = arith.mulf %15, %10 : vector<8x2x8x256xf32>
    %17 = arith.addf %10, %16 : vector<8x2x8x256xf32>
    %cst_9 = arith.constant 0.797884583 : f32
    %18 = vector.broadcast %cst_9 : f32 to vector<8x2x8x256xf32>
    %19 = arith.mulf %18, %17 : vector<8x2x8x256xf32>
    %20 = math.tanh %19 : vector<8x2x8x256xf32>
    %cst_10 = arith.constant 1.000000e+00 : f32
    %21 = vector.broadcast %cst_10 : f32 to vector<8x2x8x256xf32>
    %22 = arith.addf %21, %20 : vector<8x2x8x256xf32>
    %23 = arith.mulf %12, %22 : vector<8x2x8x256xf32>
    %24 = vector.extract_strided_slice %23 {offsets = [0, 0, 0, 0], sizes = [8, 2, 8, 128], strides = [1, 1, 1, 1]} : vector<8x2x8x256xf32> to vector<8x2x8x128xf32>
    %25 = vector.extract_strided_slice %23 {offsets = [0, 0, 0, 128], sizes = [8, 2, 8, 128], strides = [1, 1, 1, 1]} : vector<8x2x8x256xf32> to vector<8x2x8x128xf32>
    %26 = arith.maximumf %24, %25 : vector<8x2x8x128xf32>
    %27 = vector.extract_strided_slice %26 {offsets = [0, 0, 0, 0], sizes = [8, 1, 8, 128], strides = [1, 1, 1, 1]} : vector<8x2x8x128xf32> to vector<8x1x8x128xf32>
    %28 = vector.shape_cast %27 : vector<8x1x8x128xf32> to vector<8x8x128xf32>
    %29 = vector.extract_strided_slice %26 {offsets = [0, 1, 0, 0], sizes = [8, 1, 8, 128], strides = [1, 1, 1, 1]} : vector<8x2x8x128xf32> to vector<8x1x8x128xf32>
    %30 = vector.shape_cast %29 : vector<8x1x8x128xf32> to vector<8x8x128xf32>
    %31 = arith.maximumf %28, %30 : vector<8x8x128xf32>
    %c0_11 = arith.constant 0 : index
    %c0_12 = arith.constant 0 : index
    %c0_13 = arith.constant 0 : index
    %c0_14 = arith.constant 0 : index
    %32 = vector.load %arg4[%c0_11, %c0_12, %c0_13, %c0_14] : memref<1x8x8x128xf32, #tpu.memory_space<vmem>>, vector<1x8x8x128xf32>
    %33 = vector.shape_cast %32 : vector<1x8x8x128xf32> to vector<8x8x128xf32>
    %34 = vector.shape_cast %31 : vector<8x8x128xf32> to vector<1x8x8x128xf32>
    tpu.vector_store %arg4[%c0_11, %c0_12, %c0_13, %c0_14], %34 {strides = array<i32>} : memref<1x8x8x128xf32, #tpu.memory_space<vmem>>, vector<1x8x8x128xf32>,
    return
  }
  func.func @transform_0(%arg0: i32) -> (i32, i32, i32, i32, i32) {
    %c0_i32 = arith.constant 0 : i32
    %c0_i32_0 = arith.constant 0 : i32
    %c0_i32_1 = arith.constant 0 : i32
    %c0_i32_2 = arith.constant 0 : i32
    %c0_i32_3 = arith.constant 0 : i32
    return %arg0, %c0_i32, %c0_i32_0, %c0_i32_1, %c0_i32_2 : i32, i32, i32, i32, i32
  }
  func.func @transform_1(%arg0: i32) -> (i32, i32) {
    %c0_i32 = arith.constant 0 : i32
    %c0_i32_0 = arith.constant 0 : i32
    %c0_i32_1 = arith.constant 0 : i32
    return %c0_i32, %c0_i32_0 : i32, i32
  }
  func.func @transform_2(%arg0: i32) -> (i32, i32) {
    %c0_i32 = arith.constant 0 : i32
    %c0_i32_0 = arith.constant 0 : i32
    %c0_i32_1 = arith.constant 0 : i32
    return %c0_i32, %c0_i32_0 : i32, i32
  }
  func.func @transform_3(%arg0: i32) -> (i32, i32, i32, i32) {
    %c0_i32 = arith.constant 0 : i32
    %c0_i32_0 = arith.constant 0 : i32
    %c0_i32_1 = arith.constant 0 : i32
    %c0_i32_2 = arith.constant 0 : i32
    return %arg0, %c0_i32, %c0_i32_0, %c0_i32_1 : i32, i32, i32, i32
  }
}

</mosaic_0001>

<bundles_post_ra>
// kernel: unet_down_forward.5
= control target key start
LH: loop header
LB: loop body
LE: loop exit
PB: predicated region body
PF: predicated region fallthrough
CT: control target
= control target key end

     0   :  { %s783_s12 = smov 0   ;;  %s1049_s0 = inlined_call_operand.vmem [shape: bf16[2,8,2,8,256], index: 0, kind: input, shape index: {}]   ;;  %s1050_s1 = inlined_call_operand.vmem [shape: f32[1,256], index: 1, kind: input, shape index: {}]   ;;  %s1051_s2 = inlined_call_operand.vmem [shape: f32[1,256], index: 2, kind: input, shape index: {}]   ;;  %s1052_s3 = inlined_call_operand.vmem [shape: f32[2,8,8,128], index: 3, kind: output, shape index: {}]  }
   0x1 LB: > { %s670_s13 = sadd.s32 4294967295, %s761_s12   ;;  %p674_p0 = scmp.ge.s32.totalorder %s761_s12, 1  ;;  %s761_s12 = sphi %s783_s12, %s13_s12  }
   0x2   : > { %p137_p1 = scmp.lt.s32.totalorder %s761_s12, 3 }
   0x4   : > { %p138_p2 = pnand %p674_p0, %p137_p1 }
   0x5   : > { %p161_p3 = scmp.lt.s32.totalorder (!%p138_p2), %s670_s13, 1 }
   0x6   : > { %141 = sbr.rel (%p138_p2) target bundleno = 131 (0x83), region = 32 }
   0xb   : > { %s1054_s13 = smov (!%p161_p3, %s670_s13), 1  ;;  %v219_v0 = vld [vmem:[%s1050_s1] sm:$0x3] }
   0xc   : > { %v257_v1 = vld [vmem:[%s1051_s2] sm:$0x3]  ;;  %s681_s18 = sshll.u32 %s1054_s13, 7  ;;  %v805_v2 = vperm.slane %v219_v0, 0  ;;  %v807_v3 = vperm.slane %v219_v0, 1  ;;  %s682_s22 = sshll.u32 %s1054_s13, 6 }
   0xd   : > { %s803_s21 = scalar_lea.vmem %s1049_s0, %s681_s18  ;;  %v811_v6 = vperm.slane %v257_v1, 0  ;;  %v813_v7 = vperm.slane %v257_v1, 1  ;;  %s903_s25 = scalar_lea.vmem %s1052_s3, %s682_s22 }
   0xe   : > { %v171_v4 = vld [vmem:[%s803_s21] sm:$0xff]  ;;  %v172_v5 = vld [vmem:[%s803_s21 + $0x8] sm:$0xff]  ;;  %v173_v8 = vld [vmem:[%s803_s21 + $0x10] sm:$0xff] }
   0xf   : > { %v187_v9 = vunpack.c.l.bf16 %v171_v4  ;;  %v188_v10 = vunpack.c.h.bf16 %v171_v4  ;;  %v189_v11 = vunpack.c.l.bf16 %v172_v5  ;;  %v190_v12 = vunpack.c.h.bf16 %v172_v5  ;;  %v174_v13 = vld [vmem:[%s803_s21 + $0x18] sm:$0xff]  ;;  %v175_v34 = vld [vmem:[%s803_s21 + $0x20] sm:$0xff]  ;;  %v176_v5 = vld [vmem:[%s803_s21 + $0x28] sm:$0xff] }
  0x10   : > { %v191_v14 = vunpack.c.l.bf16 %v173_v8  ;;  %v192_v15 = vunpack.c.h.bf16 %v173_v8  ;;  %v193_v16 = vunpack.c.l.bf16 %v174_v13  ;;  %v194_v17 = vunpack.c.h.bf16 %v174_v13 }
  0x11   : > { %v225_v18 = vmul.f32 %v805_v2, %v187_v9  ;;  %v226_v19 = vmul.f32 %v807_v3, %v188_v10  ;;  %v227_v20 = vmul.f32 %v805_v2, %v189_v11  ;;  %v228_v21 = vmul.f32 %v807_v3, %v190_v12 }
  0x12   : > { %v229_v22 = vmul.f32 %v805_v2, %v191_v14  ;;  %v230_v23 = vmul.f32 %v807_v3, %v192_v15  ;;  %v231_v24 = vmul.f32 %v805_v2, %v193_v16  ;;  %v232_v25 = vmul.f32 %v807_v3, %v194_v17 }
  0x13   : > { %v263_v26 = vadd.f32 %v811_v6, %v225_v18  ;;  %v264_v27 = vadd.f32 %v813_v7, %v226_v19  ;;  %v265_v28 = vadd.f32 %v811_v6, %v227_v20  ;;  %v266_v29 = vadd.f32 %v813_v7, %v228_v21 }
  0x14   : > { %v267_v31 = vadd.f32 %v811_v6, %v229_v22  ;;  %v268_v32 = vadd.f32 %v813_v7, %v230_v23  ;;  %v834_v33 = vadd.f32 %v811_v6, %v231_v24  ;;  %v838_v38 = vadd.f32 %v813_v7, %v232_v25 }
  0x15   : > { %v829_v30 = vmul.f32 0.5, %v263_v26  ;;  %v327_v35 = vmul.f32 0.044715, %v263_v26  ;;  %v328_v36 = vmul.f32 0.044715, %v264_v27  ;;  %v840_v39 = vmul.f32 0.5, %v264_v27 }
  0x16   : > { %v329_v37 = vmul.f32 0.044715, %v265_v28  ;;  %v842_v40 = vmul.f32 0.5, %v265_v28  ;;  %v844_v41 = vmul.f32 0.5, %v266_v29  ;;  %v330_v42 = vmul.f32 0.044715, %v266_v29 }
  0x17   : > { %v359_v43 = vmul.f32 %v327_v35, %v263_v26  ;;  %v360_v44 = vmul.f32 %v328_v36, %v264_v27  ;;  %v195_v46 = vunpack.c.l.bf16 %v175_v34  ;;  %v331_v48 = vmul.f32 0.044715, %v267_v31 }
  0x18   : > { %v361_v45 = vmul.f32 %v329_v37, %v265_v28  ;;  %v362_v47 = vmul.f32 %v330_v42, %v266_v29  ;;  %v332_v49 = vmul.f32 0.044715, %v268_v32  ;;  %v333_v50 = vmul.f32 0.044715, %v834_v33  ;;  %v873_v42 = vld [vmem:[%s803_s21 + $0x38] sm:$0xff] }
  0x19   : > { %v391_v51 = vmul.f32 %v359_v43, %v263_v26  ;;  %v392_v52 = vmul.f32 %v360_v44, %v264_v27  ;;  %v334_v54 = vmul.f32 0.044715, %v838_v38  ;;  %v363_v56 = vmul.f32 %v331_v48, %v267_v31 }
  0x1a   : > { %v393_v53 = vmul.f32 %v361_v45, %v265_v28  ;;  %v394_v55 = vmul.f32 %v362_v47, %v266_v29  ;;  %v364_v57 = vmul.f32 %v332_v49, %v268_v32  ;;  %v365_v58 = vmul.f32 %v333_v50, %v834_v33 }
  0x1b   : > { %v423_v59 = vadd.f32 %v391_v51, %v263_v26  ;;  %v424_v60 = vadd.f32 %v392_v52, %v264_v27  ;;  %v366_v62 = vmul.f32 %v334_v54, %v838_v38  ;;  %v395_v0 = vmul.f32 %v363_v56, %v267_v31 }
  0x1c   : > { %v425_v61 = vadd.f32 %v393_v53, %v265_v28  ;;  %v426_v63 = vadd.f32 %v394_v55, %v266_v29  ;;  %v396_v1 = vmul.f32 %v364_v57, %v268_v32  ;;  %v397_v4 = vmul.f32 %v365_v58, %v834_v33 }
  0x1d   : > { %v455_v8 = vmul.f32 0.7978846, %v423_v59  ;;  %v456_v9 = vmul.f32 0.7978846, %v424_v60  ;;  %v398_v11 = vmul.f32 %v366_v62, %v838_v38  ;;  %v427_v13 = vadd.f32 %v395_v0, %v267_v31 }
  0x1e   : > { %v457_v10 = vmul.f32 0.7978846, %v425_v61  ;;  %v458_v12 = vmul.f32 0.7978846, %v426_v63  ;;  %v428_v14 = vadd.f32 %v396_v1, %v268_v32  ;;  %v429_v15 = vadd.f32 %v397_v4, %v834_v33 }
  0x1f   : > { %691 = vtanh.f32 %v455_v8  ;;  %v430_v16 = vadd.f32 %v398_v11, %v838_v38  ;;  %v196_v17 = vunpack.c.h.bf16 %v175_v34  ;;  %v197_v18 = vunpack.c.l.bf16 %v176_v5  ;;  %v863_v34 = vld [vmem:[%s803_s21 + $0x30] sm:$0xff] }
  0x20   : > { %693 = vtanh.f32 %v456_v9  ;;  %v299_v19 = vmul.f32 0.5, %v267_v31  ;;  %v459_v20 = vmul.f32 0.7978846, %v427_v13  ;;  %v460_v21 = vmul.f32 0.7978846, %v428_v14 }
  0x21   : > { %695 = vtanh.f32 %v457_v10  ;;  %v461_v22 = vmul.f32 0.7978846, %v429_v15  ;;  %v198_v23 = vunpack.c.h.bf16 %v176_v5  ;;  %v233_v24 = vmul.f32 %v805_v2, %v195_v46 }
  0x22   : > { %697 = vtanh.f32 %v458_v12  ;;  %v462_v25 = vmul.f32 0.7978846, %v430_v16  ;;  %v234_v26 = vmul.f32 %v807_v3, %v196_v17  ;;  %v235_v27 = vmul.f32 %v805_v2, %v197_v18 }
  0x23   : > { %v300_v28 = vmul.f32 0.5, %v268_v32  ;;  %699 = vtanh.f32 %v459_v20  ;;  %v236_v29 = vmul.f32 %v807_v3, %v198_v23  ;;  %v860_v31 = vadd.f32 %v811_v6, %v233_v24 }
  0x24   : > { %v301_v35 = vmul.f32 0.5, %v834_v33  ;;  %701 = vtanh.f32 %v460_v21  ;;  %v867_v36 = vadd.f32 %v813_v7, %v234_v26  ;;  %v870_v37 = vadd.f32 %v811_v6, %v235_v27  ;;  %v179_v26 = vld [vmem:[%s803_s21 + $0x40] sm:$0xff] }
  0x25   : > { %v692_v32 = vpop.eup %691  ;;  %v302_v43 = vmul.f32 0.5, %v838_v38  ;;  %703 = vtanh.f32 %v461_v22  ;;  %v877_v44 = vadd.f32 %v813_v7, %v236_v29  ;;  %v335_v45 = vmul.f32 0.044715, %v860_v31 }
  0x26   : > { %v694_v46 = vpop.eup %693  ;;  %v519_v33 = vadd.f32 1.0, %v692_v32  ;;  %705 = vtanh.f32 %v462_v25  ;;  %v199_v47 = vunpack.c.l.bf16 %v863_v34  ;;  %v200_v48 = vunpack.c.h.bf16 %v863_v34 }
  0x27   : > { %v696_v49 = vpop.eup %695  ;;  %v520_v50 = vadd.f32 1.0, %v694_v46  ;;  %v336_v51 = vmul.f32 0.044715, %v867_v36  ;;  %v337_v52 = vmul.f32 0.044715, %v870_v37  ;;  %v201_v38 = vunpack.c.l.bf16 %v873_v42 }
  0x28   : > { %v698_v53 = vpop.eup %697  ;;  %v521_v54 = vadd.f32 1.0, %v696_v49  ;;  %v551_v55 = vmul.f32 %v519_v33, %v829_v30  ;;  %v338_v56 = vmul.f32 0.044715, %v877_v44  ;;  %v367_v57 = vmul.f32 %v335_v45, %v860_v31  ;;  %v180_v33 = vld [vmem:[%s803_s21 + $0x48] sm:$0xff] }
  0x29   : > { %v700_v58 = vpop.eup %699  ;;  %v522_v59 = vadd.f32 1.0, %v698_v53  ;;  %v552_v60 = vmul.f32 %v520_v50, %v840_v39  ;;  %v368_v61 = vmul.f32 %v336_v51, %v867_v36  ;;  %v369_v62 = vmul.f32 %v337_v52, %v870_v37 }
  0x2a   : > { %v702_v63 = vpop.eup %701  ;;  %v553_v0 = vmul.f32 %v521_v54, %v842_v40  ;;  %v523_v1 = vadd.f32 1.0, %v700_v58  ;;  %v370_v4 = vmul.f32 %v338_v56, %v877_v44  ;;  %v399_v30 = vmul.f32 %v367_v57, %v860_v31 }
  0x2b   : > { %v704_v5 = vpop.eup %703  ;;  %v554_v8 = vmul.f32 %v522_v59, %v844_v41  ;;  %v583_v9 = vmax.f32 %v551_v55, %v552_v60  ;;  %v524_v10 = vadd.f32 1.0, %v702_v63  ;;  %v400_v39 = vmul.f32 %v368_v61, %v867_v36 }
  0x2c   : > { %v706_v11 = vpop.eup %705  ;;  %v525_v12 = vadd.f32 1.0, %v704_v5  ;;  %v555_v13 = vmul.f32 %v523_v1, %v299_v19  ;;  %v401_v14 = vmul.f32 %v369_v62, %v870_v37  ;;  %v402_v40 = vmul.f32 %v370_v4, %v877_v44 }
  0x2d   : > { %v584_v15 = vmax.f32 %v553_v0, %v554_v8  ;;  %v526_v16 = vadd.f32 1.0, %v706_v11  ;;  %v556_v17 = vmul.f32 %v524_v10, %v300_v28  ;;  %v431_v18 = vadd.f32 %v399_v30, %v860_v31 }
  0x2e   : > { %v557_v41 = vmul.f32 %v525_v12, %v301_v35  ;;  %v432_v20 = vadd.f32 %v400_v39, %v867_v36  ;;  %v433_v19 = vadd.f32 %v401_v14, %v870_v37  ;;  %v434_v21 = vadd.f32 %v402_v40, %v877_v44 }
  0x2f   : > { %v599_v22 = vmax.f32 %v583_v9, %v584_v15  ;;  %v558_v23 = vmul.f32 %v526_v16, %v302_v43  ;;  %v585_v24 = vmax.f32 %v555_v13, %v556_v17  ;;  %v463_v25 = vmul.f32 0.7978846, %v431_v18 }
  0x30   : > { %v464_v27 = vmul.f32 0.7978846, %v432_v20  ;;  %v465_v28 = vmul.f32 0.7978846, %v433_v19  ;;  %v466_v29 = vmul.f32 0.7978846, %v434_v21  ;;  %v202_v34 = vunpack.c.h.bf16 %v873_v42 }
  0x31   : > { %607 = vst [vmem:[%s903_s25] sm:$0xff] %v599_v22  ;;  %v586_v32 = vmax.f32 %v557_v41, %v558_v23  ;;  %707 = vtanh.f32 %v463_v25  ;;  %v237_v35 = vmul.f32 %v805_v2, %v199_v47  ;;  %v238_v45 = vmul.f32 %v807_v3, %v200_v48 }
  0x32   : > { %709 = vtanh.f32 %v464_v27  ;;  %v239_v43 = vmul.f32 %v805_v2, %v201_v38  ;;  %v240_v46 = vmul.f32 %v807_v3, %v202_v34  ;;  %v203_v49 = vunpack.c.l.bf16 %v179_v26 }
  0x33   : > { %v600_v50 = vmax.f32 %v585_v24, %v586_v32  ;;  %711 = vtanh.f32 %v465_v28  ;;  %v275_v51 = vadd.f32 %v811_v6, %v237_v35  ;;  %v276_v42 = vadd.f32 %v813_v7, %v238_v45 }
  0x34   : > { %713 = vtanh.f32 %v466_v29  ;;  %v277_v52 = vadd.f32 %v811_v6, %v239_v43  ;;  %v278_v47 = vadd.f32 %v813_v7, %v240_v46  ;;  %v204_v53 = vunpack.c.h.bf16 %v179_v26  ;;  %v181_v43 = vld [vmem:[%s803_s21 + $0x50] sm:$0xff] }
  0x35   : > { %608 = vst [vmem:[%s903_s25 + $0x8] sm:$0xff] %v600_v50  ;;  %v303_v48 = vmul.f32 0.5, %v860_v31  ;;  %v304_v38 = vmul.f32 0.5, %v867_v36  ;;  %v339_v54 = vmul.f32 0.044715, %v275_v51  ;;  %v205_v55 = vunpack.c.l.bf16 %v180_v33  ;;  %v182_v50 = vld [vmem:[%s803_s21 + $0x58] sm:$0xff] }
  0x36   : > { %v305_v56 = vmul.f32 0.5, %v870_v37  ;;  %v306_v57 = vmul.f32 0.5, %v877_v44  ;;  %v340_v58 = vmul.f32 0.044715, %v276_v42  ;;  %v341_v59 = vmul.f32 0.044715, %v277_v52 }
  0x37   : > { %v708_v60 = vpop.eup %707  ;;  %v342_v61 = vmul.f32 0.044715, %v278_v47  ;;  %v371_v62 = vmul.f32 %v339_v54, %v275_v51  ;;  %v206_v63 = vunpack.c.h.bf16 %v180_v33  ;;  %v241_v0 = vmul.f32 %v805_v2, %v203_v49 }
  0x38   : > { %v710_v1 = vpop.eup %709  ;;  %v527_v4 = vadd.f32 1.0, %v708_v60  ;;  %v372_v30 = vmul.f32 %v340_v58, %v276_v42  ;;  %v373_v31 = vmul.f32 %v341_v59, %v277_v52  ;;  %v242_v36 = vmul.f32 %v807_v3, %v204_v53 }
  0x39   : > { %v712_v5 = vpop.eup %711  ;;  %v528_v8 = vadd.f32 1.0, %v710_v1  ;;  %v374_v9 = vmul.f32 %v342_v61, %v278_v47  ;;  %v403_v37 = vmul.f32 %v371_v62, %v275_v51  ;;  %v243_v44 = vmul.f32 %v805_v2, %v205_v55 }
  0x3a   : > { %v714_v10 = vpop.eup %713  ;;  %v529_v39 = vadd.f32 1.0, %v712_v5  ;;  %v559_v11 = vmul.f32 %v527_v4, %v303_v48  ;;  %v404_v12 = vmul.f32 %v372_v30, %v276_v42  ;;  %v405_v13 = vmul.f32 %v373_v31, %v277_v52 }
  0x3b   : > { %v530_v14 = vadd.f32 1.0, %v714_v10  ;;  %v560_v40 = vmul.f32 %v528_v8, %v304_v38  ;;  %v406_v15 = vmul.f32 %v374_v9, %v278_v47  ;;  %v435_v16 = vadd.f32 %v403_v37, %v275_v51 }
  0x3c   : > { %v561_v17 = vmul.f32 %v529_v39, %v305_v56  ;;  %v436_v18 = vadd.f32 %v404_v12, %v276_v42  ;;  %v437_v41 = vadd.f32 %v405_v13, %v277_v52  ;;  %v244_v20 = vmul.f32 %v807_v3, %v206_v63 }
  0x3d   : > { %v562_v19 = vmul.f32 %v530_v14, %v306_v57  ;;  %v587_v21 = vmax.f32 %v559_v11, %v560_v40  ;;  %v438_v22 = vadd.f32 %v406_v15, %v278_v47  ;;  %v467_v23 = vmul.f32 0.7978846, %v435_v16 }
  0x3e   : > { %v468_v24 = vmul.f32 0.7978846, %v436_v18  ;;  %v469_v25 = vmul.f32 0.7978846, %v437_v41  ;;  %v930_v26 = vadd.f32 %v811_v6, %v241_v0  ;;  %v933_v27 = vadd.f32 %v813_v7, %v242_v36 }
  0x3f   : > { %v588_v28 = vmax.f32 %v561_v17, %v562_v19  ;;  %v470_v29 = vmul.f32 0.7978846, %v438_v22  ;;  %715 = vtanh.f32 %v467_v23  ;;  %v936_v34 = vadd.f32 %v811_v6, %v243_v44 }
  0x40   : > { %v307_v32 = vmul.f32 0.5, %v275_v51  ;;  %v308_v35 = vmul.f32 0.5, %v276_v42  ;;  %717 = vtanh.f32 %v468_v24  ;;  %v939_v45 = vadd.f32 %v813_v7, %v244_v20 }
  0x41   : > { %v601_v46 = vmax.f32 %v587_v21, %v588_v28  ;;  %v309_v33 = vmul.f32 0.5, %v277_v52  ;;  %719 = vtanh.f32 %v469_v25  ;;  %v343_v49 = vmul.f32 0.044715, %v930_v26 }
  0x42   : > { %v310_v53 = vmul.f32 0.5, %v278_v47  ;;  %721 = vtanh.f32 %v470_v29  ;;  %v344_v48 = vmul.f32 0.044715, %v933_v27  ;;  %v345_v38 = vmul.f32 0.044715, %v936_v34  ;;  %v183_v29 = vld [vmem:[%s803_s21 + $0x60] sm:$0xff] }
  0x43   : > { %609 = vst [vmem:[%s903_s25 + $0x10] sm:$0xff] %v601_v46  ;;  %v346_v51 = vmul.f32 0.044715, %v939_v45  ;;  %v375_v42 = vmul.f32 %v343_v49, %v930_v26  ;;  %v207_v54 = vunpack.c.l.bf16 %v181_v43  ;;  %v208_v55 = vunpack.c.h.bf16 %v181_v43 }
  0x44   : > { %v376_v56 = vmul.f32 %v344_v48, %v933_v27  ;;  %v377_v52 = vmul.f32 %v345_v38, %v936_v34  ;;  %v209_v57 = vunpack.c.l.bf16 %v182_v50  ;;  %v210_v58 = vunpack.c.h.bf16 %v182_v50 }
  0x45   : > { %v716_v59 = vpop.eup %715  ;;  %v378_v47 = vmul.f32 %v346_v51, %v939_v45  ;;  %v407_v60 = vmul.f32 %v375_v42, %v930_v26  ;;  %v245_v61 = vmul.f32 %v805_v2, %v207_v54  ;;  %v246_v62 = vmul.f32 %v807_v3, %v208_v55 }
  0x46   : > { %v718_v63 = vpop.eup %717  ;;  %v531_v0 = vadd.f32 1.0, %v716_v59  ;;  %v408_v1 = vmul.f32 %v376_v56, %v933_v27  ;;  %v409_v4 = vmul.f32 %v377_v52, %v936_v34  ;;  %v247_v30 = vmul.f32 %v805_v2, %v209_v57 }
  0x47   : > { %v720_v31 = vpop.eup %719  ;;  %v532_v36 = vadd.f32 1.0, %v718_v63  ;;  %v410_v5 = vmul.f32 %v378_v47, %v939_v45  ;;  %v439_v8 = vadd.f32 %v407_v60, %v930_v26  ;;  %v248_v9 = vmul.f32 %v807_v3, %v210_v58 }
  0x48   : > { %v722_v37 = vpop.eup %721  ;;  %v533_v44 = vadd.f32 1.0, %v720_v31  ;;  %v563_v10 = vmul.f32 %v531_v0, %v307_v32  ;;  %v440_v39 = vadd.f32 %v408_v1, %v933_v27  ;;  %v441_v11 = vadd.f32 %v409_v4, %v936_v34  ;;  %v184_v32 = vld [vmem:[%s803_s21 + $0x68] sm:$0xff] }
  0x49   : > { %v534_v12 = vadd.f32 1.0, %v722_v37  ;;  %v564_v13 = vmul.f32 %v532_v36, %v308_v35  ;;  %v442_v14 = vadd.f32 %v410_v5, %v939_v45  ;;  %v471_v40 = vmul.f32 0.7978846, %v439_v8 }
  0x4a   : > { %v565_v15 = vmul.f32 %v533_v44, %v309_v33  ;;  %v472_v16 = vmul.f32 0.7978846, %v440_v39  ;;  %v473_v17 = vmul.f32 0.7978846, %v441_v11  ;;  %v965_v18 = vadd.f32 %v811_v6, %v245_v61 }
  0x4b   : > { %v566_v41 = vmul.f32 %v534_v12, %v310_v53  ;;  %v589_v20 = vmax.f32 %v563_v10, %v564_v13  ;;  %v474_v19 = vmul.f32 0.7978846, %v442_v14  ;;  %723 = vtanh.f32 %v471_v40 }
  0x4c   : > { %725 = vtanh.f32 %v472_v16  ;;  %v284_v21 = vadd.f32 %v813_v7, %v246_v62  ;;  %v969_v22 = vadd.f32 %v811_v6, %v247_v30  ;;  %v972_v23 = vadd.f32 %v813_v7, %v248_v9 }
  0x4d   : > { %v590_v24 = vmax.f32 %v565_v15, %v566_v41  ;;  %v311_v25 = vmul.f32 0.5, %v930_v26  ;;  %727 = vtanh.f32 %v473_v17  ;;  %v347_v28 = vmul.f32 0.044715, %v965_v18 }
  0x4e   : > { %v312_v35 = vmul.f32 0.5, %v933_v27  ;;  %v313_v43 = vmul.f32 0.5, %v936_v34  ;;  %v314_v46 = vmul.f32 0.5, %v939_v45  ;;  %729 = vtanh.f32 %v474_v19 }
  0x4f   : > { %v602_v33 = vmax.f32 %v589_v20, %v590_v24  ;;  %v348_v49 = vmul.f32 0.044715, %v284_v21  ;;  %v349_v50 = vmul.f32 0.044715, %v969_v22  ;;  %v350_v53 = vmul.f32 0.044715, %v972_v23 }
  0x50   : > { %v379_v26 = vmul.f32 %v347_v28, %v965_v18  ;;  %v211_v48 = vunpack.c.l.bf16 %v183_v29  ;;  %v212_v38 = vunpack.c.h.bf16 %v183_v29  ;;  %v213_v51 = vunpack.c.l.bf16 %v184_v32  ;;  %v186_v28 = vld [vmem:[%s803_s21 + $0x78] sm:$0xff] }
  0x51   : > { %v724_v42 = vpop.eup %723  ;;  %610 = vst [vmem:[%s903_s25 + $0x18] sm:$0xff] %v602_v33  ;;  %v380_v54 = vmul.f32 %v348_v49, %v284_v21  ;;  %v381_v27 = vmul.f32 %v349_v50, %v969_v22  ;;  %v382_v34 = vmul.f32 %v350_v53, %v972_v23  ;;  %v214_v45 = vunpack.c.h.bf16 %v184_v32 }
  0x52   : > { %v726_v55 = vpop.eup %725  ;;  %v535_v56 = vadd.f32 1.0, %v724_v42  ;;  %v411_v52 = vmul.f32 %v379_v26, %v965_v18  ;;  %v249_v57 = vmul.f32 %v805_v2, %v211_v48  ;;  %v250_v58 = vmul.f32 %v807_v3, %v212_v38 }
  0x53   : > { %v728_v59 = vpop.eup %727  ;;  %v536_v47 = vadd.f32 1.0, %v726_v55  ;;  %v412_v60 = vmul.f32 %v380_v54, %v284_v21  ;;  %v413_v61 = vmul.f32 %v381_v27, %v969_v22  ;;  %v414_v62 = vmul.f32 %v382_v34, %v972_v23 }
  0x54   : > { %v730_v63 = vpop.eup %729  ;;  %v537_v0 = vadd.f32 1.0, %v728_v59  ;;  %v567_v1 = vmul.f32 %v535_v56, %v311_v25  ;;  %v443_v4 = vadd.f32 %v411_v52, %v965_v18  ;;  %v251_v30 = vmul.f32 %v805_v2, %v213_v51  ;;  %v185_v25 = vld [vmem:[%s803_s21 + $0x70] sm:$0xff] }
  0x55   : > { %v538_v31 = vadd.f32 1.0, %v730_v63  ;;  %v568_v36 = vmul.f32 %v536_v47, %v312_v35  ;;  %v444_v5 = vadd.f32 %v412_v60, %v284_v21  ;;  %v445_v8 = vadd.f32 %v413_v61, %v969_v22 }
  0x56   : > { %v569_v9 = vmul.f32 %v537_v0, %v313_v43  ;;  %v446_v37 = vadd.f32 %v414_v62, %v972_v23  ;;  %v475_v44 = vmul.f32 0.7978846, %v443_v4  ;;  %v252_v10 = vmul.f32 %v807_v3, %v214_v45 }
  0x57   : > { %v570_v39 = vmul.f32 %v538_v31, %v314_v46  ;;  %v591_v11 = vmax.f32 %v567_v1, %v568_v36  ;;  %v476_v12 = vmul.f32 0.7978846, %v444_v5  ;;  %v477_v13 = vmul.f32 0.7978846, %v445_v8 }
  0x58   : > { %v478_v14 = vmul.f32 0.7978846, %v446_v37  ;;  %731 = vtanh.f32 %v475_v44  ;;  %v998_v40 = vadd.f32 %v811_v6, %v249_v57  ;;  %v1001_v15 = vadd.f32 %v813_v7, %v250_v58 }
  0x59   : > { %v592_v16 = vmax.f32 %v569_v9, %v570_v39  ;;  %733 = vtanh.f32 %v476_v12  ;;  %v1004_v17 = vadd.f32 %v811_v6, %v251_v30  ;;  %v1007_v41 = vadd.f32 %v813_v7, %v252_v10 }
  0x5a   : > { %v315_v20 = vmul.f32 0.5, %v965_v18  ;;  %v316_v19 = vmul.f32 0.5, %v284_v21  ;;  %735 = vtanh.f32 %v477_v13  ;;  %v351_v24 = vmul.f32 0.044715, %v998_v40 }
  0x5b   : > { %v603_v29 = vmax.f32 %v591_v11, %v592_v16  ;;  %v317_v32 = vmul.f32 0.5, %v969_v22  ;;  %v318_v35 = vmul.f32 0.5, %v972_v23  ;;  %737 = vtanh.f32 %v478_v14 }
  0x5c   : > { %v352_v43 = vmul.f32 0.044715, %v1001_v15  ;;  %v353_v46 = vmul.f32 0.044715, %v1004_v17  ;;  %v354_v33 = vmul.f32 0.044715, %v1007_v41  ;;  %v383_v18 = vmul.f32 %v351_v24, %v998_v40 }
  0x5d   : > { %611 = vst [vmem:[%s903_s25 + $0x20] sm:$0xff] %v603_v29  ;;  %v215_v21 = vunpack.c.l.bf16 %v185_v25  ;;  %v216_v49 = vunpack.c.h.bf16 %v185_v25  ;;  %v217_v50 = vunpack.c.l.bf16 %v186_v28  ;;  %v218_v53 = vunpack.c.h.bf16 %v186_v28 }
  0x5e   : > { %v732_v26 = vpop.eup %731  ;;  %v384_v48 = vmul.f32 %v352_v43, %v1001_v15  ;;  %v385_v22 = vmul.f32 %v353_v46, %v1004_v17  ;;  %v386_v23 = vmul.f32 %v354_v33, %v1007_v41  ;;  %v415_v38 = vmul.f32 %v383_v18, %v998_v40 }
  0x5f   : > { %v734_v51 = vpop.eup %733  ;;  %v539_v42 = vadd.f32 1.0, %v732_v26  ;;  %v253_v54 = vmul.f32 %v805_v2, %v215_v21  ;;  %v254_v27 = vmul.f32 %v807_v3, %v216_v49  ;;  %v255_v34 = vmul.f32 %v805_v2, %v217_v50 }
  0x60   : > { %v736_v45 = vpop.eup %735  ;;  %v540_v55 = vadd.f32 1.0, %v734_v51  ;;  %v416_v56 = vmul.f32 %v384_v48, %v1001_v15  ;;  %v417_v52 = vmul.f32 %v385_v22, %v1004_v17  ;;  %v418_v57 = vmul.f32 %v386_v23, %v1007_v41 }
  0x61   : > { %v738_v58 = vpop.eup %737  ;;  %v541_v59 = vadd.f32 1.0, %v736_v45  ;;  %v571_v47 = vmul.f32 %v539_v42, %v315_v20  ;;  %v447_v60 = vadd.f32 %v415_v38, %v998_v40  ;;  %v256_v61 = vmul.f32 %v807_v3, %v218_v53 }
  0x62   : > { %v542_v62 = vadd.f32 1.0, %v738_v58  ;;  %v572_v63 = vmul.f32 %v540_v55, %v316_v19  ;;  %v448_v0 = vadd.f32 %v416_v56, %v1001_v15  ;;  %v449_v2 = vadd.f32 %v417_v52, %v1004_v17 }
  0x63   : > { %v573_v1 = vmul.f32 %v541_v59, %v317_v32  ;;  %v450_v4 = vadd.f32 %v418_v57, %v1007_v41  ;;  %v479_v30 = vmul.f32 0.7978846, %v447_v60  ;;  %v291_v31 = vadd.f32 %v811_v6, %v253_v54 }
  0x64   : > { %v574_v36 = vmul.f32 %v542_v62, %v318_v35  ;;  %v593_v5 = vmax.f32 %v571_v47, %v572_v63  ;;  %v480_v8 = vmul.f32 0.7978846, %v448_v0  ;;  %v481_v9 = vmul.f32 0.7978846, %v449_v2 }
  0x65   : > { %v482_v37 = vmul.f32 0.7978846, %v450_v4  ;;  %739 = vtanh.f32 %v479_v30  ;;  %v292_v3 = vadd.f32 %v813_v7, %v254_v27  ;;  %v293_v44 = vadd.f32 %v811_v6, %v255_v34 }
  0x66   : > { %v594_v10 = vmax.f32 %v573_v1, %v574_v36  ;;  %741 = vtanh.f32 %v480_v8  ;;  %v294_v39 = vadd.f32 %v813_v7, %v256_v61  ;;  %v355_v11 = vmul.f32 0.044715, %v291_v31 }
  0x67   : > { %743 = vtanh.f32 %v481_v9  ;;  %v356_v13 = vmul.f32 0.044715, %v292_v3  ;;  %v357_v14 = vmul.f32 0.044715, %v293_v44  ;;  %v319_v19 = vmul.f32 0.5, %v998_v40 }
  0x68   : > { %v604_v12 = vmax.f32 %v593_v5, %v594_v10  ;;  %745 = vtanh.f32 %v482_v37  ;;  %v358_v16 = vmul.f32 0.044715, %v294_v39  ;;  %v387_v20 = vmul.f32 %v355_v11, %v291_v31 }
  0x69   : > { %v388_v24 = vmul.f32 %v356_v13, %v292_v3  ;;  %v320_v28 = vmul.f32 0.5, %v1001_v15  ;;  %v389_v6 = vmul.f32 %v357_v14, %v293_v44  ;;  %v321_v7 = vmul.f32 0.5, %v1004_v17 }
  0x6a   : > { %612 = vst [vmem:[%s903_s25 + $0x28] sm:$0xff] %v604_v12  ;;  %v390_v29 = vmul.f32 %v358_v16, %v294_v39  ;;  %v419_v32 = vmul.f32 %v387_v20, %v291_v31  ;;  %v322_v43 = vmul.f32 0.5, %v1007_v41  ;;  %v323_v52 = vmul.f32 0.5, %v291_v31 }
  0x6b   : > { %v740_v25 = vpop.eup %739  ;;  %v420_v33 = vmul.f32 %v388_v24, %v292_v3  ;;  %v421_v49 = vmul.f32 %v389_v6, %v293_v44  ;;  %v324_v58 = vmul.f32 0.5, %v292_v3  ;;  %v325_v47 = vmul.f32 0.5, %v293_v44 }
  0x6c   : > { %v742_v35 = vpop.eup %741  ;;  %v543_v46 = vadd.f32 1.0, %v740_v25  ;;  %v422_v50 = vmul.f32 %v390_v29, %v294_v39  ;;  %v451_v53 = vadd.f32 %v419_v32, %v291_v31  ;;  %v326_v62 = vmul.f32 0.5, %v294_v39 }
  0x6d   : > { %v744_v18 = vpop.eup %743  ;;  %v544_v21 = vadd.f32 1.0, %v742_v35  ;;  %v452_v22 = vadd.f32 %v420_v33, %v292_v3  ;;  %v453_v38 = vadd.f32 %v421_v49, %v293_v44 }
  0x6e   : > { %v746_v40 = vpop.eup %745  ;;  %v545_v26 = vadd.f32 1.0, %v744_v18  ;;  %v575_v48 = vmul.f32 %v543_v46, %v319_v19  ;;  %v454_v51 = vadd.f32 %v422_v50, %v294_v39  ;;  %v483_v17 = vmul.f32 0.7978846, %v451_v53 }
  0x6f   : > { %v546_v15 = vadd.f32 1.0, %v746_v40  ;;  %v576_v23 = vmul.f32 %v544_v21, %v320_v28  ;;  %v484_v54 = vmul.f32 0.7978846, %v452_v22  ;;  %v485_v34 = vmul.f32 0.7978846, %v453_v38 }
  0x70   : > { %v577_v42 = vmul.f32 %v545_v26, %v321_v7  ;;  %v486_v45 = vmul.f32 0.7978846, %v454_v51  ;;  %747 = vtanh.f32 %v483_v17 }
  0x71   : > { %v578_v41 = vmul.f32 %v546_v15, %v322_v43  ;;  %v595_v27 = vmax.f32 %v575_v48, %v576_v23  ;;  %749 = vtanh.f32 %v484_v54 }
  0x72   : > { %751 = vtanh.f32 %v485_v34 }
  0x73   : > { %v596_v55 = vmax.f32 %v577_v42, %v578_v41  ;;  %753 = vtanh.f32 %v486_v45 }
  0x75   : > { %v605_v56 = vmax.f32 %v595_v27, %v596_v55 }
  0x76   : > { %v748_v57 = vpop.eup %747 }
  0x77   : > { %613 = vst [vmem:[%s903_s25 + $0x30] sm:$0xff] %v605_v56  ;;  %v750_v59 = vpop.eup %749  ;;  %v547_v60 = vadd.f32 1.0, %v748_v57 }
  0x78   : > { %v752_v61 = vpop.eup %751  ;;  %v548_v63 = vadd.f32 1.0, %v750_v59 }
  0x79   : > { %v754_v0 = vpop.eup %753  ;;  %v549_v2 = vadd.f32 1.0, %v752_v61  ;;  %v579_v1 = vmul.f32 %v547_v60, %v323_v52 }
  0x7a   : > { %v550_v4 = vadd.f32 1.0, %v754_v0  ;;  %v580_v30 = vmul.f32 %v548_v63, %v324_v58 }
  0x7b   : > { %v581_v36 = vmul.f32 %v549_v2, %v325_v47 }
  0x7c   : > { %v582_v5 = vmul.f32 %v550_v4, %v326_v62  ;;  %v597_v8 = vmax.f32 %v579_v1, %v580_v30 }
  0x7e   : > { %v598_v9 = vmax.f32 %v581_v36, %v582_v5 }
  0x80   : > { %v606_v37 = vmax.f32 %v597_v8, %v598_v9 }
  0x82   : > { %614 = vst [vmem:[%s903_s25 + $0x38] sm:$0xff] %v606_v37 }
  0x83 PF: > { %s13_s12 = sadd.s32 1, %s761_s12  }
  0x84   : > { %p10_p4 = scmp.ge.s32.totalorder %s13_s12, 4  }
  0x86   :  { %12 = sbr.rel (!%p10_p4) target bundleno = 1 (0x1), region = 62 }

// kernel: unet_down_forward.3
= control target key start
LH: loop header
LB: loop body
LE: loop exit
PB: predicated region body
PF: predicated region fallthrough
CT: control target
= control target key end

     0   :  { %s2702_s12 = smov 0   ;;  %s3554_s0 = inlined_call_operand.vmem [shape: bf16[2,16,16,4], index: 0, kind: input, shape index: {}]   ;;  %s3555_s1 = inlined_call_operand.vmem [shape: bf16[3,12,128], index: 1, kind: input, shape index: {}]   ;;  %s3556_s2 = inlined_call_operand.vmem [shape: bf16[2,16,16,128], index: 2, kind: output, shape index: {0}]   ;;  %s3557_s3 = inlined_call_operand.vmem [shape: f32[2,2,128], index: 3, kind: output, shape index: {1}]  }
   0x1 LB: > { %s2385_s13 = sadd.s32 4294967295, %s2677_s12   ;;  %p2389_p0 = scmp.ge.s32.totalorder %s2677_s12, 1  ;;  %s2677_s12 = sphi %s2702_s12, %s14_s12  }
   0x2   : > { %p140_p1 = scmp.lt.s32.totalorder %s2677_s12, 3 }
   0x4   : > { %p141_p2 = pnand %p2389_p0, %p140_p1 }
   0x5   : > { %p168_p3 = scmp.lt.s32.totalorder (!%p141_p2), %s2385_s13, 1  ;;  %s2679_s18 = smov (!%p141_p2), 8  }
   0x6   : > { %144 = sbr.rel (%p141_p2) target bundleno = 523 (0x20b), region = 28  ;;  %s2680_s19 = smov (!%p141_p2), 4  }
   0xb   : > { %s3567_s13 = smov (!%p168_p3, %s2385_s13), 1  ;;  %vm317_vm0 = vcmask 27648   ;;  %v2681_v23 = vmov 0   ;;  %vm321_vm1 = vcmask 93248   ;;  %vm215_vm2 = vcmask 93187  }
   0xc   : > { %s2541_s14 = sshll.u32 %s3567_s13, 7  ;;  %318 = vst.msk [vmem:[#allocation2 + $0x4] sm:$0xf] %vm317_vm0, %v2681_v23  ;;  %vm216_vm3 = vsmask.f32 7950  ;;  %vm483_vm5 = vcmask 60448  }
   0xd   : > { %s2718_s17 = scalar_lea.vmem %s3554_s0, %s2541_s14  ;;  %319 = vst.msk [vmem:[#allocation2 + $0x8] sm:$0xf] %vm317_vm0, %v2681_v23  ;;  %vm2813_vm4 = vmand %vm215_vm2, %vm216_vm3  ;;  %v218_v25 = vld [vmem:[#allocation2] sm:$0x8]  ;;  %vm267_vm6 = vsmask.f32 256  ;;  %s3365_s7 = scalar_lea.vmem %s3556_s2, %s2541_s14 }
   0xe   : > { %v185_v0 = vld [vmem:[%s2718_s17 + $0x8] sm:$0xf]  ;;  %v183_v1 = vld [vmem:[%s2718_s17] sm:$0xf]  ;;  %v186_v2 = vld [vmem:[%s2718_s17 + $0xc] sm:$0xf] }
   0xf   : > { %516 = vrot.lane.b32.xlu1 %v185_v0, %s2679_s18  ;;  %387 = vrot.lane.b32.xlu0 %v183_v1, %s2680_s19  ;;  %325 = vst.msk [vmem:[#allocation2 + $0x14] sm:$0xf] %vm317_vm0, %v183_v1  ;;  %v184_v3 = vld [vmem:[%s2718_s17 + $0x4] sm:$0xf]  ;;  %v188_v4 = vld [vmem:[%s2718_s17 + $0x14] sm:$0xf] }
  0x10   : > { %327 = vst.msk [vmem:[#allocation2 + $0x24] sm:$0xf] %vm317_vm0, %v185_v0  ;;  %391 = vrot.lane.b32.xlu2 %v185_v0, %s2680_s19  ;;  %v187_v5 = vld [vmem:[%s2718_s17 + $0x10] sm:$0xf]  ;;  %v209_v6 = vld [vmem:[%s2718_s17 + $0x68] sm:$0xf] }
  0x11   : > { %328 = vst.msk [vmem:[#allocation2 + $0x28] sm:$0xf] %vm317_vm0, %v186_v2  ;;  %v2738_v7 = vld [vmem:[%s2718_s17 + $0x64] sm:$0xf]  ;;  %v190_v8 = vld [vmem:[%s2718_s17 + $0x1c] sm:$0xf] }
  0x12   : > { %326 = vst.msk [vmem:[#allocation2 + $0x18] sm:$0xf] %vm317_vm0, %v184_v3  ;;  %v2747_v9 = vld [vmem:[%s2718_s17 + $0x60] sm:$0xf]  ;;  %v210_v10 = vld [vmem:[%s2718_s17 + $0x6c] sm:$0xf] }
  0x13   : > { %330 = vst.msk [vmem:[#allocation2 + $0x38] sm:$0xf] %vm317_vm0, %v188_v4  ;;  %v191_v11 = vld [vmem:[%s2718_s17 + $0x20] sm:$0xf]  ;;  %v189_v12 = vld [vmem:[%s2718_s17 + $0x18] sm:$0xf] }
  0x14   : > { %329 = vst.msk [vmem:[#allocation2 + $0x34] sm:$0xf] %vm317_vm0, %v187_v5  ;;  %v194_v13 = vld [vmem:[%s2718_s17 + $0x2c] sm:$0xf]  ;;  %v212_v14 = vld [vmem:[%s2718_s17 + $0x74] sm:$0xf] }
  0x15   : > { %351 = vst.msk [vmem:[#allocation2 + $0xe4] sm:$0xf] %vm317_vm0, %v209_v6  ;;  %v211_v15 = vld [vmem:[%s2718_s17 + $0x70] sm:$0xf]  ;;  %v193_v16 = vld [vmem:[%s2718_s17 + $0x28] sm:$0xf] }
  0x16   : > { %350 = vst.msk [vmem:[#allocation2 + $0xd8] sm:$0xf] %vm317_vm0, %v2738_v7  ;;  %v192_v17 = vld [vmem:[%s2718_s17 + $0x24] sm:$0xf]  ;;  %v2786_v18 = vld [vmem:[%s2718_s17 + $0x34] sm:$0xf] }
  0x17   : > { %518 = vrot.lane.b32.xlu1 %v186_v2, %s2679_s18  ;;  %389 = vrot.lane.b32.xlu0 %v184_v3, %s2680_s19  ;;  %332 = vst.msk [vmem:[#allocation2 + $0x48] sm:$0xf] %vm317_vm0, %v190_v8  ;;  %v213_v19 = vld [vmem:[%s2718_s17 + $0x78] sm:$0xf]  ;;  %v195_v20 = vld [vmem:[%s2718_s17 + $0x30] sm:$0xf] }
  0x18   : > { %393 = vrot.lane.b32.xlu2 %v186_v2, %s2680_s19  ;;  %349 = vst.msk [vmem:[#allocation2 + $0xd4] sm:$0xf] %vm317_vm0, %v2747_v9  ;;  %v214_v21 = vld [vmem:[%s2718_s17 + $0x7c] sm:$0xf]  ;;  %v2801_v22 = vld [vmem:[%s2718_s17 + $0x38] sm:$0xf] }
  0x19   : > { %352 = vst.msk [vmem:[#allocation2 + $0xe8] sm:$0xf] %vm317_vm0, %v210_v10  ;;  %v219_v26 = vsel %vm2813_vm4, 0, %v218_v25  ;;  %v198_v27 = vld [vmem:[%s2718_s17 + $0x3c] sm:$0xf]  ;;  %vm266_vm7 = vcmask 90112  }
  0x1a   : > { %333 = vst.msk [vmem:[#allocation2 + $0x54] sm:$0xf] %vm317_vm0, %v191_v11  ;;  %v2828_v29 = vld [vmem:[%s2718_s17 + $0x44] sm:$0xf]  ;;  %v2479_v30 = vld [vmem:[%s3555_s1 + $0x8] sm:$0xf]  ;;  %vm2842_vm8 = vmand %vm266_vm7, %vm267_vm6 }
  0x1b   : > { %331 = vst.msk [vmem:[#allocation2 + $0x44] sm:$0xf] %vm317_vm0, %v189_v12  ;;  %v2560_v31 = vld [vmem:[%s3555_s1 + $0x8] sm:$0x30]  ;;  %vm1177_vm9 = vcmask 1045504   ;;  %vm1128_vm12 = vcmask 97280  }
  0x1c   : > { %336 = vst.msk [vmem:[#allocation2 + $0x68] sm:$0xf] %vm317_vm0, %v194_v13  ;;  %v2480_v32 = vor.u32 %v2560_v31, %v2479_v30  ;;  %v269_v34 = vld [vmem:[#allocation2 + $0xc] sm:$0x1]  ;;  %v2852_v38 = vld [vmem:[%s2718_s17 + $0x58] sm:$0xf] }
  0x1d   : > { %335 = vst.msk [vmem:[#allocation2 + $0x64] sm:$0xf] %vm317_vm0, %v193_v16  ;;  %v270_v35 = vsel %vm2842_vm8, 0, %v269_v34  ;;  %v199_v39 = vld [vmem:[%s2718_s17 + $0x40] sm:$0xf]  ;;  %s2394_s8 = sshll.u32 %s3567_s13, 1 }
  0x1e   : > { %334 = vst.msk [vmem:[#allocation2 + $0x58] sm:$0xf] %vm317_vm0, %v192_v17  ;;  %v1179_v36 = vsel %vm1177_vm9, %v2480_v32, 0  ;;  %v221_v40 = vld [vmem:[#allocation2 + $0x10] sm:$0x8]  ;;  %s181_s11 = scalar_lea.vmem %s3557_s3, %s2394_s8 }
  0x1f   : > { %522 = vrot.lane.b32.xlu1 %v188_v4, %s2679_s18  ;;  %520 = vrot.lane.b32.xlu0 %v187_v5, %s2679_s18  ;;  %338 = vst.msk [vmem:[#allocation2 + $0x78] sm:$0xf] %vm317_vm0, %v2786_v18  ;;  %v222_v41 = vsel %vm2813_vm4, 0, %v221_v40  ;;  %v272_v42 = vld [vmem:[#allocation2 + $0x1c] sm:$0x1] }
  0x20   : > { %435 = vrot.lane.b32.xlu2 %v2747_v9, %s2680_s19  ;;  %337 = vst.msk [vmem:[#allocation2 + $0x74] sm:$0xf] %vm317_vm0, %v195_v20  ;;  %1188 = vmatpush.bf16.msra.mxu0 %v1179_v36  ;;  %v273_v43 = vsel %vm2842_vm8, 0, %v272_v42  ;;  %v2499_v44 = vld [vmem:[%s3555_s1] sm:$0xf] }
  0x21   : > { %339 = vst.msk [vmem:[#allocation2 + $0x84] sm:$0xf] %vm317_vm0, %v2801_v22  ;;  %2657 = vmatpush.bf16.msra.mxu3 %v1179_v36  ;;  %v2559_v45 = vld [vmem:[%s3555_s1] sm:$0x30]  ;;  %v2874_v46 = vld [vmem:[%s2718_s17 + $0x5c] sm:$0xf] }
  0x22   : > { %322 = vst.msk [vmem:[#allocation2 + $0xf4] sm:$0xf] %vm321_vm1, %v2681_v23  ;;  %v2500_v47 = vor.u32 %v2559_v45, %v2499_v44  ;;  %v2521_v49 = vld [vmem:[%s3555_s1 + $0x10] sm:$0xf]  ;;  %v2561_v50 = vld [vmem:[%s3555_s1 + $0x10] sm:$0x30] }
  0x23   : > { %323 = vst.msk [vmem:[#allocation2 + $0xf8] sm:$0xf] %vm321_vm1, %v2681_v23  ;;  %v2887_v52 = vld [vmem:[%s2718_s17 + $0x4c] sm:$0xf]  ;;  %v2522_v53 = vor.u32 %v2561_v50, %v2521_v49  ;;  %v201_v54 = vld [vmem:[%s2718_s17 + $0x48] sm:$0xf] }
  0x24   : > { %353 = vst.msk [vmem:[#allocation2 + $0xf4] sm:$0xf] %vm317_vm0, %v211_v15  ;;  %v1372_v51 = vsel %vm1177_vm9, %v2500_v47, 0  ;;  %v254_v56 = vld [vmem:[#allocation2 + $0xc0] sm:$0x8] }
  0x25   : > { %354 = vst.msk [vmem:[#allocation2 + $0xf8] sm:$0xf] %vm317_vm0, %v212_v14  ;;  %1381 = vmatpush.bf16.msra.mxu1 %v1372_v51  ;;  %2658 = vmatpush.bf16.msrb.mxu3 %v1372_v51  ;;  %v2894_v55 = vsel %vm1177_vm9, %v2522_v53, 0  ;;  %v255_v57 = vsel %vm2813_vm4, 0, %v254_v56  ;;  %v305_v60 = vld [vmem:[#allocation2 + $0xcc] sm:$0x1] }
  0x26   : > { %220 = vst [vmem:[#allocation2] sm:$0x8] %v219_v26  ;;  %2012 = vmatpush.bf16.msra.mxu2 %v2894_v55  ;;  %v306_v62 = vsel %vm2842_vm8, 0, %v305_v60  ;;  %vm684_vm10 = vsmask.f32 4368 }
  0x27   : > { %564 = vrot.lane.b32.xlu1 %v209_v6, %s2679_s18  ;;  %437 = vrot.lane.b32.xlu0 %v2738_v7, %s2680_s19  ;;  %340 = vst.msk [vmem:[#allocation2 + $0x88] sm:$0xf] %vm317_vm0, %v198_v27  ;;  %vm1511_vm11 = vsmask.f32 3328  ;;  %vm1512_vm13 = vsmask.f32 7440  ;;  %vm2936_vm14 = vmor %vm267_vm6, %vm684_vm10 }
  0x28   : > { %566 = vrot.lane.b32.xlu2 %v210_v10, %s2679_s18  ;;  %342 = vst.msk [vmem:[#allocation2 + $0x98] sm:$0xf] %vm317_vm0, %v2828_v29  ;;  %vm2943_vm15 = vmor %vm1511_vm11, %vm1512_vm13  ;;  %v257_v44 = vld [vmem:[#allocation2 + $0xd0] sm:$0x8] }
  0x29   : > { %271 = vst [vmem:[#allocation2 + $0xc] sm:$0x1] %v270_v35  ;;  %v258_v50 = vsel %vm2813_vm4, 0, %v257_v44 }
  0x2a   : > { %347 = vst.msk [vmem:[#allocation2 + $0xc4] sm:$0xf] %vm317_vm0, %v2852_v38 }
  0x2b   : > { %341 = vst.msk [vmem:[#allocation2 + $0x94] sm:$0xf] %vm317_vm0, %v199_v39 }
  0x2c   : > { %223 = vst [vmem:[#allocation2 + $0x10] sm:$0x8] %v222_v41 }
  0x2d   : > { %274 = vst [vmem:[#allocation2 + $0x1c] sm:$0x1] %v273_v43 }
  0x2e   : > { %348 = vst.msk [vmem:[#allocation2 + $0xc8] sm:$0xf] %vm317_vm0, %v2874_v46 }
  0x2f   : > { %397 = vrot.lane.b32.xlu1 %v188_v4, %s2680_s19  ;;  %395 = vrot.lane.b32.xlu0 %v187_v5, %s2680_s19  ;;  %344 = vst.msk [vmem:[#allocation2 + $0xa8] sm:$0xf] %vm317_vm0, %v2887_v52 }
  0x30   : > { %524 = vrot.lane.b32.xlu2 %v189_v12, %s2679_s18  ;;  %343 = vst.msk [vmem:[#allocation2 + $0xa4] sm:$0xf] %vm317_vm0, %v201_v54 }
  0x31   : > { %256 = vst [vmem:[#allocation2 + $0xc0] sm:$0x8] %v255_v57 }
  0x32   : > { %307 = vst [vmem:[#allocation2 + $0xcc] sm:$0x1] %v306_v62 }
  0x33   : > { %v639_v49 = vld [vmem:[#allocation2 + $0x10] sm:$0x8]  ;;  %259 = vst [vmem:[#allocation2 + $0xd0] sm:$0x8] %v258_v50 }
  0x37   : > { %439 = vrot.lane.b32.xlu1 %v209_v6, %s2680_s19  ;;  %526 = vrot.lane.b32.xlu0 %v190_v8, %s2679_s18 }
  0x38   : > { %441 = vrot.lane.b32.xlu2 %v210_v10, %s2680_s19  ;;  %v2919_v10 = vld [vmem:[%s2718_s17 + $0x50] sm:$0xf] }
  0x39   : > { %345 = vst.msk [vmem:[#allocation2 + $0xb4] sm:$0xf] %vm317_vm0, %v2919_v10 }
  0x3f   : > { %570 = vrot.lane.b32.xlu1 %v212_v14, %s2679_s18  ;;  %568 = vrot.lane.b32.xlu0 %v211_v15, %s2679_s18 }
  0x40   : > { %399 = vrot.lane.b32.xlu2 %v189_v12, %s2680_s19 }
  0x47   : > { %528 = vrot.lane.b32.xlu1 %v191_v11, %s2679_s18  ;;  %401 = vrot.lane.b32.xlu0 %v190_v8, %s2680_s19  ;;  %v636_v8 = vld [vmem:[#allocation2] sm:$0x8] }
  0x48   : > { %530 = vrot.lane.b32.xlu2 %v192_v17, %s2679_s18 }
  0x4f   : > { %445 = vrot.lane.b32.xlu1 %v212_v14, %s2680_s19  ;;  %443 = vrot.lane.b32.xlu0 %v211_v15, %s2680_s19  ;;  %v687_v15 = vshrl.u32 %v636_v8, 16  ;;  %v1468_v8 = vld [vmem:[#allocation2 + $0x1c] sm:$0x1] }
  0x50   : > { %572 = vrot.lane.b32.xlu2 %v213_v19, %s2679_s18 }
  0x57   : > { %403 = vrot.lane.b32.xlu1 %v191_v11, %s2680_s19  ;;  %574 = vrot.lane.b32.xlu0 %v214_v21, %s2679_s18  ;;  %v224_v11 = vld [vmem:[#allocation2 + $0x20] sm:$0x8] }
  0x58   : > { %405 = vrot.lane.b32.xlu2 %v192_v17, %s2680_s19  ;;  %v225_v12 = vsel %vm2813_vm4, 0, %v224_v11  ;;  %v275_v17 = vld [vmem:[#allocation2 + $0x2c] sm:$0x1] }
  0x59   : > { %226 = vst [vmem:[#allocation2 + $0x20] sm:$0x8] %v225_v12 }
  0x5f   : > { %534 = vrot.lane.b32.xlu1 %v194_v13, %s2679_s18  ;;  %532 = vrot.lane.b32.xlu0 %v193_v16, %s2679_s18 }
  0x60   : > { %447 = vrot.lane.b32.xlu2 %v213_v19, %s2680_s19 }
  0x67   : > { %407 = vrot.lane.b32.xlu1 %v193_v16, %s2680_s19  ;;  %449 = vrot.lane.b32.xlu0 %v214_v21, %s2680_s19  ;;  %v1465_v21 = vld [vmem:[#allocation2 + $0xc] sm:$0x1] }
  0x68   : > { %409 = vrot.lane.b32.xlu2 %v194_v13, %s2680_s19  ;;  %v1534_v36 = vshll.u32 %v1465_v21, 16 }
  0x6a   : > { %v392_v28 = vpop.permute.xlu2 %391 }
  0x6b   : > { %486 = vst.msk [vmem:[#allocation2 + $0x14] sm:$0xf] %vm483_vm5, %v392_v28  ;;  %v2395_v28 = vrot.slane %v687_v15, 11 }
  0x6f   : > { %538 = vrot.lane.b32.xlu1 %v2786_v18, %s2679_s18  ;;  %536 = vrot.lane.b32.xlu0 %v195_v20, %s2679_s18 }
  0x70   : > { %411 = vrot.lane.b32.xlu2 %v195_v20, %s2680_s19 }
  0x72   : > { %v394_v37 = vpop.permute.xlu2 %393 }
  0x73   : > { %487 = vst.msk [vmem:[#allocation2 + $0x18] sm:$0xf] %vm483_vm5, %v394_v37 }
  0x77   : > { %413 = vrot.lane.b32.xlu0 %v2786_v18, %s2680_s19  ;;  %540 = vrot.lane.b32.xlu1 %v2801_v22, %s2679_s18 }
  0x78   : > { %542 = vrot.lane.b32.xlu2 %v198_v27, %s2679_s18 }
  0x7a   : > { %v436_v48 = vpop.permute.xlu2 %435 }
  0x7b   : > { %508 = vst.msk [vmem:[#allocation2 + $0xc4] sm:$0xf] %vm483_vm5, %v436_v48 }
  0x7f   : > { %415 = vrot.lane.b32.xlu0 %v2801_v22, %s2680_s19  ;;  %417 = vrot.lane.b32.xlu1 %v198_v27, %s2680_s19  ;;  %v276_v27 = vsel %vm2842_vm8, 0, %v275_v17 }
  0x80   : > { %544 = vrot.lane.b32.xlu2 %v199_v39, %s2679_s18  ;;  %277 = vst [vmem:[#allocation2 + $0x2c] sm:$0x1] %v276_v27  ;;  %v227_v27 = vld [vmem:[#allocation2 + $0x30] sm:$0x8] }
  0x81   : > { %v517_v58 = vpop.permute.xlu1 %516  ;;  %v388_v59 = vpop.permute.xlu0 %387 }
  0x82   : > { %484 = vst.msk [vmem:[#allocation2 + $0x4] sm:$0xf] %vm483_vm5, %v388_v59  ;;  %v2904_v61 = vpop.permute.xlu2 %566 }
  0x83   : > { %606 = vst.msk [vmem:[#allocation2 + $0x4] sm:$0xf] %vm321_vm1, %v517_v58 }
  0x87   : > { %546 = vrot.lane.b32.xlu0 %v2828_v29, %s2679_s18  ;;  %419 = vrot.lane.b32.xlu1 %v199_v39, %s2680_s19 }
  0x88   : > { %421 = vrot.lane.b32.xlu2 %v2828_v29, %s2680_s19 }
  0x89   : > { %v519_v63 = vpop.permute.xlu1 %518  ;;  %v390_v0 = vpop.permute.xlu0 %389 }
  0x8a   : > { %485 = vst.msk [vmem:[#allocation2 + $0x8] sm:$0xf] %vm483_vm5, %v390_v0  ;;  %v637_v1 = vld [vmem:[#allocation2 + $0x4] sm:$0xf]  ;;  %v2915_v3 = vpop.permute.xlu2 %524 }
  0x8b   : > { %v1463_v2 = vld [vmem:[#allocation2 + $0x4] sm:$0xf]  ;;  %607 = vst.msk [vmem:[#allocation2 + $0x8] sm:$0xf] %vm321_vm1, %v519_v63  ;;  %v692_v4 = vshrl.u32 %v637_v1, 16  ;;  %v695_v20 = vshll.u32 %v637_v1, 16 }
  0x8c   : > { %v1515_v5 = vshrl.u32 %v1463_v2, 16  ;;  %v1518_v6 = vshll.u32 %v1463_v2, 16  ;;  %v709_v1 = vshrl.u32 %v639_v49, 16 }
  0x8d   : > { %v694_v16 = vrot.slane %v692_v4, 7 }
  0x8e   : > { %v1517_v13 = vrot.slane %v1515_v5, 4  ;;  %v1520_v14 = vrot.slane %v1518_v6, 5 }
  0x8f   : > { %550 = vrot.lane.b32.xlu1 %v2887_v52, %s2679_s18  ;;  %548 = vrot.lane.b32.xlu0 %v201_v54, %s2679_s18  ;;  %v697_v29 = vor.u32 %v695_v20, %v694_v16  ;;  %v699_v47 = vrot.slane %v694_v16, 4 }
  0x90   : > { %423 = vrot.lane.b32.xlu2 %v201_v54, %s2680_s19  ;;  %v1521_v25 = vor.u32 %v1520_v14, %v1517_v13  ;;  %v1536_v54 = vrot.slane %v1534_v36, 5  ;;  %v2396_v36 = vrot.slane %v709_v1, 11 }
  0x91   : > { %v523_v18 = vpop.permute.xlu1 %522  ;;  %v521_v19 = vpop.permute.xlu0 %520  ;;  %v698_v45 = vsel %vm2936_vm14, %v2395_v28, %v697_v29 }
  0x92   : > { %609 = vst.msk [vmem:[#allocation2 + $0x18] sm:$0xf] %vm321_vm1, %v523_v18  ;;  %v2543_v22 = vld [vmem:[#allocation2 + $0x4] sm:$0xff]  ;;  %v442_v26 = vpop.permute.xlu2 %441  ;;  %v1522_v41 = vrot.slane %v1521_v25, 4  ;;  %v1270_v60 = vunpack.c.l.b16 %v698_v45  ;;  %v228_v45 = vsel %vm2813_vm4, 0, %v227_v27 }
  0x93   : > { %v638_v23 = vld [vmem:[#allocation2 + $0x8] sm:$0xf]  ;;  %608 = vst.msk [vmem:[#allocation2 + $0x14] sm:$0xf] %vm321_vm1, %v521_v19  ;;  %2481 = vmatmul.msk.bf16.vlgmr.msra.gmra.mxu0 %vm1128_vm12, %v2543_v22 }
  0x94   : > { %v701_v30 = vshrl.u32 %v638_v23, 16  ;;  %v1464_v31 = vld [vmem:[#allocation2 + $0x8] sm:$0xf]  ;;  %511 = vst.msk [vmem:[#allocation2 + $0xd8] sm:$0xf] %vm483_vm5, %v442_v26  ;;  %v704_v39 = vshll.u32 %v638_v23, 16 }
  0x95   : > { %v1524_v34 = vshll.u32 %v1464_v31, 16  ;;  %v1528_v35 = vshrl.u32 %v1464_v31, 16  ;;  %v204_v23 = vld [vmem:[%s2718_s17 + $0x54] sm:$0xf]  ;;  %v1558_v31 = vshll.u32 %v1468_v8, 16 }
  0x96   : > { %v703_v37 = vrot.slane %v701_v30, 7  ;;  %346 = vst.msk [vmem:[#allocation2 + $0xb8] sm:$0xf] %vm317_vm0, %v204_v23  ;;  %v260_v8 = vld [vmem:[#allocation2 + $0xe0] sm:$0x8]  ;;  %vm2296_vm0 = vcmask 1040384  }
  0x97   : > { %v1526_v42 = vrot.slane %v1524_v34, 5  ;;  %v1530_v43 = vrot.slane %v1528_v35, 4  ;;  %425 = vrot.lane.b32.xlu0 %v2887_v52, %s2680_s19  ;;  %552 = vrot.lane.b32.xlu1 %v2919_v10, %s2679_s18  ;;  %229 = vst [vmem:[#allocation2 + $0x30] sm:$0x8] %v228_v45 }
  0x98   : > { %v706_v48 = vor.u32 %v704_v39, %v703_v37  ;;  %554 = vrot.lane.b32.xlu2 %v204_v23, %s2679_s18 }
  0x99   : > { %v1527_v51 = vsel %vm2943_vm15, %v1522_v41, %v1526_v42  ;;  %v1531_v53 = vor.u32 %v1530_v43, %v1526_v42  ;;  %v565_v56 = vpop.permute.xlu1 %564  ;;  %v438_v57 = vpop.permute.xlu0 %437  ;;  %v641_v59 = vld [vmem:[#allocation2 + $0x18] sm:$0xf] }
  0x9a   : > { %v707_v58 = vsel %vm2936_vm14, %v699_v47, %v706_v48  ;;  %v1467_v52 = vld [vmem:[#allocation2 + $0x18] sm:$0xf]  ;;  %630 = vst.msk [vmem:[#allocation2 + $0xc4] sm:$0xf] %vm321_vm1, %v565_v56  ;;  %v640_v0 = vld [vmem:[#allocation2 + $0x14] sm:$0xf]  ;;  %v400_v2 = vpop.permute.xlu2 %399  ;;  %v1901_v4 = vunpack.c.l.b16 %v1527_v51 }
  0x9b   : > { %v1271_v62 = vunpack.c.l.b16 %v707_v58  ;;  %v1532_v63 = vrot.slane %v1531_v53, 4  ;;  %509 = vst.msk [vmem:[#allocation2 + $0xc8] sm:$0xf] %vm483_vm5, %v438_v57  ;;  %v714_v5 = vshrl.u32 %v640_v0, 16  ;;  %v723_v6 = vshrl.u32 %v641_v59, 16  ;;  %v2544_v42 = vld [vmem:[#allocation2 + $0x14] sm:$0xff] }
  0x9c   : > { %631 = vst.msk [vmem:[#allocation2 + $0xc8] sm:$0xf] %vm321_vm1, %v2904_v61  ;;  %v1466_v13 = vld [vmem:[#allocation2 + $0x14] sm:$0xf]  ;;  %v1548_v14 = vshll.u32 %v1467_v52, 16  ;;  %v1552_v15 = vshrl.u32 %v1467_v52, 16 }
  0x9d   : > { %v1302_v11 = vpack.c.b16 %v1271_v62, %v1270_v60  ;;  %v1537_v12 = vsel %vm2943_vm15, %v1532_v63, %v1536_v54  ;;  %v716_v17 = vrot.slane %v714_v5, 7  ;;  %v725_v18 = vrot.slane %v723_v6, 7  ;;  %490 = vst.msk [vmem:[#allocation2 + $0x34] sm:$0xf] %vm483_vm5, %v400_v2 }
  0x9e   : > { %v1902_v16 = vunpack.c.l.b16 %v1537_v12  ;;  %v1539_v19 = vshrl.u32 %v1466_v13, 16  ;;  %v1542_v20 = vshll.u32 %v1466_v13, 16  ;;  %v1550_v21 = vrot.slane %v1548_v14, 5 }
  0x9f   : > { %2501 = vmatmul.msk.bf16.vlgmr.msra.gmra.mxu1 %vm1128_vm12, %v1302_v11  ;;  %v1554_v22 = vrot.slane %v1552_v15, 4  ;;  %v717_v25 = vshll.u32 %v640_v0, 16  ;;  %v726_v26 = vshll.u32 %v641_v59, 16  ;;  %427 = vrot.lane.b32.xlu0 %v2919_v10, %s2680_s19  ;;  %v721_v39 = vrot.slane %v716_v17, 4  ;;  %v278_v10 = vld [vmem:[#allocation2 + $0x3c] sm:$0x1] }
  0xa0   : > { %v1933_v61 = vpack.c.b16 %v1902_v16, %v1901_v4  ;;  %429 = vrot.lane.b32.xlu1 %v204_v23, %s2680_s19  ;;  %v1541_v28 = vrot.slane %v1539_v19, 4  ;;  %v1544_v29 = vrot.slane %v1542_v20, 5  ;;  %v279_v48 = vsel %vm2842_vm8, 0, %v278_v10  ;;  %556 = vrot.lane.b32.xlu2 %v2852_v38, %s2679_s18  ;;  %v1471_v20 = vld [vmem:[#allocation2 + $0x2c] sm:$0x1] }
  0xa1   : > { %v1555_v30 = vor.u32 %v1554_v22, %v1550_v21  ;;  %v398_v34 = vpop.permute.xlu1 %397  ;;  %v396_v35 = vpop.permute.xlu0 %395  ;;  %v719_v37 = vor.u32 %v717_v25, %v716_v17  ;;  %v728_v41 = vor.u32 %v726_v26, %v725_v18  ;;  %v1560_v51 = vrot.slane %v1558_v31, 5  ;;  %280 = vst [vmem:[#allocation2 + $0x3c] sm:$0x1] %v279_v48  ;;  %v308_v17 = vld [vmem:[#allocation2 + $0xdc] sm:$0x1] }
  0xa2   : > { %2523 = vmatmul.msk.bf16.vlgmr.msra.gmra.mxu2 %vm1128_vm12, %v1933_v61  ;;  %489 = vst.msk [vmem:[#allocation2 + $0x28] sm:$0xf] %vm483_vm5, %v398_v34  ;;  %v1545_v43 = vor.u32 %v1544_v29, %v1541_v28  ;;  %v2975_v44 = vpop.permute.xlu2 %530  ;;  %v261_v16 = vsel %vm2813_vm4, 0, %v260_v8  ;;  %v1582_v29 = vshll.u32 %v1471_v20, 16 }
  0xa3   : > { %488 = vst.msk [vmem:[#allocation2 + $0x24] sm:$0xf] %vm483_vm5, %v396_v35  ;;  %v2555_v47 = vld [vmem:[#allocation2 + $0xc4] sm:$0xff]  ;;  %2482 = vmatmul.msk.bf16.gmra.mxu0 %vm1128_vm12, %v2544_v42  ;;  %v1556_v50 = vrot.slane %v1555_v30, 4  ;;  %v720_v53 = vsel %vm2936_vm14, %v2396_v36, %v719_v37  ;;  %v729_v54 = vsel %vm2936_vm14, %v721_v39, %v728_v41  ;;  %v230_v39 = vld [vmem:[#allocation2 + $0x40] sm:$0x8] }
  0xa4   : > { %610 = vst.msk [vmem:[#allocation2 + $0x24] sm:$0xf] %vm321_vm1, %v2915_v3  ;;  %v1546_v49 = vrot.slane %v1545_v43, 4  ;;  %2493 = vmatmul.msk.bf16.vlgmr.msra.gmra.mxu3 %vm1128_vm12, %v2555_v47  ;;  %v1272_v3 = vunpack.c.l.b16 %v720_v53  ;;  %v1273_v56 = vunpack.c.l.b16 %v729_v54  ;;  %v231_v42 = vsel %vm2813_vm4, 0, %v230_v39  ;;  %v281_v47 = vld [vmem:[#allocation2 + $0x4c] sm:$0x1] }
  0xa5   : > { %2659 = vmatpush.bf16.msra.mxu3 %v2894_v55  ;;  %v1561_v58 = vsel %vm2943_vm15, %v1556_v50, %v1560_v51  ;;  %v642_v55 = vld [vmem:[#allocation2 + $0x20] sm:$0x8]  ;;  %262 = vst [vmem:[#allocation2 + $0xe0] sm:$0x8] %v261_v16  ;;  %v1584_v45 = vrot.slane %v1582_v29, 5 }
  0xa6   : > { %v1551_v57 = vsel %vm2943_vm15, %v1546_v49, %v1550_v21  ;;  %v1904_v63 = vunpack.c.l.b16 %v1561_v58  ;;  %v1303_v2 = vpack.c.b16 %v1273_v56, %v1272_v3  ;;  %232 = vst [vmem:[#allocation2 + $0x40] sm:$0x8] %v231_v42  ;;  %v645_v58 = vld [vmem:[#allocation2 + $0x30] sm:$0x8] }
  0xa7   : > { %558 = vrot.lane.b32.xlu0 %v2874_v46, %s2679_s18  ;;  %v1903_v62 = vunpack.c.l.b16 %v1551_v57  ;;  %v233_v29 = vld [vmem:[#allocation2 + $0x50] sm:$0x8] }
  0xa8   : > { %431 = vrot.lane.b32.xlu1 %v2852_v38, %s2680_s19  ;;  %v731_v38 = vshrl.u32 %v642_v55, 16  ;;  %433 = vrot.lane.b32.xlu2 %v2874_v46, %s2680_s19 }
  0xa9   : > { %v440_v59 = vpop.permute.xlu1 %439  ;;  %v527_v52 = vpop.permute.xlu0 %526  ;;  %v1934_v13 = vpack.c.b16 %v1904_v63, %v1903_v62  ;;  %v263_v62 = vld [vmem:[#allocation2 + $0xf0] sm:$0x8] }
  0xaa   : > { %510 = vst.msk [vmem:[#allocation2 + $0xd4] sm:$0xf] %vm483_vm5, %v440_v59  ;;  %v3002_v60 = vpop.permute.xlu2 %572  ;;  %v2397_v61 = vrot.slane %v731_v38, 11  ;;  %v282_v59 = vsel %vm2842_vm8, 0, %v281_v47 }
  0xab   : > { %611 = vst.msk [vmem:[#allocation2 + $0x28] sm:$0xf] %vm321_vm1, %v527_v52  ;;  %v643_v0 = vld [vmem:[#allocation2 + $0x24] sm:$0xf] }
  0xac   : > { %v1469_v1 = vld [vmem:[#allocation2 + $0x24] sm:$0xf]  ;;  %v736_v4 = vshrl.u32 %v643_v0, 16  ;;  %v739_v15 = vshll.u32 %v643_v0, 16  ;;  %283 = vst [vmem:[#allocation2 + $0x4c] sm:$0x1] %v282_v59 }
  0xad   : > { %v1563_v5 = vshrl.u32 %v1469_v1, 16  ;;  %v1566_v6 = vshll.u32 %v1469_v1, 16  ;;  %v264_v1 = vsel %vm2813_vm4, 0, %v263_v62  ;;  %v3067_v62 = vld [vmem:[#allocation2 + $0xc4] sm:$0xf] }
  0xae   : > { %v738_v14 = vrot.slane %v736_v4, 7  ;;  %265 = vst [vmem:[#allocation2 + $0xf0] sm:$0x8] %v264_v1  ;;  %v648_v1 = vld [vmem:[#allocation2 + $0x40] sm:$0x8] }
  0xaf   : > { %2502 = vmatmul.msk.bf16.gmra.mxu1 %vm1128_vm12, %v1303_v2  ;;  %v1565_v11 = vrot.slane %v1563_v5, 4  ;;  %v1568_v12 = vrot.slane %v1566_v6, 5  ;;  %560 = vrot.lane.b32.xlu0 %v2747_v9, %s2679_s18  ;;  %v309_v9 = vsel %vm2842_vm8, 0, %v308_v17  ;;  %v753_v2 = vshrl.u32 %v645_v58, 16 }
  0xb0   : > { %562 = vrot.lane.b32.xlu1 %v2738_v7, %s2679_s18  ;;  %v741_v25 = vor.u32 %v739_v15, %v738_v14  ;;  %v743_v30 = vrot.slane %v738_v14, 4  ;;  %310 = vst [vmem:[#allocation2 + $0xdc] sm:$0x1] %v309_v9 }
  0xb1   : > { %v571_v18 = vpop.permute.xlu1 %570  ;;  %v569_v19 = vpop.permute.xlu0 %568  ;;  %v1569_v22 = vor.u32 %v1568_v12, %v1565_v11  ;;  %v2398_v38 = vrot.slane %v753_v2, 11  ;;  %v1474_v12 = vld [vmem:[#allocation2 + $0x3c] sm:$0x1] }
  0xb2   : > { %2524 = vmatmul.msk.bf16.gmra.mxu2 %vm1128_vm12, %v1934_v13  ;;  %633 = vst.msk [vmem:[#allocation2 + $0xd8] sm:$0xf] %vm321_vm1, %v571_v18  ;;  %v2545_v21 = vld [vmem:[#allocation2 + $0x24] sm:$0xff]  ;;  %v406_v23 = vpop.permute.xlu2 %405  ;;  %v742_v41 = vsel %vm2936_vm14, %v2397_v61, %v741_v25 }
  0xb3   : > { %v644_v7 = vld [vmem:[#allocation2 + $0x28] sm:$0xf]  ;;  %632 = vst.msk [vmem:[#allocation2 + $0xd4] sm:$0xf] %vm321_vm1, %v569_v19  ;;  %2483 = vmatmul.msk.bf16.gmra.mxu0 %vm1128_vm12, %v2545_v21  ;;  %v1570_v35 = vrot.slane %v1569_v22, 4  ;;  %v1274_v53 = vunpack.c.l.b16 %v742_v41 }
  0xb4   : > { %v745_v46 = vshrl.u32 %v644_v7, 16  ;;  %v1470_v26 = vld [vmem:[#allocation2 + $0x28] sm:$0xf]  ;;  %493 = vst.msk [vmem:[#allocation2 + $0x48] sm:$0xf] %vm483_vm5, %v406_v23  ;;  %v748_v34 = vshll.u32 %v644_v7, 16 }
  0xb5   : > { %v1572_v27 = vshll.u32 %v1470_v26, 16  ;;  %v1576_v28 = vshrl.u32 %v1470_v26, 16 }
  0xb6   : > { %v747_v31 = vrot.slane %v745_v46, 7 }
  0xb7   : > { %v1574_v36 = vrot.slane %v1572_v27, 5  ;;  %v1578_v37 = vrot.slane %v1576_v28, 4  ;;  %v1606_v28 = vshll.u32 %v1474_v12, 16  ;;  %v1477_v12 = vld [vmem:[#allocation2 + $0x4c] sm:$0x1] }
  0xb8   : > { %v750_v10 = vor.u32 %v748_v34, %v747_v31  ;;  %v234_v34 = vsel %vm2813_vm4, 0, %v233_v29 }
  0xb9   : > { %v1579_v43 = vor.u32 %v1578_v37, %v1574_v36  ;;  %v529_v48 = vpop.permute.xlu1 %528  ;;  %v402_v49 = vpop.permute.xlu0 %401  ;;  %v1575_v3 = vsel %vm2943_vm15, %v1570_v35, %v1574_v36  ;;  %v284_v35 = vld [vmem:[#allocation2 + $0x5c] sm:$0x1]  ;;  %235 = vst [vmem:[#allocation2 + $0x50] sm:$0x8] %v234_v34 }
  0xba   : > { %v751_v50 = vsel %vm2936_vm14, %v743_v30, %v750_v10  ;;  %612 = vst.msk [vmem:[#allocation2 + $0x34] sm:$0xf] %vm321_vm1, %v529_v48  ;;  %v2556_v51 = vld [vmem:[#allocation2 + $0xd4] sm:$0xff]  ;;  %v448_v57 = vpop.permute.xlu2 %447  ;;  %v1905_v63 = vunpack.c.l.b16 %v1575_v3 }
  0xbb   : > { %v1275_v54 = vunpack.c.l.b16 %v751_v50  ;;  %v1580_v56 = vrot.slane %v1579_v43, 4  ;;  %491 = vst.msk [vmem:[#allocation2 + $0x38] sm:$0xf] %vm483_vm5, %v402_v49  ;;  %2494 = vmatmul.msk.bf16.gmra.mxu3 %vm1128_vm12, %v2556_v51  ;;  %v285_v43 = vsel %vm2842_vm8, 0, %v284_v35  ;;  %v1608_v49 = vrot.slane %v1606_v28, 5 }
  0xbc   : > { %613 = vst.msk [vmem:[#allocation2 + $0x38] sm:$0xf] %vm321_vm1, %v2975_v44  ;;  %v311_v51 = vld [vmem:[#allocation2 + $0xec] sm:$0x1] }
  0xbd   : > { %v1304_v52 = vpack.c.b16 %v1275_v54, %v1274_v53  ;;  %v1585_v55 = vsel %vm2943_vm15, %v1580_v56, %v1584_v45  ;;  %514 = vst.msk [vmem:[#allocation2 + $0xf4] sm:$0xf] %vm483_vm5, %v448_v57  ;;  %v312_v56 = vsel %vm2842_vm8, 0, %v311_v51 }
  0xbe   : > { %v1906_v0 = vunpack.c.l.b16 %v1585_v55  ;;  %286 = vst [vmem:[#allocation2 + $0x5c] sm:$0x1] %v285_v43  ;;  %v672_v55 = vld [vmem:[#allocation2 + $0xc0] sm:$0x8] }
  0xbf   : > { %2503 = vmatmul.msk.bf16.gmra.mxu1 %vm1128_vm12, %v1304_v52  ;;  %313 = vst [vmem:[#allocation2 + $0xec] sm:$0x1] %v312_v56  ;;  %v951_v2 = vshrl.u32 %v672_v55, 16 }
  0xc0   : > { %v1935_v4 = vpack.c.b16 %v1906_v0, %v1905_v63  ;;  %v651_v55 = vld [vmem:[#allocation2 + $0x50] sm:$0x8] }
  0xc1   : > { %v446_v44 = vpop.permute.xlu1 %445  ;;  %v444_v5 = vpop.permute.xlu0 %443  ;;  %v646_v6 = vld [vmem:[#allocation2 + $0x34] sm:$0xf] }
  0xc2   : > { %2525 = vmatmul.msk.bf16.gmra.mxu2 %vm1128_vm12, %v1935_v4  ;;  %v1472_v8 = vld [vmem:[#allocation2 + $0x34] sm:$0xf]  ;;  %513 = vst.msk [vmem:[#allocation2 + $0xe8] sm:$0xf] %vm483_vm5, %v446_v44  ;;  %v758_v11 = vshrl.u32 %v646_v6, 16  ;;  %v410_v15 = vpop.permute.xlu2 %409  ;;  %v761_v18 = vshll.u32 %v646_v6, 16 }
  0xc3   : > { %v1587_v13 = vshrl.u32 %v1472_v8, 16  ;;  %v1590_v14 = vshll.u32 %v1472_v8, 16  ;;  %512 = vst.msk [vmem:[#allocation2 + $0xe4] sm:$0xf] %vm483_vm5, %v444_v5  ;;  %v2546_v16 = vld [vmem:[#allocation2 + $0x34] sm:$0xff]  ;;  %v956_v4 = vshrl.u32 %v3067_v62, 16 }
  0xc4   : > { %v647_v17 = vld [vmem:[#allocation2 + $0x38] sm:$0xf]  ;;  %634 = vst.msk [vmem:[#allocation2 + $0xe4] sm:$0xf] %vm321_vm1, %v3002_v60  ;;  %v760_v19 = vrot.slane %v758_v11, 7  ;;  %2484 = vmatmul.msk.bf16.gmra.mxu0 %vm1128_vm12, %v2546_v16  ;;  %v775_v6 = vshrl.u32 %v648_v1, 16 }
  0xc5   : > { %v767_v20 = vshrl.u32 %v647_v17, 16  ;;  %v770_v21 = vshll.u32 %v647_v17, 16  ;;  %v1589_v7 = vrot.slane %v1587_v13, 4  ;;  %v1473_v22 = vld [vmem:[#allocation2 + $0x38] sm:$0xf]  ;;  %v1592_v23 = vrot.slane %v1590_v14, 5 }
  0xc6   : > { %495 = vst.msk [vmem:[#allocation2 + $0x58] sm:$0xf] %vm483_vm5, %v410_v15  ;;  %v763_v9 = vor.u32 %v761_v18, %v760_v19  ;;  %v765_v61 = vrot.slane %v760_v19, 4  ;;  %v1596_v46 = vshll.u32 %v1473_v22, 16  ;;  %v1600_v27 = vshrl.u32 %v1473_v22, 16 }
  0xc7   : > { %v769_v25 = vrot.slane %v767_v20, 7  ;;  %v1593_v26 = vor.u32 %v1592_v23, %v1589_v7  ;;  %v236_v44 = vld [vmem:[#allocation2 + $0x60] sm:$0x8]  ;;  %v287_v5 = vld [vmem:[#allocation2 + $0x6c] sm:$0x1]  ;;  %v3080_v13 = vrot.slane %v951_v2, 11 }
  0xc8   : > { %v764_v60 = vsel %vm2936_vm14, %v2398_v38, %v763_v9  ;;  %v1598_v31 = vrot.slane %v1596_v46, 5  ;;  %v1602_v10 = vrot.slane %v1600_v27, 4  ;;  %v237_v8 = vsel %vm2813_vm4, 0, %v236_v44  ;;  %v3078_v11 = vld [vmem:[#allocation2 + $0xc8] sm:$0xf] }
  0xc9   : > { %v772_v30 = vor.u32 %v770_v21, %v769_v25  ;;  %v404_v36 = vpop.permute.xlu1 %403  ;;  %v575_v37 = vpop.permute.xlu0 %574  ;;  %v1276_v39 = vunpack.c.l.b16 %v764_v60  ;;  %v1594_v41 = vrot.slane %v1593_v26, 4  ;;  %v288_v38 = vsel %vm2842_vm8, 0, %v287_v5  ;;  %238 = vst [vmem:[#allocation2 + $0x60] sm:$0x8] %v237_v8  ;;  %v314_v15 = vld [vmem:[#allocation2 + $0xfc] sm:$0x1] }
  0xca   : > { %492 = vst.msk [vmem:[#allocation2 + $0x44] sm:$0xf] %vm483_vm5, %v404_v36  ;;  %v1603_v48 = vor.u32 %v1602_v10, %v1598_v31  ;;  %v412_v50 = vpop.permute.xlu2 %411  ;;  %v3082_v14 = vrot.slane %v956_v4, 7  ;;  %v2399_v19 = vrot.slane %v775_v6, 11  ;;  %v965_v21 = vshrl.u32 %v3078_v11, 16 }
  0xcb   : > { %v773_v42 = vsel %vm2936_vm14, %v765_v61, %v772_v30  ;;  %635 = vst.msk [vmem:[#allocation2 + $0xe8] sm:$0xf] %vm321_vm1, %v575_v37  ;;  %v1599_v47 = vsel %vm2943_vm15, %v1594_v41, %v1598_v31  ;;  %v1630_v46 = vshll.u32 %v1477_v12, 16  ;;  %v315_v26 = vsel %vm2842_vm8, 0, %v314_v15  ;;  %v675_v31 = vld [vmem:[#allocation2 + $0xd0] sm:$0x8] }
  0xcc   : > { %v1277_v45 = vunpack.c.l.b16 %v773_v42  ;;  %496 = vst.msk [vmem:[#allocation2 + $0x64] sm:$0xf] %vm483_vm5, %v412_v50  ;;  %v1604_v54 = vrot.slane %v1603_v48, 4  ;;  %v1907_v3 = vunpack.c.l.b16 %v1599_v47  ;;  %v967_v42 = vrot.slane %v965_v21, 7  ;;  %v1480_v21 = vld [vmem:[#allocation2 + $0x5c] sm:$0x1] }
  0xcd   : > { %289 = vst [vmem:[#allocation2 + $0x6c] sm:$0x1] %v288_v38  ;;  %v968_v43 = vshll.u32 %v3078_v11, 16  ;;  %v1632_v51 = vrot.slane %v1630_v46, 5  ;;  %v963_v6 = vrot.slane %v3082_v14, 4  ;;  %v797_v15 = vshrl.u32 %v651_v55, 16 }
  0xce   : > { %v1305_v53 = vpack.c.b16 %v1277_v45, %v1276_v39  ;;  %v1609_v57 = vsel %vm2943_vm15, %v1604_v54, %v1608_v49  ;;  %v3092_v39 = vld [vmem:[#allocation2 + $0xd4] sm:$0xf]  ;;  %316 = vst [vmem:[#allocation2 + $0xfc] sm:$0x1] %v315_v26  ;;  %v3096_v54 = vld [vmem:[#allocation2 + $0xd8] sm:$0xf] }
  0xcf   : > { %v1908_v58 = vunpack.c.l.b16 %v1609_v57  ;;  %v970_v8 = vor.u32 %v968_v43, %v967_v42  ;;  %v987_v38 = vshrl.u32 %v3096_v54, 16  ;;  %v990_v26 = vshll.u32 %v3096_v54, 16 }
  0xd0   : > { %2504 = vmatmul.msk.bf16.gmra.mxu1 %vm1128_vm12, %v1305_v53  ;;  %v959_v53 = vshll.u32 %v3067_v62, 16 }
  0xd1   : > { %v535_v59 = vpop.permute.xlu1 %534  ;;  %v533_v52 = vpop.permute.xlu0 %532  ;;  %v1936_v63 = vpack.c.b16 %v1908_v58, %v1907_v3  ;;  %v978_v3 = vshrl.u32 %v3092_v39, 16  ;;  %v989_v46 = vrot.slane %v987_v38, 7 }
  0xd2   : > { %615 = vst.msk [vmem:[#allocation2 + $0x48] sm:$0xf] %vm321_vm1, %v535_v59  ;;  %v2557_v0 = vld [vmem:[#allocation2 + $0xe4] sm:$0xff]  ;;  %v3086_v9 = vpop.permute.xlu2 %542  ;;  %v961_v4 = vor.u32 %v959_v53, %v3082_v14 }
  0xd3   : > { %614 = vst.msk [vmem:[#allocation2 + $0x44] sm:$0xf] %vm321_vm1, %v533_v52  ;;  %2526 = vmatmul.msk.bf16.gmra.mxu2 %vm1128_vm12, %v1936_v63  ;;  %2495 = vmatmul.msk.bf16.gmra.mxu3 %vm1128_vm12, %v2557_v0  ;;  %v973_v63 = vshrl.u32 %v675_v31, 16 }
  0xd9   : > { %v408_v16 = vpop.permute.xlu1 %407  ;;  %v450_v17 = vpop.permute.xlu0 %449  ;;  %v650_v18 = vld [vmem:[#allocation2 + $0x48] sm:$0xf] }
  0xda   : > { %v1476_v20 = vld [vmem:[#allocation2 + $0x48] sm:$0xf]  ;;  %494 = vst.msk [vmem:[#allocation2 + $0x54] sm:$0xf] %vm483_vm5, %v408_v16  ;;  %v649_v22 = vld [vmem:[#allocation2 + $0x44] sm:$0xf]  ;;  %v3105_v44 = vpop.permute.xlu2 %544 }
  0xdb   : > { %v2547_v7 = vld [vmem:[#allocation2 + $0x44] sm:$0xff]  ;;  %v789_v23 = vshrl.u32 %v650_v18, 16  ;;  %515 = vst.msk [vmem:[#allocation2 + $0xf8] sm:$0xf] %vm483_vm5, %v450_v17  ;;  %v780_v61 = vshrl.u32 %v649_v22, 16  ;;  %v1620_v25 = vshll.u32 %v1476_v20, 16 }
  0xdc   : > { %2485 = vmatmul.msk.bf16.gmra.mxu0 %vm1128_vm12, %v2547_v7  ;;  %v783_v27 = vshll.u32 %v649_v22, 16  ;;  %v792_v29 = vshll.u32 %v650_v18, 16  ;;  %v1475_v60 = vld [vmem:[#allocation2 + $0x44] sm:$0xf]  ;;  %v1624_v30 = vshrl.u32 %v1476_v20, 16  ;;  %v3113_v16 = vrot.slane %v978_v3, 7 }
  0xdd   : > { %v791_v28 = vrot.slane %v789_v23, 7  ;;  %v782_v34 = vrot.slane %v780_v61, 7  ;;  %v1611_v35 = vshrl.u32 %v1475_v60, 16  ;;  %v1614_v36 = vshll.u32 %v1475_v60, 16  ;;  %v239_v17 = vld [vmem:[#allocation2 + $0x70] sm:$0x8] }
  0xde   : > { %v1622_v37 = vrot.slane %v1620_v25, 5  ;;  %v1626_v10 = vrot.slane %v1624_v30, 4  ;;  %v290_v18 = vld [vmem:[#allocation2 + $0x7c] sm:$0x1]  ;;  %v240_v14 = vsel %vm2813_vm4, 0, %v239_v17  ;;  %v3122_v23 = vrot.slane %v973_v63, 11 }
  0xdf   : > { %v794_v41 = vor.u32 %v792_v29, %v791_v28  ;;  %v785_v45 = vor.u32 %v783_v27, %v782_v34  ;;  %v787_v47 = vrot.slane %v782_v34, 4  ;;  %v1613_v48 = vrot.slane %v1611_v35, 4  ;;  %241 = vst [vmem:[#allocation2 + $0x70] sm:$0x8] %v240_v14 }
  0xe0   : > { %v1616_v49 = vrot.slane %v1614_v36, 5  ;;  %v1627_v50 = vor.u32 %v1626_v10, %v1622_v37  ;;  %v291_v7 = vsel %vm2842_vm8, 0, %v290_v18  ;;  %v962_v61 = vsel %vm2936_vm14, %v3080_v13, %v961_v4 }
  0xe1   : > { %v539_v56 = vpop.permute.xlu1 %538  ;;  %v537_v57 = vpop.permute.xlu0 %536  ;;  %v786_v58 = vsel %vm2936_vm14, %v2399_v19, %v785_v45  ;;  %v795_v59 = vsel %vm2936_vm14, %v787_v47, %v794_v41  ;;  %v981_v25 = vshll.u32 %v3092_v39, 16  ;;  %292 = vst [vmem:[#allocation2 + $0x7c] sm:$0x1] %v291_v7  ;;  %v2400_v28 = vrot.slane %v797_v15, 11 }
  0xe2   : > { %v1617_v52 = vor.u32 %v1616_v49, %v1613_v48  ;;  %617 = vst.msk [vmem:[#allocation2 + $0x58] sm:$0xf] %vm321_vm1, %v539_v56  ;;  %v2558_v0 = vld [vmem:[#allocation2 + $0xf4] sm:$0xff]  ;;  %v1278_v1 = vunpack.c.l.b16 %v786_v58  ;;  %v1279_v62 = vunpack.c.l.b16 %v795_v59  ;;  %v1628_v2 = vrot.slane %v1627_v50, 4  ;;  %v422_v42 = vpop.permute.xlu2 %421 }
  0xe3   : > { %616 = vst.msk [vmem:[#allocation2 + $0x54] sm:$0xf] %vm321_vm1, %v537_v57  ;;  %2496 = vmatmul.msk.bf16.gmra.mxu3 %vm1128_vm12, %v2558_v0  ;;  %v1654_v29 = vshll.u32 %v1480_v21, 16  ;;  %v985_v60 = vrot.slane %v3113_v16, 4  ;;  %v971_v34 = vsel %vm2936_vm14, %v963_v6, %v970_v8  ;;  %v1294_v39 = vunpack.c.l.b16 %v962_v61 }
  0xe4   : > { %v1618_v5 = vrot.slane %v1617_v52, 4  ;;  %v1306_v11 = vpack.c.b16 %v1279_v62, %v1278_v1  ;;  %v1633_v12 = vsel %vm2943_vm15, %v1628_v2, %v1632_v51  ;;  %v1295_v49 = vunpack.c.l.b16 %v971_v34  ;;  %501 = vst.msk [vmem:[#allocation2 + $0x88] sm:$0xf] %vm483_vm5, %v422_v42  ;;  %v678_v34 = vld [vmem:[#allocation2 + $0xe0] sm:$0x8] }
  0xe5   : > { %v1910_v20 = vunpack.c.l.b16 %v1633_v12  ;;  %v3139_v54 = vor.u32 %v981_v25, %v3113_v16  ;;  %v992_v52 = vor.u32 %v990_v26, %v989_v46  ;;  %v1656_v4 = vrot.slane %v1654_v29, 5 }
  0xe6   : > { %v1623_v19 = vsel %vm2943_vm15, %v1618_v5, %v1622_v37  ;;  %2505 = vmatmul.msk.bf16.gmra.mxu1 %vm1128_vm12, %v1306_v11  ;;  %v654_v37 = vld [vmem:[#allocation2 + $0x60] sm:$0x8]  ;;  %v1314_v12 = vpack.c.b16 %v1295_v49, %v1294_v39 }
  0xe7   : > { %v1909_v22 = vunpack.c.l.b16 %v1623_v19  ;;  %v819_v55 = vshrl.u32 %v654_v37, 16  ;;  %v1483_v19 = vld [vmem:[#allocation2 + $0x6c] sm:$0x1]  ;;  %v984_v21 = vsel %vm2936_vm14, %v3122_v23, %v3139_v54  ;;  %v3154_v14 = vsel %vm2936_vm14, %v985_v60, %v992_v52 }
  0xe8   : > { %v1678_v42 = vshll.u32 %v1483_v19, 16  ;;  %v1296_v52 = vunpack.c.l.b16 %v984_v21 }
  0xe9   : > { %v1937_v27 = vpack.c.b16 %v1910_v20, %v1909_v22  ;;  %v414_v30 = vpop.permute.xlu0 %413  ;;  %v541_v31 = vpop.permute.xlu1 %540  ;;  %v653_v35 = vld [vmem:[#allocation2 + $0x58] sm:$0xf]  ;;  %v3156_v22 = vrot.slane %v819_v55, 11  ;;  %v995_v55 = vshrl.u32 %v678_v34, 16 }
  0xea   : > { %v1479_v36 = vld [vmem:[#allocation2 + $0x58] sm:$0xf]  ;;  %497 = vst.msk [vmem:[#allocation2 + $0x68] sm:$0xf] %vm483_vm5, %v414_v30  ;;  %v652_v41 = vld [vmem:[#allocation2 + $0x54] sm:$0xf]  ;;  %v424_v23 = vpop.permute.xlu2 %423 }
  0xeb   : > { %2527 = vmatmul.msk.bf16.gmra.mxu2 %vm1128_vm12, %v1937_v27  ;;  %v2548_v13 = vld [vmem:[#allocation2 + $0x54] sm:$0xff]  ;;  %v811_v10 = vshrl.u32 %v653_v35, 16  ;;  %619 = vst.msk [vmem:[#allocation2 + $0x68] sm:$0xf] %vm321_vm1, %v3086_v9  ;;  %v802_v43 = vshrl.u32 %v652_v41, 16  ;;  %v805_v45 = vshll.u32 %v652_v41, 16 }
  0xec   : > { %v814_v47 = vshll.u32 %v653_v35, 16  ;;  %v1644_v48 = vshll.u32 %v1479_v36, 16  ;;  %2486 = vmatmul.msk.bf16.gmra.mxu0 %vm1128_vm12, %v2548_v13  ;;  %618 = vst.msk [vmem:[#allocation2 + $0x64] sm:$0xf] %vm321_vm1, %v541_v31  ;;  %v1478_v51 = vld [vmem:[#allocation2 + $0x54] sm:$0xf] }
  0xed   : > { %v813_v50 = vrot.slane %v811_v10, 7  ;;  %v1648_v53 = vshrl.u32 %v1479_v36, 16  ;;  %v804_v3 = vrot.slane %v802_v43, 7  ;;  %v1635_v56 = vshrl.u32 %v1478_v51, 16  ;;  %502 = vst.msk [vmem:[#allocation2 + $0x94] sm:$0xf] %vm483_vm5, %v424_v23 }
  0xee   : > { %v1638_v57 = vshll.u32 %v1478_v51, 16  ;;  %v1646_v58 = vrot.slane %v1644_v48, 5  ;;  %v242_v13 = vld [vmem:[#allocation2 + $0x80] sm:$0x8]  ;;  %v293_v43 = vld [vmem:[#allocation2 + $0x8c] sm:$0x1] }
  0xef   : > { %v816_v9 = vor.u32 %v814_v47, %v813_v50  ;;  %v1650_v59 = vrot.slane %v1648_v53, 4  ;;  %v807_v63 = vor.u32 %v805_v45, %v804_v3  ;;  %v809_v0 = vrot.slane %v804_v3, 4  ;;  %v3167_v51 = vld [vmem:[#allocation2 + $0xe4] sm:$0xf] }
  0xf0   : > { %v1637_v1 = vrot.slane %v1635_v56, 4  ;;  %v1640_v62 = vrot.slane %v1638_v57, 5 }
  0xf1   : > { %v1651_v2 = vor.u32 %v1650_v59, %v1646_v58  ;;  %v416_v5 = vpop.permute.xlu0 %415  ;;  %v808_v6 = vsel %vm2936_vm14, %v2400_v28, %v807_v63  ;;  %v817_v8 = vsel %vm2936_vm14, %v809_v0, %v816_v9  ;;  %v418_v11 = vpop.permute.xlu1 %417  ;;  %v3169_v9 = vld [vmem:[#allocation2 + $0xe8] sm:$0xf]  ;;  %v3171_v59 = vld [vmem:[#allocation2 + $0xc4] sm:$0xf]  ;;  %v243_v63 = vsel %vm2813_vm4, 0, %v242_v13 }
  0xf2   : > { %v1641_v38 = vor.u32 %v1640_v62, %v1637_v1  ;;  %498 = vst.msk [vmem:[#allocation2 + $0x74] sm:$0xf] %vm483_vm5, %v416_v5  ;;  %v1280_v15 = vunpack.c.l.b16 %v808_v6  ;;  %v1281_v16 = vunpack.c.l.b16 %v817_v8  ;;  %v656_v18 = vld [vmem:[#allocation2 + $0x68] sm:$0xf]  ;;  %v294_v0 = vsel %vm2842_vm8, 0, %v293_v43 }
  0xf3   : > { %v1652_v17 = vrot.slane %v1651_v2, 4  ;;  %499 = vst.msk [vmem:[#allocation2 + $0x78] sm:$0xf] %vm483_vm5, %v418_v11  ;;  %v655_v7 = vld [vmem:[#allocation2 + $0x64] sm:$0xf]  ;;  %2513 = vmatmul.msk.bf16.vlgmr.msrb.gmra.mxu3 %vm1128_vm12, %v1314_v12  ;;  %v833_v60 = vshrl.u32 %v656_v18, 16  ;;  %v1297_v1 = vunpack.c.l.b16 %v3154_v14 }
  0xf4   : > { %v1642_v20 = vrot.slane %v1641_v38, 4  ;;  %v1307_v61 = vpack.c.b16 %v1281_v16, %v1280_v15  ;;  %620 = vst.msk [vmem:[#allocation2 + $0x74] sm:$0xf] %vm321_vm1, %v3105_v44  ;;  %v824_v46 = vshrl.u32 %v655_v7, 16  ;;  %v827_v26 = vshll.u32 %v655_v7, 16  ;;  %v2549_v47 = vld [vmem:[#allocation2 + $0x64] sm:$0xff] }
  0xf5   : > { %v1657_v25 = vsel %vm2943_vm15, %v1652_v17, %v1656_v4  ;;  %v1481_v27 = vld [vmem:[#allocation2 + $0x64] sm:$0xf]  ;;  %v836_v30 = vshll.u32 %v656_v18, 16  ;;  %v1482_v31 = vld [vmem:[#allocation2 + $0x68] sm:$0xf]  ;;  %v835_v39 = vrot.slane %v833_v60, 7  ;;  %v1315_v14 = vpack.c.b16 %v1297_v1, %v1296_v52 }
  0xf6   : > { %v1647_v28 = vsel %vm2943_vm15, %v1642_v20, %v1646_v58  ;;  %v1912_v29 = vunpack.c.l.b16 %v1657_v25  ;;  %2506 = vmatmul.msk.bf16.gmra.mxu1 %vm1128_vm12, %v1307_v61  ;;  %v826_v36 = vrot.slane %v824_v46, 7  ;;  %v1659_v37 = vshrl.u32 %v1481_v27, 16  ;;  %244 = vst [vmem:[#allocation2 + $0x80] sm:$0x8] %v243_v63  ;;  %v657_v17 = vld [vmem:[#allocation2 + $0x70] sm:$0x8] }
  0xf7   : > { %v1911_v35 = vunpack.c.l.b16 %v1647_v28  ;;  %v1662_v44 = vshll.u32 %v1481_v27, 16  ;;  %v1668_v41 = vshll.u32 %v1482_v31, 16  ;;  %v1672_v10 = vshrl.u32 %v1482_v31, 16  ;;  %295 = vst [vmem:[#allocation2 + $0x8c] sm:$0x1] %v294_v0 }
  0xf8   : > { %v829_v48 = vor.u32 %v827_v26, %v826_v36  ;;  %v831_v49 = vrot.slane %v826_v36, 4  ;;  %v1661_v50 = vrot.slane %v1659_v37, 4  ;;  %v838_v3 = vor.u32 %v836_v30, %v835_v39  ;;  %v1486_v36 = vld [vmem:[#allocation2 + $0x7c] sm:$0x1]  ;;  %v3209_v52 = vld [vmem:[#allocation2 + $0xf4] sm:$0xf] }
  0xf9   : > { %v1938_v45 = vpack.c.b16 %v1912_v29, %v1911_v35  ;;  %v547_v53 = vpop.permute.xlu0 %546  ;;  %v420_v54 = vpop.permute.xlu1 %419  ;;  %v1664_v56 = vrot.slane %v1662_v44, 5  ;;  %v1670_v57 = vrot.slane %v1668_v41, 5  ;;  %v1674_v58 = vrot.slane %v1672_v10, 4 }
  0xfa   : > { %621 = vst.msk [vmem:[#allocation2 + $0x78] sm:$0xf] %vm321_vm1, %v547_v53  ;;  %v1000_v4 = vshrl.u32 %v3167_v51, 16  ;;  %v1680_v6 = vrot.slane %v1678_v42, 5  ;;  %v1009_v8 = vshrl.u32 %v3169_v9, 16  ;;  %v830_v11 = vsel %vm2936_vm14, %v3156_v22, %v829_v48 }
  0xfb   : > { %2528 = vmatmul.msk.bf16.gmra.mxu2 %vm1128_vm12, %v1938_v45  ;;  %500 = vst.msk [vmem:[#allocation2 + $0x84] sm:$0xf] %vm483_vm5, %v420_v54  ;;  %v1665_v62 = vor.u32 %v1664_v56, %v1661_v50  ;;  %v1675_v2 = vor.u32 %v1674_v58, %v1670_v57  ;;  %v1484_v5 = vld [vmem:[#allocation2 + $0x74] sm:$0xf]  ;;  %v839_v12 = vsel %vm2936_vm14, %v831_v49, %v838_v3  ;;  %v1803_v20 = vshrl.u32 %v3171_v59, 16 }
  0xfc   : > { %2487 = vmatmul.msk.bf16.gmra.mxu0 %vm1128_vm12, %v2549_v47  ;;  %v658_v38 = vld [vmem:[#allocation2 + $0x74] sm:$0xf]  ;;  %v1683_v18 = vshrl.u32 %v1484_v5, 16  ;;  %v1686_v19 = vshll.u32 %v1484_v5, 16  ;;  %v1806_v21 = vshll.u32 %v3171_v59, 16  ;;  %v3191_v7 = vrot.slane %v995_v55, 11  ;;  %v555_v5 = vpop.permute.xlu2 %554 }
  0xfd   : > { %v1666_v15 = vrot.slane %v1665_v62, 4  ;;  %v1676_v16 = vrot.slane %v1675_v2, 4  ;;  %v1003_v61 = vshll.u32 %v3167_v51, 16  ;;  %v846_v25 = vshrl.u32 %v658_v38, 16  ;;  %v3204_v3 = vld [vmem:[#allocation2 + $0xc8] sm:$0xf] }
  0xfe   : > { %v1282_v22 = vunpack.c.l.b16 %v830_v11  ;;  %v1283_v46 = vunpack.c.l.b16 %v839_v12  ;;  %v1002_v26 = vrot.slane %v1000_v4, 7  ;;  %v1012_v27 = vshll.u32 %v3169_v9, 16  ;;  %v3207_v59 = vld [vmem:[#allocation2 + $0xf0] sm:$0x8]  ;;  %v3212_v62 = vld [vmem:[#allocation2 + $0xf8] sm:$0xf] }
  0xff   : > { %v1671_v23 = vsel %vm2943_vm15, %v1666_v15, %v1670_v57  ;;  %v1681_v28 = vsel %vm2943_vm15, %v1676_v16, %v1680_v6  ;;  %v1011_v30 = vrot.slane %v1009_v8, 7  ;;  %v841_v34 = vshrl.u32 %v657_v17, 16 }
 0x100   : > { %v849_v37 = vshll.u32 %v658_v38, 16  ;;  %v1685_v13 = vrot.slane %v1683_v18, 4  ;;  %v1688_v39 = vrot.slane %v1686_v19, 5  ;;  %v848_v41 = vrot.slane %v846_v25, 7 }
 0x101   : > { %v551_v29 = vpop.permute.xlu1 %550  ;;  %v549_v60 = vpop.permute.xlu0 %548  ;;  %v659_v31 = vld [vmem:[#allocation2 + $0x78] sm:$0xf]  ;;  %v1308_v45 = vpack.c.b16 %v1283_v46, %v1282_v22  ;;  %v1913_v47 = vunpack.c.l.b16 %v1671_v23  ;;  %v1914_v48 = vunpack.c.l.b16 %v1681_v28  ;;  %v1005_v50 = vor.u32 %v1003_v61, %v1002_v26 }
 0x102   : > { %v1485_v35 = vld [vmem:[#allocation2 + $0x78] sm:$0xf]  ;;  %623 = vst.msk [vmem:[#allocation2 + $0x88] sm:$0xf] %vm321_vm1, %v551_v29  ;;  %v855_v44 = vshrl.u32 %v659_v31, 16  ;;  %v858_v10 = vshll.u32 %v659_v31, 16  ;;  %v1014_v56 = vor.u32 %v1012_v27, %v1011_v30  ;;  %v1689_v58 = vor.u32 %v1688_v39, %v1685_v13 }
 0x103   : > { %622 = vst.msk [vmem:[#allocation2 + $0x84] sm:$0xf] %vm321_vm1, %v549_v60  ;;  %v1692_v42 = vshll.u32 %v1485_v35, 16  ;;  %v1696_v43 = vshrl.u32 %v1485_v35, 16  ;;  %2514 = vmatmul.msk.bf16.gmra.mxu3 %vm1128_vm12, %v1315_v14  ;;  %v1007_v51 = vrot.slane %v1002_v26, 4  ;;  %v2402_v57 = vrot.slane %v841_v34, 11 }
 0x104   : > { %v857_v49 = vrot.slane %v855_v44, 7  ;;  %v1702_v9 = vshll.u32 %v1486_v36, 16  ;;  %v851_v55 = vor.u32 %v849_v37, %v848_v41  ;;  %v853_v63 = vrot.slane %v848_v41, 4  ;;  %v2550_v4 = vld [vmem:[#allocation2 + $0x74] sm:$0xff]  ;;  %v245_v30 = vld [vmem:[#allocation2 + $0x90] sm:$0x8] }
 0x105   : > { %v3202_v53 = vrot.slane %v1692_v42, 5  ;;  %v1698_v54 = vrot.slane %v1696_v43, 4  ;;  %v1939_v2 = vpack.c.b16 %v1914_v48, %v1913_v47  ;;  %v3214_v6 = vrot.slane %v1803_v20, 4  ;;  %v660_v36 = vld [vmem:[#allocation2 + $0x80] sm:$0x8] }
 0x106   : > { %2507 = vmatmul.msk.bf16.gmra.mxu1 %vm1128_vm12, %v1308_v45  ;;  %v860_v0 = vor.u32 %v858_v10, %v857_v49  ;;  %v1812_v8 = vshll.u32 %v3204_v3, 16  ;;  %v1816_v38 = vshrl.u32 %v3204_v3, 16  ;;  %v1017_v15 = vshrl.u32 %v3207_v59, 16  ;;  %v296_v44 = vld [vmem:[#allocation2 + $0x9c] sm:$0x1] }
 0x107   : > { %v1699_v1 = vor.u32 %v1698_v54, %v3202_v53  ;;  %v1022_v16 = vshrl.u32 %v3209_v52, 16  ;;  %v1025_v17 = vshll.u32 %v3209_v52, 16  ;;  %v3221_v18 = vrot.slane %v1806_v21, 5  ;;  %v1501_v47 = vld [vmem:[#allocation2 + $0xcc] sm:$0x1] }
 0x108   : > { %v1006_v19 = vsel %vm2936_vm14, %v3191_v7, %v1005_v50  ;;  %v1015_v20 = vsel %vm2936_vm14, %v1007_v51, %v1014_v56  ;;  %v1690_v14 = vrot.slane %v1689_v58, 4  ;;  %v1031_v61 = vshrl.u32 %v3212_v62, 16 }
 0x109   : > { %v426_v11 = vpop.permute.xlu0 %425  ;;  %v553_v12 = vpop.permute.xlu1 %552  ;;  %v852_v25 = vsel %vm2936_vm14, %v2402_v57, %v851_v55  ;;  %v861_v21 = vsel %vm2936_vm14, %v853_v63, %v860_v0  ;;  %v1700_v22 = vrot.slane %v1699_v1, 4  ;;  %v1704_v46 = vrot.slane %v1702_v9, 5  ;;  %v3238_v7 = vld [vmem:[#allocation2 + $0x88] sm:$0xf]  ;;  %v1489_v63 = vld [vmem:[#allocation2 + $0x8c] sm:$0x1] }
 0x10a   : > { %503 = vst.msk [vmem:[#allocation2 + $0x98] sm:$0xf] %vm483_vm5, %v426_v11  ;;  %v1487_v26 = vld [vmem:[#allocation2 + $0x84] sm:$0xf]  ;;  %v1298_v27 = vunpack.c.l.b16 %v1006_v19  ;;  %v1299_v23 = vunpack.c.l.b16 %v1015_v20  ;;  %v1488_v29 = vld [vmem:[#allocation2 + $0x88] sm:$0xf]  ;;  %v1809_v60 = vor.u32 %v3221_v18, %v3214_v6  ;;  %v1284_v31 = vunpack.c.l.b16 %v852_v25  ;;  %v557_v1 = vpop.permute.xlu2 %556 }
 0x10b   : > { %2529 = vmatmul.msk.bf16.gmra.mxu2 %vm1128_vm12, %v1939_v2  ;;  %625 = vst.msk [vmem:[#allocation2 + $0x98] sm:$0xf] %vm321_vm1, %v555_v5  ;;  %v661_v28 = vld [vmem:[#allocation2 + $0x84] sm:$0xf]  ;;  %v1285_v34 = vunpack.c.l.b16 %v861_v21  ;;  %v1695_v35 = vsel %vm2943_vm15, %v1690_v14, %v3202_v53  ;;  %v246_v37 = vsel %vm2813_vm4, 0, %v245_v30  ;;  %v1705_v13 = vsel %vm2943_vm15, %v1700_v22, %v1704_v46 }
 0x10c   : > { %2488 = vmatmul.msk.bf16.gmra.mxu0 %vm1128_vm12, %v2550_v4  ;;  %624 = vst.msk [vmem:[#allocation2 + $0x94] sm:$0xf] %vm321_vm1, %v553_v12  ;;  %v877_v39 = vshrl.u32 %v3238_v7, 16  ;;  %v1707_v41 = vshrl.u32 %v1487_v26, 16  ;;  %v1710_v10 = vshll.u32 %v1487_v26, 16  ;;  %v868_v42 = vshrl.u32 %v661_v28, 16 }
 0x10d   : > { %247 = vst [vmem:[#allocation2 + $0x90] sm:$0x8] %v246_v37  ;;  %v1716_v43 = vshll.u32 %v1488_v29, 16  ;;  %v1720_v45 = vshrl.u32 %v1488_v29, 16  ;;  %v297_v48 = vsel %vm2842_vm8, 0, %v296_v44  ;;  %v1316_v50 = vpack.c.b16 %v1299_v23, %v1298_v27  ;;  %v2551_v23 = vld [vmem:[#allocation2 + $0x84] sm:$0xff] }
 0x10e   : > { %v1024_v51 = vrot.slane %v1022_v16, 7  ;;  %v1033_v53 = vrot.slane %v1031_v61, 7  ;;  %v1034_v54 = vshll.u32 %v3212_v62, 16  ;;  %298 = vst [vmem:[#allocation2 + $0x9c] sm:$0x1] %v297_v48  ;;  %v1309_v57 = vpack.c.b16 %v1285_v34, %v1284_v31 }
 0x10f   : > { %v1915_v58 = vunpack.c.l.b16 %v1695_v35  ;;  %v863_v9 = vshrl.u32 %v660_v36, 16  ;;  %v871_v55 = vshll.u32 %v661_v28, 16  ;;  %v1916_v2 = vunpack.c.l.b16 %v1705_v13  ;;  %v3275_v46 = vld [vmem:[#allocation2 + $0xd4] sm:$0xf] }
 0x110   : > { %v3252_v49 = vpop.f32.mrf.mxu0  ;;  %v879_v4 = vrot.slane %v877_v39, 7  ;;  %v1709_v5 = vrot.slane %v1707_v41, 4  ;;  %v1712_v6 = vrot.slane %v1710_v10, 5  ;;  %v870_v62 = vrot.slane %v868_v42, 7 }
 0x111   : > { %v428_v56 = vpop.permute.xlu0 %427  ;;  %v880_v11 = vshll.u32 %v3238_v7, 16  ;;  %v3259_v12 = vrot.slane %v1716_v43, 5  ;;  %v1722_v16 = vrot.slane %v1720_v45, 4  ;;  %v3262_v18 = vrot.slane %v1809_v60, 4 }
 0x112   : > { %504 = vst.msk [vmem:[#allocation2 + $0xa4] sm:$0xf] %vm483_vm5, %v428_v56  ;;  %v430_v0 = vpop.permute.xlu1 %429  ;;  %v3266_v19 = vrot.slane %v1812_v8, 5  ;;  %v1818_v20 = vrot.slane %v1816_v38, 4  ;;  %v1822_v14 = vshll.u32 %v1501_v47, 16  ;;  %v2410_v61 = vrot.slane %v1017_v15, 11 }
 0x113   : > { %505 = vst.msk [vmem:[#allocation2 + $0xa8] sm:$0xf] %vm483_vm5, %v430_v0  ;;  %2515 = vmatmul.msk.bf16.gmra.mxu3 %vm1128_vm12, %v1316_v50  ;;  %v1027_v25 = vor.u32 %v1025_v17, %v1024_v51  ;;  %v1029_v21 = vrot.slane %v1024_v51, 4  ;;  %v1036_v22 = vor.u32 %v1034_v54, %v1033_v53  ;;  %v1940_v7 = vpack.c.b16 %v1916_v2, %v1915_v58  ;;  %v3283_v17 = vld [vmem:[#allocation2 + $0xd8] sm:$0xf] }
 0x114   : > { %626 = vst.msk [vmem:[#allocation2 + $0xa4] sm:$0xf] %vm321_vm1, %v557_v1  ;;  %v2403_v26 = vrot.slane %v863_v9, 11  ;;  %v1713_v8 = vor.u32 %v1712_v6, %v1709_v5  ;;  %v1726_v27 = vshll.u32 %v1489_v63, 16  ;;  %v873_v3 = vor.u32 %v871_v55, %v870_v62  ;;  %v3288_v34 = vld [vmem:[#allocation2 + $0x94] sm:$0xf] }
 0x115   : > { %v875_v38 = vrot.slane %v870_v62, 4  ;;  %v882_v28 = vor.u32 %v880_v11, %v879_v4  ;;  %v1723_v29 = vor.u32 %v1722_v16, %v3259_v12  ;;  %v1819_v52 = vor.u32 %v1818_v20, %v3266_v19  ;;  %v665_v35 = vld [vmem:[#allocation2 + $0x98] sm:$0xf]  ;;  %v1490_v50 = vld [vmem:[#allocation2 + $0x94] sm:$0xf]  ;;  %v434_v20 = vpop.permute.xlu2 %433 }
 0x116   : > { %2508 = vmatmul.msk.bf16.gmra.mxu1 %vm1128_vm12, %v1309_v57  ;;  %v3281_v15 = vrot.slane %v1822_v14, 5  ;;  %v1827_v30 = vshrl.u32 %v3275_v46, 16  ;;  %v1028_v37 = vsel %vm2936_vm14, %v2410_v61, %v1027_v25  ;;  %v1037_v44 = vsel %vm2936_vm14, %v1029_v21, %v1036_v22  ;;  %v1491_v54 = vld [vmem:[#allocation2 + $0x98] sm:$0xf]  ;;  %v663_v1 = vld [vmem:[#allocation2 + $0x90] sm:$0x8] }
 0x117   : > { %v1714_v13 = vrot.slane %v1713_v8, 4  ;;  %v1815_v39 = vsel %vm2943_vm15, %v3262_v18, %v3266_v19  ;;  %v874_v41 = vsel %vm2936_vm14, %v2403_v26, %v873_v3  ;;  %v883_v10 = vsel %vm2936_vm14, %v875_v38, %v882_v28  ;;  %507 = vst.msk [vmem:[#allocation2 + $0xb8] sm:$0xf] %vm483_vm5, %v434_v20  ;;  %v1504_v22 = vld [vmem:[#allocation2 + $0xdc] sm:$0x1] }
 0x118   : > { %v3278_v60 = vpop.f32.mrf.mxu0  ;;  %v1724_v42 = vrot.slane %v1723_v29, 4  ;;  %v1728_v43 = vrot.slane %v1726_v27, 5  ;;  %v1820_v45 = vrot.slane %v1819_v52, 4  ;;  %v890_v47 = vshrl.u32 %v3288_v34, 16  ;;  %v248_v3 = vld [vmem:[#allocation2 + $0xa0] sm:$0x8] }
 0x119   : > { %v559_v59 = vpop.permute.xlu0 %558  ;;  %v899_v48 = vshrl.u32 %v665_v35, 16  ;;  %v1836_v51 = vshll.u32 %v3283_v17, 16  ;;  %v1301_v53 = vunpack.c.l.b16 %v1037_v44  ;;  %v3308_v56 = vrot.slane %v1827_v30, 4  ;;  %v299_v38 = vld [vmem:[#allocation2 + $0xac] sm:$0x1] }
 0x11a   : > { %627 = vst.msk [vmem:[#allocation2 + $0xa8] sm:$0xf] %vm321_vm1, %v559_v59  ;;  %v432_v31 = vpop.permute.xlu1 %431  ;;  %v1830_v57 = vshll.u32 %v3275_v46, 16  ;;  %v1840_v58 = vshrl.u32 %v3283_v17, 16  ;;  %v1300_v9 = vunpack.c.l.b16 %v1028_v37  ;;  %v1286_v55 = vunpack.c.l.b16 %v874_v41 }
 0x11b   : > { %2530 = vmatmul.msk.bf16.gmra.mxu2 %vm1128_vm12, %v1940_v7  ;;  %506 = vst.msk [vmem:[#allocation2 + $0xb4] sm:$0xf] %vm483_vm5, %v432_v31  ;;  %v1287_v63 = vunpack.c.l.b16 %v883_v10  ;;  %v1719_v0 = vsel %vm2943_vm15, %v1714_v13, %v3259_v12  ;;  %v1729_v2 = vsel %vm2943_vm15, %v1724_v42, %v1728_v43  ;;  %v902_v4 = vshll.u32 %v665_v35, 16  ;;  %v1492_v13 = vld [vmem:[#allocation2 + $0x9c] sm:$0x1] }
 0x11c   : > { %v3290_v36 = vpop.f32.mrf.mxu1  ;;  %2489 = vmatmul.msk.bf16.gmra.mxu0 %vm1128_vm12, %v2551_v23  ;;  %v1731_v5 = vshrl.u32 %v1490_v50, 16  ;;  %v1734_v6 = vshll.u32 %v1490_v50, 16  ;;  %v892_v11 = vrot.slane %v890_v47, 7  ;;  %v901_v16 = vrot.slane %v899_v48, 7  ;;  %v2552_v48 = vld [vmem:[#allocation2 + $0x94] sm:$0xff] }
 0x11d   : > { %v1740_v18 = vshll.u32 %v1491_v54, 16  ;;  %v1744_v19 = vshrl.u32 %v1491_v54, 16  ;;  %v1317_v14 = vpack.c.b16 %v1301_v53, %v1300_v9  ;;  %v885_v61 = vshrl.u32 %v663_v1, 16 }
 0x11e   : > { %v893_v25 = vshll.u32 %v3288_v34, 16  ;;  %v1832_v46 = vrot.slane %v1830_v57, 5  ;;  %v1310_v26 = vpack.c.b16 %v1287_v63, %v1286_v55  ;;  %v1917_v8 = vunpack.c.l.b16 %v1719_v0  ;;  %v667_v63 = vld [vmem:[#allocation2 + $0xa4] sm:$0xf] }
 0x11f   : > { %v1918_v27 = vunpack.c.l.b16 %v1729_v2  ;;  %v1825_v23 = vsel %vm2943_vm15, %v1820_v45, %v3281_v15  ;;  %v1733_v29 = vrot.slane %v1731_v5, 4  ;;  %v1736_v59 = vrot.slane %v1734_v6, 5  ;;  %v1493_v0 = vld [vmem:[#allocation2 + $0xa4] sm:$0xf] }
 0x120   : > { %v3317_v62 = vpop.f32.mrf.mxu0  ;;  %v249_v52 = vsel %vm2813_vm4, 0, %v248_v3  ;;  %v300_v17 = vsel %vm2842_vm8, 0, %v299_v38  ;;  %v897_v30 = vrot.slane %v892_v11, 4  ;;  %v904_v31 = vor.u32 %v902_v4, %v901_v16 }
 0x121   : > { %v561_v21 = vpop.permute.xlu0 %560  ;;  %v3331_v15 = vrot.slane %v1740_v18, 5  ;;  %v1746_v34 = vrot.slane %v1744_v19, 4  ;;  %250 = vst [vmem:[#allocation2 + $0xa0] sm:$0x8] %v249_v52  ;;  %v3334_v35 = vunpack.c.l.b16 %v1815_v39  ;;  %v2404_v37 = vrot.slane %v885_v61, 11 }
 0x122   : > { %v563_v12 = vpop.permute.xlu1 %562  ;;  %628 = vst.msk [vmem:[#allocation2 + $0xb4] sm:$0xf] %vm321_vm1, %v561_v21  ;;  %v895_v44 = vor.u32 %v893_v25, %v892_v11  ;;  %v3336_v41 = vunpack.c.l.b16 %v1825_v23  ;;  %v3338_v10 = vrot.slane %v1836_v51, 5  ;;  %v1842_v42 = vrot.slane %v1840_v58, 4  ;;  %v668_v11 = vld [vmem:[#allocation2 + $0xa8] sm:$0xf] }
 0x123   : > { %629 = vst.msk [vmem:[#allocation2 + $0xb8] sm:$0xf] %vm321_vm1, %v563_v12  ;;  %2516 = vmatmul.msk.bf16.gmra.mxu3 %vm1128_vm12, %v1317_v14  ;;  %v1846_v43 = vshll.u32 %v1504_v22, 16  ;;  %v1384_v45 = vadd.f32 %v3290_v36, %v3252_v49  ;;  %v1941_v47 = vpack.c.b16 %v1918_v27, %v1917_v8  ;;  %v1737_v50 = vor.u32 %v1736_v59, %v1733_v29  ;;  %v1494_v20 = vld [vmem:[#allocation2 + $0xa8] sm:$0xf] }
 0x124   : > { %v1385_v7 = vpop.f32.mrf.mxu1  ;;  %301 = vst [vmem:[#allocation2 + $0xac] sm:$0x1] %v300_v17  ;;  %v1833_v53 = vor.u32 %v1832_v46, %v3308_v56  ;;  %v905_v54 = vsel %vm2936_vm14, %v897_v30, %v904_v31  ;;  %v1747_v57 = vor.u32 %v1746_v34, %v3331_v15  ;;  %v1750_v9 = vshll.u32 %v1492_v13, 16 }
 0x125   : > { %v2014_v28 = vpop.f32.mrf.mxu2  ;;  %v896_v58 = vsel %vm2936_vm14, %v2404_v37, %v895_v44  ;;  %v1386_v49 = vadd.f32 %v1385_v7, %v3278_v60  ;;  %v1945_v56 = vpack.c.b16 %v3336_v41, %v3334_v35  ;;  %v3354_v55 = vrot.slane %v1846_v43, 5  ;;  %v1505_v35 = vld [vmem:[#allocation2 + $0xe4] sm:$0xf]  ;;  %v251_v43 = vld [vmem:[#allocation2 + $0xb0] sm:$0x8] }
 0x126   : > { %2509 = vmatmul.msk.bf16.gmra.mxu1 %vm1128_vm12, %v1310_v26  ;;  %v2094_v51 = vadd.f32 %v2014_v28, %v1384_v45  ;;  %v1289_v2 = vunpack.c.l.b16 %v905_v54  ;;  %v1738_v4 = vrot.slane %v1737_v50, 4  ;;  %v3357_v5 = vrot.slane %v1833_v53, 4  ;;  %v302_v45 = vld [vmem:[#allocation2 + $0xbc] sm:$0x1] }
 0x127   : > { %v1843_v6 = vor.u32 %v1842_v42, %v3338_v10  ;;  %v1288_v16 = vunpack.c.l.b16 %v896_v58  ;;  %v1748_v18 = vrot.slane %v1747_v57, 4  ;;  %v1752_v19 = vrot.slane %v1750_v9, 5  ;;  %v3375_v52 = vpop.f32.mrf.mxu3 }
 0x128   : > { %v3343_v39 = vpop.f32.mrf.mxu0  ;;  %v2227_v14 = vmul.f32 %v2094_v51, %v2094_v51  ;;  %v912_v61 = vshrl.u32 %v667_v63, 16  ;;  %v1755_v25 = vshrl.u32 %v1493_v0, 16  ;;  %v1758_v12 = vshll.u32 %v1493_v0, 16  ;;  %v666_v27 = vld [vmem:[#allocation2 + $0xa0] sm:$0x8] }
 0x129   : > { %v921_v7 = vshrl.u32 %v668_v11, 16  ;;  %v1743_v26 = vsel %vm2943_vm15, %v1738_v4, %v3331_v15  ;;  %v3370_v8 = vrot.slane %v1843_v6, 4  ;;  %v1764_v23 = vshll.u32 %v1494_v20, 16  ;;  %v2553_v6 = vld [vmem:[#allocation2 + $0xa4] sm:$0xff] }
 0x12a   : > { %v1768_v3 = vshrl.u32 %v1494_v20, 16  ;;  %v1311_v28 = vpack.c.b16 %v1289_v2, %v1288_v16  ;;  %v1753_v29 = vsel %vm2943_vm15, %v1748_v18, %v1752_v19  ;;  %v915_v59 = vshll.u32 %v667_v63, 16  ;;  %v1506_v63 = vld [vmem:[#allocation2 + $0xe8] sm:$0xf] }
 0x12b   : > { %2531 = vmatmul.msk.bf16.gmra.mxu2 %vm1128_vm12, %v1941_v47  ;;  %v914_v17 = vrot.slane %v912_v61, 7  ;;  %v924_v30 = vshll.u32 %v668_v11, 16  ;;  %v1757_v31 = vrot.slane %v1755_v25, 4  ;;  %v1760_v34 = vrot.slane %v1758_v12, 5 }
 0x12c   : > { %v1388_v36 = vpop.f32.mrf.mxu1  ;;  %2490 = vmatmul.msk.bf16.gmra.mxu0 %vm1128_vm12, %v2552_v48  ;;  %v1919_v13 = vunpack.c.l.b16 %v1743_v26  ;;  %v907_v41 = vshrl.u32 %v666_v27, 16  ;;  %v923_v42 = vrot.slane %v921_v7, 7  ;;  %v1920_v48 = vunpack.c.l.b16 %v1753_v29  ;;  %v1507_v26 = vld [vmem:[#allocation2 + $0xec] sm:$0x1]  ;;  %v670_v29 = vld [vmem:[#allocation2 + $0xb4] sm:$0xf] }
 0x12d   : > { %v2016_v1 = vpop.f32.mrf.mxu2  ;;  %v1389_v15 = vadd.f32 %v1388_v36, %v3317_v62  ;;  %v3381_v50 = vrot.slane %v1764_v23, 5  ;;  %v1770_v53 = vrot.slane %v1768_v3, 4  ;;  %v252_v54 = vsel %vm2813_vm4, 0, %v251_v43  ;;  %v1495_v62 = vld [vmem:[#allocation2 + $0xac] sm:$0x1] }
 0x12e   : > { %v2095_v60 = vadd.f32 %v2016_v1, %v1386_v49  ;;  %v1851_v9 = vshrl.u32 %v1505_v35, 16  ;;  %253 = vst [vmem:[#allocation2 + $0xb0] sm:$0x8] %v252_v54  ;;  %v1839_v58 = vsel %vm2943_vm15, %v3357_v5, %v3338_v10  ;;  %v917_v49 = vor.u32 %v915_v59, %v914_v17 }
 0x12f   : > { %v919_v36 = vrot.slane %v914_v17, 4  ;;  %v2405_v1 = vrot.slane %v907_v41, 11  ;;  %v926_v2 = vor.u32 %v924_v30, %v923_v42  ;;  %v1942_v4 = vpack.c.b16 %v1920_v48, %v1919_v13  ;;  %v3403_v12 = vpop.f32.mrf.mxu3 }
 0x130   : > { %v2565_v21 = vpack.c.bf16 %v2095_v60, %v2094_v51  ;;  %v2190_v22 = vadd.f32 %v2095_v60, %v2094_v51  ;;  %v2228_v46 = vmul.f32 %v2095_v60, %v2095_v60  ;;  %v3378_v37 = vpop.f32.mrf.mxu0  ;;  %v303_v51 = vsel %vm2842_vm8, 0, %v302_v45 }
 0x131   : > { %304 = vst [vmem:[#allocation2 + $0xbc] sm:$0x1] %v303_v51  ;;  %v1849_v33 = vsel %vm2943_vm15, %v3370_v8, %v3354_v55  ;;  %v1771_v11 = vor.u32 %v1770_v53, %v3381_v50  ;;  %v1774_v60 = vshll.u32 %v1495_v62, 16  ;;  %v1854_v5 = vshll.u32 %v1505_v35, 16  ;;  %v1496_v55 = vld [vmem:[#allocation2 + $0xb4] sm:$0xf] }
 0x132   : > { %2566 = vst [vmem:[%s3365_s7] sm:$0xff] %v2565_v21   ;;  %v2259_v38 = vadd.f32 %v2228_v46, %v2227_v14  ;;  %v1860_v16 = vshll.u32 %v1506_v63, 16  ;;  %v1864_v18 = vshrl.u32 %v1506_v63, 16  ;;  %v1927_v14 = vunpack.c.l.b16 %v1839_v58 }
 0x133   : > { %2535 = vmatmul.msk.bf16.vlgmr.msra.gmra.mxu3 %vm1128_vm12, %v1945_v56  ;;  %v1761_v56 = vor.u32 %v1760_v34, %v1757_v31  ;;  %v918_v61 = vsel %vm2936_vm14, %v2405_v1, %v917_v49  ;;  %v927_v25 = vsel %vm2936_vm14, %v919_v36, %v926_v2  ;;  %v1772_v46 = vrot.slane %v1771_v11, 4  ;;  %v671_v31 = vld [vmem:[#allocation2 + $0xb8] sm:$0xf] }
 0x134   : > { %v1390_v44 = vpop.f32.mrf.mxu1  ;;  %v1776_v7 = vrot.slane %v1774_v60, 5  ;;  %v1853_v8 = vrot.slane %v1851_v9, 4  ;;  %v1856_v3 = vrot.slane %v1854_v5, 5  ;;  %v1290_v59 = vunpack.c.l.b16 %v918_v61  ;;  %v1497_v34 = vld [vmem:[#allocation2 + $0xb8] sm:$0xf] }
 0x135   : > { %v2019_v47 = vpop.f32.mrf.mxu2  ;;  %v1762_v19 = vrot.slane %v1761_v56, 4  ;;  %v1391_v20 = vadd.f32 %v1390_v44, %v3343_v39  ;;  %v1291_v17 = vunpack.c.l.b16 %v927_v25  ;;  %v1779_v35 = vshrl.u32 %v1496_v55, 16  ;;  %v669_v53 = vld [vmem:[#allocation2 + $0xb0] sm:$0x8] }
 0x136   : > { %v2096_v57 = vadd.f32 %v2019_v47, %v1389_v15  ;;  %2510 = vmatmul.msk.bf16.gmra.mxu1 %vm1128_vm12, %v1311_v28  ;;  %v1866_v28 = vrot.slane %v1864_v18, 4  ;;  %v1782_v41 = vshll.u32 %v1496_v55, 16  ;;  %v1777_v43 = vsel %vm2943_vm15, %v1772_v46, %v1776_v7  ;;  %v1509_v55 = vld [vmem:[#allocation2 + $0xf8] sm:$0xf] }
 0x137   : > { %v1767_v30 = vsel %vm2943_vm15, %v1762_v19, %v3381_v50  ;;  %v1870_v45 = vshll.u32 %v1507_v26, 16  ;;  %v934_v47 = vshrl.u32 %v670_v29, 16  ;;  %v943_v54 = vshrl.u32 %v671_v31, 16 }
 0x138   : > { %v2191_v24 = vadd.f32 %v2190_v22, %v2096_v57  ;;  %v2229_v0 = vmul.f32 %v2096_v57, %v2096_v57  ;;  %v1928_v22 = vunpack.c.l.b16 %v1849_v33  ;;  %v3406_v27 = vpop.f32.mrf.mxu0  ;;  %v1788_v62 = vshll.u32 %v1497_v34, 16  ;;  %v1498_v60 = vld [vmem:[#allocation2 + $0xbc] sm:$0x1] }
 0x139   : > { %v1792_v9 = vshrl.u32 %v1497_v34, 16  ;;  %v1312_v50 = vpack.c.b16 %v1291_v17, %v1290_v59  ;;  %v1921_v51 = vunpack.c.l.b16 %v1767_v30  ;;  %v1857_v58 = vor.u32 %v1856_v3, %v1853_v8 }
 0x13a   : > { %v2260_v10 = vadd.f32 %v2259_v38, %v2229_v0  ;;  %v3408_v38 = vrot.slane %v1860_v16, 5  ;;  %v1946_v42 = vpack.c.b16 %v1928_v22, %v1927_v14  ;;  %v1922_v36 = vunpack.c.l.b16 %v1777_v43 }
 0x13b   : > { %2532 = vmatmul.msk.bf16.gmra.mxu2 %vm1128_vm12, %v1942_v4  ;;  %v1781_v56 = vrot.slane %v1779_v35, 4  ;;  %v1784_v63 = vrot.slane %v1782_v41, 5  ;;  %v929_v0 = vshrl.u32 %v669_v53, 16  ;;  %v936_v1 = vrot.slane %v934_v47, 7 }
 0x13c   : > { %2491 = vmatmul.msk.bf16.gmra.mxu0 %vm1128_vm12, %v2553_v6  ;;  %v1393_v39 = vpop.f32.mrf.mxu1  ;;  %v937_v2 = vshll.u32 %v670_v29, 16  ;;  %v946_v4 = vshll.u32 %v671_v31, 16  ;;  %v945_v11 = vrot.slane %v943_v54, 7  ;;  %v1794_v5 = vrot.slane %v1792_v9, 4 }
 0x13d   : > { %v2021_v21 = vpop.f32.mrf.mxu2  ;;  %v1394_v49 = vadd.f32 %v1393_v39, %v3378_v37  ;;  %v1858_v37 = vrot.slane %v1857_v58, 4  ;;  %v1872_v16 = vrot.slane %v1870_v45, 5  ;;  %v1943_v61 = vpack.c.b16 %v1922_v36, %v1921_v51  ;;  %v1510_v58 = vld [vmem:[#allocation2 + $0xfc] sm:$0x1] }
 0x13e   : > { %v2097_v23 = vadd.f32 %v2021_v21, %v1391_v20  ;;  %v3419_v6 = vpop.f32.mrf.mxu3  ;;  %v2554_v21 = vld [vmem:[#allocation2 + $0xb4] sm:$0xff]  ;;  %v2406_v22 = vrot.slane %v929_v0, 11  ;;  %v939_v46 = vor.u32 %v937_v2, %v936_v1  ;;  %v1785_v7 = vor.u32 %v1784_v63, %v1781_v56 }
 0x13f   : > { %v1798_v26 = vshll.u32 %v1498_v60, 16  ;;  %v941_v39 = vrot.slane %v936_v1, 4  ;;  %v1884_v29 = vshll.u32 %v1509_v55, 16  ;;  %v1863_v17 = vsel %vm2943_vm15, %v1858_v37, %v3408_v38 }
 0x140   : > { %v2570_v15 = vpack.c.bf16 %v2097_v23, %v2096_v57  ;;  %v2192_v44 = vadd.f32 %v2191_v24, %v2097_v23  ;;  %v2230_v13 = vmul.f32 %v2097_v23, %v2097_v23  ;;  %v1867_v57 = vor.u32 %v1866_v28, %v3408_v38  ;;  %v1508_v28 = vld [vmem:[#allocation2 + $0xf4] sm:$0xf] }
 0x141   : > { %v1205_v18 = vpop.f32.mrf.mxu0  ;;  %v948_v23 = vor.u32 %v946_v4, %v945_v11  ;;  %v1888_v31 = vshrl.u32 %v1509_v55, 16  ;;  %v1786_v35 = vrot.slane %v1785_v7, 4  ;;  %v1886_v45 = vrot.slane %v1884_v29, 5 }
 0x142   : > { %2642 = vst [vmem:[%s3365_s7 + $0x8] sm:$0xff] %v2570_v15   ;;  %v2261_v48 = vadd.f32 %v2260_v10, %v2230_v13  ;;  %v1790_v10 = vrot.slane %v1788_v62, 5  ;;  %v1868_v25 = vrot.slane %v1867_v57, 4  ;;  %v1800_v15 = vrot.slane %v1798_v26, 5 }
 0x143   : > { %2536 = vmatmul.msk.bf16.gmra.mxu3 %vm1128_vm12, %v1946_v42  ;;  %v1878_v13 = vshll.u32 %v1508_v28, 16  ;;  %v940_v42 = vsel %vm2936_vm14, %v2406_v22, %v939_v46  ;;  %v1890_v62 = vrot.slane %v1888_v31, 4  ;;  %v1929_v9 = vunpack.c.l.b16 %v1863_v17 }
 0x144   : > { %v1395_v19 = vpop.f32.mrf.mxu1  ;;  %v1795_v3 = vor.u32 %v1794_v5, %v1790_v10  ;;  %v1873_v30 = vsel %vm2943_vm15, %v1868_v25, %v1872_v16  ;;  %v1791_v56 = vsel %vm2943_vm15, %v1786_v35, %v1790_v10  ;;  %v1894_v2 = vshll.u32 %v1510_v58, 16 }
 0x145   : > { %v2024_v24 = vpop.f32.mrf.mxu2  ;;  %v1396_v59 = vadd.f32 %v1395_v19, %v3406_v27  ;;  %v949_v27 = vsel %vm2936_vm14, %v941_v39, %v948_v23  ;;  %v1930_v43 = vunpack.c.l.b16 %v1873_v30  ;;  %v1891_v1 = vor.u32 %v1890_v62, %v1886_v45 }
 0x146   : > { %v2098_v33 = vadd.f32 %v2024_v24, %v1394_v49  ;;  %2511 = vmatmul.msk.bf16.gmra.mxu1 %vm1128_vm12, %v1312_v50  ;;  %v1796_v38 = vrot.slane %v1795_v3, 4  ;;  %v3434_v47 = vpop.f32.mrf.mxu3  ;;  %v1292_v50 = vunpack.c.l.b16 %v940_v42  ;;  %v1293_v51 = vunpack.c.l.b16 %v949_v27 }
 0x147   : > { %v1880_v24 = vrot.slane %v1878_v13, 5  ;;  %v1947_v0 = vpack.c.b16 %v1930_v43, %v1929_v9  ;;  %v1892_v10 = vrot.slane %v1891_v1, 4  ;;  %v1896_v19 = vrot.slane %v1894_v2, 5 }
 0x148   : > { %v2193_v20 = vadd.f32 %v2192_v44, %v2098_v33  ;;  %v2231_v14 = vmul.f32 %v2098_v33, %v2098_v33  ;;  %v1875_v44 = vshrl.u32 %v1508_v28, 16  ;;  %v1801_v63 = vsel %vm2943_vm15, %v1796_v38, %v1800_v15 }
 0x149   : > { %v1207_v49 = vpop.f32.mrf.mxu0  ;;  %v1313_v4 = vpack.c.b16 %v1293_v51, %v1292_v50  ;;  %v1924_v11 = vunpack.c.l.b16 %v1801_v63 }
 0x14a   : > { %v2262_v8 = vadd.f32 %v2261_v48, %v2231_v14  ;;  %v1877_v57 = vrot.slane %v1875_v44, 4 }
 0x14b   : > { %2533 = vmatmul.msk.bf16.gmra.mxu2 %vm1128_vm12, %v1943_v61 }
 0x14c   : > { %2492 = vmatmul.msk.bf16.gmra.mxu0 %vm1128_vm12, %v2554_v21  ;;  %v1881_v60 = vor.u32 %v1880_v24, %v1877_v57 }
 0x14d   : > { %v2026_v34 = vpop.f32.mrf.mxu2  ;;  %v1398_v36 = vpop.f32.mrf.mxu1 }
 0x14e   : > { %v2099_v41 = vadd.f32 %v2026_v34, %v1396_v59  ;;  %v1399_v5 = vadd.f32 %v1398_v36, %v1205_v18  ;;  %v1882_v25 = vrot.slane %v1881_v60, 4  ;;  %v1897_v18 = vsel %vm2943_vm15, %v1892_v10, %v1896_v19 }
 0x150   : > { %v2575_v48 = vpack.c.bf16 %v2099_v41, %v2098_v33  ;;  %v2194_v53 = vadd.f32 %v2193_v20, %v2099_v41  ;;  %v2232_v54 = vmul.f32 %v2099_v41, %v2099_v41  ;;  %v1923_v33 = vunpack.c.l.b16 %v1791_v56 }
 0x151   : > { %v1887_v7 = vsel %vm2943_vm15, %v1882_v25, %v1886_v45 }
 0x152   : > { %2643 = vst [vmem:[%s3365_s7 + $0x10] sm:$0xff] %v2575_v48   ;;  %v2263_v32 = vadd.f32 %v2262_v8, %v2232_v54  ;;  %v1944_v14 = vpack.c.b16 %v1924_v11, %v1923_v33  ;;  %v1932_v8 = vunpack.c.l.b16 %v1897_v18  ;;  %v1931_v28 = vunpack.c.l.b16 %v1887_v7 }
 0x153   : > { %2537 = vmatmul.msk.bf16.gmra.mxu3 %vm1128_vm12, %v1947_v0 }
 0x154   : > { %v1948_v31 = vpack.c.b16 %v1932_v8, %v1931_v28 }
 0x155   : > { %v1400_v22 = vpop.f32.mrf.mxu1 }
 0x156   : > { %2512 = vmatmul.msk.bf16.gmra.mxu1 %vm1128_vm12, %v1313_v4  ;;  %v2029_v37 = vpop.f32.mrf.mxu2  ;;  %v3443_v16 = vpop.f32.mrf.mxu3  ;;  %v1401_v26 = vadd.f32 %v1400_v22, %v1207_v49 }
 0x157   : > { %v2100_v20 = vadd.f32 %v2029_v37, %v1399_v5 }
 0x159   : > { %v1210_v61 = vpop.f32.mrf.mxu0  ;;  %v2195_v55 = vadd.f32 %v2194_v53, %v2100_v20  ;;  %v2233_v21 = vmul.f32 %v2100_v20, %v2100_v20 }
 0x15b   : > { %2534 = vmatmul.msk.bf16.gmra.mxu2 %vm1128_vm12, %v1944_v14  ;;  %v2264_v46 = vadd.f32 %v2263_v32, %v2233_v21 }
 0x15e   : > { %v2031_v39 = vpop.f32.mrf.mxu2  ;;  %v3450_v23 = vpop.f32.mrf.mxu3 }
 0x15f   : > { %v2101_v3 = vadd.f32 %v2031_v39, %v1401_v26 }
 0x161   : > { %v1212_v29 = vpop.f32.mrf.mxu0  ;;  %v2580_v59 = vpack.c.bf16 %v2101_v3, %v2100_v20  ;;  %v2196_v17 = vadd.f32 %v2195_v55, %v2101_v3  ;;  %v2234_v30 = vmul.f32 %v2101_v3, %v2101_v3 }
 0x163   : > { %v1403_v34 = vpop.f32.mrf.mxu1  ;;  %2644 = vst [vmem:[%s3365_s7 + $0x18] sm:$0xff] %v2580_v59   ;;  %v2265_v35 = vadd.f32 %v2264_v46, %v2234_v30  ;;  %2538 = vmatmul.msk.bf16.gmra.mxu3 %vm1128_vm12, %v1948_v31 }
 0x164   : > { %v1404_v13 = vadd.f32 %v1403_v34, %v1210_v61 }
 0x166   : > { %v3454_v15 = vpop.f32.mrf.mxu3 }
 0x169   : > { %v1215_v40 = vpop.f32.mrf.mxu0 }
 0x16b   : > { %v1405_v44 = vpop.f32.mrf.mxu1 }
 0x16c   : > { %v1406_v54 = vadd.f32 %v1405_v44, %v1212_v29 }
 0x16e   : > { %v2034_v41 = vpop.f32.mrf.mxu2  ;;  %v3456_v27 = vpop.f32.mrf.mxu3 }
 0x16f   : > { %v2102_v42 = vadd.f32 %v2034_v41, %v1404_v13 }
 0x171   : > { %v2197_v38 = vadd.f32 %v2196_v17, %v2102_v42  ;;  %v2235_v43 = vmul.f32 %v2102_v42, %v2102_v42  ;;  %v1217_v45 = vpop.f32.mrf.mxu0 }
 0x173   : > { %v2266_v48 = vadd.f32 %v2265_v35, %v2235_v43  ;;  %v1408_v53 = vpop.f32.mrf.mxu1 }
 0x174   : > { %v1409_v56 = vadd.f32 %v1408_v53, %v1215_v40 }
 0x176   : > { %v2036_v62 = vpop.f32.mrf.mxu2  ;;  %v3458_v50 = vpop.f32.mrf.mxu3 }
 0x177   : > { %v2103_v9 = vadd.f32 %v2036_v62, %v1406_v54 }
 0x179   : > { %v2585_v51 = vpack.c.bf16 %v2103_v9, %v2102_v42  ;;  %v2198_v58 = vadd.f32 %v2197_v38, %v2103_v9  ;;  %v2236_v57 = vmul.f32 %v2103_v9, %v2103_v9  ;;  %v1220_v49 = vpop.f32.mrf.mxu0 }
 0x17b   : > { %2645 = vst [vmem:[%s3365_s7 + $0x20] sm:$0xff] %v2585_v51   ;;  %v2267_v36 = vadd.f32 %v2266_v48, %v2236_v57  ;;  %v1410_v32 = vpop.f32.mrf.mxu1 }
 0x17c   : > { %v1411_v60 = vadd.f32 %v1410_v32, %v1217_v45 }
 0x17e   : > { %v2039_v63 = vpop.f32.mrf.mxu2  ;;  %v1445_v0 = vpop.f32.mrf.mxu3 }
 0x17f   : > { %v2104_v24 = vadd.f32 %v2039_v63, %v1409_v56 }
 0x181   : > { %v2199_v1 = vadd.f32 %v2198_v58, %v2104_v24  ;;  %v2237_v2 = vmul.f32 %v2104_v24, %v2104_v24  ;;  %v1222_v4 = vpop.f32.mrf.mxu0 }
 0x183   : > { %v2268_v33 = vadd.f32 %v2267_v36, %v2237_v2  ;;  %v1413_v11 = vpop.f32.mrf.mxu1  ;;  %v1446_v2 = vadd.f32 %v1445_v0, %v3403_v12 }
 0x184   : > { %v1414_v7 = vadd.f32 %v1413_v11, %v1220_v49 }
 0x186   : > { %v2041_v5 = vpop.f32.mrf.mxu2  ;;  %v3461_v10 = vpop.f32.mrf.mxu3 }
 0x187   : > { %v2105_v37 = vadd.f32 %v2041_v5, %v1411_v60 }
 0x189   : > { %v2590_v19 = vpack.c.bf16 %v2105_v37, %v2104_v24  ;;  %v3463_v20 = vadd.f32 %v2199_v1, %v2105_v37  ;;  %v2238_v14 = vmul.f32 %v2105_v37, %v2105_v37  ;;  %v1225_v61 = vpop.f32.mrf.mxu0  ;;  %v1444_v1 = vadd.f32 %v3458_v50, %v3375_v52 }
 0x18b   : > { %2646 = vst [vmem:[%s3365_s7 + $0x28] sm:$0xff] %v2590_v19   ;;  %v3466_v25 = vadd.f32 %v2268_v33, %v2238_v14  ;;  %v1415_v55 = vpop.f32.mrf.mxu1 }
 0x18c   : > { %v1416_v26 = vadd.f32 %v1415_v55, %v1222_v4 }
 0x18e   : > { %v2044_v21 = vpop.f32.mrf.mxu2  ;;  %v3468_v22 = vpop.f32.mrf.mxu3 }
 0x18f   : > { %v3470_v39 = vadd.f32 %v2044_v21, %v1414_v7 }
 0x191   : > { %v1227_v18 = vpop.f32.mrf.mxu0  ;;  %v2239_v7 = vmul.f32 %v3470_v39, %v3470_v39 }
 0x193   : > { %v1418_v46 = vpop.f32.mrf.mxu1 }
 0x194   : > { %v1419_v40 = vadd.f32 %v1418_v46, %v1225_v61  ;;  %v1451_v46 = vadd.f32 %v3468_v22, %v3434_v47  ;;  %v2270_v47 = vadd.f32 %v3466_v25, %v2239_v7 }
 0x196   : > { %v2046_v8 = vpop.f32.mrf.mxu2  ;;  %v1453_v28 = vpop.f32.mrf.mxu3 }
 0x197   : > { %v3472_v3 = vadd.f32 %v2046_v8, %v1416_v26  ;;  %v3477_v59 = vadd.f32 %v1453_v28, %v3443_v16 }
 0x199   : > { %v2595_v29 = vpack.c.bf16 %v3472_v3, %v3470_v39  ;;  %v1230_v30 = vpop.f32.mrf.mxu0 }
 0x19b   : > { %2647 = vst [vmem:[%s3365_s7 + $0x30] sm:$0xff] %v2595_v29   ;;  %v1420_v17 = vpop.f32.mrf.mxu1 }
 0x19c   : > { %v1421_v44 = vadd.f32 %v1420_v17, %v1227_v18  ;;  %v1449_v18 = vadd.f32 %v3461_v10, %v3419_v6  ;;  %v2201_v17 = vadd.f32 %v3463_v20, %v3470_v39 }
 0x19e   : > { %v2049_v31 = vpop.f32.mrf.mxu2  ;;  %v3480_v34 = vpop.f32.mrf.mxu3  ;;  %v2202_v10 = vadd.f32 %v2201_v17, %v3472_v3 }
 0x19f   : > { %v2108_v41 = vadd.f32 %v2049_v31, %v1419_v40 }
 0x1a1   : > { %v1232_v38 = vpop.f32.mrf.mxu0  ;;  %v2241_v22 = vmul.f32 %v2108_v41, %v2108_v41 }
 0x1a3   : > { %v1423_v35 = vpop.f32.mrf.mxu1 }
 0x1a4   : > { %v1424_v51 = vadd.f32 %v1423_v35, %v1230_v30  ;;  %v2240_v30 = vmul.f32 %v3472_v3, %v3472_v3 }
 0x1a6   : > { %v2051_v13 = vpop.f32.mrf.mxu2  ;;  %v1458_v43 = vpop.f32.mrf.mxu3  ;;  %v2271_v40 = vadd.f32 %v2270_v47, %v2240_v30 }
 0x1a7   : > { %v3482_v42 = vadd.f32 %v2051_v13, %v1421_v44  ;;  %v3486_v45 = vadd.f32 %v1458_v43, %v3454_v15  ;;  %v2203_v44 = vadd.f32 %v2202_v10, %v2108_v41 }
 0x1a8   : > { %v2272_v43 = vadd.f32 %v2271_v40, %v2241_v22 }
 0x1a9   : > { %v2600_v16 = vpack.c.bf16 %v3482_v42, %v2108_v41  ;;  %v1235_v62 = vpop.f32.mrf.mxu0  ;;  %v2242_v20 = vmul.f32 %v3482_v42, %v3482_v42 }
 0x1ab   : > { %2648 = vst [vmem:[%s3365_s7 + $0x38] sm:$0xff] %v2600_v16   ;;  %v1425_v48 = vpop.f32.mrf.mxu1  ;;  %v2204_v16 = vadd.f32 %v2203_v44, %v3482_v42 }
 0x1ac   : > { %v1426_v58 = vadd.f32 %v1425_v48, %v1232_v38 }
 0x1ae   : > { %v2054_v53 = vpop.f32.mrf.mxu2  ;;  %v3489_v54 = vpop.f32.mrf.mxu3 }
 0x1af   : > { %v2110_v49 = vadd.f32 %v2054_v53, %v1424_v51  ;;  %v1461_v40 = vadd.f32 %v3489_v54, %v3456_v27 }
 0x1b1   : > { %v1237_v63 = vpop.f32.mrf.mxu0  ;;  %v2243_v48 = vmul.f32 %v2110_v49, %v2110_v49 }
 0x1b3   : > { %v1428_v9 = vpop.f32.mrf.mxu1 }
 0x1b4   : > { %v1429_v37 = vadd.f32 %v1428_v9, %v1235_v62  ;;  %v2273_v62 = vadd.f32 %v2272_v43, %v2242_v20  ;;  %v2205_v9 = vadd.f32 %v2204_v16, %v2110_v49 }
 0x1b6   : > { %v2056_v57 = vpop.f32.mrf.mxu2  ;;  %v2074_v32 = vpop.f32.mrf.mxu3 }
 0x1b7   : > { %v2111_v36 = vadd.f32 %v2056_v57, %v1426_v58  ;;  %v3495_v33 = vadd.f32 %v2074_v32, %v1444_v1  ;;  %v2274_v57 = vadd.f32 %v2273_v62, %v2243_v48 }
 0x1b9   : > { %v2605_v56 = vpack.c.bf16 %v2111_v36, %v2110_v49  ;;  %v1240_v14 = vpop.f32.mrf.mxu0  ;;  %v2244_v51 = vmul.f32 %v2111_v36, %v2111_v36  ;;  %v2206_v41 = vadd.f32 %v2205_v9, %v2111_v36 }
 0x1bb   : > { %2649 = vst [vmem:[%s3365_s7 + $0x40] sm:$0xff] %v2605_v56   ;;  %v1430_v24 = vpop.f32.mrf.mxu1  ;;  %v2275_v56 = vadd.f32 %v2274_v57, %v2244_v51 }
 0x1bc   : > { %v1431_v19 = vadd.f32 %v1430_v24, %v1237_v63 }
 0x1be   : > { %v2059_v15 = vpop.f32.mrf.mxu2  ;;  %v2076_v4 = vpop.f32.mrf.mxu3 }
 0x1bf   : > { %v3497_v11 = vadd.f32 %v2076_v4, %v1446_v2  ;;  %v2112_v55 = vadd.f32 %v2059_v15, %v1429_v37  ;;  %v1456_v15 = vadd.f32 %v3480_v34, %v3450_v23 }
 0x1c1   : > { %v2625_v60 = vpack.c.bf16 %v3497_v11, %v3495_v33  ;;  %v1242_v26 = vpop.f32.mrf.mxu0  ;;  %v2245_v32 = vmul.f32 %v2112_v55, %v2112_v55  ;;  %v2207_v63 = vadd.f32 %v2206_v41, %v2112_v55  ;;  %v2252_v22 = vmul.f32 %v3497_v11, %v3497_v11 }
 0x1c3   : > { %v1433_v5 = vpop.f32.mrf.mxu1  ;;  %2653 = vst [vmem:[%s3365_s7 + $0x60] sm:$0xff] %v2625_v60   ;;  %v2276_v2 = vadd.f32 %v2275_v56, %v2245_v32 }
 0x1c4   : > { %v1434_v31 = vadd.f32 %v1433_v5, %v1240_v14 }
 0x1c6   : > { %v2061_v61 = vpop.f32.mrf.mxu2  ;;  %v2079_v52 = vpop.f32.mrf.mxu3 }
 0x1c7   : > { %v2113_v21 = vadd.f32 %v2061_v61, %v1431_v19  ;;  %v3509_v28 = vadd.f32 %v2079_v52, %v1449_v18 }
 0x1c9   : > { %v2610_v50 = vpack.c.bf16 %v2113_v21, %v2112_v55  ;;  %v1245_v58 = vpop.f32.mrf.mxu0  ;;  %v2246_v1 = vmul.f32 %v2113_v21, %v2113_v21  ;;  %v2208_v4 = vadd.f32 %v2207_v63, %v2113_v21  ;;  %v2253_v44 = vmul.f32 %v3509_v28, %v3509_v28 }
 0x1cb   : > { %2650 = vst [vmem:[%s3365_s7 + $0x48] sm:$0xff] %v2610_v50   ;;  %v1435_v12 = vpop.f32.mrf.mxu1  ;;  %v2277_v36 = vadd.f32 %v2276_v2, %v2246_v1 }
 0x1cc   : > { %v1436_v35 = vadd.f32 %v1435_v12, %v1242_v26 }
 0x1ce   : > { %v2064_v0 = vpop.f32.mrf.mxu2  ;;  %v2081_v8 = vpop.f32.mrf.mxu3 }
 0x1cf   : > { %v3511_v29 = vadd.f32 %v2081_v8, %v1451_v46  ;;  %v2114_v13 = vadd.f32 %v2064_v0, %v1434_v31 }
 0x1d1   : > { %v2630_v6 = vpack.c.bf16 %v3511_v29, %v3509_v28  ;;  %v2247_v5 = vmul.f32 %v2114_v13, %v2114_v13  ;;  %v2209_v61 = vadd.f32 %v2208_v4, %v2114_v13  ;;  %v1247_v50 = vpop.f32.mrf.mxu0 }
 0x1d3   : > { %2654 = vst [vmem:[%s3365_s7 + $0x68] sm:$0xff] %v2630_v6   ;;  %v1438_v25 = vpop.f32.mrf.mxu1  ;;  %v2278_v12 = vadd.f32 %v2277_v36, %v2247_v5  ;;  %v2251_v6 = vmul.f32 %v3495_v33, %v3495_v33 }
 0x1d4   : > { %v1439_v42 = vadd.f32 %v1438_v25, %v1245_v58 }
 0x1d6   : > { %v2066_v39 = vpop.f32.mrf.mxu2  ;;  %v2084_v53 = vpop.f32.mrf.mxu3 }
 0x1d7   : > { %v2115_v38 = vadd.f32 %v2066_v39, %v1436_v35  ;;  %v2122_v49 = vadd.f32 %v2084_v53, %v3477_v59 }
 0x1d9   : > { %v2615_v3 = vpack.c.bf16 %v2115_v38, %v2114_v13  ;;  %v2248_v52 = vmul.f32 %v2115_v38, %v2115_v38  ;;  %v2210_v23 = vadd.f32 %v2209_v61, %v2115_v38  ;;  %v2255_v48 = vmul.f32 %v2122_v49, %v2122_v49 }
 0x1db   : > { %2651 = vst [vmem:[%s3365_s7 + $0x50] sm:$0xff] %v2615_v3   ;;  %v1440_v14 = vpop.f32.mrf.mxu1  ;;  %v2279_v18 = vadd.f32 %v2278_v12, %v2248_v52 }
 0x1dc   : > { %v1441_v34 = vadd.f32 %v1440_v14, %v1247_v50 }
 0x1de   : > { %v2069_v24 = vpop.f32.mrf.mxu2  ;;  %v2086_v60 = vpop.f32.mrf.mxu3 }
 0x1df   : > { %v2116_v37 = vadd.f32 %v2069_v24, %v1439_v42  ;;  %v2123_v19 = vadd.f32 %v2086_v60, %v1456_v15 }
 0x1e1   : > { %v2635_v55 = vpack.c.bf16 %v2123_v19, %v2122_v49  ;;  %v2249_v0 = vmul.f32 %v2116_v37, %v2116_v37  ;;  %v2211_v46 = vadd.f32 %v2210_v23, %v2116_v37  ;;  %v2256_v53 = vmul.f32 %v2123_v19, %v2123_v19 }
 0x1e3   : > { %2655 = vst [vmem:[%s3365_s7 + $0x70] sm:$0xff] %v2635_v55   ;;  %v2280_v59 = vadd.f32 %v2279_v18, %v2249_v0 }
 0x1e6   : > { %v2071_v21 = vpop.f32.mrf.mxu2  ;;  %v2089_v26 = vpop.f32.mrf.mxu3 }
 0x1e7   : > { %v2117_v7 = vadd.f32 %v2071_v21, %v1441_v34  ;;  %v2124_v43 = vadd.f32 %v2089_v26, %v3486_v45 }
 0x1e9   : > { %v2620_v8 = vpack.c.bf16 %v2117_v7, %v2116_v37  ;;  %v2212_v17 = vadd.f32 %v2211_v46, %v2117_v7  ;;  %v2250_v30 = vmul.f32 %v2117_v7, %v2117_v7  ;;  %v2257_v9 = vmul.f32 %v2124_v43, %v2124_v43 }
 0x1eb   : > { %2652 = vst [vmem:[%s3365_s7 + $0x58] sm:$0xff] %v2620_v8   ;;  %v2213_v47 = vadd.f32 %v2212_v17, %v3495_v33  ;;  %v2281_v10 = vadd.f32 %v2280_v59, %v2250_v30  ;;  %v2254_v33 = vmul.f32 %v3511_v29, %v3511_v29 }
 0x1ed   : > { %v2214_v31 = vadd.f32 %v2213_v47, %v3497_v11  ;;  %v2282_v35 = vadd.f32 %v2281_v10, %v2251_v6 }
 0x1ee   : > { %v2091_v13 = vpop.f32.mrf.mxu3 }
 0x1ef   : > { %v2215_v20 = vadd.f32 %v2214_v31, %v3509_v28  ;;  %v2283_v39 = vadd.f32 %v2282_v35, %v2252_v22  ;;  %v2125_v16 = vadd.f32 %v2091_v13, %v1461_v40 }
 0x1f1   : > { %v2284_v38 = vadd.f32 %v2283_v39, %v2253_v44  ;;  %v2216_v11 = vadd.f32 %v2215_v20, %v3511_v29  ;;  %v2640_v54 = vpack.c.bf16 %v2125_v16, %v2124_v43  ;;  %v2258_v41 = vmul.f32 %v2125_v16, %v2125_v16 }
 0x1f3   : > { %v2217_v25 = vadd.f32 %v2216_v11, %v2122_v49  ;;  %v2285_v27 = vadd.f32 %v2284_v38, %v2254_v33  ;;  %2656 = vst [vmem:[%s3365_s7 + $0x78] sm:$0xff] %v2640_v54  }
 0x1f5   : > { %v2218_v3 = vadd.f32 %v2217_v25, %v2123_v19  ;;  %v2286_v62 = vadd.f32 %v2285_v27, %v2255_v48 }
 0x1f7   : > { %v2219_v28 = vadd.f32 %v2218_v3, %v2124_v43  ;;  %v2287_v51 = vadd.f32 %v2286_v62, %v2256_v53 }
 0x1f9   : > { %v2288_v58 = vadd.f32 %v2287_v51, %v2257_v9  ;;  %v2220_v57 = vadd.f32 %v2219_v28, %v2125_v16 }
 0x1fb   : > { %v2221_v32 = vrot.slane %v2220_v57, 4  ;;  %v2289_v45 = vadd.f32 %v2288_v58, %v2258_v41 }
 0x1fd   : > { %v2222_v56 = vadd.f32 %v2221_v32, %v2220_v57  ;;  %v2290_v29 = vrot.slane %v2289_v45, 4 }
 0x1ff   : > { %v2223_v63 = vrot.slane %v2222_v56, 2  ;;  %v2291_v24 = vadd.f32 %v2290_v29, %v2289_v45 }
 0x201   : > { %v2224_v15 = vadd.f32 %v2223_v63, %v2222_v56  ;;  %v2292_v1 = vrot.slane %v2291_v24, 2 }
 0x203   : > { %v2225_v42 = vrot.slane %v2224_v15, 1  ;;  %v2293_v2 = vadd.f32 %v2292_v1, %v2291_v24 }
 0x205   : > { %v2294_v4 = vrot.slane %v2293_v2, 1  ;;  %v2226_v60 = vadd.f32 %v2225_v42, %v2224_v15 }
 0x207   : > { %v2295_v5 = vadd.f32 %v2294_v4, %v2293_v2 }
 0x209   : > { %v2297_v49 = vsel %vm2296_vm0, %v2226_v60, %v2295_v5 }
 0x20a   : > { %2298 = vst [vmem:[%s181_s11] sm:$0x3] %v2297_v49 }
 0x20b PF: > { %s14_s12 = sadd.s32 1, %s2677_s12  }
 0x20c   : > { %p11_p4 = scmp.ge.s32.totalorder %s14_s12, 4  }
 0x20e   :  { %13 = sbr.rel (!%p11_p4) target bundleno = 1 (0x1), region = 74 }

// kernel: unet_down_forward.4
= control target key start
LH: loop header
LB: loop body
LE: loop exit
PB: predicated region body
PF: predicated region fallthrough
CT: control target
= control target key end

     0   :  { %s6034_s18 = smov 0   ;;  %s7865_s0 = inlined_call_operand.vmem [shape: bf16[2,16,16,128], index: 0, kind: input, shape index: {}]   ;;  %s7866_s1 = inlined_call_operand.vmem [shape: f32[1,128], index: 1, kind: input, shape index: {}]   ;;  %s7867_s2 = inlined_call_operand.vmem [shape: f32[1,128], index: 2, kind: input, shape index: {}]   ;;  %s7868_s3 = inlined_call_operand.vmem [shape: bf16[3,384,128], index: 3, kind: input, shape index: {}]   ;;  %s7869_s4 = inlined_call_operand.vmem [shape: bf16[2,16,16,128], index: 4, kind: output, shape index: {0}]   ;;  %s7870_s5 = inlined_call_operand.vmem [shape: f32[2,2,128], index: 5, kind: output, shape index: {1}]  }
   0x1 LB: > { %s4976_s19 = sadd.s32 4294967295, %s6001_s18   ;;  %p4980_p0 = scmp.ge.s32.totalorder %s6001_s18, 1  ;;  %s6001_s18 = sphi %s6034_s18, %s16_s18  }
   0x2   : > { %p190_p1 = scmp.lt.s32.totalorder %s6001_s18, 3 }
   0x4   : > { %p191_p2 = pnand %p4980_p0, %p190_p1 }
   0x6   : > { %194 = sbr.rel (%p191_p2) target bundleno = 819 (0x333), region = 36 }
   0xb   : > { %v5677_v0 = vld [vmem:[%s7868_s3 + $0xf8] sm:$0xff]  ;;  %p222_p3 = scmp.lt.s32.totalorder %s4976_s19, 1  ;;  %v6003_v1 = vmov 0   ;;  %v5676_v2 = vld [vmem:[%s7868_s3 + $0xf0] sm:$0xff]  ;;  %v5675_v3 = vld [vmem:[%s7868_s3 + $0xe8] sm:$0xff]  ;;  %vm693_vm0 = vcmask 1043459  }
   0xc   : > { %899 = vst [vmem:[#allocation2 + $0xc] sm:$0xf] %v6003_v1  ;;  %2296 = vmatpush.bf16.msra.mxu0 %v5677_v0  ;;  %5892 = vmatpush.bf16.msra.mxu1 %v5677_v0  ;;  %v6064_v4 = vld [vmem:[%s7866_s1] ss:$0 sm:$0xff]  ;;  %v5673_v34 = vld [vmem:[%s7868_s3 + $0xd8] sm:$0xff]  ;;  %v5672_v60 = vld [vmem:[%s7868_s3 + $0xd0] sm:$0xff] }
   0xd   : > { %900 = vst [vmem:[#allocation2 + $0x18] sm:$0xf] %v6003_v1  ;;  %s7974_s19 = smov (!%p222_p3, %s4976_s19), 1  ;;  %5893 = vmatpush.bf16.msra.mxu2 %v5677_v0  ;;  %5894 = vmatpush.bf16.msra.mxu3 %v5677_v0  ;;  %v6072_v10 = vld [vmem:[%s7867_s2] ss:$0 sm:$0xff]  ;;  %vm696_vm3 = vcmask 1047559  }
   0xe   : > { %902 = vst [vmem:[#allocation2 + $0x2e4] sm:$0xf] %v6003_v1  ;;  %s5596_s24 = sshll.u32 %s7974_s19, 7  ;;  %v5674_v25 = vld [vmem:[%s7868_s3 + $0xe0] sm:$0xff]  ;;  %vm694_vm1 = vsmask.f32 7950 }
   0xf   : > { %903 = vst [vmem:[#allocation2 + $0x2f0] sm:$0xf] %v6003_v1  ;;  %s6059_s29 = scalar_lea.vmem %s7865_s0, %s5596_s24  ;;  %vm697_vm2 = vsmask.f32 7966  ;;  %vm6504_vm4 = vmand %vm693_vm0, %vm694_vm1  ;;  %vm797_vm7 = vsmask.f32 256 }
  0x10   : > { %2297 = vmatpush.bf16.msra.mxu0 %v5676_v2  ;;  %5895 = vmatpush.bf16.msra.mxu1 %v5676_v2  ;;  %v5864_v5 = vld [vmem:[%s6059_s29 + $0x18] sm:$0xff]   ;;  %v5719_v13 = vld [vmem:[%s6059_s29] sm:$0xff]   ;;  %vm6510_vm5 = vmand %vm696_vm3, %vm697_vm2  ;;  %vm1093_vm8 = vsmask.f32 4368  ;;  %vm796_vm10 = vcmask 1040384   ;;  %vm799_vm11 = vcmask 1044484  }
  0x11   : > { %v5868_v6 = vld [vmem:[%s6059_s29 + $0x38] sm:$0xff]   ;;  %5896 = vmatpush.bf16.msra.mxu2 %v5676_v2  ;;  %5897 = vmatpush.bf16.msra.mxu3 %v5676_v2  ;;  %v5732_v8 = vunpack.c.l.bf16 %v5864_v5  ;;  %v5733_v9 = vunpack.c.h.bf16 %v5864_v5  ;;  %v6076_v14 = vld [vmem:[%s6059_s29 + $0x20] sm:$0xff]   ;;  %v5720_v18 = vunpack.c.l.bf16 %v5719_v13  ;;  %v5721_v19 = vunpack.c.h.bf16 %v5719_v13  ;;  %vm6528_vm6 = vmor %vm6510_vm5, %vm6504_vm4 }
  0x12   : > { %v5872_v7 = vld [vmem:[%s6059_s29 + $0x58] sm:$0xff]   ;;  %v5748_v11 = vunpack.c.l.bf16 %v5868_v6  ;;  %v5749_v12 = vunpack.c.h.bf16 %v5868_v6  ;;  %v5736_v29 = vunpack.c.l.bf16 %v6076_v14  ;;  %v5737_v33 = vunpack.c.h.bf16 %v6076_v14  ;;  %v6118_v51 = vld [vmem:[%s6059_s29 + $0x40] sm:$0xff]   ;;  %vm6552_vm9 = vmor %vm797_vm7, %vm1093_vm8 }
  0x13   : > { %v6078_v15 = vld [vmem:[#allocation2 + $0xc] sm:$0xf]  ;;  %v5764_v16 = vunpack.c.l.bf16 %v5872_v7  ;;  %v5765_v17 = vunpack.c.h.bf16 %v5872_v7  ;;  %v311_v21 = vmul.f32 %v6064_v4, %v5732_v8  ;;  %v312_v22 = vmul.f32 %v6064_v4, %v5733_v9  ;;  %vm6959_vm13 = vmand %vm796_vm10, %vm797_vm7 }
  0x14   : > { %v6080_v20 = vld [vmem:[#allocation2 + $0x14] sm:$0xf0]  ;;  %v319_v23 = vmul.f32 %v6064_v4, %v5748_v11  ;;  %v320_v24 = vmul.f32 %v6064_v4, %v5749_v12  ;;  %2298 = vmatpush.bf16.msra.mxu0 %v5675_v3  ;;  %5898 = vmatpush.bf16.msra.mxu1 %v5675_v3  ;;  %v305_v38 = vmul.f32 %v6064_v4, %v5720_v18  ;;  %v5752_v0 = vunpack.c.l.bf16 %v6118_v51  ;;  %v5671_v11 = vld [vmem:[%s7868_s3 + $0xc8] sm:$0xff] }
  0x15   : > { %v5069_v26 = vor.u32 %v6080_v20, %v6078_v15  ;;  %v327_v27 = vmul.f32 %v6064_v4, %v5764_v16  ;;  %v328_v28 = vmul.f32 %v6064_v4, %v5765_v17  ;;  %5899 = vmatpush.bf16.msra.mxu2 %v5675_v3  ;;  %5900 = vmatpush.bf16.msra.mxu3 %v5675_v3  ;;  %v5753_v14 = vunpack.c.h.bf16 %v6118_v51 }
  0x16   : > { %v347_v30 = vadd.f32 %v6072_v10, %v311_v21  ;;  %v348_v31 = vadd.f32 %v6072_v10, %v312_v22  ;;  %v355_v32 = vadd.f32 %v6072_v10, %v319_v23  ;;  %v356_v35 = vadd.f32 %v6072_v10, %v320_v24 }
  0x17   : > { %v363_v36 = vadd.f32 %v6072_v10, %v327_v27  ;;  %v364_v37 = vadd.f32 %v6072_v10, %v328_v28  ;;  %v306_v58 = vmul.f32 %v6064_v4, %v5721_v19  ;;  %v341_v59 = vadd.f32 %v6072_v10, %v305_v38 }
  0x18   : > { %v6105_v39 = vmul.f32 0.5, %v347_v30  ;;  %v6107_v40 = vmul.f32 0.5, %v348_v31  ;;  %v411_v41 = vmul.f32 0.044715, %v347_v30  ;;  %v412_v42 = vmul.f32 0.044715, %v348_v31  ;;  %2299 = vmatpush.bf16.msra.mxu0 %v5674_v25  ;;  %5901 = vmatpush.bf16.msra.mxu1 %v5674_v25 }
  0x19   : > { %v6109_v43 = vmul.f32 0.5, %v355_v32  ;;  %v6111_v44 = vmul.f32 0.5, %v356_v35  ;;  %v419_v45 = vmul.f32 0.044715, %v355_v32  ;;  %v420_v46 = vmul.f32 0.044715, %v356_v35  ;;  %5902 = vmatpush.bf16.msra.mxu2 %v5674_v25  ;;  %5903 = vmatpush.bf16.msra.mxu3 %v5674_v25 }
  0x1a   : > { %v443_v47 = vmul.f32 %v411_v41, %v347_v30  ;;  %v444_v48 = vmul.f32 %v412_v42, %v348_v31  ;;  %v6113_v49 = vmul.f32 0.5, %v363_v36  ;;  %v6115_v50 = vmul.f32 0.5, %v364_v37  ;;  %v6154_v41 = vld [vmem:[%s6059_s29 + $0x60] sm:$0xff]   ;;  %v5693_v42 = vld [vmem:[%s7868_s3 + $0x178] sm:$0xff] }
  0x1b   : > { %v451_v52 = vmul.f32 %v419_v45, %v355_v32  ;;  %v452_v53 = vmul.f32 %v420_v46, %v356_v35  ;;  %v427_v54 = vmul.f32 0.044715, %v363_v36  ;;  %v428_v55 = vmul.f32 0.044715, %v364_v37  ;;  %v5653_v45 = vld [vmem:[%s7868_s3 + $0x38] sm:$0xff] }
  0x1c   : > { %v475_v56 = vmul.f32 %v443_v47, %v347_v30  ;;  %v476_v57 = vmul.f32 %v444_v48, %v348_v31  ;;  %2300 = vmatpush.bf16.msra.mxu0 %v5673_v34  ;;  %5904 = vmatpush.bf16.msra.mxu1 %v5673_v34  ;;  %v405_v5 = vmul.f32 0.044715, %v341_v59  ;;  %v342_v9 = vadd.f32 %v6072_v10, %v306_v58 }
  0x1d   : > { %v483_v61 = vmul.f32 %v451_v52, %v355_v32  ;;  %v484_v62 = vmul.f32 %v452_v53, %v356_v35  ;;  %v459_v63 = vmul.f32 %v427_v54, %v363_v36  ;;  %5905 = vmatpush.bf16.msra.mxu2 %v5673_v34  ;;  %5906 = vmatpush.bf16.msra.mxu3 %v5673_v34  ;;  %v5685_v52 = vld [vmem:[%s7868_s3 + $0x138] sm:$0xff]  ;;  %vm800_vm12 = vsmask.f32 4352 }
  0x1e   : > { %v507_v1 = vadd.f32 %v475_v56, %v347_v30  ;;  %v508_v2 = vadd.f32 %v476_v57, %v348_v31  ;;  %v460_v3 = vmul.f32 %v428_v55, %v364_v37  ;;  %v437_v17 = vmul.f32 %v405_v5, %v341_v59  ;;  %vm801_vm14 = vmand %vm799_vm11, %vm800_vm12 }
  0x1f   : > { %v515_v6 = vadd.f32 %v483_v61, %v355_v32  ;;  %v516_v7 = vadd.f32 %v484_v62, %v356_v35  ;;  %v491_v8 = vmul.f32 %v459_v63, %v363_v36  ;;  %v406_v22 = vmul.f32 0.044715, %v342_v9  ;;  %vm6982_vm15 = vmor %vm801_vm14, %vm6959_vm13 }
  0x20   : > { %v539_v12 = vmul.f32 0.7978846, %v507_v1  ;;  %v540_v13 = vmul.f32 0.7978846, %v508_v2  ;;  %v492_v16 = vmul.f32 %v460_v3, %v364_v37  ;;  %2301 = vmatpush.bf16.msra.mxu0 %v5672_v60  ;;  %5907 = vmatpush.bf16.msra.mxu1 %v5672_v60  ;;  %v469_v24 = vmul.f32 %v437_v17, %v341_v59 }
  0x21   : > { %v547_v18 = vmul.f32 0.7978846, %v515_v6  ;;  %v548_v19 = vmul.f32 0.7978846, %v516_v7  ;;  %v523_v21 = vadd.f32 %v491_v8, %v363_v36  ;;  %5908 = vmatpush.bf16.msra.mxu2 %v5672_v60  ;;  %5909 = vmatpush.bf16.msra.mxu3 %v5672_v60  ;;  %v313_v25 = vmul.f32 %v6064_v4, %v5736_v29  ;;  %v5670_v29 = vld [vmem:[%s7868_s3 + $0xc0] sm:$0xff]  ;;  %v5692_v7 = vld [vmem:[%s7868_s3 + $0x170] sm:$0xff] }
  0x22   : > { %5927 = vtanh.f32 %v539_v12  ;;  %v524_v23 = vadd.f32 %v492_v16, %v364_v37  ;;  %v438_v28 = vmul.f32 %v406_v22, %v342_v9  ;;  %v314_v30 = vmul.f32 %v6064_v4, %v5737_v33  ;;  %v5652_v8 = vld [vmem:[%s7868_s3 + $0x30] sm:$0xff] }
  0x23   : > { %5929 = vtanh.f32 %v540_v13  ;;  %v555_v27 = vmul.f32 0.7978846, %v523_v21  ;;  %v501_v32 = vadd.f32 %v469_v24, %v341_v59  ;;  %v6137_v34 = vadd.f32 %v6072_v10, %v313_v25 }
  0x24   : > { %5931 = vtanh.f32 %v547_v18  ;;  %v556_v31 = vmul.f32 0.7978846, %v524_v23  ;;  %2302 = vmatpush.bf16.msra.mxu0 %v5671_v11  ;;  %5910 = vmatpush.bf16.msra.mxu1 %v5671_v11  ;;  %v470_v35 = vmul.f32 %v438_v28, %v342_v9  ;;  %v6143_v36 = vadd.f32 %v6072_v10, %v314_v30 }
  0x25   : > { %5933 = vtanh.f32 %v548_v19  ;;  %5911 = vmatpush.bf16.msra.mxu2 %v5671_v11  ;;  %5912 = vmatpush.bf16.msra.mxu3 %v5671_v11  ;;  %v6146_v33 = vmul.f32 0.5, %v341_v59  ;;  %v6148_v37 = vmul.f32 0.5, %v342_v9  ;;  %v6151_v38 = vmul.f32 0.5, %v6137_v34  ;;  %v5661_v59 = vld [vmem:[%s7868_s3 + $0x78] sm:$0xff] }
  0x26   : > { %5935 = vtanh.f32 %v555_v27  ;;  %v502_v46 = vadd.f32 %v470_v35, %v342_v9  ;;  %v533_v47 = vmul.f32 0.7978846, %v501_v32  ;;  %v6163_v48 = vmul.f32 0.5, %v6143_v36  ;;  %v5862_v35 = vld [vmem:[%s6059_s29 + $0x8] sm:$0xff]  }
  0x27   : > { %5937 = vtanh.f32 %v556_v31  ;;  %v413_v53 = vmul.f32 0.044715, %v6137_v34  ;;  %v414_v54 = vmul.f32 0.044715, %v6143_v36  ;;  %v321_v55 = vmul.f32 %v6064_v4, %v5752_v0 }
  0x28   : > { %v5928_v51 = vpop.eup %5927  ;;  %v322_v56 = vmul.f32 %v6064_v4, %v5753_v14  ;;  %2303 = vmatpush.bf16.msra.mxu0 %v5670_v29  ;;  %5913 = vmatpush.bf16.msra.mxu1 %v5670_v29  ;;  %v534_v60 = vmul.f32 0.7978846, %v502_v46  ;;  %5939 = vtanh.f32 %v533_v47  ;;  %v5768_v61 = vunpack.c.l.bf16 %v6154_v41 }
  0x29   : > { %v5930_v57 = vpop.eup %5929  ;;  %v603_v58 = vadd.f32 1.0, %v5928_v51  ;;  %5914 = vmatpush.bf16.msra.mxu2 %v5670_v29  ;;  %5915 = vmatpush.bf16.msra.mxu3 %v5670_v29  ;;  %v445_v0 = vmul.f32 %v413_v53, %v6137_v34  ;;  %v446_v1 = vmul.f32 %v414_v54, %v6143_v36  ;;  %v6179_v2 = vadd.f32 %v6072_v10, %v321_v55 }
  0x2a   : > { %v5932_v62 = vpop.eup %5931  ;;  %v604_v63 = vadd.f32 1.0, %v5930_v57  ;;  %5941 = vtanh.f32 %v534_v60  ;;  %v6189_v9 = vadd.f32 %v6072_v10, %v322_v56  ;;  %v329_v47 = vmul.f32 %v6064_v4, %v5768_v61 }
  0x2b   : > { %v5934_v3 = vpop.eup %5933  ;;  %v635_v5 = vmul.f32 %v603_v58, %v6105_v39  ;;  %v611_v6 = vadd.f32 1.0, %v5932_v62  ;;  %2304 = vmatmul.bf16.vlgmr.msra.gmra.mxu0 %v5069_v26  ;;  %v477_v13 = vmul.f32 %v445_v0, %v6137_v34  ;;  %v478_v16 = vmul.f32 %v446_v1, %v6143_v36 }
  0x2c   : > { %v5936_v11 = vpop.eup %5935  ;;  %v636_v39 = vmul.f32 %v604_v63, %v6107_v40  ;;  %v612_v12 = vadd.f32 1.0, %v5934_v3  ;;  %2385 = vmatpush.bf16.msrb.mxu1 %v5685_v52  ;;  %2988 = vmatpush.bf16.msrb.mxu0 %v5661_v59  ;;  %v6199_v22 = vmul.f32 0.5, %v6179_v2  ;;  %v6209_v29 = vmul.f32 0.5, %v6189_v9 }
  0x2d   : > { %2474 = vmatpush.bf16.msrb.mxu2 %v5693_v42  ;;  %2899 = vmatpush.bf16.msrb.mxu3 %v5653_v45  ;;  %v5938_v17 = vpop.eup %5937  ;;  %v667_v18 = vpack.c.bf16 %v635_v5, %v635_v5  ;;  %v643_v19 = vmul.f32 %v611_v6, %v6109_v43  ;;  %v619_v21 = vadd.f32 1.0, %v5936_v11  ;;  %v509_v26 = vadd.f32 %v477_v13, %v6137_v34 }
  0x2e   : > { %v668_v23 = vpack.c.bf16 %v636_v39, %v636_v39  ;;  %v644_v15 = vmul.f32 %v612_v12, %v6111_v44  ;;  %v620_v20 = vadd.f32 1.0, %v5938_v17  ;;  %v5940_v40 = vpop.eup %5939  ;;  %v510_v43 = vadd.f32 %v478_v16, %v6143_v36 }
  0x2f   : > { %911 = vst [vmem:[#allocation2 + $0xcc] sm:$0xf] %v667_v18  ;;  %v675_v24 = vpack.c.bf16 %v643_v19, %v643_v19  ;;  %v651_v25 = vmul.f32 %v619_v21, %v6113_v49  ;;  %v597_v30 = vadd.f32 1.0, %v5940_v40  ;;  %v541_v44 = vmul.f32 0.7978846, %v509_v26 }
  0x30   : > { %912 = vst [vmem:[#allocation2 + $0xd8] sm:$0xf] %v668_v23  ;;  %v676_v27 = vpack.c.bf16 %v644_v15, %v644_v15  ;;  %v652_v28 = vmul.f32 %v620_v20, %v6115_v50  ;;  %v5942_v31 = vpop.eup %5941  ;;  %v542_v34 = vmul.f32 0.7978846, %v510_v43  ;;  %v5769_v49 = vunpack.c.h.bf16 %v6154_v41  ;;  %v6217_v50 = vld [vmem:[%s6059_s29 + $0x28] sm:$0xff]  }
  0x31   : > { %2475 = vmatpush.bf16.msrb.mxu2 %v5692_v7  ;;  %2900 = vmatpush.bf16.msrb.mxu3 %v5652_v8  ;;  %941 = vst [vmem:[#allocation2 + $0xa0] sm:$0xf] %v667_v18  ;;  %v6206_v32 = vpack.c.bf16 %v651_v25, %v651_v25  ;;  %v598_v14 = vadd.f32 1.0, %v5942_v31  ;;  %v629_v42 = vmul.f32 %v597_v30, %v6146_v33  ;;  %5943 = vtanh.f32 %v541_v44  ;;  %v5691_v25 = vld [vmem:[%s7868_s3 + $0x168] sm:$0xff]  ;;  %v5660_v44 = vld [vmem:[%s7868_s3 + $0x70] sm:$0xff] }
  0x32   : > { %942 = vst [vmem:[#allocation2 + $0xac] sm:$0xf] %v668_v23  ;;  %v6213_v36 = vpack.c.bf16 %v652_v28, %v652_v28  ;;  %5945 = vtanh.f32 %v542_v34  ;;  %v421_v45 = vmul.f32 0.044715, %v6179_v2  ;;  %v422_v46 = vmul.f32 0.044715, %v6189_v9  ;;  %2989 = vmatpush.bf16.msrb.mxu0 %v5660_v44 }
  0x33   : > { %971 = vst [vmem:[#allocation2 + $0x74] sm:$0xf] %v667_v18  ;;  %v630_v51 = vmul.f32 %v598_v14, %v6148_v37  ;;  %v6225_v52 = vpack.c.bf16 %v629_v42, %v629_v42  ;;  %v330_v33 = vmul.f32 %v6064_v4, %v5769_v49  ;;  %v5724_v53 = vunpack.c.l.bf16 %v5862_v35  ;;  %v5651_v30 = vld [vmem:[%s7868_s3 + $0x28] sm:$0xff] }
  0x34   : > { %972 = vst [vmem:[#allocation2 + $0x80] sm:$0xf] %v668_v23  ;;  %v453_v54 = vmul.f32 %v421_v45, %v6179_v2  ;;  %v454_v55 = vmul.f32 %v422_v46, %v6189_v9  ;;  %v365_v56 = vadd.f32 %v6072_v10, %v329_v47  ;;  %v5725_v57 = vunpack.c.h.bf16 %v5862_v35  ;;  %v5683_v14 = vld [vmem:[%s7868_s3 + $0x128] sm:$0xff]  ;;  %v5690_v45 = vld [vmem:[%s7868_s3 + $0x160] sm:$0xff] }
  0x35   : > { %919 = vst [vmem:[#allocation2 + $0x18c] sm:$0xf] %v675_v24  ;;  %v6231_v41 = vpack.c.bf16 %v630_v51, %v630_v51  ;;  %v366_v59 = vadd.f32 %v6072_v10, %v330_v33  ;;  %v307_v37 = vmul.f32 %v6064_v4, %v5724_v53  ;;  %v5740_v60 = vunpack.c.l.bf16 %v6217_v50  ;;  %v5870_v42 = vld [vmem:[%s6059_s29 + $0x48] sm:$0xff]   ;;  %2476 = vmatpush.bf16.msrb.mxu2 %v5691_v25  ;;  %v5650_v46 = vld [vmem:[%s7868_s3 + $0x20] sm:$0xff] }
  0x36   : > { %v5116_v58 = vld [vmem:[#allocation2 + $0xcc] sm:$0xf]  ;;  %920 = vst [vmem:[#allocation2 + $0x198] sm:$0xf] %v676_v27  ;;  %v485_v62 = vmul.f32 %v453_v54, %v6179_v2  ;;  %v486_v63 = vmul.f32 %v454_v55, %v6189_v9  ;;  %v6238_v0 = vmul.f32 0.5, %v365_v56  ;;  %v308_v1 = vmul.f32 %v6064_v4, %v5725_v57  ;;  %2901 = vmatpush.bf16.msrb.mxu3 %v5651_v30 }
  0x37   : > { %v5611_v61 = vld [vmem:[#allocation2 + $0xd4] sm:$0xf0]  ;;  %949 = vst [vmem:[#allocation2 + $0x160] sm:$0xf] %v675_v24  ;;  %v5944_v3 = vpop.eup %5943  ;;  %v6241_v6 = vmul.f32 0.5, %v366_v59  ;;  %v343_v8 = vadd.f32 %v6072_v10, %v307_v37  ;;  %v315_v31 = vmul.f32 %v6064_v4, %v5740_v60  ;;  %v5659_v47 = vld [vmem:[%s7868_s3 + $0x68] sm:$0xff] }
  0x38   : > { %v5117_v5 = vor.u32 %v5611_v61, %v5116_v58  ;;  %950 = vst [vmem:[#allocation2 + $0x16c] sm:$0xf] %v676_v27  ;;  %v429_v7 = vmul.f32 0.044715, %v365_v56  ;;  %v5946_v11 = vpop.eup %5945  ;;  %v605_v39 = vadd.f32 1.0, %v5944_v3  ;;  %v517_v12 = vadd.f32 %v485_v62, %v6179_v2  ;;  %2990 = vmatpush.bf16.msrb.mxu0 %v5659_v47 }
  0x39   : > { %979 = vst [vmem:[#allocation2 + $0x134] sm:$0xf] %v675_v24  ;;  %v518_v13 = vadd.f32 %v486_v63, %v6189_v9  ;;  %v430_v16 = vmul.f32 0.044715, %v366_v59  ;;  %v606_v17 = vadd.f32 1.0, %v5946_v11  ;;  %v6247_v19 = vadd.f32 %v6072_v10, %v308_v1  ;;  %v5684_v24 = vld [vmem:[%s7868_s3 + $0x130] sm:$0xff]  ;;  %2477 = vmatpush.bf16.msrb.mxu2 %v5690_v45 }
  0x3a   : > { %2324 = vmatmul.bf16.vlgmr.msra.gmra.mxu1 %v5117_v5  ;;  %980 = vst [vmem:[#allocation2 + $0x140] sm:$0xf] %v676_v27  ;;  %v461_v18 = vmul.f32 %v429_v7, %v365_v56  ;;  %v407_v21 = vmul.f32 0.044715, %v343_v8  ;;  %v637_v23 = vmul.f32 %v605_v39, %v6151_v38  ;;  %v549_v15 = vmul.f32 0.7978846, %v517_v12  ;;  %2902 = vmatpush.bf16.msrb.mxu3 %v5650_v46 }
  0x3b   : > { %927 = vst [vmem:[#allocation2 + $0x24c] sm:$0xf] %v6206_v32  ;;  %v550_v20 = vmul.f32 0.7978846, %v518_v13  ;;  %v462_v26 = vmul.f32 %v430_v16, %v366_v59  ;;  %v638_v2 = vmul.f32 %v606_v17, %v6163_v48  ;;  %v5741_v38 = vunpack.c.h.bf16 %v6217_v50  ;;  %2386 = vmatpush.bf16.msrb.mxu1 %v5684_v24 }
  0x3c   : > { %v5164_v40 = vld [vmem:[#allocation2 + $0x18c] sm:$0xf]  ;;  %928 = vst [vmem:[#allocation2 + $0x258] sm:$0xf] %v6213_v36  ;;  %v493_v9 = vmul.f32 %v461_v18, %v365_v56  ;;  %v439_v43 = vmul.f32 %v407_v21, %v343_v8  ;;  %v6261_v28 = vpack.c.bf16 %v637_v23, %v637_v23  ;;  %5947 = vtanh.f32 %v549_v15 }
  0x3d   : > { %v5623_v27 = vld [vmem:[#allocation2 + $0x194] sm:$0xf0]  ;;  %957 = vst [vmem:[#allocation2 + $0x220] sm:$0xf] %v6206_v32  ;;  %v494_v48 = vmul.f32 %v462_v26, %v366_v59  ;;  %v6271_v49 = vpack.c.bf16 %v638_v2, %v638_v2  ;;  %5949 = vtanh.f32 %v550_v20  ;;  %v6287_v51 = vmul.f32 0.5, %v343_v8  ;;  %v5874_v23 = vld [vmem:[%s6059_s29 + $0x68] sm:$0xff]  }
  0x3e   : > { %v5165_v34 = vor.u32 %v5623_v27, %v5164_v40  ;;  %958 = vst [vmem:[#allocation2 + $0x22c] sm:$0xf] %v6213_v36  ;;  %v525_v35 = vadd.f32 %v493_v9, %v365_v56  ;;  %v471_v33 = vmul.f32 %v439_v43, %v343_v8  ;;  %v408_v53 = vmul.f32 0.044715, %v6247_v19 }
  0x3f   : > { %987 = vst [vmem:[#allocation2 + $0x1f4] sm:$0xf] %v6206_v32  ;;  %v526_v50 = vadd.f32 %v494_v48, %v366_v59  ;;  %v316_v54 = vmul.f32 %v6064_v4, %v5741_v38  ;;  %v6293_v55 = vadd.f32 %v6072_v10, %v315_v31  ;;  %v5756_v58 = vunpack.c.l.bf16 %v5870_v42  ;;  %2387 = vmatpush.bf16.msrb.mxu1 %v5683_v14 }
  0x40   : > { %2344 = vmatmul.bf16.vlgmr.msra.gmra.mxu2 %v5165_v34  ;;  %988 = vst [vmem:[#allocation2 + $0x200] sm:$0xf] %v6213_v36  ;;  %v557_v32 = vmul.f32 0.7978846, %v525_v35  ;;  %v503_v57 = vadd.f32 %v471_v33, %v343_v8  ;;  %v5757_v59 = vunpack.c.h.bf16 %v5870_v42  ;;  %v6298_v36 = vmul.f32 0.5, %v6247_v19  ;;  %v5863_v33 = vld [vmem:[%s6059_s29 + $0x10] sm:$0xff]  }
  0x41   : > { %905 = vst [vmem:[#allocation2 + $0x3c] sm:$0xf] %v6225_v52  ;;  %v558_v56 = vmul.f32 0.7978846, %v526_v50  ;;  %v440_v60 = vmul.f32 %v408_v53, %v6247_v19  ;;  %v6302_v61 = vadd.f32 %v6072_v10, %v316_v54  ;;  %v323_v3 = vmul.f32 %v6064_v4, %v5756_v58 }
  0x42   : > { %v5212_v37 = vld [vmem:[#allocation2 + $0x24c] sm:$0xf]  ;;  %906 = vst [vmem:[#allocation2 + $0x48] sm:$0xf] %v6231_v41  ;;  %5951 = vtanh.f32 %v557_v32  ;;  %v5948_v62 = vpop.eup %5947  ;;  %v535_v1 = vmul.f32 0.7978846, %v503_v57  ;;  %v324_v5 = vmul.f32 %v6064_v4, %v5757_v59  ;;  %v5772_v48 = vunpack.c.l.bf16 %v5874_v23 }
  0x43   : > { %v5635_v63 = vld [vmem:[#allocation2 + $0x254] sm:$0xf0]  ;;  %935 = vst [vmem:[#allocation2 + $0x10] sm:$0xf] %v6225_v52  ;;  %5953 = vtanh.f32 %v558_v56  ;;  %v5950_v7 = vpop.eup %5949  ;;  %v613_v11 = vadd.f32 1.0, %v5948_v62  ;;  %v472_v39 = vmul.f32 %v440_v60, %v6247_v19  ;;  %v6310_v12 = vmul.f32 0.5, %v6293_v55 }
  0x44   : > { %v5213_v8 = vor.u32 %v5635_v63, %v5212_v37  ;;  %936 = vst [vmem:[#allocation2 + $0x1c] sm:$0xf] %v6231_v41  ;;  %v614_v52 = vadd.f32 1.0, %v5950_v7  ;;  %5955 = vtanh.f32 %v535_v1  ;;  %v415_v13 = vmul.f32 0.044715, %v6293_v55 }
  0x45   : > { %913 = vst [vmem:[#allocation2 + $0xfc] sm:$0xf] %v6261_v28  ;;  %v6315_v16 = vadd.f32 %v6072_v10, %v323_v3  ;;  %v645_v41 = vmul.f32 %v613_v11, %v6199_v22  ;;  %v504_v17 = vadd.f32 %v472_v39, %v6247_v19  ;;  %v6321_v18 = vmul.f32 0.5, %v6302_v61 }
  0x46   : > { %2364 = vmatmul.bf16.vlgmr.msra.gmra.mxu3 %v5213_v8  ;;  %914 = vst [vmem:[#allocation2 + $0x108] sm:$0xf] %v6271_v49  ;;  %v416_v21 = vmul.f32 0.044715, %v6302_v61  ;;  %v646_v15 = vmul.f32 %v614_v52, %v6209_v29  ;;  %v447_v20 = vmul.f32 %v415_v13, %v6293_v55  ;;  %v6329_v26 = vadd.f32 %v6072_v10, %v324_v5 }
  0x47   : > { %943 = vst [vmem:[#allocation2 + $0xd0] sm:$0xf] %v6261_v28  ;;  %v423_v40 = vmul.f32 0.044715, %v6315_v16  ;;  %v677_v19 = vpack.c.bf16 %v645_v41, %v645_v41  ;;  %v536_v9 = vmul.f32 0.7978846, %v504_v17  ;;  %v5773_v47 = vunpack.c.h.bf16 %v5874_v23 }
  0x48   : > { %v5952_v22 = vpop.eup %5951  ;;  %v5080_v2 = vld [vmem:[#allocation2 + $0x3c] sm:$0xf]  ;;  %944 = vst [vmem:[#allocation2 + $0xdc] sm:$0xf] %v6271_v49  ;;  %v448_v24 = vmul.f32 %v416_v21, %v6302_v61  ;;  %v678_v29 = vpack.c.bf16 %v646_v15, %v646_v15  ;;  %v479_v27 = vmul.f32 %v447_v20, %v6293_v55  ;;  %v331_v60 = vmul.f32 %v6064_v4, %v5772_v48 }
  0x49   : > { %v5954_v25 = vpop.eup %5953  ;;  %v5602_v43 = vld [vmem:[#allocation2 + $0x44] sm:$0xf0]  ;;  %973 = vst [vmem:[#allocation2 + $0xa4] sm:$0xf] %v6261_v28  ;;  %v621_v38 = vadd.f32 1.0, %v5952_v22  ;;  %5957 = vtanh.f32 %v536_v9  ;;  %v455_v42 = vmul.f32 %v423_v40, %v6315_v16  ;;  %v6353_v63 = vmul.f32 0.5, %v6315_v16 }
  0x4a   : > { %v5081_v30 = vor.u32 %v5602_v43, %v5080_v2  ;;  %974 = vst [vmem:[#allocation2 + $0xb0] sm:$0xf] %v6271_v49  ;;  %v622_v44 = vadd.f32 1.0, %v5954_v25  ;;  %v480_v31 = vmul.f32 %v448_v24, %v6302_v61  ;;  %v5956_v34 = vpop.eup %5955  ;;  %v511_v14 = vadd.f32 %v479_v27, %v6293_v55 }
  0x4b   : > { %921 = vst [vmem:[#allocation2 + $0x1bc] sm:$0xf] %v677_v19  ;;  %v653_v35 = vmul.f32 %v621_v38, %v6238_v0  ;;  %v424_v28 = vmul.f32 0.044715, %v6329_v26  ;;  %v599_v45 = vadd.f32 1.0, %v5956_v34  ;;  %v487_v55 = vmul.f32 %v455_v42, %v6315_v16  ;;  %v5649_v38 = vld [vmem:[%s7868_s3 + $0x18] sm:$0xff] }
  0x4c   : > { %2309 = vmatmul.bf16.gmra.mxu0 %v5081_v30  ;;  %v5128_v50 = vld [vmem:[#allocation2 + $0xfc] sm:$0xf]  ;;  %922 = vst [vmem:[#allocation2 + $0x1c8] sm:$0xf] %v678_v29  ;;  %v654_v49 = vmul.f32 %v622_v44, %v6241_v6  ;;  %v512_v46 = vadd.f32 %v480_v31, %v6302_v61  ;;  %v543_v53 = vmul.f32 0.7978846, %v511_v14  ;;  %v332_v1 = vmul.f32 %v6064_v4, %v5773_v47 }
  0x4d   : > { %v5614_v32 = vld [vmem:[#allocation2 + $0x104] sm:$0xf0]  ;;  %951 = vst [vmem:[#allocation2 + $0x190] sm:$0xf] %v677_v19  ;;  %v685_v0 = vpack.c.bf16 %v653_v35, %v653_v35  ;;  %v456_v54 = vmul.f32 %v424_v28, %v6329_v26  ;;  %v631_v58 = vmul.f32 %v599_v45, %v6287_v51  ;;  %v519_v37 = vadd.f32 %v487_v55, %v6315_v16  ;;  %v5867_v61 = vld [vmem:[%s6059_s29 + $0x30] sm:$0xff]   ;;  %v5658_v44 = vld [vmem:[%s7868_s3 + $0x60] sm:$0xff] }
  0x4e   : > { %v5129_v56 = vor.u32 %v5614_v32, %v5128_v50  ;;  %952 = vst [vmem:[#allocation2 + $0x19c] sm:$0xf] %v678_v29  ;;  %v686_v57 = vpack.c.bf16 %v654_v49, %v654_v49  ;;  %v544_v6 = vmul.f32 0.7978846, %v512_v46  ;;  %5959 = vtanh.f32 %v543_v53  ;;  %v5681_v42 = vld [vmem:[%s7868_s3 + $0x118] sm:$0xff]  ;;  %2903 = vmatpush.bf16.msrb.mxu3 %v5649_v38  ;;  %2991 = vmatpush.bf16.msrb.mxu0 %v5658_v44 }
  0x4f   : > { %981 = vst [vmem:[#allocation2 + $0x164] sm:$0xf] %v677_v19  ;;  %v488_v59 = vmul.f32 %v456_v54, %v6329_v26  ;;  %v5958_v62 = vpop.eup %5957  ;;  %v5728_v51 = vunpack.c.l.bf16 %v5863_v33  ;;  %v551_v7 = vmul.f32 0.7978846, %v519_v37  ;;  %v6358_v8 = vadd.f32 %v6072_v10, %v331_v60  ;;  %v5657_v55 = vld [vmem:[%s7868_s3 + $0x58] sm:$0xff] }
  0x50   : > { %2329 = vmatmul.bf16.gmra.mxu1 %v5129_v56  ;;  %982 = vst [vmem:[#allocation2 + $0x170] sm:$0xf] %v678_v29  ;;  %5961 = vtanh.f32 %v544_v6  ;;  %v600_v3 = vadd.f32 1.0, %v5958_v62  ;;  %v663_v39 = vpack.c.bf16 %v631_v58, %v631_v58  ;;  %v6361_v52 = vadd.f32 %v6072_v10, %v332_v1  ;;  %v5689_v29 = vld [vmem:[%s7868_s3 + $0x158] sm:$0xff]  ;;  %v5991_v38 = vld [vmem:[%s7866_s1] ss:$0 sm:$0xff] }
  0x51   : > { %929 = vst [vmem:[#allocation2 + $0x27c] sm:$0xf] %v685_v0  ;;  %v520_v5 = vadd.f32 %v488_v59, %v6329_v26  ;;  %v5729_v13 = vunpack.c.h.bf16 %v5863_v33  ;;  %v5744_v16 = vunpack.c.l.bf16 %v5867_v61  ;;  %5963 = vtanh.f32 %v551_v7  ;;  %2478 = vmatpush.bf16.msrb.mxu2 %v5689_v29  ;;  %v5648_v33 = vld [vmem:[%s7868_s3 + $0x10] sm:$0xff] }
  0x52   : > { %v5176_v11 = vld [vmem:[#allocation2 + $0x1bc] sm:$0xf]  ;;  %930 = vst [vmem:[#allocation2 + $0x288] sm:$0xf] %v686_v57  ;;  %v632_v17 = vmul.f32 %v600_v3, %v6298_v36  ;;  %v309_v23 = vmul.f32 %v6064_v4, %v5728_v51  ;;  %v6366_v20 = vmul.f32 0.5, %v6329_v26  ;;  %v5745_v22 = vunpack.c.h.bf16 %v5867_v61  ;;  %v5682_v26 = vld [vmem:[%s7868_s3 + $0x120] sm:$0xff]  ;;  %2904 = vmatpush.bf16.msrb.mxu3 %v5648_v33  ;;  %2992 = vmatpush.bf16.msrb.mxu0 %v5657_v55 }
  0x53   : > { %v5626_v41 = vld [vmem:[#allocation2 + $0x1c4] sm:$0xf0]  ;;  %959 = vst [vmem:[#allocation2 + $0x250] sm:$0xf] %v685_v0  ;;  %v552_v21 = vmul.f32 0.7978846, %v520_v5  ;;  %v310_v36 = vmul.f32 %v6064_v4, %v5729_v13  ;;  %v317_v27 = vmul.f32 %v6064_v4, %v5744_v16  ;;  %2388 = vmatpush.bf16.msrb.mxu1 %v5682_v26 }
  0x54   : > { %v5177_v15 = vor.u32 %v5626_v41, %v5176_v11  ;;  %960 = vst [vmem:[#allocation2 + $0x25c] sm:$0xf] %v686_v57  ;;  %v431_v40 = vmul.f32 0.044715, %v6358_v8  ;;  %v5960_v2 = vpop.eup %5959  ;;  %v664_v19 = vpack.c.bf16 %v632_v17, %v632_v17  ;;  %v432_v9 = vmul.f32 0.044715, %v6361_v52 }
  0x55   : > { %989 = vst [vmem:[#allocation2 + $0x224] sm:$0xf] %v685_v0  ;;  %5965 = vtanh.f32 %v552_v21  ;;  %v607_v25 = vadd.f32 1.0, %v5960_v2  ;;  %v6387_v31 = vadd.f32 %v6072_v10, %v309_v23  ;;  %v6390_v34 = vadd.f32 %v6072_v10, %v310_v36  ;;  %v5871_v7 = vld [vmem:[%s6059_s29 + $0x50] sm:$0xff]  }
  0x56   : > { %v5962_v24 = vpop.eup %5961  ;;  %2349 = vmatmul.bf16.gmra.mxu2 %v5177_v15  ;;  %990 = vst [vmem:[#allocation2 + $0x230] sm:$0xf] %v686_v57  ;;  %v463_v43 = vmul.f32 %v431_v40, %v6358_v8  ;;  %v464_v30 = vmul.f32 %v432_v9, %v6361_v52  ;;  %v318_v50 = vmul.f32 %v6064_v4, %v5745_v22  ;;  %v6421_v1 = vmul.f32 0.5, %v6358_v8  ;;  %v5875_v16 = vld [vmem:[%s6059_s29 + $0x70] sm:$0xff]  }
  0x57   : > { %907 = vst [vmem:[#allocation2 + $0x6c] sm:$0xf] %v663_v39  ;;  %v608_v48 = vadd.f32 1.0, %v5962_v24  ;;  %v639_v14 = vmul.f32 %v607_v25, %v6310_v12  ;;  %v5964_v49 = vpop.eup %5963  ;;  %v5688_v12 = vld [vmem:[%s7868_s3 + $0x150] sm:$0xff]  ;;  %v6407_v32 = vadd.f32 %v6072_v10, %v317_v27  ;;  %v409_v6 = vmul.f32 0.044715, %v6387_v31  ;;  %2389 = vmatpush.bf16.msrb.mxu1 %v5681_v42 }
  0x58   : > { %v5224_v35 = vld [vmem:[#allocation2 + $0x27c] sm:$0xf]  ;;  %908 = vst [vmem:[#allocation2 + $0x78] sm:$0xf] %v664_v19  ;;  %v495_v28 = vmul.f32 %v463_v43, %v6358_v8  ;;  %v496_v47 = vmul.f32 %v464_v30, %v6361_v52  ;;  %v615_v54 = vadd.f32 1.0, %v5964_v49  ;;  %v6418_v62 = vadd.f32 %v6072_v10, %v318_v50  ;;  %2479 = vmatpush.bf16.msrb.mxu2 %v5688_v12 }
  0x59   : > { %v5638_v45 = vld [vmem:[#allocation2 + $0x284] sm:$0xf0]  ;;  %937 = vst [vmem:[#allocation2 + $0x40] sm:$0xf] %v663_v39  ;;  %v640_v46 = vmul.f32 %v608_v48, %v6321_v18  ;;  %v671_v53 = vpack.c.bf16 %v639_v14, %v639_v14  ;;  %v410_v59 = vmul.f32 0.044715, %v6390_v34  ;;  %v441_v3 = vmul.f32 %v409_v6, %v6387_v31 }
  0x5a   : > { %v5225_v0 = vor.u32 %v5638_v45, %v5224_v35  ;;  %938 = vst [vmem:[#allocation2 + $0x4c] sm:$0xf] %v664_v19  ;;  %v527_v18 = vadd.f32 %v495_v28, %v6358_v8  ;;  %v528_v58 = vadd.f32 %v496_v47, %v6361_v52  ;;  %v647_v60 = vmul.f32 %v615_v54, %v6353_v63  ;;  %v5992_v45 = vld [vmem:[%s7867_s2] ss:$0 sm:$0xff] }
  0x5b   : > { %v5966_v56 = vpop.eup %5965  ;;  %967 = vst [vmem:[#allocation2 + $0x14] sm:$0xf] %v663_v39  ;;  %v672_v57 = vpack.c.bf16 %v640_v46, %v640_v46  ;;  %v442_v5 = vmul.f32 %v410_v59, %v6390_v34  ;;  %v400_v13 = vmul.f32 0.5, %v6361_v52  ;;  %v473_v41 = vmul.f32 %v441_v3, %v6387_v31 }
  0x5c   : > { %2369 = vmatmul.bf16.gmra.mxu3 %v5225_v0  ;;  %968 = vst [vmem:[#allocation2 + $0x20] sm:$0xf] %v664_v19  ;;  %v616_v37 = vadd.f32 1.0, %v5966_v56  ;;  %v559_v61 = vmul.f32 0.7978846, %v527_v18  ;;  %v679_v39 = vpack.c.bf16 %v647_v60, %v647_v60  ;;  %v5760_v40 = vunpack.c.l.bf16 %v5871_v7 }
  0x5d   : > { %915 = vst [vmem:[#allocation2 + $0x12c] sm:$0xf] %v671_v53  ;;  %v560_v51 = vmul.f32 0.7978846, %v528_v58  ;;  %v474_v17 = vmul.f32 %v442_v5, %v6390_v34  ;;  %v417_v21 = vmul.f32 0.044715, %v6407_v32  ;;  %v505_v52 = vadd.f32 %v473_v41, %v6387_v31 }
  0x5e   : > { %v5092_v11 = vld [vmem:[#allocation2 + $0x6c] sm:$0xf]  ;;  %916 = vst [vmem:[#allocation2 + $0x138] sm:$0xf] %v672_v57  ;;  %v648_v63 = vmul.f32 %v616_v37, %v6366_v20  ;;  %5967 = vtanh.f32 %v559_v61  ;;  %v418_v20 = vmul.f32 0.044715, %v6418_v62  ;;  %v5761_v19 = vunpack.c.h.bf16 %v5871_v7 }
  0x5f   : > { %v5605_v8 = vld [vmem:[#allocation2 + $0x74] sm:$0xf0]  ;;  %945 = vst [vmem:[#allocation2 + $0x100] sm:$0xf] %v671_v53  ;;  %5969 = vtanh.f32 %v560_v51  ;;  %v506_v22 = vadd.f32 %v474_v17, %v6390_v34  ;;  %v449_v2 = vmul.f32 %v417_v21, %v6407_v32  ;;  %v325_v36 = vmul.f32 %v6064_v4, %v5760_v40 }
  0x60   : > { %v5093_v23 = vor.u32 %v5605_v8, %v5092_v11  ;;  %946 = vst [vmem:[#allocation2 + $0x10c] sm:$0xf] %v672_v57  ;;  %v680_v15 = vpack.c.bf16 %v648_v63, %v648_v63  ;;  %v450_v9 = vmul.f32 %v418_v20, %v6418_v62  ;;  %v5776_v24 = vunpack.c.l.bf16 %v5875_v16 }
  0x61   : > { %975 = vst [vmem:[#allocation2 + $0xd4] sm:$0xf] %v671_v53  ;;  %v5777_v25 = vunpack.c.h.bf16 %v5875_v16  ;;  %v537_v43 = vmul.f32 0.7978846, %v505_v52  ;;  %v538_v26 = vmul.f32 0.7978846, %v506_v22  ;;  %v481_v29 = vmul.f32 %v449_v2, %v6407_v32 }
  0x62   : > { %2314 = vmatmul.bf16.gmra.mxu0 %v5093_v23  ;;  %976 = vst [vmem:[#allocation2 + $0xe0] sm:$0xf] %v672_v57  ;;  %v326_v27 = vmul.f32 %v5991_v38, %v5761_v19  ;;  %v482_v44 = vmul.f32 %v450_v9, %v6418_v62  ;;  %v6444_v35 = vadd.f32 %v6072_v10, %v325_v36  ;;  %v377_v0 = vmul.f32 0.5, %v6387_v31  ;;  %v5680_v19 = vld [vmem:[%s7868_s3 + $0x110] sm:$0xff] }
  0x63   : > { %923 = vst [vmem:[#allocation2 + $0x1ec] sm:$0xf] %v679_v39  ;;  %v333_v4 = vmul.f32 %v5991_v38, %v5776_v24  ;;  %v334_v14 = vmul.f32 %v5991_v38, %v5777_v25  ;;  %5971 = vtanh.f32 %v537_v43  ;;  %v513_v49 = vadd.f32 %v481_v29, %v6407_v32  ;;  %v5687_v43 = vld [vmem:[%s7868_s3 + $0x148] sm:$0xff]  ;;  %v5656_v29 = vld [vmem:[%s7868_s3 + $0x50] sm:$0xff]  ;;  %2390 = vmatpush.bf16.msrb.mxu1 %v5680_v19  ;;  %v5669_v19 = vld [vmem:[%s7868_s3 + $0xb8] sm:$0xff] }
  0x64   : > { %v5968_v48 = vpop.eup %5967  ;;  %v5140_v30 = vld [vmem:[#allocation2 + $0x12c] sm:$0xf]  ;;  %924 = vst [vmem:[#allocation2 + $0x1f8] sm:$0xf] %v680_v15  ;;  %v6450_v46 = vadd.f32 %v5992_v45, %v326_v27  ;;  %5973 = vtanh.f32 %v538_v26  ;;  %v514_v10 = vadd.f32 %v482_v44, %v6418_v62  ;;  %v425_v55 = vmul.f32 0.044715, %v6444_v35  ;;  %2480 = vmatpush.bf16.msrb.mxu2 %v5687_v43  ;;  %2993 = vmatpush.bf16.msrb.mxu0 %v5656_v29 }
  0x65   : > { %v5970_v28 = vpop.eup %5969  ;;  %v5617_v42 = vld [vmem:[#allocation2 + $0x134] sm:$0xf0]  ;;  %953 = vst [vmem:[#allocation2 + $0x1c0] sm:$0xf] %v679_v39  ;;  %v623_v50 = vadd.f32 1.0, %v5968_v48  ;;  %v6456_v56 = vadd.f32 %v5992_v45, %v333_v4  ;;  %v6459_v6 = vadd.f32 %v5992_v45, %v334_v14  ;;  %v378_v60 = vmul.f32 0.5, %v6390_v34 }
  0x66   : > { %v5141_v47 = vor.u32 %v5617_v42, %v5140_v30  ;;  %954 = vst [vmem:[#allocation2 + $0x1cc] sm:$0xf] %v680_v15  ;;  %v624_v12 = vadd.f32 1.0, %v5970_v28  ;;  %v545_v53 = vmul.f32 0.7978846, %v513_v49  ;;  %v457_v31 = vmul.f32 %v425_v55, %v6444_v35  ;;  %v5647_v26 = vld [vmem:[%s7868_s3 + $0x8] sm:$0xff] }
  0x67   : > { %983 = vst [vmem:[#allocation2 + $0x194] sm:$0xf] %v679_v39  ;;  %v655_v33 = vmul.f32 %v623_v50, %v6421_v1  ;;  %v546_v18 = vmul.f32 0.7978846, %v514_v10  ;;  %v426_v58 = vmul.f32 0.044715, %v6450_v46  ;;  %2905 = vmatpush.bf16.msrb.mxu3 %v5647_v26 }
  0x68   : > { %2334 = vmatmul.bf16.gmra.mxu1 %v5141_v47  ;;  %984 = vst [vmem:[#allocation2 + $0x1a0] sm:$0xf] %v680_v15  ;;  %v656_v54 = vmul.f32 %v624_v12, %v400_v13  ;;  %5975 = vtanh.f32 %v545_v53  ;;  %v385_v51 = vmul.f32 0.5, %v6407_v32  ;;  %v386_v3 = vmul.f32 0.5, %v6418_v62  ;;  %v5679_v30 = vld [vmem:[%s7868_s3 + $0x108] sm:$0xff]  ;;  %v5686_v28 = vld [vmem:[%s7868_s3 + $0x140] sm:$0xff] }
  0x69   : > { %v687_v57 = vpack.c.bf16 %v655_v33, %v655_v33  ;;  %5977 = vtanh.f32 %v546_v18  ;;  %v5972_v61 = vpop.eup %5971  ;;  %v458_v5 = vmul.f32 %v426_v58, %v6450_v46  ;;  %v489_v39 = vmul.f32 %v457_v31, %v6444_v35  ;;  %v5646_v42 = vld [vmem:[%s7868_s3] sm:$0xff]  ;;  %v5655_v47 = vld [vmem:[%s7868_s3 + $0x48] sm:$0xff]  ;;  %2391 = vmatpush.bf16.msrb.mxu1 %v5679_v30  ;;  %2481 = vmatpush.bf16.msrb.mxu2 %v5686_v28  ;;  %v706_v29 = vld [vmem:[#allocation2 + $0x30] sm:$0x88] }
  0x6a   : > { %v5188_v59 = vld [vmem:[#allocation2 + $0x1ec] sm:$0xf]  ;;  %v688_v37 = vpack.c.bf16 %v656_v54, %v656_v54  ;;  %v5974_v7 = vpop.eup %5973  ;;  %v601_v63 = vadd.f32 1.0, %v5972_v61  ;;  %v433_v34 = vmul.f32 0.044715, %v6456_v56  ;;  %v5678_v53 = vld [vmem:[%s7868_s3 + $0x100] sm:$0xff]  ;;  %2994 = vmatpush.bf16.msrb.mxu0 %v5655_v47 }
  0x6b   : > { %v5629_v1 = vld [vmem:[#allocation2 + $0x1f4] sm:$0xf0]  ;;  %931 = vst [vmem:[#allocation2 + $0x2ac] sm:$0xf] %v687_v57  ;;  %v602_v13 = vadd.f32 1.0, %v5974_v7  ;;  %v490_v16 = vmul.f32 %v458_v5, %v6450_v46  ;;  %v521_v62 = vadd.f32 %v489_v39, %v6444_v35  ;;  %v393_v54 = vmul.f32 0.5, %v6444_v35  ;;  %2906 = vmatpush.bf16.msrb.mxu3 %v5646_v42 }
  0x6c   : > { %v5189_v11 = vor.u32 %v5629_v1, %v5188_v59  ;;  %932 = vst [vmem:[#allocation2 + $0x2b8] sm:$0xf] %v688_v37  ;;  %v434_v8 = vmul.f32 0.044715, %v6459_v6  ;;  %v633_v32 = vmul.f32 %v601_v63, %v377_v0  ;;  %v465_v41 = vmul.f32 %v433_v34, %v6456_v56  ;;  %v700_v18 = vld [vmem:[#allocation2] sm:$0x88] }
  0x6d   : > { %961 = vst [vmem:[#allocation2 + $0x280] sm:$0xf] %v687_v57  ;;  %v634_v21 = vmul.f32 %v602_v13, %v378_v60  ;;  %v522_v23 = vadd.f32 %v490_v16, %v6450_v46  ;;  %v553_v22 = vmul.f32 0.7978846, %v521_v62  ;;  %v6518_v55 = vld [vmem:[#allocation2 + $0xc] sm:$0xff]  ;;  %v394_v58 = vmul.f32 0.5, %v6450_v46  ;;  %2392 = vmatpush.bf16.msrb.mxu1 %v5678_v53 }
  0x6e   : > { %2354 = vmatmul.bf16.gmra.mxu2 %v5189_v11  ;;  %962 = vst [vmem:[#allocation2 + $0x28c] sm:$0xf] %v688_v37  ;;  %v5976_v17 = vpop.eup %5975  ;;  %v466_v15 = vmul.f32 %v434_v8, %v6459_v6  ;;  %v665_v40 = vpack.c.bf16 %v633_v32, %v633_v32  ;;  %v497_v2 = vmul.f32 %v465_v41, %v6456_v56  ;;  %v5654_v59 = vld [vmem:[%s7868_s3 + $0x40] sm:$0xff]  ;;  %v1101_v46 = vshrl.u32 %v6518_v55, 16  ;;  %v5598_v0 = vld [vmem:[#allocation2 + $0x10] sm:$0xf] }
  0x6f   : > { %991 = vst [vmem:[#allocation2 + $0x254] sm:$0xf] %v687_v57  ;;  %v5978_v20 = vpop.eup %5977  ;;  %v609_v52 = vadd.f32 1.0, %v5976_v17  ;;  %v666_v9 = vpack.c.bf16 %v634_v21, %v634_v21  ;;  %v554_v24 = vmul.f32 0.7978846, %v522_v23  ;;  %5979 = vtanh.f32 %v553_v22  ;;  %2995 = vmatpush.bf16.msrb.mxu0 %v5654_v59 }
  0x70   : > { %992 = vst [vmem:[#allocation2 + $0x260] sm:$0xf] %v688_v37  ;;  %v610_v36 = vadd.f32 1.0, %v5978_v20  ;;  %v498_v25 = vmul.f32 %v466_v15, %v6459_v6  ;;  %v529_v48 = vadd.f32 %v497_v2, %v6456_v56  ;;  %v1001_v37 = vld [vmem:[#allocation2 + $0x18] sm:$0xff]  ;;  %v401_v11 = vmul.f32 0.5, %v6456_v56 }
  0x71   : > { %909 = vst [vmem:[#allocation2 + $0x9c] sm:$0xf] %v665_v40  ;;  %v641_v27 = vmul.f32 %v609_v52, %v385_v51  ;;  %5981 = vtanh.f32 %v554_v24  ;;  %v701_v63 = vsel %vm6528_vm6, 0, %v700_v18  ;;  %v402_v13 = vmul.f32 0.5, %v6459_v6  ;;  %v5709_v52 = vld [vmem:[%s7868_s3 + $0x1f8] sm:$0xff]  ;;  %3077 = vmatpush.bf16.msra.mxu1 %v5669_v19 }
  0x72   : > { %v5236_v38 = vld [vmem:[#allocation2 + $0x2ac] sm:$0xf]  ;;  %910 = vst [vmem:[#allocation2 + $0xa8] sm:$0xf] %v666_v9  ;;  %v642_v4 = vmul.f32 %v610_v36, %v386_v3  ;;  %v530_v14 = vadd.f32 %v498_v25, %v6459_v6  ;;  %v561_v45 = vmul.f32 0.7978846, %v529_v48  ;;  %4507 = vmatpush.bf16.msra.mxu3 %v5709_v52 }
  0x73   : > { %v5641_v44 = vld [vmem:[#allocation2 + $0x2b4] sm:$0xf0]  ;;  %939 = vst [vmem:[#allocation2 + $0x70] sm:$0xf] %v665_v40  ;;  %v673_v49 = vpack.c.bf16 %v641_v27, %v641_v27  ;;  %v1123_v3 = vshrl.u32 %v1001_v37, 16  ;;  %v1103_v62 = vrot.slane %v1101_v46, 7 }
  0x74   : > { %v5237_v50 = vor.u32 %v5641_v44, %v5236_v38  ;;  %940 = vst [vmem:[#allocation2 + $0x7c] sm:$0xf] %v666_v9  ;;  %v674_v10 = vpack.c.bf16 %v642_v4, %v642_v4  ;;  %v562_v33 = vmul.f32 0.7978846, %v530_v14  ;;  %5983 = vtanh.f32 %v561_v45  ;;  %v1005_v27 = vld [vmem:[#allocation2 + $0x3c] sm:$0xff]  ;;  %v1007_v48 = vld [vmem:[#allocation2 + $0x48] sm:$0xff] }
  0x75   : > { %969 = vst [vmem:[#allocation2 + $0x44] sm:$0xf] %v665_v40  ;;  %v5980_v57 = vpop.eup %5979  ;;  %v1125_v56 = vrot.slane %v1123_v3, 7  ;;  %v1126_v21 = vshll.u32 %v1001_v37, 16  ;;  %v5701_v40 = vld [vmem:[%s7868_s3 + $0x1b8] sm:$0xff]  ;;  %v1104_v24 = vshll.u32 %v6518_v55, 16 }
  0x76   : > { %2374 = vmatmul.bf16.gmra.mxu3 %v5237_v50  ;;  %970 = vst [vmem:[#allocation2 + $0x50] sm:$0xf] %v666_v9  ;;  %5985 = vtanh.f32 %v562_v33  ;;  %v617_v61 = vadd.f32 1.0, %v5980_v57  ;;  %v5717_v9 = vld [vmem:[%s7868_s3 + $0x238] sm:$0xff]  ;;  %v1121_v25 = vrot.slane %v1103_v62, 4  ;;  %4418 = vmatpush.bf16.msra.mxu2 %v5701_v40  ;;  %v707_v42 = vsel %vm6528_vm6, 0, %v706_v29 }
  0x77   : > { %917 = vst [vmem:[#allocation2 + $0x15c] sm:$0xf] %v673_v49  ;;  %v5982_v60 = vpop.eup %5981  ;;  %v1128_v43 = vor.u32 %v1126_v21, %v1125_v56  ;;  %4596 = vmatpush.bf16.msra.mxu0 %v5717_v9  ;;  %v1106_v4 = vor.u32 %v1104_v24, %v1103_v62  ;;  %v1145_v45 = vshrl.u32 %v1005_v27, 16  ;;  %v1167_v47 = vshrl.u32 %v1007_v48, 16  ;;  %v5070_v53 = vld [vmem:[#allocation2 + $0x18] sm:$0xf0] }
  0x78   : > { %v5104_v31 = vld [vmem:[#allocation2 + $0x9c] sm:$0xf]  ;;  %918 = vst [vmem:[#allocation2 + $0x168] sm:$0xf] %v674_v10  ;;  %v618_v51 = vadd.f32 1.0, %v5982_v60  ;;  %v649_v7 = vmul.f32 %v617_v61, %v393_v54  ;;  %v5073_v46 = vor.u32 %v5598_v0, %v5070_v53 }
  0x79   : > { %v5608_v1 = vld [vmem:[#allocation2 + $0xa4] sm:$0xf0]  ;;  %947 = vst [vmem:[#allocation2 + $0x130] sm:$0xf] %v673_v49  ;;  %v1129_v14 = vsel %vm6552_vm9, %v1121_v25, %v1128_v43  ;;  %v1147_v55 = vrot.slane %v1145_v45, 7  ;;  %v1169_v57 = vrot.slane %v1167_v47, 7 }
  0x7a   : > { %v5105_v5 = vor.u32 %v5608_v1, %v5104_v31  ;;  %948 = vst [vmem:[#allocation2 + $0x13c] sm:$0xf] %v674_v10  ;;  %v5984_v39 = vpop.eup %5983  ;;  %v650_v34 = vmul.f32 %v618_v51, %v394_v58  ;;  %v681_v8 = vpack.c.bf16 %v649_v7, %v649_v7  ;;  %v1170_v58 = vshll.u32 %v1007_v48, 16  ;;  %v712_v60 = vld [vmem:[#allocation2 + $0x60] sm:$0x88] }
  0x7b   : > { %977 = vst [vmem:[#allocation2 + $0x104] sm:$0xf] %v673_v49  ;;  %v625_v32 = vadd.f32 1.0, %v5984_v39  ;;  %v713_v61 = vsel %vm6528_vm6, 0, %v712_v60  ;;  %v1148_v1 = vshll.u32 %v1005_v27, 16  ;;  %v1165_v51 = vrot.slane %v1147_v55, 4 }
  0x7c   : > { %v5986_v16 = vpop.eup %5985  ;;  %2319 = vmatmul.bf16.gmra.mxu0 %v5105_v5  ;;  %978 = vst [vmem:[#allocation2 + $0x110] sm:$0xf] %v674_v10  ;;  %v682_v41 = vpack.c.bf16 %v650_v34, %v650_v34  ;;  %v2567_v10 = vunpack.c.h.b16 %v1129_v14  ;;  %v1172_v3 = vor.u32 %v1170_v58, %v1169_v57  ;;  %v5076_v7 = vld [vmem:[#allocation2 + $0x14] sm:$0xf]  ;;  %v5601_v40 = vld [vmem:[#allocation2 + $0x40] sm:$0xf] }
  0x7d   : > { %v626_v17 = vadd.f32 1.0, %v5986_v16  ;;  %702 = vst [vmem:[#allocation2] sm:$0x88] %v701_v63  ;;  %v657_v15 = vmul.f32 %v625_v32, %v401_v11  ;;  %v5600_v11 = vld [vmem:[#allocation2 + $0x1c] sm:$0xf0]  ;;  %v1150_v39 = vor.u32 %v1148_v1, %v1147_v55  ;;  %v1011_v16 = vld [vmem:[#allocation2 + $0x6c] sm:$0xff] }
  0x7e   : > { %v5152_v23 = vld [vmem:[#allocation2 + $0x15c] sm:$0xf]  ;;  %925 = vst [vmem:[#allocation2 + $0x21c] sm:$0xf] %v681_v8  ;;  %v1173_v34 = vsel %vm6552_vm9, %v1165_v51, %v1172_v3  ;;  %v5077_v32 = vor.u32 %v5600_v11, %v5076_v7  ;;  %v1192_v9 = vshll.u32 %v1011_v16, 16 }
  0x7f   : > { %v5620_v20 = vld [vmem:[#allocation2 + $0x164] sm:$0xf0]  ;;  %926 = vst [vmem:[#allocation2 + $0x228] sm:$0xf] %v682_v41  ;;  %v658_v6 = vmul.f32 %v626_v17, %v402_v13  ;;  %v689_v2 = vpack.c.bf16 %v657_v15, %v657_v15  ;;  %v2573_v56 = vunpack.c.h.b16 %v1173_v34  ;;  %v1189_v15 = vshrl.u32 %v1011_v16, 16  ;;  %v1017_v47 = vld [vmem:[#allocation2 + $0x9c] sm:$0xff] }
  0x80   : > { %v5153_v22 = vor.u32 %v5620_v20, %v5152_v23  ;;  %955 = vst [vmem:[#allocation2 + $0x1f0] sm:$0xf] %v681_v8  ;;  %v718_v25 = vld [vmem:[#allocation2 + $0x90] sm:$0x88]  ;;  %v2572_v53 = vunpack.c.l.b16 %v1173_v34  ;;  %v1233_v57 = vshrl.u32 %v1017_v47, 16  ;;  %v1236_v1 = vshll.u32 %v1017_v47, 16 }
  0x81   : > { %956 = vst [vmem:[#allocation2 + $0x1fc] sm:$0xf] %v682_v41  ;;  %v690_v36 = vpack.c.bf16 %v658_v6, %v658_v6  ;;  %v1191_v19 = vrot.slane %v1189_v15, 7  ;;  %v719_v43 = vsel %vm6528_vm6, 0, %v718_v25  ;;  %v5100_v16 = vld [vmem:[#allocation2 + $0x74] sm:$0xf] }
  0x82   : > { %2339 = vmatmul.bf16.gmra.mxu1 %v5153_v22  ;;  %985 = vst [vmem:[#allocation2 + $0x1c4] sm:$0xf] %v681_v8  ;;  %v1013_v8 = vld [vmem:[#allocation2 + $0x78] sm:$0xff]  ;;  %v5112_v47 = vld [vmem:[#allocation2 + $0xa4] sm:$0xf] }
  0x83   : > { %986 = vst [vmem:[#allocation2 + $0x1d0] sm:$0xf] %v682_v41  ;;  %v2566_v41 = vunpack.c.l.b16 %v1129_v14  ;;  %v1211_v20 = vshrl.u32 %v1013_v8, 16  ;;  %v1214_v24 = vshll.u32 %v1013_v8, 16  ;;  %v1194_v27 = vor.u32 %v1192_v9, %v1191_v19  ;;  %v5668_v14 = vld [vmem:[%s7868_s3 + $0xb0] sm:$0xff] }
  0x84   : > { %933 = vst [vmem:[#allocation2 + $0x2dc] sm:$0xf] %v689_v2  ;;  %v997_v38 = vld [vmem:[#allocation2] sm:$0x88]  ;;  %v1209_v48 = vrot.slane %v1191_v19, 4  ;;  %3078 = vmatpush.bf16.msra.mxu1 %v5668_v14 }
  0x85   : > { %v5200_v30 = vld [vmem:[#allocation2 + $0x21c] sm:$0xf]  ;;  %934 = vst [vmem:[#allocation2 + $0x2e8] sm:$0xf] %v690_v36  ;;  %v1096_v44 = vshrl.u32 %v997_v38, 16 }
  0x86   : > { %v5632_v28 = vld [vmem:[#allocation2 + $0x224] sm:$0xf0]  ;;  %963 = vst [vmem:[#allocation2 + $0x2b0] sm:$0xf] %v689_v2  ;;  %v5606_v8 = vld [vmem:[#allocation2 + $0x7c] sm:$0xf0] }
  0x87   : > { %v5201_v50 = vor.u32 %v5632_v28, %v5200_v30  ;;  %964 = vst [vmem:[#allocation2 + $0x2bc] sm:$0xf] %v690_v36  ;;  %v4986_v49 = vrot.slane %v1096_v44, 11  ;;  %v5700_v44 = vld [vmem:[%s7868_s3 + $0x1b0] sm:$0xff]  ;;  %vm3262_vm0 = vsmask.f32 3328 }
  0x88   : > { %993 = vst [vmem:[#allocation2 + $0x284] sm:$0xf] %v689_v2  ;;  %v5082_v2 = vld [vmem:[#allocation2 + $0x48] sm:$0xf0]  ;;  %v5716_v28 = vld [vmem:[%s7868_s3 + $0x230] sm:$0xff]  ;;  %4419 = vmatpush.bf16.msra.mxu2 %v5700_v44 }
  0x89   : > { %2359 = vmatmul.bf16.gmra.mxu2 %v5201_v50  ;;  %994 = vst [vmem:[#allocation2 + $0x290] sm:$0xf] %v690_v36  ;;  %v1107_v33 = vsel %vm6552_vm9, %v4986_v49, %v1106_v4  ;;  %v1213_v36 = vrot.slane %v1211_v20, 7  ;;  %v5085_v29 = vor.u32 %v5601_v40, %v5082_v2  ;;  %v5708_v4 = vld [vmem:[%s7868_s3 + $0x1f0] sm:$0xff]  ;;  %4597 = vmatpush.bf16.msra.mxu0 %v5716_v28  ;;  %v5607_v2 = vld [vmem:[#allocation2 + $0xa0] sm:$0xf] }
  0x8a   : > { %v2564_v54 = vunpack.c.h.b16 %v1107_v33  ;;  %708 = vst [vmem:[#allocation2 + $0x30] sm:$0x88] %v707_v42  ;;  %v2563_v62 = vunpack.c.l.b16 %v1107_v33  ;;  %4508 = vmatpush.bf16.msra.mxu3 %v5708_v4  ;;  %v5088_v42 = vld [vmem:[#allocation2 + $0x44] sm:$0xf]  ;;  %v5603_v50 = vld [vmem:[#allocation2 + $0x4c] sm:$0xf0] }
  0x8b   : > { %v5248_v18 = vld [vmem:[#allocation2 + $0x2dc] sm:$0xf]  ;;  %714 = vst [vmem:[#allocation2 + $0x60] sm:$0x88] %v713_v61  ;;  %v1216_v30 = vor.u32 %v1214_v24, %v1213_v36  ;;  %v5089_v33 = vor.u32 %v5603_v50, %v5088_v42  ;;  %v5106_v36 = vld [vmem:[#allocation2 + $0xa8] sm:$0xf0] }
  0x8c   : > { %v5644_v59 = vld [vmem:[#allocation2 + $0x2e4] sm:$0xf0]  ;;  %v2660_v37 = vpack.c.b16 %v2567_v10, %v2564_v54  ;;  %v2659_v6 = vpack.c.b16 %v2566_v41, %v2563_v62  ;;  %720 = vst [vmem:[#allocation2 + $0x90] sm:$0x88] %v719_v43  ;;  %v5094_v61 = vld [vmem:[#allocation2 + $0x78] sm:$0xf0] }
  0x8d   : > { %v5249_v31 = vor.u32 %v5644_v59, %v5248_v18  ;;  %v1217_v45 = vsel %vm6552_vm9, %v1209_v48, %v1216_v30  ;;  %v1019_v10 = vld [vmem:[#allocation2 + $0xa8] sm:$0xff]  ;;  %v5109_v30 = vor.u32 %v5607_v2, %v5106_v36  ;;  %vm3263_vm1 = vsmask.f32 7440 }
  0x8e   : > { %2996 = vmatmul.bf16.vlgmr.msrb.gmra.mxu0 %v2660_v37  ;;  %v2579_v18 = vunpack.c.h.b16 %v1217_v45  ;;  %v1255_v58 = vshrl.u32 %v1019_v10, 16  ;;  %v5604_v37 = vld [vmem:[#allocation2 + $0x70] sm:$0xf]  ;;  %v1258_v3 = vshll.u32 %v1019_v10, 16  ;;  %v5699_v42 = vld [vmem:[%s7868_s3 + $0x1a8] sm:$0xff]  ;;  %vm7015_vm2 = vmor %vm3262_vm0, %vm3263_vm1 }
  0x8f   : > { %2379 = vmatmul.bf16.gmra.mxu3 %v5249_v31  ;;  %v5097_v11 = vor.u32 %v5604_v37, %v5094_v61  ;;  %v1023_v41 = vld [vmem:[#allocation2 + $0xcc] sm:$0xff]  ;;  %4420 = vmatpush.bf16.msra.mxu2 %v5699_v42  ;;  %v5232_v35 = vld [vmem:[#allocation2 + $0x284] sm:$0xf] }
  0x90   : > { %v1257_v51 = vrot.slane %v1255_v58, 7  ;;  %v1277_v40 = vshrl.u32 %v1023_v41, 16  ;;  %v1280_v25 = vshll.u32 %v1023_v41, 16  ;;  %v5707_v50 = vld [vmem:[%s7868_s3 + $0x1e8] sm:$0xff]  ;;  %v5609_v10 = vld [vmem:[#allocation2 + $0xac] sm:$0xf0] }
  0x91   : > { %v1003_v5 = vld [vmem:[#allocation2 + $0x30] sm:$0x88]  ;;  %4509 = vmatpush.bf16.msra.mxu3 %v5707_v50  ;;  %v5130_v42 = vld [vmem:[#allocation2 + $0x108] sm:$0xf0] }
  0x92   : > { %2393 = vmatmul.bf16.vlgmr.msrb.gmra.mxu1 %v5073_v46  ;;  %v1140_v63 = vshrl.u32 %v1003_v5, 16  ;;  %v1009_v23 = vld [vmem:[#allocation2 + $0x60] sm:$0x88]  ;;  %v1235_v46 = vrot.slane %v1233_v57, 7  ;;  %v1279_v24 = vrot.slane %v1277_v40, 7 }
  0x93   : > { %v1184_v22 = vshrl.u32 %v1009_v23, 16  ;;  %v1015_v55 = vld [vmem:[#allocation2 + $0x90] sm:$0x88]  ;;  %v724_v5 = vld [vmem:[#allocation2 + $0xc0] sm:$0x88]  ;;  %v2578_v23 = vunpack.c.l.b16 %v1217_v45  ;;  %v5715_v45 = vld [vmem:[%s7868_s3 + $0x228] sm:$0xff] }
  0x94   : > { %v4988_v13 = vrot.slane %v1140_v63, 11  ;;  %v1228_v31 = vshrl.u32 %v1015_v55, 16  ;;  %v725_v7 = vsel %vm6528_vm6, 0, %v724_v5  ;;  %v1253_v34 = vrot.slane %v1235_v46, 4  ;;  %4598 = vmatpush.bf16.msra.mxu0 %v5715_v45 }
  0x95   : > { %v4990_v38 = vrot.slane %v1184_v22, 11  ;;  %726 = vst [vmem:[#allocation2 + $0xc0] sm:$0x88] %v725_v7  ;;  %v1282_v4 = vor.u32 %v1280_v25, %v1279_v24  ;;  %v1297_v14 = vrot.slane %v1279_v24, 4  ;;  %v5113_v55 = vor.u32 %v5609_v10, %v5112_v47  ;;  %v5118_v7 = vld [vmem:[#allocation2 + $0xd8] sm:$0xf0] }
  0x96   : > { %v1151_v17 = vsel %vm6552_vm9, %v4988_v13, %v1150_v39  ;;  %v4992_v63 = vrot.slane %v1228_v31, 11  ;;  %v1238_v39 = vor.u32 %v1236_v1, %v1235_v46  ;;  %v1260_v13 = vor.u32 %v1258_v3, %v1257_v51  ;;  %v5610_v51 = vld [vmem:[#allocation2 + $0xd0] sm:$0xf] }
  0x97   : > { %v2570_v21 = vunpack.c.h.b16 %v1151_v17  ;;  %v1195_v49 = vsel %vm6552_vm9, %v4990_v38, %v1194_v27  ;;  %v2569_v0 = vunpack.c.l.b16 %v1151_v17  ;;  %v1025_v17 = vld [vmem:[#allocation2 + $0xd8] sm:$0xff]  ;;  %v730_v38 = vld [vmem:[#allocation2 + $0xf0] sm:$0x88] }
  0x98   : > { %v2576_v54 = vunpack.c.h.b16 %v1195_v49  ;;  %v1261_v62 = vsel %vm6552_vm9, %v1253_v34, %v1260_v13  ;;  %v731_v48 = vsel %vm6528_vm6, 0, %v730_v38  ;;  %v736_v13 = vld [vmem:[#allocation2 + $0x120] sm:$0x88] }
  0x99   : > { %2482 = vmatmul.bf16.vlgmr.msrb.gmra.mxu2 %v5077_v32  ;;  %v2663_v52 = vpack.c.b16 %v2573_v56, %v2570_v21  ;;  %v2662_v59 = vpack.c.b16 %v2572_v53, %v2569_v0  ;;  %v1239_v32 = vsel %vm6552_vm9, %v4992_v63, %v1238_v39  ;;  %v5101_v56 = vor.u32 %v5606_v8, %v5100_v16 }
  0x9a   : > { %v2666_v60 = vpack.c.b16 %v2579_v18, %v2576_v54  ;;  %v2575_v21 = vunpack.c.l.b16 %v1195_v49  ;;  %v2582_v15 = vunpack.c.h.b16 %v1239_v32  ;;  %v2585_v20 = vunpack.c.h.b16 %v1261_v62  ;;  %732 = vst [vmem:[#allocation2 + $0xf0] sm:$0x88] %v731_v48  ;;  %v5667_v49 = vld [vmem:[%s7868_s3 + $0xa8] sm:$0xff]  ;;  %v1029_v54 = vld [vmem:[#allocation2 + $0xfc] sm:$0xff] }
  0x9b   : > { %3079 = vmatpush.bf16.msra.mxu1 %v5667_v49  ;;  %v1031_v18 = vld [vmem:[#allocation2 + $0x108] sm:$0xff]  ;;  %v2581_v57 = vunpack.c.l.b16 %v1239_v32  ;;  %v2584_v58 = vunpack.c.l.b16 %v1261_v62  ;;  %v1321_v61 = vshrl.u32 %v1029_v54, 16  ;;  %v1324_v63 = vshll.u32 %v1029_v54, 16 }
  0x9c   : > { %v2665_v22 = vpack.c.b16 %v2578_v23, %v2575_v21  ;;  %v2669_v19 = vpack.c.b16 %v2585_v20, %v2582_v15  ;;  %v1343_v46 = vshrl.u32 %v1031_v18, 16  ;;  %v1346_v34 = vshll.u32 %v1031_v18, 16  ;;  %v5124_v15 = vld [vmem:[#allocation2 + $0xd4] sm:$0xf]  ;;  %v5612_v20 = vld [vmem:[#allocation2 + $0xdc] sm:$0xf0] }
  0x9d   : > { %v2668_v1 = vpack.c.b16 %v2584_v58, %v2581_v57  ;;  %v737_v8 = vsel %vm6528_vm6, 0, %v736_v13  ;;  %v5121_v32 = vor.u32 %v5610_v51, %v5118_v7  ;;  %v5125_v2 = vor.u32 %v5612_v20, %v5124_v15  ;;  %v5136_v51 = vld [vmem:[#allocation2 + $0x104] sm:$0xf] }
  0x9e   : > { %3001 = vmatmul.bf16.gmra.mxu0 %v2663_v52  ;;  %v1299_v52 = vshrl.u32 %v1025_v17, 16  ;;  %v1345_v39 = vrot.slane %v1343_v46, 7  ;;  %738 = vst [vmem:[#allocation2 + $0x120] sm:$0x88] %v737_v8  ;;  %v5714_v46 = vld [vmem:[%s7868_s3 + $0x220] sm:$0xff] }
  0x9f   : > { %2907 = vmatmul.bf16.vlgmr.msrb.gmra.mxu3 %v2659_v6  ;;  %v1021_v6 = vld [vmem:[#allocation2 + $0xc0] sm:$0x88]  ;;  %4599 = vmatpush.bf16.msra.mxu0 %v5714_v46 }
  0xa0   : > { %v1272_v9 = vshrl.u32 %v1021_v6, 16  ;;  %v1301_v43 = vrot.slane %v1299_v52, 7  ;;  %v1035_v52 = vld [vmem:[#allocation2 + $0x12c] sm:$0xff] }
  0xa1   : > { %v1027_v31 = vld [vmem:[#allocation2 + $0xf0] sm:$0x88]  ;;  %v1365_v38 = vshrl.u32 %v1035_v52, 16  ;;  %v1368_v45 = vshll.u32 %v1035_v52, 16 }
  0xa2   : > { %2398 = vmatmul.bf16.gmra.mxu1 %v5085_v29  ;;  %v1302_v29 = vshll.u32 %v1025_v17, 16  ;;  %v4994_v44 = vrot.slane %v1272_v9, 11  ;;  %v1316_v5 = vshrl.u32 %v1027_v31, 16  ;;  %v5666_v31 = vld [vmem:[%s7868_s3 + $0xa0] sm:$0xff] }
  0xa3   : > { %v1367_v49 = vrot.slane %v1365_v38, 7  ;;  %3080 = vmatpush.bf16.msra.mxu1 %v5666_v31 }
  0xa4   : > { %v1304_v28 = vor.u32 %v1302_v29, %v1301_v43  ;;  %v1283_v0 = vsel %vm6552_vm9, %v4994_v44, %v1282_v4  ;;  %v4996_v62 = vrot.slane %v1316_v5, 11  ;;  %v5613_v4 = vld [vmem:[#allocation2 + $0x100] sm:$0xf] }
  0xa5   : > { %v1033_v29 = vld [vmem:[#allocation2 + $0x120] sm:$0x88]  ;;  %v5133_v54 = vor.u32 %v5613_v4, %v5130_v42  ;;  %v1385_v57 = vrot.slane %v1367_v49, 4 }
  0xa6   : > { %v1305_v53 = vsel %vm6552_vm9, %v1297_v14, %v1304_v28  ;;  %v1360_v28 = vshrl.u32 %v1033_v29, 16 }
  0xa7   : > { %v2591_v37 = vunpack.c.h.b16 %v1305_v53  ;;  %v2590_v9 = vunpack.c.l.b16 %v1305_v53 }
  0xa8   : > { %v6592_v27 = vpop.f32.mrf.mxu0  ;;  %v4998_v18 = vrot.slane %v1360_v28, 11 }
  0xa9   : > { %2487 = vmatmul.bf16.gmra.mxu2 %v5089_v33 }
  0xae   : > { %3006 = vmatmul.bf16.gmra.mxu0 %v2666_v60 }
  0xaf   : > { %2912 = vmatmul.bf16.gmra.mxu3 %v2662_v59  ;;  %v2588_v59 = vunpack.c.h.b16 %v1283_v0 }
  0xb0   : > { %v6614_v60 = vpop.f32.mrf.mxu0 }
  0xb1   : > { %v2672_v3 = vpack.c.b16 %v2591_v37, %v2588_v59  ;;  %v5698_v59 = vld [vmem:[%s7868_s3 + $0x1a0] sm:$0xff] }
  0xb2   : > { %2403 = vmatmul.bf16.gmra.mxu1 %v5097_v11  ;;  %v1323_v11 = vrot.slane %v1321_v61, 7  ;;  %v5706_v37 = vld [vmem:[%s7868_s3 + $0x1e0] sm:$0xff]  ;;  %4421 = vmatpush.bf16.msra.mxu2 %v5698_v59 }
  0xb3   : > { %4510 = vmatpush.bf16.msra.mxu3 %v5706_v37 }
  0xb4   : > { %v1326_v41 = vor.u32 %v1324_v63, %v1323_v11  ;;  %v1341_v17 = vrot.slane %v1323_v11, 4  ;;  %v1041_v63 = vld [vmem:[#allocation2 + $0x15c] sm:$0xff] }
  0xb5   : > { %v1412_v29 = vshll.u32 %v1041_v63, 16 }
  0xb6   : > { %v6626_v6 = vsel %vm6552_vm9, %v4996_v62, %v1326_v41 }
  0xb7   : > { %v6608_v33 = vpop.f32.mrf.mxu1  ;;  %v2594_v24 = vunpack.c.h.b16 %v6626_v6  ;;  %v2593_v8 = vunpack.c.l.b16 %v6626_v6 }
  0xb9   : > { %2492 = vmatmul.bf16.gmra.mxu2 %v5101_v56  ;;  %v1348_v56 = vor.u32 %v1346_v34, %v1345_v39  ;;  %v1043_v39 = vld [vmem:[#allocation2 + $0x168] sm:$0xff] }
  0xba   : > { %v1431_v15 = vshrl.u32 %v1043_v39, 16  ;;  %v1434_v38 = vshll.u32 %v1043_v39, 16 }
  0xbb   : > { %v6630_v40 = vsel %vm6552_vm9, %v1341_v17, %v1348_v56  ;;  %v1409_v56 = vshrl.u32 %v1041_v63, 16 }
  0xbc   : > { %v2597_v25 = vunpack.c.h.b16 %v6630_v40  ;;  %v1433_v6 = vrot.slane %v1431_v15, 7 }
  0xbe   : > { %3011 = vmatmul.bf16.gmra.mxu0 %v2669_v19  ;;  %v2587_v19 = vunpack.c.l.b16 %v1283_v0  ;;  %v2675_v14 = vpack.c.b16 %v2597_v25, %v2594_v24  ;;  %v742_v0 = vld [vmem:[#allocation2 + $0x150] sm:$0x88]  ;;  %v5142_v24 = vld [vmem:[#allocation2 + $0x138] sm:$0xf0]  ;;  %v1411_v25 = vrot.slane %v1409_v56, 7 }
  0xbf   : > { %2917 = vmatmul.bf16.gmra.mxu3 %v2665_v22  ;;  %v6616_v16 = vpop.f32.mrf.mxu1  ;;  %v1037_v22 = vld [vmem:[#allocation2 + $0x138] sm:$0xff]  ;;  %v743_v53 = vsel %vm6528_vm6, 0, %v742_v0 }
  0xc0   : > { %v1387_v48 = vshrl.u32 %v1037_v22, 16  ;;  %v1390_v10 = vshll.u32 %v1037_v22, 16  ;;  %744 = vst [vmem:[#allocation2 + $0x150] sm:$0x88] %v743_v53  ;;  %v5616_v22 = vld [vmem:[#allocation2 + $0x130] sm:$0xf]  ;;  %v1414_v42 = vor.u32 %v1412_v29, %v1411_v25 }
  0xc1   : > { %v5145_v4 = vor.u32 %v5616_v22, %v5142_v24 }
  0xc2   : > { %2408 = vmatmul.bf16.gmra.mxu1 %v5109_v30  ;;  %v2671_v30 = vpack.c.b16 %v2590_v9, %v2587_v19  ;;  %v1389_v47 = vrot.slane %v1387_v48, 7 }
  0xc3   : > { %v6620_v21 = vpop.f32.mrf.mxu2 }
  0xc4   : > { %v1392_v58 = vor.u32 %v1390_v10, %v1389_v47  ;;  %v5148_v47 = vld [vmem:[#allocation2 + $0x134] sm:$0xf]  ;;  %v5618_v10 = vld [vmem:[#allocation2 + $0x13c] sm:$0xf0] }
  0xc6   : > { %v1393_v7 = vsel %vm6552_vm9, %v1385_v57, %v1392_v58  ;;  %v5149_v57 = vor.u32 %v5618_v10, %v5148_v47  ;;  %v5665_v10 = vld [vmem:[%s7868_s3 + $0x98] sm:$0xff] }
  0xc7   : > { %v2603_v41 = vunpack.c.h.b16 %v1393_v7  ;;  %v1039_v17 = vld [vmem:[#allocation2 + $0x150] sm:$0x88]  ;;  %v2602_v37 = vunpack.c.l.b16 %v1393_v7  ;;  %3081 = vmatpush.bf16.msra.mxu1 %v5665_v10 }
  0xc8   : > { %v1404_v19 = vshrl.u32 %v1039_v17, 16  ;;  %v5154_v17 = vld [vmem:[#allocation2 + $0x168] sm:$0xf0] }
  0xc9   : > { %2497 = vmatmul.bf16.gmra.mxu2 %v5113_v55  ;;  %v6622_v23 = vpop.f32.mrf.mxu0  ;;  %v6632_v36 = vpop.f32.mrf.mxu3  ;;  %v1370_v55 = vor.u32 %v1368_v45, %v1367_v49  ;;  %v1429_v49 = vrot.slane %v1411_v25, 4  ;;  %v1436_v45 = vor.u32 %v1434_v38, %v1433_v6 }
  0xca   : > { %7879 = vst [vmem:[#allocation3_spill] sm:$0xff] %v6632_v36  ;;  %v5000_v28 = vrot.slane %v1404_v19, 11 }
  0xcb   : > { %v6638_v44 = vpop.f32.mrf.mxu2  ;;  %v1371_v5 = vsel %vm6552_vm9, %v4998_v18, %v1370_v55  ;;  %v6686_v53 = vsel %vm6552_vm9, %v1429_v49, %v1436_v45  ;;  %v1047_v18 = vld [vmem:[#allocation2 + $0x18c] sm:$0xff]  ;;  %v1049_v55 = vld [vmem:[#allocation2 + $0x198] sm:$0xff] }
  0xcc   : > { %v2600_v62 = vunpack.c.h.b16 %v1371_v5  ;;  %v6682_v0 = vsel %vm6552_vm9, %v5000_v28, %v1414_v42  ;;  %v2599_v59 = vunpack.c.l.b16 %v1371_v5  ;;  %v2609_v46 = vunpack.c.h.b16 %v6686_v53  ;;  %v5160_v42 = vld [vmem:[#allocation2 + $0x164] sm:$0xf]  ;;  %v5621_v49 = vld [vmem:[#allocation2 + $0x16c] sm:$0xf0] }
  0xcd   : > { %v6636_v43 = vpop.f32.mrf.mxu1  ;;  %v2606_v31 = vunpack.c.h.b16 %v6682_v0  ;;  %v1475_v63 = vshrl.u32 %v1049_v55, 16  ;;  %v1456_v5 = vshll.u32 %v1047_v18, 16  ;;  %v1478_v15 = vshll.u32 %v1049_v55, 16  ;;  %v1053_v55 = vld [vmem:[#allocation2 + $0x1bc] sm:$0xff] }
  0xce   : > { %3016 = vmatmul.bf16.gmra.mxu0 %v2672_v3  ;;  %v5615_v3 = vld [vmem:[#allocation2 + $0x10c] sm:$0xf0] }
  0xcf   : > { %2922 = vmatmul.bf16.gmra.mxu3 %v2668_v1  ;;  %v5137_v34 = vor.u32 %v5615_v3, %v5136_v51  ;;  %v1453_v3 = vshrl.u32 %v1047_v18, 16  ;;  %v1477_v7 = vrot.slane %v1475_v63, 7  ;;  %v5713_v18 = vld [vmem:[%s7868_s3 + $0x218] sm:$0xff] }
  0xd0   : > { %4600 = vmatpush.bf16.msra.mxu0 %v5713_v18  ;;  %v5172_v18 = vld [vmem:[#allocation2 + $0x194] sm:$0xf] }
  0xd1   : > { %v6640_v50 = vpop.f32.mrf.mxu0  ;;  %v6653_v61 = vpop.f32.mrf.mxu3  ;;  %v1455_v56 = vrot.slane %v1453_v3, 7  ;;  %v1480_v38 = vor.u32 %v1478_v15, %v1477_v7  ;;  %v1500_v15 = vshll.u32 %v1053_v55, 16 }
  0xd2   : > { %2413 = vmatmul.bf16.gmra.mxu1 %v5121_v32  ;;  %7880 = vst [vmem:[#allocation4_spill] sm:$0xff] %v6653_v61  ;;  %v2596_v32 = vunpack.c.l.b16 %v6630_v40  ;;  %v748_v40 = vld [vmem:[#allocation2 + $0x180] sm:$0x88] }
  0xd3   : > { %v749_v48 = vsel %vm6528_vm6, 0, %v748_v40  ;;  %v1458_v29 = vor.u32 %v1456_v5, %v1455_v56  ;;  %v1473_v6 = vrot.slane %v1455_v56, 4  ;;  %v5697_v40 = vld [vmem:[%s7868_s3 + $0x198] sm:$0xff] }
  0xd4   : > { %v2674_v20 = vpack.c.b16 %v2596_v32, %v2593_v8  ;;  %750 = vst [vmem:[#allocation2 + $0x180] sm:$0x88] %v749_v48  ;;  %v2677_v8 = vpack.c.b16 %v2602_v37, %v2599_v59  ;;  %v5619_v32 = vld [vmem:[#allocation2 + $0x160] sm:$0xf]  ;;  %v5705_v48 = vld [vmem:[%s7868_s3 + $0x1d8] sm:$0xff]  ;;  %4422 = vmatpush.bf16.msra.mxu2 %v5697_v40  ;;  %v5161_v59 = vor.u32 %v5621_v49, %v5160_v42  ;;  %v2605_v37 = vunpack.c.l.b16 %v6682_v0 }
  0xd5   : > { %v6658_v1 = vpop.f32.mrf.mxu1  ;;  %v5157_v19 = vor.u32 %v5619_v32, %v5154_v17  ;;  %4511 = vmatpush.bf16.msra.mxu3 %v5705_v48  ;;  %v6720_v47 = vsel %vm6552_vm9, %v1473_v6, %v1480_v38  ;;  %v5622_v17 = vld [vmem:[#allocation2 + $0x190] sm:$0xf]  ;;  %v5166_v0 = vld [vmem:[#allocation2 + $0x198] sm:$0xf0] }
  0xd6   : > { %v5169_v6 = vor.u32 %v5622_v17, %v5166_v0 }
  0xd9   : > { %2502 = vmatmul.bf16.gmra.mxu2 %v5125_v2  ;;  %v6664_v11 = vpop.f32.mrf.mxu2  ;;  %v2678_v2 = vpack.c.b16 %v2603_v41, %v2600_v62  ;;  %v2681_v62 = vpack.c.b16 %v2609_v46, %v2606_v31  ;;  %v2608_v31 = vunpack.c.l.b16 %v6686_v53 }
  0xdb   : > { %v1045_v51 = vld [vmem:[#allocation2 + $0x180] sm:$0x88] }
  0xdc   : > { %v1448_v41 = vshrl.u32 %v1045_v51, 16  ;;  %v2615_v51 = vunpack.c.h.b16 %v6720_v47 }
  0xde   : > { %3021 = vmatmul.bf16.gmra.mxu0 %v2675_v14  ;;  %v5002_v25 = vrot.slane %v1448_v41, 11  ;;  %v2680_v41 = vpack.c.b16 %v2608_v31, %v2605_v37 }
  0xdf   : > { %2927 = vmatmul.bf16.gmra.mxu3 %v2671_v30  ;;  %v6666_v13 = vpop.f32.mrf.mxu0  ;;  %v6670_v52 = vpop.f32.mrf.mxu3 }
  0xe0   : > { %7881 = vst [vmem:[#allocation5_spill] sm:$0xff] %v6670_v52  ;;  %v6716_v45 = vsel %vm6552_vm9, %v5002_v25, %v1458_v29  ;;  %v760_v25 = vld [vmem:[#allocation2 + $0x1e0] sm:$0x88] }
  0xe1   : > { %v6676_v30 = vpop.f32.mrf.mxu2  ;;  %v2612_v46 = vunpack.c.h.b16 %v6716_v45  ;;  %v761_v29 = vsel %vm6528_vm6, 0, %v760_v25  ;;  %v5625_v25 = vld [vmem:[#allocation2 + $0x1c0] sm:$0xf] }
  0xe2   : > { %2418 = vmatmul.bf16.gmra.mxu1 %v5133_v54  ;;  %762 = vst [vmem:[#allocation2 + $0x1e0] sm:$0x88] %v761_v29 }
  0xe3   : > { %v2684_v56 = vpack.c.b16 %v2615_v51, %v2612_v46  ;;  %v1059_v46 = vld [vmem:[#allocation2 + $0x1ec] sm:$0xff]  ;;  %v1061_v51 = vld [vmem:[#allocation2 + $0x1f8] sm:$0xff] }
  0xe4   : > { %v1541_v0 = vshrl.u32 %v1059_v46, 16 }
  0xe5   : > { %v6672_v9 = vpop.f32.mrf.mxu1 }
  0xe7   : > { %v6678_v14 = vpop.f32.mrf.mxu0  ;;  %v6688_v54 = vpop.f32.mrf.mxu3 }
  0xe8   : > { %7882 = vst [vmem:[#allocation6_spill] sm:$0xff] %v6688_v54 }
  0xe9   : > { %2507 = vmatmul.bf16.gmra.mxu2 %v5137_v34 }
  0xed   : > { %v6690_v58 = vpop.f32.mrf.mxu1 }
  0xee   : > { %3026 = vmatmul.bf16.gmra.mxu0 %v2678_v2 }
  0xef   : > { %2932 = vmatmul.bf16.gmra.mxu3 %v2674_v20  ;;  %v754_v20 = vld [vmem:[#allocation2 + $0x1b0] sm:$0x88] }
  0xf0   : > { %v755_v22 = vsel %vm6528_vm6, 0, %v754_v20 }
  0xf1   : > { %v6694_v39 = vpop.f32.mrf.mxu2  ;;  %756 = vst [vmem:[#allocation2 + $0x1b0] sm:$0x88] %v755_v22 }
  0xf2   : > { %2423 = vmatmul.bf16.gmra.mxu1 %v5145_v4 }
  0xf8   : > { %v1051_v63 = vld [vmem:[#allocation2 + $0x1b0] sm:$0x88] }
  0xf9   : > { %2512 = vmatmul.bf16.gmra.mxu2 %v5149_v57  ;;  %v6696_v34 = vpop.f32.mrf.mxu0  ;;  %v6700_v2 = vpop.f32.mrf.mxu3  ;;  %v1055_v57 = vld [vmem:[#allocation2 + $0x1c8] sm:$0xff]  ;;  %v1492_v5 = vshrl.u32 %v1051_v63, 16 }
  0xfa   : > { %7883 = vst [vmem:[#allocation7_spill] sm:$0xff] %v6700_v2  ;;  %v6712_v28 = vpop.f32.mrf.mxu2  ;;  %v1519_v32 = vshrl.u32 %v1055_v57, 16  ;;  %v1522_v22 = vshll.u32 %v1055_v57, 16 }
  0xfb   : > { %v5004_v40 = vrot.slane %v1492_v5, 11  ;;  %v1057_v5 = vld [vmem:[#allocation2 + $0x1e0] sm:$0x88] }
  0xfc   : > { %v1521_v20 = vrot.slane %v1519_v32, 7  ;;  %v2614_v32 = vunpack.c.l.b16 %v6720_v47  ;;  %v5178_v47 = vld [vmem:[#allocation2 + $0x1c8] sm:$0xf0] }
  0xfe   : > { %3031 = vmatmul.bf16.gmra.mxu0 %v2681_v62  ;;  %v1524_v49 = vor.u32 %v1522_v22, %v1521_v20 }
  0xff   : > { %2937 = vmatmul.bf16.gmra.mxu3 %v2677_v8  ;;  %v6702_v24 = vpop.f32.mrf.mxu1  ;;  %v1497_v8 = vshrl.u32 %v1053_v55, 16  ;;  %v5624_v55 = vld [vmem:[#allocation2 + $0x19c] sm:$0xf0] }
 0x100   : > { %v5173_v63 = vor.u32 %v5624_v55, %v5172_v18  ;;  %v766_v55 = vld [vmem:[#allocation2 + $0x210] sm:$0x88] }
 0x101   : > { %v6710_v4 = vpop.f32.mrf.mxu0  ;;  %v6734_v62 = vpop.f32.mrf.mxu3  ;;  %v1499_v53 = vrot.slane %v1497_v8, 7  ;;  %v2611_v8 = vunpack.c.l.b16 %v6716_v45 }
 0x102   : > { %2428 = vmatmul.bf16.gmra.mxu1 %v5157_v19  ;;  %7884 = vst [vmem:[#allocation8_spill] sm:$0xff] %v6734_v62 }
 0x103   : > { %v1502_v48 = vor.u32 %v1500_v15, %v1499_v53  ;;  %v1517_v42 = vrot.slane %v1499_v53, 4  ;;  %v1563_v53 = vshrl.u32 %v1061_v51, 16  ;;  %v2683_v22 = vpack.c.b16 %v2614_v32, %v2611_v8 }
 0x105   : > { %v6752_v37 = vsel %vm6552_vm9, %v1517_v42, %v1524_v49  ;;  %v1565_v42 = vrot.slane %v1563_v53, 7  ;;  %v1566_v49 = vshll.u32 %v1061_v51, 16  ;;  %v5704_v51 = vld [vmem:[%s7868_s3 + $0x1d0] sm:$0xff] }
 0x106   : > { %v2621_v17 = vunpack.c.h.b16 %v6752_v37  ;;  %4512 = vmatpush.bf16.msra.mxu3 %v5704_v51  ;;  %v5628_v51 = vld [vmem:[#allocation2 + $0x1f0] sm:$0xf] }
 0x107   : > { %v6732_v3 = vpop.f32.mrf.mxu1 }
 0x109   : > { %2517 = vmatmul.bf16.gmra.mxu2 %v5161_v59  ;;  %v6748_v59 = vsel %vm6552_vm9, %v5004_v40, %v1502_v48  ;;  %v1543_v40 = vrot.slane %v1541_v0, 7  ;;  %v1544_v48 = vshll.u32 %v1059_v46, 16  ;;  %v5696_v46 = vld [vmem:[%s7868_s3 + $0x190] sm:$0xff] }
 0x10a   : > { %4423 = vmatpush.bf16.msra.mxu2 %v5696_v46  ;;  %v5627_v0 = vld [vmem:[#allocation2 + $0x1cc] sm:$0xf0] }
 0x10b   : > { %v6736_v7 = vpop.f32.mrf.mxu0  ;;  %v1546_v8 = vor.u32 %v1544_v48, %v1543_v40  ;;  %v1561_v32 = vrot.slane %v1543_v40, 4 }
 0x10c   : > { %v6738_v19 = vpop.f32.mrf.mxu2 }
 0x10e   : > { %3036 = vmatmul.bf16.gmra.mxu0 %v2684_v56 }
 0x10f   : > { %2942 = vmatmul.bf16.gmra.mxu3 %v2680_v41  ;;  %v2394_v38 = vpop.f32.mrf.mxu1  ;;  %v2618_v41 = vunpack.c.h.b16 %v6748_v59 }
 0x110   : > { %v2395_v20 = vadd.f32 %v2394_v38, %v6592_v27 }
 0x111   : > { %v2687_v29 = vpack.c.b16 %v2621_v17, %v2618_v41  ;;  %v1568_v41 = vor.u32 %v1566_v49, %v1565_v42  ;;  %v2620_v42 = vunpack.c.l.b16 %v6752_v37 }
 0x112   : > { %v6742_v10 = vpop.f32.mrf.mxu3  ;;  %2433 = vmatmul.bf16.gmra.mxu1 %v5169_v6  ;;  %v1536_v6 = vshrl.u32 %v1057_v5, 16  ;;  %v5184_v5 = vld [vmem:[#allocation2 + $0x1c4] sm:$0xf] }
 0x113   : > { %7885 = vst [vmem:[#allocation9_spill] sm:$0xff] %v6742_v10  ;;  %v6744_v57 = vpop.f32.mrf.mxu0  ;;  %v5185_v48 = vor.u32 %v5627_v0, %v5184_v5 }
 0x114   : > { %v6754_v31 = vpop.f32.mrf.mxu2  ;;  %v5006_v38 = vrot.slane %v1536_v6, 11  ;;  %v5664_v6 = vld [vmem:[%s7868_s3 + $0x90] sm:$0xff] }
 0x115   : > { %3082 = vmatpush.bf16.msra.mxu1 %v5664_v6 }
 0x117   : > { %v2396_v56 = vpop.f32.mrf.mxu1 }
 0x119   : > { %2522 = vmatmul.bf16.gmra.mxu2 %v5173_v63  ;;  %v767_v63 = vsel %vm6528_vm6, 0, %v766_v55 }
 0x11a   : > { %v6760_v15 = vpop.f32.mrf.mxu3  ;;  %768 = vst [vmem:[#allocation2 + $0x210] sm:$0x88] %v767_v63 }
 0x11b   : > { %7886 = vst [vmem:[#allocation10_spill] sm:$0xff] %v6760_v15  ;;  %v6763_v45 = vpop.f32.mrf.mxu0  ;;  %v5181_v15 = vor.u32 %v5625_v25, %v5178_v47  ;;  %v6778_v25 = vsel %vm6552_vm9, %v5006_v38, %v1546_v8  ;;  %v1067_v47 = vld [vmem:[#allocation2 + $0x228] sm:$0xff] }
 0x11c   : > { %v2483_v18 = vpop.f32.mrf.mxu2 }
 0x11d   : > { %v2484_v10 = vadd.f32 %v2483_v18, %v2395_v20  ;;  %v2397_v20 = vadd.f32 %v2396_v56, %v6614_v60  ;;  %v2617_v56 = vunpack.c.l.b16 %v6748_v59  ;;  %v2624_v18 = vunpack.c.h.b16 %v6778_v25 }
 0x11e   : > { %3041 = vmatmul.bf16.gmra.mxu0 %v2687_v29  ;;  %v6782_v29 = vsel %vm6552_vm9, %v1561_v32, %v1568_v41  ;;  %v1607_v32 = vshrl.u32 %v1067_v47, 16 }
 0x11f   : > { %2947 = vmatmul.bf16.gmra.mxu3 %v2683_v22  ;;  %v2399_v27 = vpop.f32.mrf.mxu1  ;;  %v2627_v55 = vunpack.c.h.b16 %v6782_v29  ;;  %v2686_v59 = vpack.c.b16 %v2620_v42, %v2617_v56 }
 0x120   : > { %v2400_v46 = vadd.f32 %v2399_v27, %v6622_v23  ;;  %v1609_v6 = vrot.slane %v1607_v32, 7 }
 0x121   : > { %v1063_v8 = vld [vmem:[#allocation2 + $0x210] sm:$0x88]  ;;  %v2690_v37 = vpack.c.b16 %v2627_v55, %v2624_v18 }
 0x122   : > { %v2908_v17 = vpop.f32.mrf.mxu3  ;;  %2438 = vmatmul.bf16.gmra.mxu1 %v5181_v15  ;;  %v1065_v15 = vld [vmem:[#allocation2 + $0x21c] sm:$0xff] }
 0x123   : > { %v2909_v53 = vadd.f32 %v2908_v17, %v2484_v10  ;;  %v6774_v22 = vpop.f32.mrf.mxu0  ;;  %v5712_v10 = vld [vmem:[%s7868_s3 + $0x210] sm:$0xff]  ;;  %v1585_v63 = vshrl.u32 %v1065_v15, 16  ;;  %v1580_v17 = vshrl.u32 %v1063_v8, 16 }
 0x124   : > { %v2485_v60 = vpop.f32.mrf.mxu2  ;;  %4601 = vmatpush.bf16.msra.mxu0 %v5712_v10  ;;  %v1610_v10 = vshll.u32 %v1067_v47, 16  ;;  %v5196_v47 = vld [vmem:[#allocation2 + $0x1f4] sm:$0xf] }
 0x125   : > { %v2486_v40 = vadd.f32 %v2485_v60, %v2397_v20  ;;  %v6793_v49 = vadd.f32 %v6736_v7, %v2909_v53  ;;  %v1587_v5 = vrot.slane %v1585_v63, 7  ;;  %v5190_v53 = vld [vmem:[#allocation2 + $0x1f8] sm:$0xf0]  ;;  %v1588_v20 = vshll.u32 %v1065_v15, 16  ;;  %v5630_v63 = vld [vmem:[#allocation2 + $0x1fc] sm:$0xf0] }
 0x126   : > { %v5193_v23 = vor.u32 %v5628_v51, %v5190_v53  ;;  %v1612_v15 = vor.u32 %v1610_v10, %v1609_v6  ;;  %v2623_v51 = vunpack.c.l.b16 %v6778_v25 }
 0x127   : > { %7887 = vst [vmem:[#allocation11_spill] sm:$0xff] %v6793_v49  ;;  %v2401_v38 = vpop.f32.mrf.mxu1  ;;  %v772_v49 = vld [vmem:[#allocation2 + $0x240] sm:$0x88]  ;;  %v1590_v42 = vor.u32 %v1588_v20, %v1587_v5  ;;  %v1605_v18 = vrot.slane %v1587_v5, 4 }
 0x128   : > { %v773_v56 = vsel %vm6528_vm6, 0, %v772_v49  ;;  %v2402_v32 = vadd.f32 %v2401_v38, %v6640_v50  ;;  %v2626_v50 = vunpack.c.l.b16 %v6782_v29 }
 0x129   : > { %2527 = vmatmul.bf16.gmra.mxu2 %v5185_v48  ;;  %774 = vst [vmem:[#allocation2 + $0x240] sm:$0x88] %v773_v56 }
 0x12a   : > { %v2910_v41 = vpop.f32.mrf.mxu3  ;;  %v2689_v25 = vpack.c.b16 %v2626_v50, %v2623_v51  ;;  %v5993_v51 = vld [vmem:[%s7866_s1] ss:$0 sm:$0xff] }
 0x12b   : > { %v2911_v0 = vadd.f32 %v2910_v41, %v2486_v40  ;;  %v6798_v7 = vpop.f32.mrf.mxu0  ;;  %v5008_v40 = vrot.slane %v1580_v17, 11  ;;  %v1071_v41 = vld [vmem:[#allocation2 + $0x24c] sm:$0xff] }
 0x12c   : > { %v2488_v60 = vpop.f32.mrf.mxu2  ;;  %v1629_v53 = vshrl.u32 %v1071_v41, 16 }
 0x12d   : > { %v2489_v62 = vadd.f32 %v2488_v60, %v2400_v46  ;;  %v6803_v48 = vadd.f32 %v6744_v57, %v2911_v0  ;;  %v6810_v57 = vsel %vm6552_vm9, %v5008_v40, %v1590_v42  ;;  %v5876_v60 = vld [vmem:[%s6059_s29 + $0x78] sm:$0xff]   ;;  %s7590_s29 = scalar_lea.vmem %s7869_s4, %s5596_s24  ;;  %s4985_s24 = sshll.u32 %s7974_s19, 1 }
 0x12e   : > { %3046 = vmatmul.bf16.gmra.mxu0 %v2690_v37  ;;  %v1073_v37 = vld [vmem:[#allocation2 + $0x258] sm:$0xff]  ;;  %v2630_v5 = vunpack.c.h.b16 %v6810_v57  ;;  %v5781_v40 = vunpack.c.h.bf16 %v5876_v60  ;;  %s235_s11 = scalar_lea.vmem %s7870_s5, %s4985_s24 }
 0x12f   : > { %7888 = vst [vmem:[#allocation12_spill] sm:$0xff] %v6803_v48  ;;  %2952 = vmatmul.bf16.gmra.mxu3 %v2686_v59  ;;  %v2404_v27 = vpop.f32.mrf.mxu1  ;;  %v6814_v59 = vsel %vm6552_vm9, %v1605_v18, %v1612_v15  ;;  %v1651_v10 = vshrl.u32 %v1073_v37, 16  ;;  %v1632_v15 = vshll.u32 %v1071_v41, 16 }
 0x130   : > { %v2633_v0 = vunpack.c.h.b16 %v6814_v59  ;;  %v1069_v6 = vld [vmem:[#allocation2 + $0x240] sm:$0x88] }
 0x131   : > { %v1624_v18 = vshrl.u32 %v1069_v6, 16 }
 0x132   : > { %v2913_v55 = vpop.f32.mrf.mxu3  ;;  %2443 = vmatmul.bf16.gmra.mxu1 %v5193_v23  ;;  %v5780_v23 = vunpack.c.l.bf16 %v5876_v60  ;;  %v2693_v29 = vpack.c.b16 %v2633_v0, %v2630_v5 }
 0x133   : > { %v2914_v8 = vadd.f32 %v2913_v55, %v2489_v62  ;;  %v6806_v49 = vpop.f32.mrf.mxu0  ;;  %v5197_v62 = vor.u32 %v5630_v63, %v5196_v47  ;;  %v2405_v47 = vadd.f32 %v2404_v27, %v6666_v13  ;;  %v5010_v13 = vrot.slane %v1624_v18, 11 }
 0x134   : > { %v2490_v46 = vpop.f32.mrf.mxu2 }
 0x135   : > { %v2491_v17 = vadd.f32 %v2490_v46, %v2402_v32  ;;  %v6819_v38 = vadd.f32 %v6763_v45, %v2914_v8  ;;  %v1631_v45 = vrot.slane %v1629_v53, 7  ;;  %v5631_v8 = vld [vmem:[#allocation2 + $0x220] sm:$0xf]  ;;  %v5202_v32 = vld [vmem:[#allocation2 + $0x228] sm:$0xf0]  ;;  %v1653_v46 = vrot.slane %v1651_v10, 7 }
 0x136   : > { %v5205_v5 = vor.u32 %v5631_v8, %v5202_v32  ;;  %v5703_v10 = vld [vmem:[%s7868_s3 + $0x1c8] sm:$0xff]  ;;  %v1077_v32 = vld [vmem:[#allocation2 + $0x27c] sm:$0xff] }
 0x137   : > { %7889 = vst [vmem:[#allocation13_spill] sm:$0xff] %v6819_v38  ;;  %v2406_v20 = vpop.f32.mrf.mxu1  ;;  %v1654_v38 = vshll.u32 %v1073_v37, 16  ;;  %v1634_v27 = vor.u32 %v1632_v15, %v1631_v45  ;;  %v5994_v37 = vld [vmem:[%s7867_s2] ss:$0 sm:$0xff]  ;;  %4513 = vmatpush.bf16.msra.mxu3 %v5703_v10  ;;  %v5711_v8 = vld [vmem:[%s7868_s3 + $0x208] sm:$0xff] }
 0x138   : > { %v2407_v56 = vadd.f32 %v2406_v20, %v6678_v14  ;;  %v778_v14 = vld [vmem:[#allocation2 + $0x270] sm:$0x88]  ;;  %v1649_v20 = vrot.slane %v1631_v45, 4  ;;  %4602 = vmatpush.bf16.msra.mxu0 %v5711_v8 }
 0x139   : > { %2532 = vmatmul.bf16.gmra.mxu2 %v5197_v62  ;;  %v335_v62 = vmul.f32 %v5993_v51, %v5780_v23  ;;  %v779_v41 = vsel %vm6528_vm6, 0, %v778_v14  ;;  %v1656_v6 = vor.u32 %v1654_v38, %v1653_v46 }
 0x13a   : > { %v2915_v42 = vpop.f32.mrf.mxu3  ;;  %780 = vst [vmem:[#allocation2 + $0x270] sm:$0x88] %v779_v41 }
 0x13b   : > { %v2916_v55 = vadd.f32 %v2915_v42, %v2491_v17  ;;  %v6826_v63 = vpop.f32.mrf.mxu0  ;;  %v336_v17 = vmul.f32 %v5993_v51, %v5781_v40  ;;  %v6836_v0 = vadd.f32 %v5994_v37, %v335_v62  ;;  %v5208_v42 = vld [vmem:[#allocation2 + $0x224] sm:$0xf]  ;;  %v1079_v62 = vld [vmem:[#allocation2 + $0x288] sm:$0xff] }
 0x13c   : > { %v2493_v48 = vpop.f32.mrf.mxu2  ;;  %v1695_v10 = vshrl.u32 %v1079_v62, 16 }
 0x13d   : > { %v2494_v50 = vadd.f32 %v2493_v48, %v2405_v47  ;;  %v5695_v48 = vld [vmem:[%s7868_s3 + $0x188] sm:$0xff]  ;;  %v6844_v60 = vadd.f32 %v5994_v37, %v336_v17  ;;  %v6847_v23 = vadd.f32 %v6774_v22, %v2916_v55  ;;  %v6857_v22 = vsel %vm6552_vm9, %v5010_v13, %v1634_v27 }
 0x13e   : > { %3051 = vmatmul.bf16.gmra.mxu0 %v2693_v29  ;;  %v5633_v29 = vld [vmem:[#allocation2 + $0x22c] sm:$0xf0]  ;;  %4424 = vmatpush.bf16.msra.mxu2 %v5695_v48  ;;  %v5663_v55 = vld [vmem:[%s7868_s3 + $0x88] sm:$0xff]  ;;  %v2629_v17 = vunpack.c.l.b16 %v6810_v57  ;;  %v2632_v27 = vunpack.c.l.b16 %v6814_v59  ;;  %v2636_v37 = vunpack.c.h.b16 %v6857_v22 }
 0x13f   : > { %2957 = vmatmul.bf16.gmra.mxu3 %v2689_v25  ;;  %v2409_v53 = vpop.f32.mrf.mxu1  ;;  %7890 = vst [vmem:[#allocation14_spill] sm:$0xff] %v6847_v23  ;;  %v435_v25 = vmul.f32 0.044715, %v6836_v0  ;;  %v436_v38 = vmul.f32 0.044715, %v6844_v60  ;;  %v5209_v51 = vor.u32 %v5633_v29, %v5208_v42  ;;  %3083 = vmatpush.bf16.msra.mxu1 %v5663_v55 }
 0x140   : > { %v2410_v40 = vadd.f32 %v2409_v53, %v6696_v34  ;;  %v6861_v34 = vsel %vm6552_vm9, %v1649_v20, %v1656_v6  ;;  %v1673_v20 = vshrl.u32 %v1077_v32, 16  ;;  %v5634_v59 = vld [vmem:[#allocation2 + $0x250] sm:$0xf] }
 0x141   : > { %v467_v45 = vmul.f32 %v435_v25, %v6836_v0  ;;  %v468_v46 = vmul.f32 %v436_v38, %v6844_v60  ;;  %v2639_v53 = vunpack.c.h.b16 %v6861_v34  ;;  %v1075_v48 = vld [vmem:[#allocation2 + $0x270] sm:$0x88]  ;;  %v2692_v38 = vpack.c.b16 %v2632_v27, %v2629_v17 }
 0x142   : > { %v2918_v18 = vpop.f32.mrf.mxu3  ;;  %2448 = vmatmul.bf16.gmra.mxu1 %v5205_v5 }
 0x143   : > { %v2919_v15 = vadd.f32 %v2918_v18, %v2494_v50  ;;  %v6853_v47 = vpop.f32.mrf.mxu0  ;;  %v499_v50 = vmul.f32 %v467_v45, %v6836_v0  ;;  %v500_v5 = vmul.f32 %v468_v46, %v6844_v60  ;;  %v2696_v18 = vpack.c.b16 %v2639_v53, %v2636_v37  ;;  %v5214_v46 = vld [vmem:[#allocation2 + $0x258] sm:$0xf0] }
 0x144   : > { %v2495_v14 = vpop.f32.mrf.mxu2  ;;  %v1668_v45 = vshrl.u32 %v1075_v48, 16  ;;  %v5217_v17 = vor.u32 %v5634_v59, %v5214_v46 }
 0x145   : > { %v2496_v41 = vadd.f32 %v2495_v14, %v2407_v56  ;;  %v6874_v13 = vadd.f32 %v6798_v7, %v2919_v15  ;;  %v531_v56 = vadd.f32 %v499_v50, %v6836_v0  ;;  %v532_v57 = vadd.f32 %v500_v5, %v6844_v60  ;;  %v784_v5 = vld [vmem:[#allocation2 + $0x2a0] sm:$0x88] }
 0x146   : > { %v1675_v15 = vrot.slane %v1673_v20, 7  ;;  %v1676_v14 = vshll.u32 %v1077_v32, 16  ;;  %v1698_v50 = vshll.u32 %v1079_v62, 16  ;;  %v5012_v37 = vrot.slane %v1668_v45, 11  ;;  %v5220_v20 = vld [vmem:[#allocation2 + $0x254] sm:$0xf] }
 0x147   : > { %7891 = vst [vmem:[#allocation15_spill] sm:$0xff] %v6874_v13  ;;  %v2411_v6 = vpop.f32.mrf.mxu1  ;;  %v563_v42 = vmul.f32 0.7978846, %v531_v56  ;;  %v564_v7 = vmul.f32 0.7978846, %v532_v57  ;;  %v1697_v13 = vrot.slane %v1695_v10, 7 }
 0x148   : > { %v2412_v25 = vadd.f32 %v2411_v6, %v6710_v4  ;;  %v1678_v32 = vor.u32 %v1676_v14, %v1675_v15  ;;  %v1693_v53 = vrot.slane %v1675_v15, 4  ;;  %v5636_v6 = vld [vmem:[#allocation2 + $0x25c] sm:$0xf0]  ;;  %v404_v10 = vmul.f32 0.5, %v6844_v60 }
 0x149   : > { %2537 = vmatmul.bf16.gmra.mxu2 %v5209_v51  ;;  %5987 = vtanh.f32 %v563_v42  ;;  %v785_v51 = vsel %vm6528_vm6, 0, %v784_v5  ;;  %v1700_v62 = vor.u32 %v1698_v50, %v1697_v13  ;;  %v5221_v59 = vor.u32 %v5636_v6, %v5220_v20 }
 0x14a   : > { %v2920_v29 = vpop.f32.mrf.mxu3  ;;  %5989 = vtanh.f32 %v564_v7  ;;  %786 = vst [vmem:[#allocation2 + $0x2a0] sm:$0x88] %v785_v51  ;;  %v2635_v51 = vunpack.c.l.b16 %v6857_v22 }
 0x14b   : > { %v2921_v55 = vadd.f32 %v2920_v29, %v2496_v41  ;;  %v6882_v8 = vpop.f32.mrf.mxu0  ;;  %v6899_v13 = vsel %vm6552_vm9, %v1693_v53, %v1700_v62  ;;  %v1083_v29 = vld [vmem:[#allocation2 + $0x2ac] sm:$0xff] }
 0x14c   : > { %v2498_v23 = vpop.f32.mrf.mxu2  ;;  %v2645_v50 = vunpack.c.h.b16 %v6899_v13  ;;  %v1720_v20 = vshll.u32 %v1083_v29, 16 }
 0x14d   : > { %v2499_v4 = vadd.f32 %v2498_v23, %v2410_v40  ;;  %v6887_v27 = vadd.f32 %v6806_v49, %v2921_v55  ;;  %v403_v23 = vmul.f32 0.5, %v6836_v0  ;;  %v6895_v49 = vsel %vm6552_vm9, %v5012_v37, %v1678_v32  ;;  %v1085_v0 = vld [vmem:[#allocation2 + $0x2b8] sm:$0xff] }
 0x14e   : > { %3056 = vmatmul.bf16.gmra.mxu0 %v2696_v18  ;;  %v1717_v55 = vshrl.u32 %v1083_v29, 16  ;;  %v2642_v14 = vunpack.c.h.b16 %v6895_v49 }
 0x14f   : > { %7892 = vst [vmem:[#allocation16_spill] sm:$0xff] %v6887_v27  ;;  %2962 = vmatmul.bf16.gmra.mxu3 %v2692_v38  ;;  %v2414_v41 = vpop.f32.mrf.mxu1  ;;  %v5988_v40 = vpop.eup %5987 }
 0x150   : > { %v5990_v56 = vpop.eup %5989  ;;  %v627_v7 = vadd.f32 1.0, %v5988_v40  ;;  %v1719_v62 = vrot.slane %v1717_v55, 7  ;;  %v2699_v6 = vpack.c.b16 %v2645_v50, %v2642_v14  ;;  %v1742_v40 = vshll.u32 %v1085_v0, 16  ;;  %v5694_v55 = vld [vmem:[%s7868_s3 + $0x180] sm:$0xff]  ;;  %v5639_v50 = vld [vmem:[#allocation2 + $0x28c] sm:$0xf0] }
 0x151   : > { %v628_v18 = vadd.f32 1.0, %v5990_v56  ;;  %v1081_v15 = vld [vmem:[#allocation2 + $0x2a0] sm:$0x88]  ;;  %4425 = vmatpush.bf16.msra.mxu2 %v5694_v55 }
 0x152   : > { %v2923_v48 = vpop.f32.mrf.mxu3  ;;  %2453 = vmatmul.bf16.gmra.mxu1 %v5217_v17  ;;  %v659_v60 = vmul.f32 %v627_v7, %v403_v23  ;;  %v2638_v17 = vunpack.c.l.b16 %v6861_v34  ;;  %v5637_v34 = vld [vmem:[#allocation2 + $0x280] sm:$0xf]  ;;  %v1722_v29 = vor.u32 %v1720_v20, %v1719_v62 }
 0x153   : > { %v2924_v57 = vadd.f32 %v2923_v48, %v2499_v4  ;;  %v6891_v42 = vpop.f32.mrf.mxu0  ;;  %v660_v5 = vmul.f32 %v628_v18, %v404_v10  ;;  %v1739_v4 = vshrl.u32 %v1085_v0, 16  ;;  %v2415_v10 = vadd.f32 %v2414_v41, %v6608_v33  ;;  %v5702_v14 = vld [vmem:[%s7868_s3 + $0x1c0] sm:$0xff] }
 0x154   : > { %v2500_v38 = vpop.f32.mrf.mxu2  ;;  %v691_v32 = vpack.c.bf16 %v659_v60, %v659_v60  ;;  %v2695_v56 = vpack.c.b16 %v2638_v17, %v2635_v51  ;;  %v1737_v33 = vrot.slane %v1719_v62, 4  ;;  %4514 = vmatpush.bf16.msra.mxu3 %v5702_v14 }
 0x155   : > { %v2501_v45 = vadd.f32 %v2500_v38, %v2412_v25  ;;  %v6902_v46 = vadd.f32 %v6826_v63, %v2924_v57  ;;  %v692_v53 = vpack.c.bf16 %v660_v5, %v660_v5  ;;  %v1712_v25 = vshrl.u32 %v1081_v15, 16  ;;  %v5226_v57 = vld [vmem:[#allocation2 + $0x288] sm:$0xf0] }
 0x156   : > { %995 = vst [vmem:[#allocation2 + $0x2b4] sm:$0xf] %v691_v32  ;;  %v1741_v23 = vrot.slane %v1739_v4, 7 }
 0x157   : > { %7893 = vst [vmem:[#allocation17_spill] sm:$0xff] %v6902_v46  ;;  %v2416_v37 = vpop.f32.mrf.mxu1  ;;  %v5014_v38 = vrot.slane %v1712_v25, 11  ;;  %v5710_v25 = vld [vmem:[%s7868_s3 + $0x200] sm:$0xff] }
 0x158   : > { %996 = vst [vmem:[#allocation2 + $0x2c0] sm:$0xf] %v692_v53  ;;  %v1744_v41 = vor.u32 %v1742_v40, %v1741_v23  ;;  %v2417_v17 = vadd.f32 %v2416_v37, %v6616_v16  ;;  %4603 = vmatpush.bf16.msra.mxu0 %v5710_v25 }
 0x159   : > { %2542 = vmatmul.bf16.gmra.mxu2 %v5221_v59  ;;  %965 = vst [vmem:[#allocation2 + $0x2e0] sm:$0xf] %v691_v32  ;;  %v790_v59 = vld [vmem:[#allocation2 + $0x2d0] sm:$0x88] }
 0x15a   : > { %v2925_v63 = vpop.f32.mrf.mxu3  ;;  %966 = vst [vmem:[#allocation2 + $0x2ec] sm:$0xf] %v692_v53  ;;  %v791_v60 = vsel %vm6528_vm6, 0, %v790_v59  ;;  %v6928_v4 = vsel %vm6552_vm9, %v1737_v33, %v1744_v41  ;;  %v5662_v53 = vld [vmem:[%s7868_s3 + $0x80] sm:$0xff]  ;;  %v2641_v59 = vunpack.c.l.b16 %v6895_v49 }
 0x15b   : > { %v2926_v48 = vadd.f32 %v2925_v63, %v2501_v45  ;;  %v6909_v22 = vpop.f32.mrf.mxu0  ;;  %v5229_v45 = vor.u32 %v5637_v34, %v5226_v57  ;;  %792 = vst [vmem:[#allocation2 + $0x2d0] sm:$0x88] %v791_v60  ;;  %v5233_v63 = vor.u32 %v5639_v50, %v5232_v35  ;;  %v2651_v16 = vunpack.c.h.b16 %v6928_v4  ;;  %3084 = vmatpush.bf16.msra.mxu1 %v5662_v53  ;;  %v5640_v35 = vld [vmem:[#allocation2 + $0x2b0] sm:$0xf] }
 0x15c   : > { %v2503_v7 = vpop.f32.mrf.mxu2 }
 0x15d   : > { %v2504_v18 = vadd.f32 %v2503_v7, %v2415_v10  ;;  %v6914_v0 = vadd.f32 %v6853_v47, %v2926_v48  ;;  %v6924_v47 = vsel %vm6552_vm9, %v5014_v38, %v1722_v29 }
 0x15e   : > { %3061 = vmatmul.bf16.gmra.mxu0 %v2699_v6  ;;  %v2648_v6 = vunpack.c.h.b16 %v6924_v47 }
 0x15f   : > { %7894 = vst [vmem:[#allocation18_spill] sm:$0xff] %v6914_v0  ;;  %2967 = vmatmul.bf16.gmra.mxu3 %v2695_v56  ;;  %v2419_v15 = vpop.f32.mrf.mxu1  ;;  %v6951_v53 = vld [vmem:[#allocation2 + $0x2bc] sm:$0xf0] }
 0x160   : > { %v1089_v62 = vld [vmem:[#allocation2 + $0x2dc] sm:$0xff] }
 0x161   : > { %v1091_v23 = vld [vmem:[#allocation2 + $0x2e8] sm:$0xff]  ;;  %v1761_v40 = vshrl.u32 %v1089_v62, 16  ;;  %v1764_v7 = vshll.u32 %v1089_v62, 16  ;;  %v2647_v62 = vunpack.c.l.b16 %v6924_v47 }
 0x162   : > { %v2928_v5 = vpop.f32.mrf.mxu3  ;;  %2458 = vmatmul.bf16.gmra.mxu1 %v5229_v45  ;;  %v1087_v37 = vld [vmem:[#allocation2 + $0x2d0] sm:$0x88]  ;;  %v1783_v10 = vshrl.u32 %v1091_v23, 16  ;;  %v1786_v38 = vshll.u32 %v1091_v23, 16  ;;  %v2702_v45 = vpack.c.b16 %v2651_v16, %v2648_v6  ;;  %v703_v6 = vld [vmem:[#allocation2 + $0x8] sm:$0x8] }
 0x163   : > { %v2929_v51 = vadd.f32 %v2928_v5, %v2504_v18  ;;  %v6931_v32 = vpop.f32.mrf.mxu0  ;;  %v1756_v34 = vshrl.u32 %v1087_v37, 16  ;;  %v1763_v57 = vrot.slane %v1761_v40, 7  ;;  %v2644_v18 = vunpack.c.l.b16 %v6899_v13  ;;  %v5238_v13 = vld [vmem:[#allocation2 + $0x2b8] sm:$0xf0]  ;;  %v803_v47 = vld [vmem:[#allocation2 + $0x24] sm:$0x11] }
 0x164   : > { %v2505_v20 = vpop.f32.mrf.mxu2  ;;  %v1785_v60 = vrot.slane %v1783_v10, 7  ;;  %v2420_v5 = vadd.f32 %v2419_v15, %v6636_v43  ;;  %v704_v40 = vsel %vm6504_vm4, 0, %v703_v6  ;;  %v5241_v16 = vor.u32 %v5640_v35, %v5238_v13  ;;  %v6974_v37 = vld [vmem:[#allocation2 + $0x2e8] sm:$0xf0]  ;;  %v3168_v35 = vld [vmem:[#allocation2 + $0x18] sm:$0xff] }
 0x165   : > { %v2506_v48 = vadd.f32 %v2505_v20, %v2417_v17  ;;  %v6942_v56 = vadd.f32 %v6882_v8, %v2929_v51  ;;  %v5016_v33 = vrot.slane %v1756_v34, 11  ;;  %v1766_v41 = vor.u32 %v1764_v7, %v1763_v57  ;;  %v6949_v17 = vld [vmem:[#allocation2 + $0x2b4] sm:$0xf]  ;;  %705 = vst [vmem:[#allocation2 + $0x8] sm:$0x8] %v704_v40 }
 0x166   : > { %v1781_v55 = vrot.slane %v1763_v57, 4  ;;  %v1788_v50 = vor.u32 %v1786_v38, %v1785_v60  ;;  %v2698_v51 = vpack.c.b16 %v2644_v18, %v2641_v59  ;;  %v2650_v20 = vunpack.c.l.b16 %v6928_v4  ;;  %v806_v4 = vld [vmem:[#allocation2 + $0x2c] sm:$0x1]  ;;  %v6997_v60 = vld [vmem:[#allocation2 + $0x2e4] sm:$0xf] }
 0x167   : > { %7895 = vst [vmem:[#allocation19_spill] sm:$0xff] %v6942_v56  ;;  %v2421_v29 = vpop.f32.mrf.mxu1  ;;  %v6965_v23 = vsel %vm6552_vm9, %v5016_v33, %v1766_v41  ;;  %v807_v57 = vsel %vm6959_vm13, 0, %v806_v4  ;;  %v804_v7 = vsel %vm6982_vm15, 0, %v803_v47  ;;  %v5245_v59 = vor.u32 %v6951_v53, %v6949_v17  ;;  %v1002_v6 = vld [vmem:[#allocation2 + $0x20] sm:$0xf] }
 0x168   : > { %v6978_v10 = vsel %vm6552_vm9, %v1781_v55, %v1788_v50  ;;  %808 = vst [vmem:[#allocation2 + $0x2c] sm:$0x1] %v807_v57  ;;  %v2422_v38 = vadd.f32 %v2421_v29, %v6658_v1  ;;  %v6995_v18 = vpack.c.b16 %v2650_v20, %v2647_v62  ;;  %v2653_v33 = vunpack.c.l.b16 %v6965_v23  ;;  %v3166_v29 = vld [vmem:[#allocation2 + $0xc] sm:$0xff]  ;;  %v3167_v50 = vld [vmem:[#allocation2 + $0x14] sm:$0xf] }
 0x169   : > { %2547 = vmatmul.bf16.gmra.mxu2 %v5233_v63  ;;  %v6955_v63 = vld [vmem:[#allocation2 + $0x2e0] sm:$0xf]  ;;  %805 = vst [vmem:[#allocation2 + $0x24] sm:$0x11] %v804_v7  ;;  %v2656_v55 = vunpack.c.l.b16 %v6978_v10  ;;  %v2657_v1 = vunpack.c.h.b16 %v6978_v10  ;;  %v3275_v13 = vshll.u32 %v3168_v35, 16  ;;  %v3293_v17 = vshrl.u32 %v3168_v35, 16 }
 0x16a   : > { %v2930_v14 = vpop.f32.mrf.mxu3  ;;  %v1000_v20 = vld [vmem:[#allocation2 + $0x14] sm:$0xf]  ;;  %v3283_v40 = vshll.u32 %v3167_v50, 16  ;;  %v1132_v10 = vshrl.u32 %v1002_v6, 16  ;;  %v1135_v62 = vshll.u32 %v1002_v6, 16 }
 0x16b   : > { %v2931_v8 = vadd.f32 %v2930_v14, %v2506_v48  ;;  %v6947_v49 = vpop.f32.mrf.mxu0  ;;  %v2654_v14 = vunpack.c.h.b16 %v6965_v23  ;;  %v3280_v23 = vshrl.u32 %v3167_v50, 16  ;;  %v1114_v4 = vshrl.u32 %v1000_v20, 16 }
 0x16c   : > { %v2508_v25 = vpop.f32.mrf.mxu2  ;;  %v3277_v41 = vrot.slane %v3275_v13, 5  ;;  %v3295_v35 = vrot.slane %v3293_v17, 4  ;;  %v1117_v56 = vshll.u32 %v1000_v20, 16  ;;  %v1134_v0 = vrot.slane %v1132_v10, 7 }
 0x16d   : > { %v2509_v15 = vadd.f32 %v2508_v25, %v2420_v5  ;;  %v6972_v48 = vadd.f32 %v6891_v42, %v2931_v8  ;;  %v3266_v5 = vshrl.u32 %v3166_v29, 16  ;;  %v3285_v50 = vrot.slane %v3283_v40, 5  ;;  %v3169_v40 = vld [vmem:[#allocation2 + $0x20] sm:$0xf] }
 0x16e   : > { %3066 = vmatmul.bf16.gmra.mxu0 %v2702_v45  ;;  %v6999_v45 = vld [vmem:[#allocation2 + $0x2ec] sm:$0xf0]  ;;  %v3296_v54 = vor.u32 %v3295_v35, %v3277_v41  ;;  %v2705_v52 = vpack.c.b16 %v2657_v1, %v2654_v14 }
 0x16f   : > { %7898 = vst [vmem:[#allocation20_spill] sm:$0xff] %v6972_v48  ;;  %2972 = vmatmul.bf16.gmra.mxu3 %v2698_v51  ;;  %v6988_v42 = vpop.f32.mrf.mxu1  ;;  %v3269_v51 = vshll.u32 %v3166_v29, 16  ;;  %v3268_v57 = vrot.slane %v3266_v5, 4  ;;  %v998_v29 = vld [vmem:[#allocation2 + $0x8] sm:$0x8]  ;;  %v1116_v48 = vrot.slane %v1114_v4, 7 }
 0x170   : > { %v3170_v27 = vld [vmem:[#allocation2 + $0x24] sm:$0x11]  ;;  %v3297_v6 = vrot.slane %v3296_v54, 4  ;;  %v809_v4 = vld [vmem:[#allocation2 + $0x54] sm:$0x11] }
 0x171   : > { %v1119_v36 = vor.u32 %v1117_v56, %v1116_v48  ;;  %v1130_v5 = vrot.slane %v1116_v48, 4 }
 0x172   : > { %v2933_v8 = vpop.f32.mrf.mxu3  ;;  %2463 = vmatmul.bf16.gmra.mxu1 %v5241_v16  ;;  %v3271_v16 = vrot.slane %v3269_v51, 5 }
 0x173   : > { %v7007_v53 = vadd.f32 %v2933_v8, %v2509_v15  ;;  %v7009_v25 = vpop.f32.mrf.mxu0  ;;  %v3282_v15 = vrot.slane %v3280_v23, 4  ;;  %v1109_v8 = vshrl.u32 %v998_v29, 16  ;;  %v3299_v23 = vshll.u32 %v3170_v27, 16 }
 0x174   : > { %v2510_v47 = vpop.f32.mrf.mxu2  ;;  %v3272_v2 = vor.u32 %v3271_v16, %v3268_v57  ;;  %v3303_v57 = vshrl.u32 %v3169_v40, 16 }
 0x175   : > { %v2511_v7 = vadd.f32 %v2510_v47, %v2422_v38  ;;  %v4987_v61 = vrot.slane %v1109_v8, 11  ;;  %v1137_v38 = vor.u32 %v1135_v62, %v1134_v0  ;;  %v3286_v14 = vor.u32 %v3285_v50, %v3282_v15  ;;  %v709_v47 = vld [vmem:[#allocation2 + $0x38] sm:$0x8] }
 0x176   : > { %v3273_v51 = vrot.slane %v3272_v2, 4  ;;  %v2425_v0 = vadd.f32 %v6988_v42, %v6672_v9  ;;  %v7025_v2 = vpack.c.b16 %v2656_v55, %v2653_v33  ;;  %v3301_v27 = vrot.slane %v3299_v23, 5  ;;  %v812_v33 = vld [vmem:[#allocation2 + $0x5c] sm:$0x1] }
 0x177   : > { %v2426_v46 = vpop.f32.mrf.mxu1  ;;  %v1120_v17 = vsel %vm6552_vm9, %v4987_v61, %v1119_v36  ;;  %v1138_v36 = vsel %vm6552_vm9, %v1130_v5, %v1137_v38  ;;  %v3171_v61 = vld [vmem:[#allocation2 + $0x2c] sm:$0x1]  ;;  %v3287_v9 = vrot.slane %v3286_v14, 4  ;;  %v3289_v42 = vshll.u32 %v3169_v40, 16 }
 0x178   : > { %v2568_v62 = vunpack.c.l.b16 %v1138_v36  ;;  %v7031_v54 = vsel %vm7015_vm2, %v3273_v51, %v3277_v41  ;;  %v2427_v55 = vadd.f32 %v2426_v46, %v6690_v58  ;;  %v7036_v16 = vsel %vm7015_vm2, %v3297_v6, %v3301_v27  ;;  %v3174_v6 = vld [vmem:[#allocation2 + $0x48] sm:$0xff]  ;;  %v1006_v27 = vld [vmem:[#allocation2 + $0x44] sm:$0xf] }
 0x179   : > { %2552 = vmatmul.bf16.gmra.mxu2 %v5245_v59  ;;  %v2565_v59 = vunpack.c.l.b16 %v1120_v17  ;;  %v710_v41 = vsel %vm6504_vm4, 0, %v709_v47  ;;  %v4082_v35 = vunpack.c.l.b16 %v7031_v54  ;;  %v4083_v15 = vunpack.c.h.b16 %v7031_v54  ;;  %v3172_v17 = vld [vmem:[#allocation2 + $0x3c] sm:$0xff]  ;;  %v1008_v47 = vld [vmem:[#allocation2 + $0x50] sm:$0xf] }
 0x17a   : > { %v2935_v13 = vpop.f32.mrf.mxu3  ;;  %v3291_v8 = vrot.slane %v3289_v42, 5  ;;  %v3305_v50 = vrot.slane %v3303_v57, 4  ;;  %711 = vst [vmem:[#allocation2 + $0x38] sm:$0x8] %v710_v41  ;;  %v810_v46 = vsel %vm6982_vm15, 0, %v809_v4  ;;  %v813_v5 = vsel %vm6959_vm13, 0, %v812_v33 }
 0x17b   : > { %v7019_v1 = vadd.f32 %v2935_v13, %v2511_v7  ;;  %v7023_v56 = vpop.f32.mrf.mxu0  ;;  %v3309_v7 = vshll.u32 %v3171_v61, 16  ;;  %v7043_v58 = vpack.c.b16 %v2568_v62, %v2565_v59  ;;  %811 = vst [vmem:[#allocation2 + $0x54] sm:$0x11] %v810_v46  ;;  %v7903_v40 = vor.u32 %v6955_v63, %v6974_v37 }
 0x17c   : > { %v2513_v48 = vpop.f32.mrf.mxu2  ;;  %v3292_v38 = vsel %vm7015_vm2, %v3287_v9, %v3291_v8  ;;  %v3306_v51 = vor.u32 %v3305_v50, %v3291_v8  ;;  %v3317_v36 = vshll.u32 %v3172_v17, 16  ;;  %v3323_v61 = vshll.u32 %v3174_v6, 16  ;;  %814 = vst [vmem:[#allocation2 + $0x5c] sm:$0x1] %v813_v5 }
 0x17d   : > { %v2514_v10 = vadd.f32 %v2513_v48, %v2425_v0  ;;  %v3311_v13 = vrot.slane %v3309_v7, 5  ;;  %v7056_v14 = vunpack.c.l.b16 %v3292_v38  ;;  %v3314_v0 = vshrl.u32 %v3172_v17, 16 }
 0x17e   : > { %3071 = vmatmul.bf16.gmra.mxu0 %v2705_v52  ;;  %v4085_v52 = vunpack.c.l.b16 %v7036_v16  ;;  %v3307_v62 = vrot.slane %v3306_v51, 4  ;;  %v3341_v4 = vshrl.u32 %v3174_v6, 16  ;;  %v7064_v9 = vadd.f32 %v6909_v22, %v7007_v53 }
 0x17f   : > { %2977 = vmatmul.bf16.gmra.mxu3 %v6995_v18  ;;  %v2429_v29 = vpop.f32.mrf.mxu1  ;;  %v1158_v37 = vshrl.u32 %v1006_v27, 16  ;;  %v1176_v42 = vshrl.u32 %v1008_v47, 16  ;;  %v3316_v57 = vrot.slane %v3314_v0, 4  ;;  %v3319_v33 = vrot.slane %v3317_v36, 5  ;;  %v3175_v18 = vld [vmem:[#allocation2 + $0x50] sm:$0xf] }
 0x180   : > { %v3325_v41 = vrot.slane %v3323_v61, 5  ;;  %v3343_v8 = vrot.slane %v3341_v4, 4  ;;  %v1161_v38 = vshll.u32 %v1006_v27, 16  ;;  %v1179_v22 = vshll.u32 %v1008_v47, 16 }
 0x181   : > { %v1004_v46 = vld [vmem:[#allocation2 + $0x38] sm:$0x8]  ;;  %v1160_v5 = vrot.slane %v1158_v37, 7  ;;  %v1178_v51 = vrot.slane %v1176_v42, 7  ;;  %v3320_v53 = vor.u32 %v3319_v33, %v3316_v57  ;;  %v2430_v0 = vadd.f32 %v2429_v29, %v6702_v24 }
 0x182   : > { %v2938_v23 = vpop.f32.mrf.mxu3  ;;  %2468 = vmatmul.bf16.gmra.mxu1 %v7903_v40  ;;  %v1153_v6 = vshrl.u32 %v1004_v46, 16  ;;  %v3173_v40 = vld [vmem:[#allocation2 + $0x44] sm:$0xf]  ;;  %v3176_v61 = vld [vmem:[#allocation2 + $0x54] sm:$0x11]  ;;  %v7079_v29 = vpack.c.b16 %v4085_v52, %v4082_v35  ;;  %v7905_v35 = vunpack.c.h.b16 %v7036_v16 }
 0x183   : > { %v7058_v48 = vadd.f32 %v2938_v23, %v2514_v10  ;;  %v7060_v59 = vpop.f32.mrf.mxu0  ;;  %v3312_v10 = vsel %vm7015_vm2, %v3307_v62, %v3311_v13  ;;  %v3344_v23 = vor.u32 %v3343_v8, %v3325_v41  ;;  %v1163_v36 = vor.u32 %v1161_v38, %v1160_v5  ;;  %v3177_v38 = vld [vmem:[#allocation2 + $0x5c] sm:$0x1] }
 0x184   : > { %v2515_v63 = vpop.f32.mrf.mxu2  ;;  %v4087_v50 = vunpack.c.l.b16 %v3312_v10  ;;  %v1174_v13 = vrot.slane %v1160_v5, 4  ;;  %v7904_v62 = vor.u32 %v6999_v45, %v6997_v60  ;;  %v4989_v27 = vrot.slane %v1153_v6, 11 }
 0x185   : > { %v2516_v7 = vadd.f32 %v2515_v63, %v2427_v55  ;;  %v1181_v4 = vor.u32 %v1179_v22, %v1178_v51  ;;  %v3321_v63 = vrot.slane %v3320_v53, 4  ;;  %v3345_v37 = vrot.slane %v3344_v23, 4  ;;  %v715_v53 = vld [vmem:[#allocation2 + $0x68] sm:$0x8]  ;;  %v815_v23 = vld [vmem:[#allocation2 + $0x84] sm:$0x11] }
 0x186   : > { %v4180_v55 = vpack.c.b16 %v4087_v50, %v7056_v14  ;;  %v3347_v42 = vshll.u32 %v3176_v61, 16  ;;  %v3328_v57 = vshrl.u32 %v3173_v40, 16  ;;  %v3331_v33 = vshll.u32 %v3173_v40, 16 }
 0x187   : > { %v2431_v17 = vpop.f32.mrf.mxu1  ;;  %v3337_v10 = vshll.u32 %v3175_v18, 16  ;;  %v1164_v60 = vsel %vm6552_vm9, %v4989_v27, %v1163_v36  ;;  %v1182_v45 = vsel %vm6552_vm9, %v1174_v13, %v1181_v4  ;;  %v7087_v5 = vsel %vm7015_vm2, %v3321_v63, %v3325_v41 }
 0x188   : > { %v2571_v50 = vunpack.c.l.b16 %v1164_v60  ;;  %v2574_v46 = vunpack.c.l.b16 %v1182_v45  ;;  %v7093_v52 = vpack.c.b16 %v7905_v35, %v4083_v15  ;;  %v3330_v6 = vrot.slane %v3328_v57, 4 }
 0x189   : > { %2557 = vmatmul.bf16.gmra.mxu2 %v7904_v62  ;;  %v3333_v22 = vrot.slane %v3331_v33, 5  ;;  %v2432_v40 = vadd.f32 %v2431_v17, %v6732_v3  ;;  %v3339_v36 = vrot.slane %v3337_v10, 5  ;;  %v3351_v13 = vshrl.u32 %v3175_v18, 16 }
 0x18a   : > { %v2940_v47 = vpop.f32.mrf.mxu3  ;;  %v4088_v16 = vunpack.c.l.b16 %v7087_v5  ;;  %v4089_v15 = vunpack.c.h.b16 %v7087_v5  ;;  %v3357_v61 = vshll.u32 %v3177_v38, 16  ;;  %v7103_v62 = vpack.c.b16 %v2574_v46, %v2571_v50  ;;  %v1012_v46 = vld [vmem:[#allocation2 + $0x74] sm:$0xf] }
 0x18b   : > { %v7073_v8 = vadd.f32 %v2940_v47, %v2516_v7  ;;  %v7075_v24 = vpop.f32.mrf.mxu0  ;;  %v3349_v7 = vrot.slane %v3347_v42, 5  ;;  %v3353_v27 = vrot.slane %v3351_v13, 4  ;;  %v716_v3 = vsel %vm6504_vm4, 0, %v715_v53  ;;  %v3180_v47 = vld [vmem:[#allocation2 + $0x78] sm:$0xff] }
 0x18c   : > { %v2518_v14 = vpop.f32.mrf.mxu2  ;;  %v816_v17 = vsel %vm6982_vm15, 0, %v815_v23  ;;  %v3359_v63 = vrot.slane %v3357_v61, 5  ;;  %717 = vst [vmem:[#allocation2 + $0x68] sm:$0x8] %v716_v3  ;;  %v3371_v60 = vshll.u32 %v3180_v47, 16  ;;  %v3389_v38 = vshrl.u32 %v3180_v47, 16 }
 0x18d   : > { %v2519_v51 = vadd.f32 %v2518_v14, %v2430_v0  ;;  %v7098_v41 = vsel %vm7015_vm2, %v3345_v37, %v3349_v7  ;;  %v3334_v0 = vor.u32 %v3333_v22, %v3330_v6  ;;  %v3178_v37 = vld [vmem:[#allocation2 + $0x6c] sm:$0xff]  ;;  %v3354_v57 = vor.u32 %v3353_v27, %v3339_v36  ;;  %817 = vst [vmem:[#allocation2 + $0x84] sm:$0x11] %v816_v17  ;;  %v1014_v7 = vld [vmem:[#allocation2 + $0x80] sm:$0xf] }
 0x18e   : > { %4604 = vmatmul.bf16.vlgmr.msra.gmra.mxu0 %v4180_v55  ;;  %v818_v55 = vld [vmem:[#allocation2 + $0x8c] sm:$0x1]  ;;  %v4091_v18 = vunpack.c.l.b16 %v7098_v41  ;;  %v3362_v33 = vshrl.u32 %v3178_v37, 16  ;;  %v3365_v10 = vshll.u32 %v3178_v37, 16  ;;  %v1202_v53 = vshrl.u32 %v1012_v46, 16 }
 0x18f   : > { %2982 = vmatmul.bf16.gmra.mxu3 %v7025_v2  ;;  %v2434_v54 = vpop.f32.mrf.mxu1  ;;  %v3335_v4 = vrot.slane %v3334_v0, 4  ;;  %v819_v35 = vsel %vm6959_vm13, 0, %v818_v55  ;;  %v1220_v23 = vshrl.u32 %v1014_v7, 16  ;;  %v3373_v61 = vrot.slane %v3371_v60, 5  ;;  %v3179_v27 = vld [vmem:[#allocation2 + $0x74] sm:$0xf] }
 0x190   : > { %820 = vst [vmem:[#allocation2 + $0x8c] sm:$0x1] %v819_v35  ;;  %v3367_v0 = vrot.slane %v3365_v10, 5  ;;  %v1204_v3 = vrot.slane %v1202_v53, 7  ;;  %v1205_v17 = vshll.u32 %v1012_v46, 16  ;;  %v1223_v55 = vshll.u32 %v1014_v7, 16 }
 0x191   : > { %v3340_v50 = vsel %vm7015_vm2, %v3335_v4, %v3339_v36  ;;  %v1222_v4 = vrot.slane %v1220_v23, 7  ;;  %v7123_v2 = vpack.c.b16 %v4091_v18, %v4088_v16  ;;  %v3376_v10 = vshrl.u32 %v3179_v27, 16  ;;  %v3181_v18 = vld [vmem:[#allocation2 + $0x80] sm:$0xf] }
 0x192   : > { %v2943_v42 = vpop.f32.mrf.mxu3  ;;  %3085 = vmatmul.bf16.vlgmr.msra.gmra.mxu1 %v7043_v58  ;;  %v3355_v58 = vrot.slane %v3354_v57, 4  ;;  %v4090_v22 = vunpack.c.l.b16 %v3340_v50  ;;  %v3391_v57 = vrot.slane %v3389_v38, 4  ;;  %v2435_v50 = vadd.f32 %v2434_v54, %v6620_v21 }
 0x193   : > { %v7112_v45 = vadd.f32 %v2943_v42, %v2519_v51  ;;  %v7114_v14 = vpop.f32.mrf.mxu0  ;;  %v3364_v51 = vrot.slane %v3362_v33, 4  ;;  %v1218_v33 = vrot.slane %v1204_v3, 4  ;;  %v1207_v35 = vor.u32 %v1205_v17, %v1204_v3 }
 0x194   : > { %v2520_v6 = vpop.f32.mrf.mxu2  ;;  %v3360_v36 = vsel %vm7015_vm2, %v3355_v58, %v3359_v63  ;;  %v1225_v63 = vor.u32 %v1223_v55, %v1222_v4  ;;  %v3392_v23 = vor.u32 %v3391_v57, %v3373_v61  ;;  %v3399_v57 = vshrl.u32 %v3181_v18, 16 }
 0x195   : > { %v2521_v13 = vadd.f32 %v2520_v6, %v2432_v40  ;;  %v4093_v47 = vunpack.c.l.b16 %v3360_v36  ;;  %v3368_v42 = vor.u32 %v3367_v0, %v3364_v51  ;;  %v1010_v40 = vld [vmem:[#allocation2 + $0x68] sm:$0x8]  ;;  %v3182_v6 = vld [vmem:[#allocation2 + $0x84] sm:$0x11]  ;;  %v3379_v51 = vshll.u32 %v3179_v27, 16 }
 0x196   : > { %v1197_v60 = vshrl.u32 %v1010_v40, 16  ;;  %v3395_v7 = vshll.u32 %v3182_v6, 16  ;;  %v1226_v16 = vsel %vm6552_vm9, %v1218_v33, %v1225_v63  ;;  %v7906_v36 = vunpack.c.h.b16 %v7098_v41  ;;  %v721_v33 = vld [vmem:[#allocation2 + $0x98] sm:$0x8] }
 0x197   : > { %v2436_v37 = vpop.f32.mrf.mxu1  ;;  %v3369_v46 = vrot.slane %v3368_v42, 4  ;;  %v4183_v53 = vpack.c.b16 %v4093_v47, %v4090_v22  ;;  %v3183_v17 = vld [vmem:[#allocation2 + $0x8c] sm:$0x1]  ;;  %v3381_v42 = vrot.slane %v3379_v51, 5  ;;  %v2580_v5 = vunpack.c.l.b16 %v1226_v16 }
 0x198   : > { %v4991_v54 = vrot.slane %v1197_v60, 11  ;;  %v7136_v3 = vpack.c.b16 %v7906_v36, %v4089_v15  ;;  %v3397_v27 = vrot.slane %v3395_v7, 5  ;;  %v2437_v47 = vadd.f32 %v2436_v37, %v6638_v44 }
 0x199   : > { %4426 = vmatmul.bf16.vlgmr.msra.gmra.mxu2 %v7079_v29  ;;  %v3378_v29 = vrot.slane %v3376_v10, 4  ;;  %v7140_v22 = vsel %vm7015_vm2, %v3369_v46, %v3373_v61  ;;  %v3385_v15 = vshll.u32 %v3181_v18, 16  ;;  %v3405_v37 = vshll.u32 %v3183_v17, 16  ;;  %v821_v10 = vld [vmem:[#allocation2 + $0xb4] sm:$0x11]  ;;  %v3186_v18 = vld [vmem:[#allocation2 + $0xa8] sm:$0xff] }
 0x19a   : > { %v2945_v58 = vpop.f32.mrf.mxu3  ;;  %v1208_v55 = vsel %vm6552_vm9, %v4991_v54, %v1207_v35  ;;  %v4094_v40 = vunpack.c.l.b16 %v7140_v22  ;;  %v3401_v6 = vrot.slane %v3399_v57, 4  ;;  %v722_v54 = vsel %vm6504_vm4, 0, %v721_v33 }
 0x19b   : > { %v7126_v38 = vadd.f32 %v2945_v58, %v2521_v13  ;;  %v7128_v21 = vpop.f32.mrf.mxu0  ;;  %v3393_v13 = vrot.slane %v3392_v23, 4  ;;  %v3382_v44 = vor.u32 %v3381_v42, %v3378_v29  ;;  %v2577_v60 = vunpack.c.l.b16 %v1208_v55  ;;  %v3184_v23 = vld [vmem:[#allocation2 + $0x9c] sm:$0xff]  ;;  %723 = vst [vmem:[#allocation2 + $0x98] sm:$0x8] %v722_v54  ;;  %v3185_v54 = vld [vmem:[#allocation2 + $0xa4] sm:$0xf] }
 0x19c   : > { %v2523_v0 = vpop.f32.mrf.mxu2  ;;  %v3387_v63 = vrot.slane %v3385_v15, 5  ;;  %v822_v16 = vsel %vm6982_vm15, 0, %v821_v10  ;;  %v3410_v29 = vshrl.u32 %v3184_v23, 16  ;;  %v7174_v17 = vadd.f32 %v6947_v49, %v7058_v48 }
 0x19d   : > { %v2524_v4 = vadd.f32 %v2523_v0, %v2435_v50  ;;  %v7147_v41 = vsel %vm7015_vm2, %v3393_v13, %v3397_v27  ;;  %v4095_v50 = vunpack.c.h.b16 %v7140_v22  ;;  %v1018_v13 = vld [vmem:[#allocation2 + $0xa4] sm:$0xf]  ;;  %v1020_v27 = vld [vmem:[#allocation2 + $0xb0] sm:$0xf]  ;;  %823 = vst [vmem:[#allocation2 + $0xb4] sm:$0x11] %v822_v16  ;;  %v7176_v10 = vpack.c.b16 %v2580_v5, %v2577_v60 }
 0x19e   : > { %4609 = vmatmul.bf16.gmra.mxu0 %v4183_v53  ;;  %v4097_v35 = vunpack.c.l.b16 %v7147_v41  ;;  %v4098_v58 = vunpack.c.h.b16 %v7147_v41  ;;  %v3407_v53 = vrot.slane %v3405_v37, 5  ;;  %v3402_v51 = vor.u32 %v3401_v6, %v3387_v63  ;;  %v824_v6 = vld [vmem:[#allocation2 + $0xbc] sm:$0x1] }
 0x19f   : > { %4515 = vmatmul.bf16.vlgmr.msra.gmra.mxu3 %v7093_v52  ;;  %v2439_v61 = vpop.f32.mrf.mxu1  ;;  %v3383_v52 = vrot.slane %v3382_v44, 4  ;;  %v1246_v15 = vshrl.u32 %v1018_v13, 16  ;;  %v1264_v57 = vshrl.u32 %v1020_v27, 16  ;;  %v3412_v44 = vrot.slane %v3410_v29, 4 }
 0x1a0   : > { %v7154_v46 = vadd.f32 %v2439_v61, %v6664_v11  ;;  %v3403_v42 = vrot.slane %v3402_v51, 4  ;;  %v3413_v37 = vshll.u32 %v3184_v23, 16  ;;  %v3419_v33 = vshll.u32 %v3186_v18, 16 }
 0x1a1   : > { %v3388_v36 = vsel %vm7015_vm2, %v3383_v52, %v3387_v63  ;;  %v1266_v63 = vrot.slane %v1264_v57, 7  ;;  %v1249_v52 = vshll.u32 %v1018_v13, 16  ;;  %v3437_v23 = vshrl.u32 %v3186_v18, 16 }
 0x1a2   : > { %v2948_v7 = vpop.f32.mrf.mxu3  ;;  %3090 = vmatmul.bf16.gmra.mxu1 %v7103_v62  ;;  %v7170_v62 = vadd.f32 %v6931_v32, %v7019_v1  ;;  %v3408_v32 = vsel %vm7015_vm2, %v3403_v42, %v3407_v53  ;;  %v1248_v1 = vrot.slane %v1246_v15, 7  ;;  %v3415_v51 = vrot.slane %v3413_v37, 5  ;;  %v1016_v42 = vld [vmem:[#allocation2 + $0x98] sm:$0x8] }
 0x1a3   : > { %v7162_v0 = vadd.f32 %v2948_v7, %v2524_v4  ;;  %v7164_v11 = vpop.f32.mrf.mxu0  ;;  %v4096_v4 = vunpack.c.l.b16 %v3388_v36  ;;  %v4099_v48 = vunpack.c.l.b16 %v3408_v32  ;;  %v1267_v7 = vshll.u32 %v1020_v27, 16 }
 0x1a4   : > { %v2525_v55 = vpop.f32.mrf.mxu2  ;;  %v7180_v36 = vpack.c.b16 %v4097_v35, %v4094_v40  ;;  %v3421_v16 = vrot.slane %v3419_v33, 5  ;;  %v3416_v29 = vor.u32 %v3415_v51, %v3412_v44  ;;  %v825_v53 = vsel %vm6959_vm13, 0, %v824_v6  ;;  %v3188_v57 = vld [vmem:[#allocation2 + $0xb4] sm:$0x11] }
 0x1a5   : > { %v2526_v61 = vadd.f32 %v2525_v55, %v2437_v47  ;;  %v1262_v47 = vrot.slane %v1248_v1, 4  ;;  %v4186_v5 = vpack.c.b16 %v4099_v48, %v4096_v4  ;;  %v1269_v60 = vor.u32 %v1267_v7, %v1266_v63  ;;  %826 = vst [vmem:[#allocation2 + $0xbc] sm:$0x1] %v825_v53 }
 0x1a6   : > { %v3439_v15 = vrot.slane %v3437_v23, 4  ;;  %v3424_v13 = vshrl.u32 %v3185_v54, 16  ;;  %v7187_v40 = vadd.f32 %v7009_v25, %v7073_v8  ;;  %v7191_v35 = vadd.f32 %v7023_v56, %v7112_v45  ;;  %v3187_v8 = vld [vmem:[#allocation2 + $0xb0] sm:$0xf] }
 0x1a7   : > { %v2441_v49 = vpop.f32.mrf.mxu1  ;;  %v1241_v27 = vshrl.u32 %v1016_v42, 16  ;;  %v1251_v4 = vor.u32 %v1249_v52, %v1248_v1  ;;  %v3417_v44 = vrot.slane %v3416_v29, 4  ;;  %v7199_v33 = vsel %vm6552_vm9, %v1262_v47, %v1269_v60  ;;  %v727_v1 = vld [vmem:[#allocation2 + $0xc8] sm:$0x8]  ;;  %v827_v60 = vld [vmem:[#allocation2 + $0xe4] sm:$0x11] }
 0x1a8   : > { %v3440_v32 = vor.u32 %v3439_v15, %v3421_v16  ;;  %v3443_v25 = vshll.u32 %v3188_v57, 16  ;;  %v3426_v63 = vrot.slane %v3424_v13, 4  ;;  %v3427_v6 = vshll.u32 %v3185_v54, 16 }
 0x1a9   : > { %4431 = vmatmul.bf16.gmra.mxu2 %v7123_v2  ;;  %v4993_v45 = vrot.slane %v1241_v27, 11  ;;  %v2442_v48 = vadd.f32 %v2441_v49, %v6676_v30  ;;  %v7211_v52 = vpack.c.b16 %v4098_v58, %v4095_v50  ;;  %v3433_v54 = vshll.u32 %v3187_v8, 16  ;;  %v3190_v27 = vld [vmem:[#allocation2 + $0xcc] sm:$0xff] }
 0x1aa   : > { %v2950_v55 = vpop.f32.mrf.mxu3  ;;  %v3441_v7 = vrot.slane %v3440_v32, 4  ;;  %v3445_v51 = vrot.slane %v3443_v25, 5  ;;  %v3447_v23 = vshrl.u32 %v3187_v8, 16  ;;  %v2586_v30 = vunpack.c.l.b16 %v7199_v33  ;;  %v1024_v33 = vld [vmem:[#allocation2 + $0xd4] sm:$0xf] }
 0x1ab   : > { %v7193_v2 = vadd.f32 %v2950_v55, %v2526_v61  ;;  %v7195_v18 = vpop.f32.mrf.mxu0  ;;  %v7204_v61 = vsel %vm7015_vm2, %v3417_v44, %v3421_v16  ;;  %v1252_v47 = vsel %vm6552_vm9, %v4993_v45, %v1251_v4  ;;  %v3429_v16 = vrot.slane %v3427_v6, 5  ;;  %v1026_v32 = vld [vmem:[#allocation2 + $0xe0] sm:$0xf] }
 0x1ac   : > { %7907 = vst [vmem:[#allocation21_spill] sm:$0xff] %v7195_v18  ;;  %v2528_v37 = vpop.f32.mrf.mxu2  ;;  %v7219_v22 = vsel %vm7015_vm2, %v3441_v7, %v3445_v51  ;;  %v4100_v41 = vunpack.c.l.b16 %v7204_v61  ;;  %v728_v50 = vsel %vm6504_vm4, 0, %v727_v1  ;;  %v4101_v58 = vunpack.c.h.b16 %v7204_v61  ;;  %v3189_v49 = vld [vmem:[#allocation2 + $0xbc] sm:$0x1] }
 0x1ad   : > { %v2529_v56 = vadd.f32 %v2528_v37, %v7154_v46  ;;  %v3435_v29 = vrot.slane %v3433_v54, 5  ;;  %729 = vst [vmem:[#allocation2 + $0xc8] sm:$0x8] %v728_v50  ;;  %v2583_v55 = vunpack.c.l.b16 %v1252_v47  ;;  %v3449_v42 = vrot.slane %v3447_v23, 4  ;;  %v3192_v54 = vld [vmem:[#allocation2 + $0xd8] sm:$0xff] }
 0x1ae   : > { %4614 = vmatmul.bf16.gmra.mxu0 %v4186_v5  ;;  %v3430_v5 = vor.u32 %v3429_v16, %v3426_v63  ;;  %v3453_v15 = vshll.u32 %v3189_v49, 16  ;;  %v828_v13 = vsel %vm6982_vm15, 0, %v827_v60  ;;  %v4103_v57 = vunpack.c.l.b16 %v7219_v22  ;;  %v830_v23 = vld [vmem:[#allocation2 + $0xec] sm:$0x1] }
 0x1af   : > { %4520 = vmatmul.bf16.gmra.mxu3 %v7136_v3  ;;  %v2444_v46 = vpop.f32.mrf.mxu1  ;;  %v4104_v44 = vunpack.c.h.b16 %v7219_v22  ;;  %v1290_v63 = vshrl.u32 %v1024_v33, 16  ;;  %v1308_v45 = vshrl.u32 %v1026_v32, 16  ;;  %829 = vst [vmem:[#allocation2 + $0xe4] sm:$0x11] %v828_v13  ;;  %v3458_v1 = vshrl.u32 %v3190_v27, 16 }
 0x1b0   : > { %v7225_v3 = vadd.f32 %v2444_v46, %v6694_v39  ;;  %v3431_v37 = vrot.slane %v3430_v5, 4  ;;  %v3455_v8 = vrot.slane %v3453_v15, 5  ;;  %v3461_v7 = vshll.u32 %v3190_v27, 16 }
 0x1b1   : > { %v1292_v47 = vrot.slane %v1290_v63, 7  ;;  %v1293_v16 = vshll.u32 %v1024_v33, 16  ;;  %v1310_v22 = vrot.slane %v1308_v45, 7  ;;  %v1311_v50 = vshll.u32 %v1026_v32, 16 }
 0x1b2   : > { %v2953_v53 = vpop.f32.mrf.mxu3  ;;  %3095 = vmatmul.bf16.gmra.mxu1 %v7176_v10  ;;  %v3450_v10 = vor.u32 %v3449_v42, %v3435_v29  ;;  %v3460_v49 = vrot.slane %v3458_v1, 4  ;;  %v3463_v5 = vrot.slane %v3461_v7, 5  ;;  %v2670_v42 = vpack.c.b16 %v2586_v30, %v2583_v55 }
 0x1b3   : > { %v7231_v4 = vadd.f32 %v2953_v53, %v2529_v56  ;;  %v7233_v39 = vpop.f32.mrf.mxu0  ;;  %v3436_v56 = vsel %vm7015_vm2, %v3431_v37, %v3435_v29  ;;  %v3191_v53 = vld [vmem:[#allocation2 + $0xd4] sm:$0xf]  ;;  %v1295_v29 = vor.u32 %v1293_v16, %v1292_v47  ;;  %v1306_v13 = vrot.slane %v1292_v47, 4 }
 0x1b4   : > { %7908 = vst [vmem:[#allocation22_spill] sm:$0xff] %v7233_v39  ;;  %v2530_v25 = vpop.f32.mrf.mxu2  ;;  %v3451_v51 = vrot.slane %v3450_v10, 4  ;;  %v4102_v46 = vunpack.c.l.b16 %v3436_v56  ;;  %v1022_v15 = vld [vmem:[#allocation2 + $0xc8] sm:$0x8]  ;;  %v1313_v33 = vor.u32 %v1311_v50, %v1310_v22  ;;  %v3467_v63 = vshll.u32 %v3192_v54, 16 }
 0x1b5   : > { %v2531_v6 = vadd.f32 %v2530_v25, %v2442_v48  ;;  %v1285_v37 = vshrl.u32 %v1022_v15, 16  ;;  %v3464_v25 = vor.u32 %v3463_v5, %v3460_v49  ;;  %v3485_v45 = vshrl.u32 %v3192_v54, 16  ;;  %v3193_v50 = vld [vmem:[#allocation2 + $0xe0] sm:$0xf]  ;;  %v733_v15 = vld [vmem:[#allocation2 + $0xf8] sm:$0x8] }
 0x1b6   : > { %v3456_v48 = vsel %vm7015_vm2, %v3451_v51, %v3455_v8  ;;  %v831_v32 = vsel %vm6959_vm13, 0, %v830_v23  ;;  %v3472_v56 = vshrl.u32 %v3191_v53, 16  ;;  %v7248_v8 = vpack.c.b16 %v4103_v57, %v4100_v41 }
 0x1b7   : > { %v2446_v60 = vpop.f32.mrf.mxu1  ;;  %v4105_v27 = vunpack.c.l.b16 %v3456_v48  ;;  %v4995_v7 = vrot.slane %v1285_v37, 11  ;;  %832 = vst [vmem:[#allocation2 + $0xec] sm:$0x1] %v831_v32  ;;  %v1314_v47 = vsel %vm6552_vm9, %v1306_v13, %v1313_v33  ;;  %v3465_v16 = vrot.slane %v3464_v25, 4  ;;  %v833_v13 = vld [vmem:[#allocation2 + $0x114] sm:$0x11] }
 0x1b8   : > { %v3469_v54 = vrot.slane %v3467_v63, 5  ;;  %v3487_v22 = vrot.slane %v3485_v45, 4  ;;  %v3474_v5 = vrot.slane %v3472_v56, 4  ;;  %v3475_v48 = vshll.u32 %v3191_v53, 16 }
 0x1b9   : > { %4436 = vmatmul.bf16.gmra.mxu2 %v7180_v36  ;;  %v4189_v1 = vpack.c.b16 %v4105_v27, %v4102_v46  ;;  %v3194_v36 = vld [vmem:[#allocation2 + $0xe4] sm:$0x11]  ;;  %v1296_v41 = vsel %vm6552_vm9, %v4995_v7, %v1295_v29  ;;  %v3481_v27 = vshll.u32 %v3193_v50, 16  ;;  %v2447_v29 = vadd.f32 %v2446_v60, %v6712_v28 }
 0x1ba   : > { %v2955_v10 = vpop.f32.mrf.mxu3  ;;  %v3491_v57 = vshll.u32 %v3194_v36, 16  ;;  %v7261_v46 = vsel %vm7015_vm2, %v3465_v16, %v3469_v54  ;;  %v3488_v49 = vor.u32 %v3487_v22, %v3469_v54  ;;  %v2589_v61 = vunpack.c.l.b16 %v1296_v41  ;;  %v1030_v54 = vld [vmem:[#allocation2 + $0x104] sm:$0xf] }
 0x1bb   : > { %v7244_v30 = vadd.f32 %v2955_v10, %v2531_v6  ;;  %v7246_v55 = vpop.f32.mrf.mxu0  ;;  %v7255_v6 = vpack.c.b16 %v4104_v44, %v4101_v58  ;;  %v2592_v58 = vunpack.c.l.b16 %v1314_v47  ;;  %v4106_v33 = vunpack.c.l.b16 %v7261_v46 }
 0x1bc   : > { %7909 = vst [vmem:[#allocation23_spill] sm:$0xff] %v7246_v55  ;;  %v2533_v51 = vpop.f32.mrf.mxu2  ;;  %v3493_v44 = vrot.slane %v3491_v57, 5  ;;  %v3489_v37 = vrot.slane %v3488_v49, 4  ;;  %v3477_v25 = vrot.slane %v3475_v48, 5  ;;  %v3483_v10 = vrot.slane %v3481_v27, 5 }
 0x1bd   : > { %v2534_v23 = vadd.f32 %v2533_v51, %v7225_v3  ;;  %v3495_v63 = vshrl.u32 %v3193_v50, 16  ;;  %v734_v53 = vsel %vm6504_vm4, 0, %v733_v15  ;;  %v834_v45 = vsel %vm6982_vm15, 0, %v833_v13 }
 0x1be   : > { %4619 = vmatmul.bf16.gmra.mxu0 %v4189_v1  ;;  %v7275_v28 = vsel %vm7015_vm2, %v3489_v37, %v3493_v44  ;;  %v4107_v60 = vunpack.c.h.b16 %v7261_v46  ;;  %v3195_v1 = vld [vmem:[#allocation2 + $0xec] sm:$0x1]  ;;  %v3478_v7 = vor.u32 %v3477_v25, %v3474_v5  ;;  %735 = vst [vmem:[#allocation2 + $0xf8] sm:$0x8] %v734_v53  ;;  %v7282_v47 = vpack.c.b16 %v2592_v58, %v2589_v61 }
 0x1bf   : > { %4525 = vmatmul.bf16.gmra.mxu3 %v7211_v52  ;;  %v2449_v3 = vpop.f32.mrf.mxu1  ;;  %v3196_v52 = vld [vmem:[#allocation2 + $0xfc] sm:$0xff]  ;;  %v3497_v16 = vrot.slane %v3495_v63, 4  ;;  %v3501_v41 = vshll.u32 %v3195_v1, 16  ;;  %v1334_v57 = vshrl.u32 %v1030_v54, 16  ;;  %835 = vst [vmem:[#allocation2 + $0x114] sm:$0x11] %v834_v45  ;;  %v4109_v5 = vunpack.c.l.b16 %v7275_v28 }
 0x1c0   : > { %v7271_v56 = vadd.f32 %v2449_v3, %v6738_v19  ;;  %v1032_v19 = vld [vmem:[#allocation2 + $0x110] sm:$0xf]  ;;  %v3506_v22 = vshrl.u32 %v3196_v52, 16  ;;  %v3479_v50 = vrot.slane %v3478_v7, 4  ;;  %v1337_v58 = vshll.u32 %v1030_v54, 16  ;;  %v3198_v44 = vld [vmem:[#allocation2 + $0x108] sm:$0xff] }
 0x1c1   : > { %v1352_v49 = vshrl.u32 %v1032_v19, 16  ;;  %v3498_v15 = vor.u32 %v3497_v16, %v3483_v10  ;;  %v3503_v3 = vrot.slane %v3501_v41, 5  ;;  %v1336_v61 = vrot.slane %v1334_v57, 7  ;;  %v3202_v46 = vld [vmem:[#allocation2 + $0x12c] sm:$0xff] }
 0x1c2   : > { %v2958_v32 = vpop.f32.mrf.mxu3  ;;  %3100 = vmatmul.bf16.gmra.mxu1 %v2670_v42  ;;  %v3484_v13 = vsel %vm7015_vm2, %v3479_v50, %v3483_v10  ;;  %v4110_v37 = vunpack.c.h.b16 %v7275_v28  ;;  %v1355_v53 = vshll.u32 %v1032_v19, 16  ;;  %v3508_v7 = vrot.slane %v3506_v22, 4  ;;  %v3197_v50 = vld [vmem:[#allocation2 + $0x104] sm:$0xf] }
 0x1c3   : > { %v7278_v36 = vadd.f32 %v2958_v32, %v2534_v23  ;;  %v7280_v51 = vpop.f32.mrf.mxu0  ;;  %v3509_v23 = vshll.u32 %v3196_v52, 16  ;;  %v3499_v25 = vrot.slane %v3498_v15, 4  ;;  %v1354_v63 = vrot.slane %v1352_v49, 7  ;;  %v836_v32 = vld [vmem:[#allocation2 + $0x11c] sm:$0x1] }
 0x1c4   : > { %7910 = vst [vmem:[#allocation24_spill] sm:$0xff] %v7280_v51  ;;  %v2535_v42 = vpop.f32.mrf.mxu2  ;;  %v4108_v45 = vunpack.c.l.b16 %v3484_v13  ;;  %v1350_v1 = vrot.slane %v1336_v61, 4  ;;  %v3533_v49 = vshrl.u32 %v3198_v44, 16  ;;  %v837_v19 = vsel %vm6959_vm13, 0, %v836_v32  ;;  %v3199_v15 = vld [vmem:[#allocation2 + $0x110] sm:$0xf] }
 0x1c5   : > { %v2536_v48 = vadd.f32 %v2535_v42, %v2447_v29  ;;  %v1339_v29 = vor.u32 %v1337_v58, %v1336_v61  ;;  %v3504_v10 = vsel %vm7015_vm2, %v3499_v25, %v3503_v3  ;;  %v1028_v52 = vld [vmem:[#allocation2 + $0xf8] sm:$0x8]  ;;  %v1357_v16 = vor.u32 %v1355_v53, %v1354_v63  ;;  %838 = vst [vmem:[#allocation2 + $0x11c] sm:$0x1] %v837_v19  ;;  %v7913_v19 = vld [vmem:[#allocation3_spill] sm:$0xff] }
 0x1c6   : > { %v3511_v54 = vrot.slane %v3509_v23, 5  ;;  %v3515_v42 = vshll.u32 %v3198_v44, 16  ;;  %v4111_v28 = vunpack.c.l.b16 %v3504_v10  ;;  %v1329_v57 = vshrl.u32 %v1028_v52, 16  ;;  %v3200_v3 = vld [vmem:[#allocation2 + $0x114] sm:$0x11] }
 0x1c7   : > { %v2451_v27 = vpop.f32.mrf.mxu1  ;;  %v1358_v44 = vsel %vm6552_vm9, %v1350_v1, %v1357_v16  ;;  %v3535_v53 = vrot.slane %v3533_v49, 4  ;;  %v3520_v52 = vshrl.u32 %v3197_v50, 16  ;;  %v7308_v1 = vpack.c.b16 %v4110_v37, %v4107_v60 }
 0x1c8   : > { %v3512_v61 = vor.u32 %v3511_v54, %v3508_v7  ;;  %v3517_v58 = vrot.slane %v3515_v42, 5  ;;  %v4192_v25 = vpack.c.b16 %v4111_v28, %v4108_v45  ;;  %v4997_v63 = vrot.slane %v1329_v57, 11  ;;  %v839_v28 = vld [vmem:[#allocation2 + $0x144] sm:$0x11] }
 0x1c9   : > { %4441 = vmatmul.bf16.gmra.mxu2 %v7248_v8  ;;  %v7297_v8 = vpack.c.b16 %v4109_v5, %v4106_v33  ;;  %v3523_v7 = vshll.u32 %v3197_v50, 16  ;;  %v3529_v54 = vshll.u32 %v3199_v15, 16  ;;  %v2452_v45 = vadd.f32 %v2451_v27, %v6754_v31 }
 0x1ca   : > { %v2960_v41 = vpop.f32.mrf.mxu3  ;;  %v3513_v10 = vrot.slane %v3512_v61, 4  ;;  %v1340_v33 = vsel %vm6552_vm9, %v4997_v63, %v1339_v29  ;;  %v3536_v5 = vor.u32 %v3535_v53, %v3517_v58  ;;  %v3522_v16 = vrot.slane %v3520_v52, 4 }
 0x1cb   : > { %v7293_v13 = vadd.f32 %v2960_v41, %v2536_v48  ;;  %v7295_v22 = vpop.f32.mrf.mxu0  ;;  %v3539_v48 = vshll.u32 %v3200_v3, 16  ;;  %v739_v41 = vld [vmem:[#allocation2 + $0x128] sm:$0x8]  ;;  %v2595_v57 = vunpack.c.l.b16 %v1340_v33  ;;  %v2598_v49 = vunpack.c.l.b16 %v1358_v44 }
 0x1cc   : > { %7912 = vst [vmem:[#allocation26_spill] sm:$0xff] %v7295_v22  ;;  %v2538_v23 = vpop.f32.mrf.mxu2  ;;  %v7312_v29 = vsel %vm7015_vm2, %v3513_v10, %v3517_v58  ;;  %v3537_v50 = vrot.slane %v3536_v5, 4  ;;  %v3525_v31 = vrot.slane %v3523_v7, 5  ;;  %v3531_v27 = vrot.slane %v3529_v54, 5  ;;  %v3201_v61 = vld [vmem:[#allocation2 + $0x11c] sm:$0x1] }
 0x1cd   : > { %7911 = vst [vmem:[#allocation25_spill] sm:$0xff] %v7293_v13  ;;  %v2539_v32 = vadd.f32 %v2538_v23, %v7271_v56  ;;  %v3541_v56 = vrot.slane %v3539_v48, 5  ;;  %v3543_v3 = vshrl.u32 %v3199_v15, 16  ;;  %v740_v58 = vsel %vm6504_vm4, 0, %v739_v41  ;;  %v1036_v10 = vld [vmem:[#allocation2 + $0x134] sm:$0xf] }
 0x1ce   : > { %4624 = vmatmul.bf16.gmra.mxu0 %v4192_v25  ;;  %v840_v23 = vsel %vm6982_vm15, 0, %v839_v28  ;;  %v3554_v25 = vshrl.u32 %v3202_v46, 16  ;;  %v4112_v15 = vunpack.c.l.b16 %v7312_v29  ;;  %v3526_v53 = vor.u32 %v3525_v31, %v3522_v16  ;;  %741 = vst [vmem:[#allocation2 + $0x128] sm:$0x8] %v740_v58  ;;  %v1038_v48 = vld [vmem:[#allocation2 + $0x140] sm:$0xf] }
 0x1cf   : > { %4530 = vmatmul.bf16.gmra.mxu3 %v7255_v6  ;;  %v2454_v42 = vpop.f32.mrf.mxu1  ;;  %v7320_v37 = vsel %vm7015_vm2, %v3537_v50, %v3541_v56  ;;  %v3545_v33 = vrot.slane %v3543_v3, 4  ;;  %v3549_v5 = vshll.u32 %v3201_v61, 16  ;;  %v1378_v7 = vshrl.u32 %v1036_v10, 16  ;;  %841 = vst [vmem:[#allocation2 + $0x144] sm:$0x11] %v840_v23  ;;  %v3204_v16 = vld [vmem:[#allocation2 + $0x138] sm:$0xff] }
 0x1d0   : > { %v7315_v6 = vadd.f32 %v2454_v42, %v7913_v19  ;;  %v1396_v54 = vshrl.u32 %v1038_v48, 16  ;;  %v7332_v56 = vpack.c.b16 %v2598_v49, %v2595_v57  ;;  %v3527_v41 = vrot.slane %v3526_v53, 4  ;;  %v745_v22 = vld [vmem:[#allocation2 + $0x158] sm:$0x8] }
 0x1d1   : > { %v3546_v28 = vor.u32 %v3545_v33, %v3531_v27  ;;  %v3551_v50 = vrot.slane %v3549_v5, 5  ;;  %v1380_v19 = vrot.slane %v1378_v7, 7  ;;  %v4116_v58 = vunpack.c.h.b16 %v7320_v37  ;;  %v7943_v13 = vld [vmem:[#allocation14_spill] sm:$0xff] }
 0x1d2   : > { %v2963_v60 = vpop.f32.mrf.mxu3  ;;  %3105 = vmatmul.bf16.gmra.mxu1 %v7282_v47  ;;  %v4115_v47 = vunpack.c.l.b16 %v7320_v37  ;;  %v3532_v3 = vsel %vm7015_vm2, %v3527_v41, %v3531_v27  ;;  %v1398_v61 = vrot.slane %v1396_v54, 7  ;;  %v1399_v23 = vshll.u32 %v1038_v48, 16 }
 0x1d3   : > { %v7326_v63 = vadd.f32 %v2963_v60, %v2539_v32  ;;  %v7328_v44 = vpop.f32.mrf.mxu0  ;;  %v1381_v60 = vshll.u32 %v1036_v10, 16  ;;  %v3547_v49 = vrot.slane %v3546_v28, 4  ;;  %v3556_v53 = vrot.slane %v3554_v25, 4  ;;  %v3203_v32 = vld [vmem:[#allocation2 + $0x134] sm:$0xf] }
 0x1d4   : > { %7915 = vst [vmem:[#allocation27_spill] sm:$0xff] %v7328_v44  ;;  %v2540_v52 = vpop.f32.mrf.mxu2  ;;  %v7340_v57 = vpack.c.b16 %v4115_v47, %v4112_v15  ;;  %v1394_v33 = vrot.slane %v1380_v19, 4  ;;  %v1401_v10 = vor.u32 %v1399_v23, %v1398_v61  ;;  %v3557_v5 = vshll.u32 %v3202_v46, 16 }
 0x1d5   : > { %7914 = vst [vmem:[#allocation3_spill] sm:$0xff] %v7326_v63  ;;  %v2541_v42 = vadd.f32 %v2540_v52, %v2452_v45  ;;  %v842_v45 = vld [vmem:[#allocation2 + $0x14c] sm:$0x1]  ;;  %v4114_v52 = vunpack.c.l.b16 %v3532_v3  ;;  %v3563_v7 = vshll.u32 %v3204_v16, 16  ;;  %v3552_v37 = vsel %vm7015_vm2, %v3547_v49, %v3551_v50  ;;  %v1034_v27 = vld [vmem:[#allocation2 + $0x128] sm:$0x8] }
 0x1d6   : > { %v1383_v54 = vor.u32 %v1381_v60, %v1380_v19  ;;  %v3581_v48 = vshrl.u32 %v3204_v16, 16  ;;  %v843_v15 = vsel %vm6959_vm13, 0, %v842_v45  ;;  %v1373_v41 = vshrl.u32 %v1034_v27, 16  ;;  %v3206_v28 = vld [vmem:[#allocation2 + $0x144] sm:$0x11] }
 0x1d7   : > { %v7335_v31 = vpop.f32.mrf.mxu1  ;;  %v1402_v46 = vsel %vm6552_vm9, %v1394_v33, %v1401_v10  ;;  %844 = vst [vmem:[#allocation2 + $0x14c] sm:$0x1] %v843_v15  ;;  %v3559_v61 = vrot.slane %v3557_v5, 5  ;;  %v3565_v50 = vrot.slane %v3563_v7, 5  ;;  %v3205_v19 = vld [vmem:[#allocation2 + $0x140] sm:$0xf] }
 0x1d8   : > { %v3583_v23 = vrot.slane %v3581_v48, 4  ;;  %v3568_v60 = vshrl.u32 %v3203_v32, 16  ;;  %v2604_v49 = vunpack.c.l.b16 %v1402_v46  ;;  %v3571_v27 = vshll.u32 %v3203_v32, 16  ;;  %v845_v15 = vld [vmem:[#allocation2 + $0x174] sm:$0x11] }
 0x1d9   : > { %4446 = vmatmul.bf16.gmra.mxu2 %v7297_v8  ;;  %v4117_v8 = vunpack.c.l.b16 %v3552_v37  ;;  %v3577_v7 = vshll.u32 %v3205_v19, 16  ;;  %v3591_v48 = vshrl.u32 %v3205_v19, 16  ;;  %v746_v32 = vsel %vm6504_vm4, 0, %v745_v22 }
 0x1da   : > { %v2965_v44 = vpop.f32.mrf.mxu3  ;;  %v3584_v37 = vor.u32 %v3583_v23, %v3565_v50  ;;  %v3573_v46 = vrot.slane %v3571_v27, 5  ;;  %747 = vst [vmem:[#allocation2 + $0x158] sm:$0x8] %v746_v32  ;;  %v846_v22 = vsel %vm6982_vm15, 0, %v845_v15 }
 0x1db   : > { %v7347_v47 = vadd.f32 %v2965_v44, %v2541_v42  ;;  %v7349_v25 = vpop.f32.mrf.mxu0  ;;  %v4195_v45 = vpack.c.b16 %v4117_v8, %v4114_v52  ;;  %v4999_v44 = vrot.slane %v1373_v41, 11  ;;  %v3587_v42 = vshll.u32 %v3206_v28, 16  ;;  %847 = vst [vmem:[#allocation2 + $0x174] sm:$0x11] %v846_v22 }
 0x1dc   : > { %7917 = vst [vmem:[#allocation29_spill] sm:$0xff] %v7349_v25  ;;  %v2543_v3 = vpop.f32.mrf.mxu2  ;;  %v3560_v25 = vor.u32 %v3559_v61, %v3556_v53  ;;  %v3585_v8 = vrot.slane %v3584_v37, 4  ;;  %v3570_v41 = vrot.slane %v3568_v60, 4  ;;  %v3579_v53 = vrot.slane %v3577_v7, 5 }
 0x1dd   : > { %7916 = vst [vmem:[#allocation28_spill] sm:$0xff] %v7347_v47  ;;  %v2544_v16 = vadd.f32 %v2543_v3, %v7315_v6  ;;  %v1384_v10 = vsel %vm6552_vm9, %v4999_v44, %v1383_v54  ;;  %v3589_v5 = vrot.slane %v3587_v42, 5  ;;  %v3593_v28 = vrot.slane %v3591_v48, 4  ;;  %v1042_v44 = vld [vmem:[#allocation2 + $0x164] sm:$0xf] }
 0x1de   : > { %4629 = vmatmul.bf16.gmra.mxu0 %v4195_v45  ;;  %v2601_v6 = vunpack.c.l.b16 %v1384_v10  ;;  %v3561_v52 = vrot.slane %v3560_v25, 4  ;;  %v7918_v3 = vunpack.c.h.b16 %v7312_v29  ;;  %v3207_v23 = vld [vmem:[#allocation2 + $0x14c] sm:$0x1]  ;;  %v1044_v42 = vld [vmem:[#allocation2 + $0x170] sm:$0xf]  ;;  %v3574_v10 = vor.u32 %v3573_v46, %v3570_v41 }
 0x1df   : > { %4535 = vmatmul.bf16.gmra.mxu3 %v7308_v1  ;;  %v2459_v33 = vpop.f32.mrf.mxu1  ;;  %v7370_v25 = vsel %vm7015_vm2, %v3585_v8, %v3589_v5  ;;  %v3594_v5 = vor.u32 %v3593_v28, %v3579_v53  ;;  %v3597_v7 = vshll.u32 %v3207_v23, 16  ;;  %v1422_v15 = vshrl.u32 %v1042_v44, 16  ;;  %v3210_v23 = vld [vmem:[#allocation2 + $0x168] sm:$0xff] }
 0x1e0   : > { %v7362_v54 = vpack.c.b16 %v4116_v58, %v7918_v3  ;;  %v7366_v61 = vsel %vm7015_vm2, %v3561_v52, %v3565_v50  ;;  %v7921_v58 = vld [vmem:[#allocation5_spill] sm:$0xff]  ;;  %v7381_v50 = vpack.c.b16 %v2604_v49, %v2601_v6  ;;  %v4121_v48 = vunpack.c.l.b16 %v7370_v25  ;;  %v3208_v52 = vld [vmem:[#allocation2 + $0x15c] sm:$0xff] }
 0x1e1   : > { %v2460_v60 = vadd.f32 %v2459_v33, %v7921_v58  ;;  %v4118_v27 = vunpack.c.l.b16 %v7366_v61  ;;  %v4119_v33 = vunpack.c.h.b16 %v7366_v61  ;;  %v3575_v8 = vrot.slane %v3574_v10, 4 }
 0x1e2   : > { %v2968_v1 = vpop.f32.mrf.mxu3  ;;  %3110 = vmatmul.bf16.gmra.mxu1 %v7332_v56  ;;  %v7920_v56 = vld [vmem:[#allocation4_spill] sm:$0xff]  ;;  %v3595_v49 = vrot.slane %v3594_v5, 4  ;;  %v3599_v6 = vrot.slane %v3597_v7, 5  ;;  %v1425_v3 = vshll.u32 %v1042_v44, 16  ;;  %v4122_v41 = vunpack.c.h.b16 %v7370_v25 }
 0x1e3   : > { %v7374_v19 = vadd.f32 %v2968_v1, %v2544_v16  ;;  %v2457_v29 = vadd.f32 %v7335_v31, %v7920_v56  ;;  %v7379_v45 = vpop.f32.mrf.mxu0  ;;  %v1440_v31 = vshrl.u32 %v1044_v42, 16  ;;  %v1424_v1 = vrot.slane %v1422_v15, 7  ;;  %v3212_v15 = vld [vmem:[#allocation2 + $0x174] sm:$0x11] }
 0x1e4   : > { %7922 = vst [vmem:[#allocation4_spill] sm:$0xff] %v7379_v45  ;;  %v2545_v37 = vpop.f32.mrf.mxu2  ;;  %v1443_v56 = vshll.u32 %v1044_v42, 16  ;;  %v3580_v46 = vsel %vm7015_vm2, %v3575_v8, %v3579_v53  ;;  %v3600_v28 = vsel %vm7015_vm2, %v3595_v49, %v3599_v6  ;;  %v3611_v49 = vshll.u32 %v3210_v23, 16 }
 0x1e5   : > { %7919 = vst [vmem:[#allocation30_spill] sm:$0xff] %v7374_v19  ;;  %v2546_v16 = vadd.f32 %v2545_v37, %v2457_v29  ;;  %v1442_v22 = vrot.slane %v1440_v31, 7  ;;  %v3602_v29 = vshrl.u32 %v3208_v52, 16  ;;  %v4120_v61 = vunpack.c.l.b16 %v3580_v46  ;;  %v1040_v37 = vld [vmem:[#allocation2 + $0x158] sm:$0x8] }
 0x1e6   : > { %v4123_v58 = vunpack.c.l.b16 %v3600_v28  ;;  %v1427_v10 = vor.u32 %v1425_v3, %v1424_v1  ;;  %v1438_v5 = vrot.slane %v1424_v1, 4  ;;  %v1417_v7 = vshrl.u32 %v1040_v37, 16  ;;  %v848_v19 = vld [vmem:[#allocation2 + $0x17c] sm:$0x1]  ;;  %v3209_v37 = vld [vmem:[#allocation2 + $0x164] sm:$0xf] }
 0x1e7   : > { %v7386_v32 = vpop.f32.mrf.mxu1  ;;  %v1445_v42 = vor.u32 %v1443_v56, %v1442_v22  ;;  %v3604_v25 = vrot.slane %v3602_v29, 4  ;;  %v3605_v31 = vshll.u32 %v3208_v52, 16  ;;  %v3629_v6 = vshrl.u32 %v3210_v23, 16  ;;  %v3211_v29 = vld [vmem:[#allocation2 + $0x170] sm:$0xf] }
 0x1e8   : > { %v4198_v8 = vpack.c.b16 %v4123_v58, %v4120_v61  ;;  %v5001_v46 = vrot.slane %v1417_v7, 11  ;;  %v3635_v28 = vshll.u32 %v3212_v15, 16  ;;  %v7400_v56 = vpack.c.b16 %v4121_v48, %v4118_v27  ;;  %v751_v7 = vld [vmem:[#allocation2 + $0x188] sm:$0x8] }
 0x1e9   : > { %4451 = vmatmul.bf16.gmra.mxu2 %v7340_v57  ;;  %v1446_v3 = vsel %vm6552_vm9, %v1438_v5, %v1445_v42  ;;  %v3607_v1 = vrot.slane %v3605_v31, 5  ;;  %v3613_v52 = vrot.slane %v3611_v49, 5  ;;  %v3616_v27 = vshrl.u32 %v3209_v37, 16 }
 0x1ea   : > { %v2970_v44 = vpop.f32.mrf.mxu3  ;;  %v1428_v61 = vsel %vm6552_vm9, %v5001_v46, %v1427_v10  ;;  %v2610_v58 = vunpack.c.l.b16 %v1446_v3  ;;  %v3619_v48 = vshll.u32 %v3209_v37, 16  ;;  %v3625_v49 = vshll.u32 %v3211_v29, 16 }
 0x1eb   : > { %v7394_v45 = vadd.f32 %v2970_v44, %v2546_v16  ;;  %v7396_v53 = vpop.f32.mrf.mxu0  ;;  %v3631_v16 = vrot.slane %v3629_v6, 4  ;;  %v3608_v23 = vor.u32 %v3607_v1, %v3604_v25  ;;  %v849_v44 = vsel %vm6959_vm13, 0, %v848_v19 }
 0x1ec   : > { %7924 = vst [vmem:[#allocation31_spill] sm:$0xff] %v7396_v53  ;;  %v2548_v57 = vpop.f32.mrf.mxu2  ;;  %v2607_v15 = vunpack.c.l.b16 %v1428_v61  ;;  %v3639_v6 = vshrl.u32 %v3211_v29, 16  ;;  %v7407_v10 = vpack.c.b16 %v4122_v41, %v4119_v33  ;;  %v3621_v46 = vrot.slane %v3619_v48, 5  ;;  %v7926_v33 = vld [vmem:[#allocation6_spill] sm:$0xff] }
 0x1ed   : > { %7923 = vst [vmem:[#allocation5_spill] sm:$0xff] %v7394_v45  ;;  %v2549_v22 = vadd.f32 %v2548_v57, %v2460_v60  ;;  %v3632_v42 = vor.u32 %v3631_v16, %v3613_v52  ;;  %v3637_v60 = vrot.slane %v3635_v28, 5  ;;  %v3609_v31 = vrot.slane %v3608_v23, 4  ;;  %v851_v28 = vld [vmem:[#allocation2 + $0x1a4] sm:$0x11] }
 0x1ee   : > { %4634 = vmatmul.bf16.gmra.mxu0 %v4198_v8  ;;  %850 = vst [vmem:[#allocation2 + $0x17c] sm:$0x1] %v849_v44  ;;  %v3618_v57 = vrot.slane %v3616_v27, 4  ;;  %v3627_v8 = vrot.slane %v3625_v49, 5  ;;  %v3641_v3 = vrot.slane %v3639_v6, 4  ;;  %v752_v1 = vsel %vm6504_vm4, 0, %v751_v7 }
 0x1ef   : > { %4540 = vmatmul.bf16.gmra.mxu3 %v7362_v54  ;;  %v2464_v5 = vpop.f32.mrf.mxu1  ;;  %v3633_v25 = vrot.slane %v3632_v42, 4  ;;  %v7412_v54 = vsel %vm7015_vm2, %v3609_v31, %v3613_v52  ;;  %v2462_v41 = vadd.f32 %v7386_v32, %v7926_v33  ;;  %v7927_v16 = vld [vmem:[#allocation7_spill] sm:$0xff]  ;;  %753 = vst [vmem:[#allocation2 + $0x188] sm:$0x8] %v752_v1  ;;  %v1048_v52 = vld [vmem:[#allocation2 + $0x194] sm:$0xf]  ;;  %v7427_v42 = vpack.c.b16 %v2610_v58, %v2607_v15 }
 0x1f0   : > { %v2465_v29 = vadd.f32 %v2464_v5, %v7927_v16  ;;  %v1050_v23 = vld [vmem:[#allocation2 + $0x1a0] sm:$0xf]  ;;  %v3622_v7 = vor.u32 %v3621_v46, %v3618_v57  ;;  %v3642_v27 = vor.u32 %v3641_v3, %v3627_v8  ;;  %v1466_v32 = vshrl.u32 %v1048_v52, 16  ;;  %v3214_v49 = vld [vmem:[#allocation2 + $0x18c] sm:$0xff]  ;;  %v3216_v33 = vld [vmem:[#allocation2 + $0x198] sm:$0xff] }
 0x1f1   : > { %v1484_v31 = vshrl.u32 %v1050_v23, 16  ;;  %v852_v5 = vsel %vm6982_vm15, 0, %v851_v28  ;;  %v4125_v6 = vunpack.c.h.b16 %v7412_v54  ;;  %v1469_v46 = vshll.u32 %v1048_v52, 16 }
 0x1f2   : > { %v2973_v19 = vpop.f32.mrf.mxu3  ;;  %3115 = vmatmul.bf16.gmra.mxu1 %v7381_v50  ;;  %v7425_v50 = vsel %vm7015_vm2, %v3633_v25, %v3637_v60  ;;  %v3643_v1 = vrot.slane %v3642_v27, 4  ;;  %853 = vst [vmem:[#allocation2 + $0x1a4] sm:$0x11] %v852_v5  ;;  %v1468_v57 = vrot.slane %v1466_v32, 7  ;;  %v1487_v16 = vshll.u32 %v1050_v23, 16 }
 0x1f3   : > { %v7416_v37 = vadd.f32 %v2973_v19, %v2549_v22  ;;  %v7421_v61 = vpop.f32.mrf.mxu0  ;;  %v4124_v22 = vunpack.c.l.b16 %v7412_v54  ;;  %v4127_v60 = vunpack.c.l.b16 %v7425_v50  ;;  %v3623_v19 = vrot.slane %v3622_v7, 4 }
 0x1f4   : > { %7928 = vst [vmem:[#allocation6_spill] sm:$0xff] %v7421_v61  ;;  %v2550_v44 = vpop.f32.mrf.mxu2  ;;  %v1486_v3 = vrot.slane %v1484_v31, 7  ;;  %v1471_v27 = vor.u32 %v1469_v46, %v1468_v57  ;;  %v1482_v5 = vrot.slane %v1468_v57, 4  ;;  %v3653_v52 = vshll.u32 %v3214_v49, 16 }
 0x1f5   : > { %7925 = vst [vmem:[#allocation32_spill] sm:$0xff] %v7416_v37  ;;  %v2551_v48 = vadd.f32 %v2550_v44, %v2462_v41  ;;  %v3213_v25 = vld [vmem:[#allocation2 + $0x17c] sm:$0x1]  ;;  %v4128_v41 = vunpack.c.h.b16 %v7425_v50  ;;  %v3628_v28 = vsel %vm7015_vm2, %v3623_v19, %v3627_v8  ;;  %v3650_v44 = vshrl.u32 %v3214_v49, 16 }
 0x1f6   : > { %v3645_v15 = vshll.u32 %v3213_v25, 16  ;;  %v4126_v7 = vunpack.c.l.b16 %v3628_v28  ;;  %v1046_v53 = vld [vmem:[#allocation2 + $0x188] sm:$0x8]  ;;  %v1489_v25 = vor.u32 %v1487_v16, %v1486_v3  ;;  %v3659_v31 = vshll.u32 %v3216_v33, 16  ;;  %v3215_v3 = vld [vmem:[#allocation2 + $0x194] sm:$0xf] }
 0x1f7   : > { %v7434_v58 = vpop.f32.mrf.mxu1  ;;  %v3652_v32 = vrot.slane %v3650_v44, 4  ;;  %v1461_v23 = vshrl.u32 %v1046_v53, 16  ;;  %v3677_v19 = vshrl.u32 %v3216_v33, 16  ;;  %v7446_v28 = vpack.c.b16 %v4127_v60, %v4124_v22  ;;  %v3217_v33 = vld [vmem:[#allocation2 + $0x1a0] sm:$0xf] }
 0x1f8   : > { %v3647_v54 = vrot.slane %v3645_v15, 5  ;;  %v3655_v46 = vrot.slane %v3653_v52, 5  ;;  %v3661_v45 = vrot.slane %v3659_v31, 5  ;;  %v3667_v52 = vshll.u32 %v3215_v3, 16 }
 0x1f9   : > { %4456 = vmatmul.bf16.gmra.mxu2 %v7400_v56  ;;  %v854_v56 = vld [vmem:[#allocation2 + $0x1ac] sm:$0x1]  ;;  %v5003_v49 = vrot.slane %v1461_v23, 11  ;;  %v3679_v44 = vrot.slane %v3677_v19, 4 }
 0x1fa   : > { %v2975_v61 = vpop.f32.mrf.mxu3  ;;  %v3648_v8 = vsel %vm7015_vm2, %v3643_v1, %v3647_v54  ;;  %v855_v53 = vsel %vm6959_vm13, 0, %v854_v56  ;;  %v3664_v54 = vshrl.u32 %v3215_v3, 16  ;;  %v3669_v19 = vrot.slane %v3667_v52, 5 }
 0x1fb   : > { %v7440_v37 = vadd.f32 %v2975_v61, %v2551_v48  ;;  %v7442_v50 = vpop.f32.mrf.mxu0  ;;  %v4129_v57 = vunpack.c.l.b16 %v3648_v8  ;;  %v1490_v61 = vsel %vm6552_vm9, %v1482_v5, %v1489_v25  ;;  %v3218_v48 = vld [vmem:[#allocation2 + $0x1a4] sm:$0x11]  ;;  %v1472_v60 = vsel %vm6552_vm9, %v5003_v49, %v1471_v27  ;;  %856 = vst [vmem:[#allocation2 + $0x1ac] sm:$0x1] %v855_v53  ;;  %v757_v5 = vld [vmem:[#allocation2 + $0x1b8] sm:$0x8] }
 0x1fc   : > { %7930 = vst [vmem:[#allocation33_spill] sm:$0xff] %v7442_v50  ;;  %v2553_v15 = vpop.f32.mrf.mxu2  ;;  %v3683_v1 = vshll.u32 %v3218_v48, 16  ;;  %v7455_v25 = vpack.c.b16 %v4128_v41, %v4125_v6  ;;  %v3666_v23 = vrot.slane %v3664_v54, 4  ;;  %v3673_v56 = vshll.u32 %v3217_v33, 16 }
 0x1fd   : > { %7929 = vst [vmem:[#allocation7_spill] sm:$0xff] %v7440_v37  ;;  %v2554_v16 = vadd.f32 %v2553_v15, %v2465_v29  ;;  %v4201_v50 = vpack.c.b16 %v4129_v57, %v4126_v7  ;;  %v3656_v37 = vor.u32 %v3655_v46, %v3652_v32  ;;  %v3680_v29 = vor.u32 %v3679_v44, %v3661_v45  ;;  %v7933_v46 = vld [vmem:[#allocation9_spill] sm:$0xff] }
 0x1fe   : > { %v2616_v7 = vunpack.c.l.b16 %v1490_v61  ;;  %v3685_v31 = vrot.slane %v3683_v1, 5  ;;  %v2613_v15 = vunpack.c.l.b16 %v1472_v60  ;;  %v3687_v57 = vshrl.u32 %v3217_v33, 16  ;;  %v1056_v61 = vld [vmem:[#allocation2 + $0x1d0] sm:$0xf] }
 0x1ff   : > { %4545 = vmatmul.bf16.gmra.mxu3 %v7407_v10  ;;  %v2469_v22 = vpop.f32.mrf.mxu1  ;;  %4639 = vmatmul.bf16.gmra.mxu0 %v4201_v50  ;;  %v3657_v32 = vrot.slane %v3656_v37, 4  ;;  %v3681_v8 = vrot.slane %v3680_v29, 4  ;;  %v758_v6 = vsel %vm6504_vm4, 0, %v757_v5  ;;  %v7932_v37 = vld [vmem:[#allocation8_spill] sm:$0xff]  ;;  %v3670_v1 = vor.u32 %v3669_v19, %v3666_v23  ;;  %v857_v29 = vld [vmem:[#allocation2 + $0x1d4] sm:$0x11] }
 0x200   : > { %v2467_v50 = vadd.f32 %v7434_v58, %v7932_v37  ;;  %v2470_v3 = vadd.f32 %v2469_v22, %v7933_v46  ;;  %759 = vst [vmem:[#allocation2 + $0x1b8] sm:$0x8] %v758_v6  ;;  %v3675_v53 = vrot.slane %v3673_v56, 5  ;;  %v3689_v58 = vrot.slane %v3687_v57, 4  ;;  %v3220_v23 = vld [vmem:[#allocation2 + $0x1bc] sm:$0xff] }
 0x201   : > { %v7460_v27 = vsel %vm7015_vm2, %v3657_v32, %v3661_v45  ;;  %v1054_v45 = vld [vmem:[#allocation2 + $0x1c4] sm:$0xf]  ;;  %v1528_v22 = vshrl.u32 %v1056_v61, 16  ;;  %v7477_v54 = vpack.c.b16 %v2616_v7, %v2613_v15  ;;  %v1531_v57 = vshll.u32 %v1056_v61, 16  ;;  %v3222_v15 = vld [vmem:[#allocation2 + $0x1c8] sm:$0xff] }
 0x202   : > { %v2978_v10 = vpop.f32.mrf.mxu3  ;;  %3120 = vmatmul.bf16.gmra.mxu1 %v7427_v42  ;;  %v7473_v42 = vsel %vm7015_vm2, %v3681_v8, %v3685_v31  ;;  %v4130_v44 = vunpack.c.l.b16 %v7460_v27  ;;  %v1510_v60 = vshrl.u32 %v1054_v45, 16  ;;  %v4131_v52 = vunpack.c.h.b16 %v7460_v27  ;;  %v3219_v32 = vld [vmem:[#allocation2 + $0x1ac] sm:$0x1] }
 0x203   : > { %v7464_v41 = vadd.f32 %v2978_v10, %v2554_v16  ;;  %v7469_v49 = vpop.f32.mrf.mxu0  ;;  %v4133_v16 = vunpack.c.l.b16 %v7473_v42  ;;  %v4134_v5 = vunpack.c.h.b16 %v7473_v42  ;;  %v3671_v31 = vrot.slane %v3670_v1, 4 }
 0x204   : > { %7934 = vst [vmem:[#allocation8_spill] sm:$0xff] %v7469_v49  ;;  %v2555_v48 = vpop.f32.mrf.mxu2  ;;  %v3690_v10 = vor.u32 %v3689_v58, %v3675_v53  ;;  %v3693_v6 = vshll.u32 %v3219_v32, 16  ;;  %v1512_v37 = vrot.slane %v1510_v60, 7  ;;  %v1530_v46 = vrot.slane %v1528_v22, 7  ;;  %v3221_v49 = vld [vmem:[#allocation2 + $0x1c4] sm:$0xf] }
 0x205   : > { %7931 = vst [vmem:[#allocation34_spill] sm:$0xff] %v7464_v41  ;;  %v2556_v33 = vadd.f32 %v2555_v48, %v2467_v50  ;;  %v3676_v19 = vsel %vm7015_vm2, %v3671_v31, %v3675_v53  ;;  %v1513_v56 = vshll.u32 %v1054_v45, 16  ;;  %v858_v7 = vsel %vm6982_vm15, 0, %v857_v29  ;;  %v3223_v41 = vld [vmem:[#allocation2 + $0x1d0] sm:$0xf] }
 0x206   : > { %v7486_v27 = vpack.c.b16 %v4133_v16, %v4130_v44  ;;  %v3691_v50 = vrot.slane %v3690_v10, 4  ;;  %v3695_v42 = vrot.slane %v3693_v6, 5  ;;  %v4132_v48 = vunpack.c.l.b16 %v3676_v19  ;;  %859 = vst [vmem:[#allocation2 + $0x1d4] sm:$0x11] %v858_v7  ;;  %v860_v16 = vld [vmem:[#allocation2 + $0x1dc] sm:$0x1] }
 0x207   : > { %v2471_v8 = vpop.f32.mrf.mxu1  ;;  %v1052_v58 = vld [vmem:[#allocation2 + $0x1b8] sm:$0x8]  ;;  %v1526_v60 = vrot.slane %v1512_v37, 4  ;;  %v1533_v22 = vor.u32 %v1531_v57, %v1530_v46  ;;  %v3698_v32 = vshrl.u32 %v3220_v23, 16  ;;  %v3701_v53 = vshll.u32 %v3220_v23, 16 }
 0x208   : > { %v3696_v29 = vsel %vm7015_vm2, %v3691_v50, %v3695_v42  ;;  %v3707_v44 = vshll.u32 %v3222_v15, 16  ;;  %v1515_v6 = vor.u32 %v1513_v56, %v1512_v37  ;;  %v3725_v51 = vshrl.u32 %v3222_v15, 16 }
 0x209   : > { %4461 = vmatmul.bf16.gmra.mxu2 %v7446_v28  ;;  %v1505_v28 = vshrl.u32 %v1052_v58, 16  ;;  %v4135_v10 = vunpack.c.l.b16 %v3696_v29  ;;  %v3700_v19 = vrot.slane %v3698_v32, 4  ;;  %v3703_v7 = vrot.slane %v3701_v53, 5  ;;  %v7936_v32 = vld [vmem:[#allocation10_spill] sm:$0xff] }
 0x20a   : > { %v2980_v1 = vpop.f32.mrf.mxu3  ;;  %v3709_v23 = vrot.slane %v3707_v44, 5  ;;  %v861_v50 = vsel %vm6959_vm13, 0, %v860_v16  ;;  %v7499_v37 = vpack.c.b16 %v4134_v5, %v4131_v52  ;;  %v3712_v56 = vshrl.u32 %v3221_v49, 16  ;;  %v763_v16 = vld [vmem:[#allocation2 + $0x1e8] sm:$0x8]  ;;  %v7937_v5 = vld [vmem:[#allocation11_spill] sm:$0xff] }
 0x20b   : > { %v7488_v45 = vadd.f32 %v2980_v1, %v2556_v33  ;;  %v7490_v61 = vpop.f32.mrf.mxu0  ;;  %v5005_v57 = vrot.slane %v1505_v28, 11  ;;  %v1534_v33 = vsel %vm6552_vm9, %v1526_v60, %v1533_v22  ;;  %v4204_v1 = vpack.c.b16 %v4135_v10, %v4132_v48  ;;  %862 = vst [vmem:[#allocation2 + $0x1dc] sm:$0x1] %v861_v50 }
 0x20c   : > { %v2558_v31 = vpop.f32.mrf.mxu2  ;;  %v3715_v58 = vshll.u32 %v3221_v49, 16  ;;  %v2472_v53 = vadd.f32 %v2471_v8, %v7936_v32  ;;  %v3727_v22 = vrot.slane %v3725_v51, 4  ;;  %v2622_v29 = vunpack.c.l.b16 %v1534_v33  ;;  %v1060_v33 = vld [vmem:[#allocation2 + $0x1f4] sm:$0xf] }
 0x20d   : > { %7935 = vst [vmem:[#allocation9_spill] sm:$0xff] %v7488_v45  ;;  %v2559_v46 = vadd.f32 %v2558_v31, %v2470_v3  ;;  %v3704_v45 = vor.u32 %v3703_v7, %v3700_v19  ;;  %v3721_v3 = vshll.u32 %v3223_v41, 16  ;;  %v1516_v48 = vsel %vm6552_vm9, %v5005_v57, %v1515_v6  ;;  %v3224_v60 = vld [vmem:[#allocation2 + $0x1d4] sm:$0x11]  ;;  %v863_v19 = vld [vmem:[#allocation2 + $0x204] sm:$0x11] }
 0x20e   : > { %v3731_v28 = vshll.u32 %v3224_v60, 16  ;;  %v3714_v44 = vrot.slane %v3712_v56, 4  ;;  %v3728_v49 = vor.u32 %v3727_v22, %v3709_v23  ;;  %v3735_v10 = vshrl.u32 %v3223_v41, 16 }
 0x20f   : > { %4550 = vmatmul.bf16.gmra.mxu3 %v7455_v25  ;;  %v3086_v42 = vpop.f32.mrf.mxu1  ;;  %4644 = vmatmul.bf16.gmra.mxu0 %v4204_v1  ;;  %v3705_v15 = vrot.slane %v3704_v45, 4  ;;  %v3717_v25 = vrot.slane %v3715_v58, 5  ;;  %v3723_v8 = vrot.slane %v3721_v3, 5  ;;  %v2619_v51 = vunpack.c.l.b16 %v1516_v48  ;;  %v1062_v1 = vld [vmem:[#allocation2 + $0x200] sm:$0xf] }
 0x210   : > { %v7505_v31 = vadd.f32 %v3086_v42, %v7937_v5  ;;  %v3733_v57 = vrot.slane %v3731_v28, 5  ;;  %v3729_v42 = vrot.slane %v3728_v49, 4  ;;  %v764_v41 = vsel %vm6504_vm4, 0, %v763_v16 }
 0x211   : > { %v7514_v45 = vsel %vm7015_vm2, %v3705_v15, %v3709_v23  ;;  %v3718_v56 = vor.u32 %v3717_v25, %v3714_v44  ;;  %765 = vst [vmem:[#allocation2 + $0x1e8] sm:$0x8] %v764_v41  ;;  %v1572_v3 = vshrl.u32 %v1062_v1, 16  ;;  %v864_v32 = vsel %vm6982_vm15, 0, %v863_v19 }
 0x212   : > { %v2983_v52 = vpop.f32.mrf.mxu3  ;;  %3125 = vmatmul.bf16.gmra.mxu1 %v7477_v54  ;;  %v3737_v54 = vrot.slane %v3735_v10, 4  ;;  %v7522_v23 = vsel %vm7015_vm2, %v3729_v42, %v3733_v57  ;;  %v3225_v48 = vld [vmem:[#allocation2 + $0x1dc] sm:$0x1]  ;;  %v1557_v22 = vshll.u32 %v1060_v33, 16  ;;  %865 = vst [vmem:[#allocation2 + $0x204] sm:$0x11] %v864_v32  ;;  %v2688_v44 = vpack.c.b16 %v2622_v29, %v2619_v51 }
 0x213   : > { %v7508_v7 = vadd.f32 %v2983_v52, %v2559_v46  ;;  %v7510_v6 = vpop.f32.mrf.mxu0  ;;  %v1554_v46 = vshrl.u32 %v1060_v33, 16  ;;  %v3719_v60 = vrot.slane %v3718_v56, 4  ;;  %v4136_v25 = vunpack.c.l.b16 %v7514_v45  ;;  %v3226_v52 = vld [vmem:[#allocation2 + $0x1ec] sm:$0xff]  ;;  %v3228_v57 = vld [vmem:[#allocation2 + $0x1f8] sm:$0xff] }
 0x214   : > { %v2560_v50 = vpop.f32.mrf.mxu2  ;;  %v3738_v15 = vor.u32 %v3737_v54, %v3723_v8  ;;  %v1574_v19 = vrot.slane %v1572_v3, 7  ;;  %v4139_v33 = vunpack.c.l.b16 %v7522_v23  ;;  %v1575_v41 = vshll.u32 %v1062_v1, 16  ;;  %v866_v32 = vld [vmem:[#allocation2 + $0x20c] sm:$0x1] }
 0x215   : > { %7938 = vst [vmem:[#allocation10_spill] sm:$0xff] %v7508_v7  ;;  %v2561_v58 = vadd.f32 %v2560_v50, %v2472_v53  ;;  %v3741_v53 = vshll.u32 %v3225_v48, 16  ;;  %v1556_v16 = vrot.slane %v1554_v46, 7  ;;  %v3724_v49 = vsel %vm7015_vm2, %v3719_v60, %v3723_v8 }
 0x216   : > { %v3739_v10 = vrot.slane %v3738_v15, 4  ;;  %v4140_v50 = vunpack.c.h.b16 %v7522_v23  ;;  %v4138_v51 = vunpack.c.l.b16 %v3724_v49  ;;  %v3746_v46 = vshrl.u32 %v3226_v52, 16 }
 0x217   : > { %v3088_v28 = vpop.f32.mrf.mxu1  ;;  %v3743_v29 = vrot.slane %v3741_v53, 5  ;;  %v1559_v56 = vor.u32 %v1557_v22, %v1556_v16  ;;  %v1570_v54 = vrot.slane %v1556_v16, 4  ;;  %v3755_v60 = vshll.u32 %v3228_v57, 16  ;;  %v3227_v22 = vld [vmem:[#allocation2 + $0x1f4] sm:$0xf] }
 0x218   : > { %v1058_v23 = vld [vmem:[#allocation2 + $0x1e8] sm:$0x8]  ;;  %v1577_v53 = vor.u32 %v1575_v41, %v1574_v19  ;;  %v3748_v49 = vrot.slane %v3746_v46, 4  ;;  %v3773_v7 = vshrl.u32 %v3228_v57, 16 }
 0x219   : > { %4466 = vmatmul.bf16.gmra.mxu2 %v7486_v27  ;;  %v3744_v3 = vsel %vm7015_vm2, %v3739_v10, %v3743_v29  ;;  %v3749_v27 = vshll.u32 %v3226_v52, 16  ;;  %v1549_v16 = vshrl.u32 %v1058_v23, 16  ;;  %v3230_v1 = vld [vmem:[#allocation2 + $0x204] sm:$0x11]  ;;  %v3757_v55 = vrot.slane %v3755_v60, 5 }
 0x21a   : > { %v2985_v42 = vpop.f32.mrf.mxu3  ;;  %v4141_v5 = vunpack.c.l.b16 %v3744_v3  ;;  %v3775_v52 = vrot.slane %v3773_v7, 4  ;;  %v3779_v29 = vshll.u32 %v3230_v1, 16  ;;  %v3229_v3 = vld [vmem:[#allocation2 + $0x200] sm:$0xf]  ;;  %v1578_v41 = vsel %vm6552_vm9, %v1570_v54, %v1577_v53 }
 0x21b   : > { %v7531_v48 = vadd.f32 %v2985_v42, %v2561_v58  ;;  %v7533_v8 = vpop.f32.mrf.mxu0  ;;  %v3751_v47 = vrot.slane %v3749_v27, 5  ;;  %v867_v58 = vsel %vm6959_vm13, 0, %v866_v32  ;;  %v7940_v42 = vld [vmem:[#allocation12_spill] sm:$0xff]  ;;  %v5007_v57 = vrot.slane %v1549_v16, 11 }
 0x21c   : > { %v4427_v15 = vpop.f32.mrf.mxu2  ;;  %v4207_v10 = vpack.c.b16 %v4141_v5, %v4138_v51  ;;  %868 = vst [vmem:[#allocation2 + $0x20c] sm:$0x1] %v867_v58  ;;  %v3760_v27 = vshrl.u32 %v3227_v22, 16  ;;  %v4205_v60 = vpack.c.b16 %v4139_v33, %v4136_v25  ;;  %v3776_v32 = vor.u32 %v3775_v52, %v3757_v55 }
 0x21d   : > { %7939 = vst [vmem:[#allocation11_spill] sm:$0xff] %v7531_v48  ;;  %v7540_v48 = vadd.f32 %v3088_v28, %v7940_v42  ;;  %v3752_v46 = vor.u32 %v3751_v47, %v3748_v49  ;;  %v3781_v23 = vrot.slane %v3779_v29, 5  ;;  %v3763_v28 = vshll.u32 %v3227_v22, 16  ;;  %v769_v42 = vld [vmem:[#allocation2 + $0x218] sm:$0x8] }
 0x21e   : > { %v1560_v7 = vsel %vm6552_vm9, %v5007_v57, %v1559_v56  ;;  %v3762_v51 = vrot.slane %v3760_v27, 4  ;;  %v3769_v1 = vshll.u32 %v3229_v3, 16  ;;  %v2628_v16 = vunpack.c.l.b16 %v1578_v41  ;;  %v1066_v56 = vld [vmem:[#allocation2 + $0x224] sm:$0xf] }
 0x21f   : > { %4555 = vmatmul.bf16.gmra.mxu3 %v7499_v37  ;;  %v3091_v19 = vpop.f32.mrf.mxu1  ;;  %4649 = vmatmul.bf16.gmra.mxu0 %v4207_v10  ;;  %v3753_v5 = vrot.slane %v3752_v46, 4  ;;  %v3777_v58 = vrot.slane %v3776_v32, 4  ;;  %v3765_v63 = vrot.slane %v3763_v28, 5  ;;  %v3783_v54 = vshrl.u32 %v3229_v3, 16  ;;  %v7941_v10 = vld [vmem:[#allocation13_spill] sm:$0xff] }
 0x220   : > { %v2625_v25 = vunpack.c.l.b16 %v1560_v7  ;;  %v770_v49 = vsel %vm6504_vm4, 0, %v769_v42  ;;  %v7554_v52 = vadd.f32 %v3091_v19, %v7941_v10  ;;  %v3771_v3 = vrot.slane %v3769_v1, 5  ;;  %v1068_v42 = vld [vmem:[#allocation2 + $0x230] sm:$0xf] }
 0x221   : > { %v3758_v33 = vsel %vm7015_vm2, %v3753_v5, %v3757_v55  ;;  %771 = vst [vmem:[#allocation2 + $0x218] sm:$0x8] %v770_v49  ;;  %v3766_v27 = vor.u32 %v3765_v63, %v3762_v51  ;;  %v3785_v32 = vrot.slane %v3783_v54, 4  ;;  %v1598_v7 = vshrl.u32 %v1066_v56, 16  ;;  %v3232_v49 = vld [vmem:[#allocation2 + $0x21c] sm:$0xff] }
 0x222   : > { %v4516_v37 = vpop.f32.mrf.mxu3  ;;  %3130 = vmatmul.bf16.gmra.mxu1 %v2688_v44  ;;  %v7942_v44 = vunpack.c.h.b16 %v7514_v45  ;;  %v4142_v41 = vunpack.c.l.b16 %v3758_v33  ;;  %v1601_v19 = vshll.u32 %v1066_v56, 16  ;;  %v4143_v45 = vunpack.c.h.b16 %v3758_v33 }
 0x223   : > { %v4517_v47 = vadd.f32 %v4516_v37, %v4427_v15  ;;  %v7547_v53 = vpop.f32.mrf.mxu0  ;;  %v3782_v15 = vsel %vm7015_vm2, %v3777_v58, %v3781_v23  ;;  %v3231_v46 = vld [vmem:[#allocation2 + $0x20c] sm:$0x1]  ;;  %v2691_v37 = vpack.c.b16 %v2628_v16, %v2625_v25  ;;  %v3767_v10 = vrot.slane %v3766_v27, 4 }
 0x224   : > { %v4429_v22 = vpop.f32.mrf.mxu2  ;;  %v4206_v29 = vpack.c.b16 %v4140_v50, %v7942_v44  ;;  %v4145_v55 = vunpack.c.l.b16 %v3782_v15  ;;  %v3789_v28 = vshll.u32 %v3231_v46, 16  ;;  %v4146_v50 = vunpack.c.h.b16 %v3782_v15  ;;  %v3234_v16 = vld [vmem:[#allocation2 + $0x228] sm:$0xff] }
 0x225   : > { %v4606_v57 = vadd.f32 %v7490_v61, %v4517_v47  ;;  %v3786_v1 = vor.u32 %v3785_v32, %v3771_v3  ;;  %v1600_v61 = vrot.slane %v1598_v7, 7  ;;  %v869_v47 = vld [vmem:[#allocation2 + $0x234] sm:$0x11]  ;;  %v3772_v51 = vsel %vm7015_vm2, %v3767_v10, %v3771_v3 }
 0x226   : > { %v3791_v58 = vrot.slane %v3789_v28, 5  ;;  %v7564_v63 = vpack.c.b16 %v4145_v55, %v4142_v41  ;;  %v1616_v54 = vshrl.u32 %v1068_v42, 16  ;;  %v1619_v56 = vshll.u32 %v1068_v42, 16 }
 0x227   : > { %v3093_v5 = vpop.f32.mrf.mxu1  ;;  %v7562_v23 = vadd.f32 %v4606_v57, %v7505_v31  ;;  %v3787_v33 = vrot.slane %v3786_v1, 4  ;;  %v4144_v44 = vunpack.c.l.b16 %v3772_v51  ;;  %v1603_v15 = vor.u32 %v1601_v19, %v1600_v61  ;;  %v872_v57 = vld [vmem:[#allocation2 + $0x23c] sm:$0x1] }
 0x228   : > { %v1614_v31 = vrot.slane %v1600_v61, 4  ;;  %v1064_v32 = vld [vmem:[#allocation2 + $0x218] sm:$0x8]  ;;  %v1618_v28 = vrot.slane %v1616_v54, 7  ;;  %v3794_v41 = vshrl.u32 %v3232_v49, 16  ;;  %v3797_v7 = vshll.u32 %v3232_v49, 16 }
 0x229   : > { %4471 = vmatmul.bf16.gmra.mxu2 %v4205_v60  ;;  %v870_v60 = vsel %vm6982_vm15, 0, %v869_v47  ;;  %v3792_v3 = vsel %vm7015_vm2, %v3787_v33, %v3791_v58  ;;  %v1593_v42 = vshrl.u32 %v1064_v32, 16  ;;  %v3803_v10 = vshll.u32 %v3234_v16, 16 }
 0x22a   : > { %v4518_v25 = vpop.f32.mrf.mxu3  ;;  %871 = vst [vmem:[#allocation2 + $0x234] sm:$0x11] %v870_v60  ;;  %v1621_v1 = vor.u32 %v1619_v56, %v1618_v28  ;;  %v3796_v61 = vrot.slane %v3794_v41, 4  ;;  %v7575_v51 = vpack.c.b16 %v4146_v50, %v4143_v45  ;;  %v3821_v47 = vshrl.u32 %v3234_v16, 16 }
 0x22b   : > { %v4519_v46 = vadd.f32 %v4518_v25, %v4429_v22  ;;  %v7568_v27 = vpop.f32.mrf.mxu0  ;;  %v4147_v22 = vunpack.c.l.b16 %v3792_v3  ;;  %v5009_v54 = vrot.slane %v1593_v42, 11  ;;  %v3799_v25 = vrot.slane %v3797_v7, 5 }
 0x22c   : > { %v4432_v55 = vpop.f32.mrf.mxu2  ;;  %v7579_v58 = vadd.f32 %v3093_v5, %v7943_v13  ;;  %v4818_v56 = vmul.f32 %v7562_v23, %v7562_v23  ;;  %v3235_v5 = vld [vmem:[#allocation2 + $0x230] sm:$0xf]  ;;  %v3823_v28 = vrot.slane %v3821_v47, 4 }
 0x22d   : > { %v4608_v19 = vadd.f32 %v7510_v6, %v4519_v46  ;;  %v4210_v49 = vpack.c.b16 %v4147_v22, %v4144_v44  ;;  %v873_v6 = vsel %vm6959_vm13, 0, %v872_v57  ;;  %v3233_v46 = vld [vmem:[#allocation2 + $0x224] sm:$0xf]  ;;  %v3800_v13 = vor.u32 %v3799_v25, %v3796_v61 }
 0x22e   : > { %874 = vst [vmem:[#allocation2 + $0x23c] sm:$0x1] %v873_v6  ;;  %v1604_v44 = vsel %vm6552_vm9, %v5009_v54, %v1603_v15  ;;  %v3808_v60 = vshrl.u32 %v3233_v46, 16  ;;  %v775_v15 = vld [vmem:[#allocation2 + $0x248] sm:$0x8]  ;;  %v7944_v25 = vld [vmem:[#allocation15_spill] sm:$0xff] }
 0x22f   : > { %v4686_v39 = vadd.f32 %v4608_v19, %v7540_v48  ;;  %4560 = vmatmul.bf16.gmra.mxu3 %v4206_v29  ;;  %v3096_v33 = vpop.f32.mrf.mxu1  ;;  %v1622_v48 = vsel %vm6552_vm9, %v1614_v31, %v1621_v1  ;;  %v3805_v29 = vrot.slane %v3803_v10, 5  ;;  %4654 = vmatmul.bf16.gmra.mxu0 %v4210_v49  ;;  %v3801_v32 = vrot.slane %v3800_v13, 4  ;;  %v1072_v54 = vld [vmem:[#allocation2 + $0x254] sm:$0xf] }
 0x230   : > { %v3811_v31 = vshll.u32 %v3233_v46, 16  ;;  %v2634_v7 = vunpack.c.l.b16 %v1622_v48  ;;  %v3817_v19 = vshll.u32 %v3235_v5, 16  ;;  %v3810_v61 = vrot.slane %v3808_v60, 4 }
 0x231   : > { %v5785_v45 = vpack.c.bf16 %v4686_v39, %v7562_v23  ;;  %v4781_v50 = vadd.f32 %v4686_v39, %v7562_v23  ;;  %v4819_v16 = vmul.f32 %v4686_v39, %v4686_v39  ;;  %v3236_v10 = vld [vmem:[#allocation2 + $0x234] sm:$0x11]  ;;  %v2631_v39 = vunpack.c.l.b16 %v1604_v44 }
 0x232   : > { %v4521_v57 = vpop.f32.mrf.mxu3  ;;  %3135 = vmatmul.bf16.gmra.mxu1 %v2691_v37  ;;  %v3824_v22 = vor.u32 %v3823_v28, %v3805_v29  ;;  %v3827_v1 = vshll.u32 %v3236_v10, 16  ;;  %v7603_v47 = vadd.f32 %v3096_v33, %v7944_v25  ;;  %v3813_v49 = vrot.slane %v3811_v31, 5  ;;  %v875_v25 = vld [vmem:[#allocation2 + $0x264] sm:$0x11] }
 0x233   : > { %5786 = vst [vmem:[%s7590_s29] sm:$0xff] %v5785_v45   ;;  %v4850_v41 = vadd.f32 %v4819_v16, %v4818_v56  ;;  %v4522_v3 = vadd.f32 %v4521_v57, %v4432_v55  ;;  %v7599_v42 = vpop.f32.mrf.mxu0  ;;  %v7607_v55 = vsel %vm7015_vm2, %v3801_v32, %v3805_v29  ;;  %v3819_v56 = vrot.slane %v3817_v19, 5 }
 0x234   : > { %v4434_v23 = vpop.f32.mrf.mxu2  ;;  %v3825_v6 = vrot.slane %v3824_v22, 4  ;;  %v3829_v46 = vrot.slane %v3827_v1, 5  ;;  %v3831_v48 = vshrl.u32 %v3235_v5, 16  ;;  %v3814_v44 = vor.u32 %v3813_v49, %v3810_v61  ;;  %v3238_v49 = vld [vmem:[#allocation2 + $0x24c] sm:$0xff] }
 0x235   : > { %v4611_v37 = vadd.f32 %v7533_v8, %v4522_v3  ;;  %v3237_v16 = vld [vmem:[#allocation2 + $0x23c] sm:$0x1]  ;;  %v776_v8 = vsel %vm6504_vm4, 0, %v775_v15  ;;  %v1642_v33 = vshrl.u32 %v1072_v54, 16  ;;  %v2694_v57 = vpack.c.b16 %v2634_v7, %v2631_v39  ;;  %v1074_v39 = vld [vmem:[#allocation2 + $0x260] sm:$0xf] }
 0x236   : > { %v7616_v29 = vsel %vm7015_vm2, %v3825_v6, %v3829_v46  ;;  %v3833_v32 = vrot.slane %v3831_v48, 4  ;;  %v3837_v28 = vshll.u32 %v3237_v16, 16  ;;  %777 = vst [vmem:[#allocation2 + $0x248] sm:$0x8] %v776_v8  ;;  %v4148_v60 = vunpack.c.l.b16 %v7607_v55  ;;  %v7945_v15 = vld [vmem:[#allocation16_spill] sm:$0xff]  ;;  %v3240_v8 = vld [vmem:[#allocation2 + $0x258] sm:$0xff] }
 0x237   : > { %v7610_v13 = vadd.f32 %v4611_v37, %v7554_v52  ;;  %v3098_v45 = vpop.f32.mrf.mxu1  ;;  %v4149_v31 = vunpack.c.h.b16 %v7607_v55  ;;  %v3815_v7 = vrot.slane %v3814_v44, 4  ;;  %v7624_v22 = vrot.slane %v1642_v33, 7 }
 0x238   : > { %v3834_v10 = vor.u32 %v3833_v32, %v3819_v56  ;;  %v3839_v19 = vrot.slane %v3837_v28, 5  ;;  %v4152_v55 = vunpack.c.h.b16 %v7616_v29  ;;  %v1645_v16 = vshll.u32 %v1072_v54, 16 }
 0x239   : > { %v4782_v5 = vadd.f32 %v4781_v50, %v7610_v13  ;;  %v4820_v52 = vmul.f32 %v7610_v13, %v7610_v13  ;;  %4476 = vmatmul.bf16.gmra.mxu2 %v7564_v63  ;;  %v7627_v50 = vadd.f32 %v3098_v45, %v7945_v15  ;;  %v4151_v63 = vunpack.c.l.b16 %v7616_v29  ;;  %v878_v15 = vld [vmem:[#allocation2 + $0x26c] sm:$0x1] }
 0x23a   : > { %v4523_v3 = vpop.f32.mrf.mxu3  ;;  %v3820_v46 = vsel %vm7015_vm2, %v3815_v7, %v3819_v56  ;;  %v3835_v48 = vrot.slane %v3834_v10, 4  ;;  %v1658_v45 = vrot.slane %v7624_v22, 4  ;;  %v1660_v44 = vshrl.u32 %v1074_v39, 16 }
 0x23b   : > { %v4851_v1 = vadd.f32 %v4850_v41, %v4820_v52  ;;  %v4524_v61 = vadd.f32 %v4523_v3, %v4434_v23  ;;  %v7629_v37 = vpop.f32.mrf.mxu0  ;;  %v4150_v23 = vunpack.c.l.b16 %v3820_v46  ;;  %v1663_v32 = vshll.u32 %v1074_v39, 16 }
 0x23c   : > { %v4437_v6 = vpop.f32.mrf.mxu2  ;;  %v3840_v33 = vsel %vm7015_vm2, %v3835_v48, %v3839_v19  ;;  %v876_v28 = vsel %vm6982_vm15, 0, %v875_v25  ;;  %v3842_v29 = vshrl.u32 %v3238_v49, 16  ;;  %v1662_v3 = vrot.slane %v1660_v44, 7 }
 0x23d   : > { %v4613_v41 = vadd.f32 %v7547_v53, %v4524_v61  ;;  %v4153_v56 = vunpack.c.l.b16 %v3840_v33  ;;  %v1070_v53 = vld [vmem:[#allocation2 + $0x248] sm:$0x8]  ;;  %877 = vst [vmem:[#allocation2 + $0x264] sm:$0x11] %v876_v28  ;;  %v3845_v7 = vshll.u32 %v3238_v49, 16  ;;  %v1647_v61 = vor.u32 %v1645_v16, %v7624_v22 }
 0x23e   : > { %v1637_v10 = vshrl.u32 %v1070_v53, 16  ;;  %v3844_v19 = vrot.slane %v3842_v29, 4  ;;  %v3851_v39 = vshll.u32 %v3240_v8, 16  ;;  %v1665_v18 = vor.u32 %v1663_v32, %v1662_v3 }
 0x23f   : > { %v4688_v52 = vadd.f32 %v4613_v41, %v7579_v58  ;;  %4565 = vmatmul.bf16.gmra.mxu3 %v7575_v51  ;;  %v3101_v54 = vpop.f32.mrf.mxu1  ;;  %v4213_v58 = vpack.c.b16 %v4153_v56, %v4150_v23  ;;  %v3239_v41 = vld [vmem:[#allocation2 + $0x254] sm:$0xf]  ;;  %v3847_v44 = vrot.slane %v3845_v7, 5  ;;  %v3869_v16 = vshrl.u32 %v3240_v8, 16 }
 0x240   : > { %v5011_v33 = vrot.slane %v1637_v10, 11  ;;  %v3853_v28 = vrot.slane %v3851_v39, 5  ;;  %v4211_v23 = vpack.c.b16 %v4151_v63, %v4148_v60  ;;  %v3859_v39 = vshll.u32 %v3239_v41, 16 }
 0x241   : > { %v5790_v25 = vpack.c.bf16 %v4688_v52, %v7610_v13  ;;  %v4783_v46 = vadd.f32 %v4782_v5, %v4688_v52  ;;  %v4821_v48 = vmul.f32 %v4688_v52, %v4688_v52  ;;  %4659 = vmatmul.bf16.gmra.mxu0 %v4213_v58  ;;  %v879_v13 = vsel %vm6959_vm13, 0, %v878_v15  ;;  %v3241_v5 = vld [vmem:[#allocation2 + $0x260] sm:$0xf] }
 0x242   : > { %v4526_v51 = vpop.f32.mrf.mxu3  ;;  %3140 = vmatmul.bf16.gmra.mxu1 %v2694_v57  ;;  %v4212_v52 = vpack.c.b16 %v4152_v55, %v4149_v31  ;;  %v3848_v56 = vor.u32 %v3847_v44, %v3844_v19  ;;  %880 = vst [vmem:[#allocation2 + $0x26c] sm:$0x1] %v879_v13  ;;  %v3856_v57 = vshrl.u32 %v3239_v41, 16  ;;  %v3871_v3 = vrot.slane %v3869_v16, 4  ;;  %v7946_v31 = vld [vmem:[#allocation17_spill] sm:$0xff] }
 0x243   : > { %5877 = vst [vmem:[%s7590_s29 + $0x8] sm:$0xff] %v5790_v25   ;;  %v4852_v49 = vadd.f32 %v4851_v1, %v4821_v48  ;;  %v4527_v53 = vadd.f32 %v4526_v51, %v4437_v6  ;;  %v7646_v22 = vpop.f32.mrf.mxu0  ;;  %v1648_v1 = vsel %vm6552_vm9, %v5011_v33, %v1647_v61  ;;  %v1666_v6 = vsel %vm6552_vm9, %v1658_v45, %v1665_v18  ;;  %v781_v48 = vld [vmem:[#allocation2 + $0x278] sm:$0x8]  ;;  %v881_v13 = vld [vmem:[#allocation2 + $0x294] sm:$0x11] }
 0x244   : > { %v4439_v29 = vpop.f32.mrf.mxu2  ;;  %v3242_v8 = vld [vmem:[#allocation2 + $0x264] sm:$0x11]  ;;  %v3849_v7 = vrot.slane %v3848_v56, 4  ;;  %v3858_v10 = vrot.slane %v3856_v57, 4  ;;  %v3865_v15 = vshll.u32 %v3241_v5, 16  ;;  %v7659_v63 = vadd.f32 %v3101_v54, %v7946_v31 }
 0x245   : > { %v4616_v32 = vadd.f32 %v7568_v27, %v4527_v53  ;;  %v3872_v27 = vor.u32 %v3871_v3, %v3853_v28  ;;  %v3875_v19 = vshll.u32 %v3242_v8, 16  ;;  %v2637_v61 = vunpack.c.l.b16 %v1648_v1  ;;  %v884_v56 = vld [vmem:[#allocation2 + $0x29c] sm:$0x1] }
 0x246   : > { %v2640_v25 = vunpack.c.l.b16 %v1666_v6  ;;  %v7665_v18 = vsel %vm7015_vm2, %v3849_v7, %v3853_v28  ;;  %v3861_v45 = vrot.slane %v3859_v39, 5  ;;  %v3867_v53 = vrot.slane %v3865_v15, 5  ;;  %v3244_v39 = vld [vmem:[#allocation2 + $0x27c] sm:$0xff] }
 0x247   : > { %v7656_v60 = vadd.f32 %v4616_v32, %v7603_v47  ;;  %v7661_v55 = vpop.f32.mrf.mxu1  ;;  %v3873_v54 = vrot.slane %v3872_v27, 4  ;;  %v3877_v41 = vrot.slane %v3875_v19, 5  ;;  %v4154_v33 = vunpack.c.l.b16 %v7665_v18 }
 0x248   : > { %v3862_v44 = vor.u32 %v3861_v45, %v3858_v10  ;;  %v3879_v16 = vshrl.u32 %v3241_v5, 16  ;;  %v2697_v3 = vpack.c.b16 %v2640_v25, %v2637_v61  ;;  %v882_v10 = vsel %vm6982_vm15, 0, %v881_v13 }
 0x249   : > { %v4784_v58 = vadd.f32 %v4783_v46, %v7656_v60  ;;  %v4822_v47 = vmul.f32 %v7656_v60, %v7656_v60  ;;  %4481 = vmatmul.bf16.gmra.mxu2 %v4211_v23  ;;  %v7675_v46 = vsel %vm7015_vm2, %v3873_v54, %v3877_v41  ;;  %v3243_v1 = vld [vmem:[#allocation2 + $0x26c] sm:$0x1]  ;;  %v782_v23 = vsel %vm6504_vm4, 0, %v781_v48  ;;  %883 = vst [vmem:[#allocation2 + $0x294] sm:$0x11] %v882_v10 }
 0x24a   : > { %v4528_v51 = vpop.f32.mrf.mxu3  ;;  %v4157_v8 = vunpack.c.l.b16 %v7675_v46  ;;  %v3863_v7 = vrot.slane %v3862_v44, 4  ;;  %v3881_v5 = vrot.slane %v3879_v16, 4  ;;  %783 = vst [vmem:[#allocation2 + $0x278] sm:$0x8] %v782_v23  ;;  %v885_v15 = vsel %vm6959_vm13, 0, %v884_v56 }
 0x24b   : > { %v4853_v28 = vadd.f32 %v4852_v49, %v4822_v47  ;;  %v4529_v57 = vadd.f32 %v4528_v51, %v4439_v29  ;;  %v7671_v32 = vpop.f32.mrf.mxu0  ;;  %v3885_v29 = vshll.u32 %v3243_v1, 16  ;;  %v4155_v31 = vunpack.c.h.b16 %v7665_v18  ;;  %v1078_v47 = vld [vmem:[#allocation2 + $0x284] sm:$0xf]  ;;  %v1080_v54 = vld [vmem:[#allocation2 + $0x290] sm:$0xf] }
 0x24c   : > { %v4442_v6 = vpop.f32.mrf.mxu2  ;;  %v4158_v27 = vunpack.c.h.b16 %v7675_v46  ;;  %v3868_v19 = vsel %vm7015_vm2, %v3863_v7, %v3867_v53  ;;  %v3882_v61 = vor.u32 %v3881_v5, %v3867_v53  ;;  %v4214_v45 = vpack.c.b16 %v4157_v8, %v4154_v33  ;;  %886 = vst [vmem:[#allocation2 + $0x29c] sm:$0x1] %v885_v15  ;;  %v3246_v7 = vld [vmem:[#allocation2 + $0x288] sm:$0xff] }
 0x24d   : > { %v4618_v49 = vadd.f32 %v7599_v42, %v4529_v57  ;;  %v3887_v48 = vrot.slane %v3885_v29, 5  ;;  %v3890_v41 = vshrl.u32 %v3244_v39, 16  ;;  %v4156_v44 = vunpack.c.l.b16 %v3868_v19 }
 0x24e   : > { %v3883_v51 = vrot.slane %v3882_v61, 4  ;;  %v1686_v16 = vshrl.u32 %v1078_v47, 16  ;;  %v1704_v13 = vshrl.u32 %v1080_v54, 16  ;;  %v1689_v23 = vshll.u32 %v1078_v47, 16 }
 0x24f   : > { %v4690_v25 = vadd.f32 %v4618_v49, %v7627_v50  ;;  %4570 = vmatmul.bf16.gmra.mxu3 %v4212_v52  ;;  %v7690_v42 = vpop.f32.mrf.mxu1  ;;  %v3892_v1 = vrot.slane %v3890_v41, 4  ;;  %v3245_v41 = vld [vmem:[#allocation2 + $0x284] sm:$0xf] }
 0x250   : > { %v3888_v52 = vsel %vm7015_vm2, %v3883_v51, %v3887_v48  ;;  %v1688_v33 = vrot.slane %v1686_v16, 7  ;;  %v1706_v8 = vrot.slane %v1704_v13, 7  ;;  %v3248_v16 = vld [vmem:[#allocation2 + $0x294] sm:$0x11]  ;;  %v3899_v13 = vshll.u32 %v3246_v7, 16 }
 0x251   : > { %v5795_v56 = vpack.c.bf16 %v4690_v25, %v7656_v60  ;;  %v4785_v53 = vadd.f32 %v4784_v58, %v4690_v25  ;;  %v4823_v57 = vmul.f32 %v4690_v25, %v4690_v25  ;;  %v4159_v29 = vunpack.c.l.b16 %v3888_v52  ;;  %v1076_v15 = vld [vmem:[#allocation2 + $0x278] sm:$0x8] }
 0x252   : > { %v4531_v50 = vpop.f32.mrf.mxu3  ;;  %3145 = vmatmul.bf16.gmra.mxu1 %v2697_v3  ;;  %v1707_v60 = vshll.u32 %v1080_v54, 16  ;;  %v1681_v19 = vshrl.u32 %v1076_v15, 16  ;;  %v1691_v61 = vor.u32 %v1689_v23, %v1688_v33  ;;  %v1702_v25 = vrot.slane %v1688_v33, 4  ;;  %v3247_v15 = vld [vmem:[#allocation2 + $0x290] sm:$0xf] }
 0x253   : > { %5878 = vst [vmem:[%s7590_s29 + $0x10] sm:$0xff] %v5795_v56   ;;  %v4854_v5 = vadd.f32 %v4853_v28, %v4823_v57  ;;  %v4532_v49 = vadd.f32 %v4531_v50, %v4442_v6  ;;  %v7696_v10 = vpop.f32.mrf.mxu0  ;;  %v3893_v3 = vshll.u32 %v3244_v39, 16  ;;  %v4216_v51 = vpack.c.b16 %v4159_v29, %v4156_v44 }
 0x254   : > { %v4444_v58 = vpop.f32.mrf.mxu2  ;;  %v1709_v47 = vor.u32 %v1707_v60, %v1706_v8  ;;  %v5013_v56 = vrot.slane %v1681_v19, 11  ;;  %v3917_v6 = vshrl.u32 %v3246_v7, 16  ;;  %v3923_v57 = vshll.u32 %v3248_v16, 16 }
 0x255   : > { %v4621_v48 = vadd.f32 %v7629_v37, %v4532_v49  ;;  %v3895_v28 = vrot.slane %v3893_v3, 5  ;;  %4664 = vmatmul.bf16.gmra.mxu0 %v4216_v51  ;;  %v3901_v33 = vrot.slane %v3899_v13, 5  ;;  %v3904_v39 = vshrl.u32 %v3245_v41, 16 }
 0x256   : > { %v1710_v52 = vsel %vm6552_vm9, %v1702_v25, %v1709_v47  ;;  %v1692_v37 = vsel %vm6552_vm9, %v5013_v56, %v1691_v61  ;;  %v3919_v7 = vrot.slane %v3917_v6, 4  ;;  %v3907_v3 = vshll.u32 %v3245_v41, 16 }
 0x257   : > { %v4691_v50 = vadd.f32 %v4621_v48, %v7659_v63  ;;  %v3108_v54 = vpop.f32.mrf.mxu1  ;;  %v2646_v44 = vunpack.c.l.b16 %v1710_v52  ;;  %v3896_v23 = vor.u32 %v3895_v28, %v3892_v1  ;;  %v2643_v29 = vunpack.c.l.b16 %v1692_v37  ;;  %v3249_v1 = vld [vmem:[#allocation2 + $0x29c] sm:$0x1] }
 0x258   : > { %v4215_v63 = vpack.c.b16 %v4158_v27, %v4155_v31  ;;  %v3906_v25 = vrot.slane %v3904_v39, 4  ;;  %v3920_v61 = vor.u32 %v3919_v7, %v3901_v33  ;;  %v3925_v47 = vrot.slane %v3923_v57, 5  ;;  %v7948_v39 = vld [vmem:[#allocation19_spill] sm:$0xff] }
 0x259   : > { %v4786_v8 = vadd.f32 %v4785_v53, %v4691_v50  ;;  %v4824_v49 = vmul.f32 %v4691_v50, %v4691_v50  ;;  %4486 = vmatmul.bf16.gmra.mxu2 %v4214_v45  ;;  %v3897_v19 = vrot.slane %v3896_v23, 4  ;;  %v7947_v53 = vld [vmem:[#allocation18_spill] sm:$0xff]  ;;  %v3909_v56 = vrot.slane %v3907_v3, 5 }
 0x25a   : > { %v4533_v60 = vpop.f32.mrf.mxu3  ;;  %v3104_v45 = vadd.f32 %v7661_v55, %v7947_v53  ;;  %v3913_v28 = vshll.u32 %v3247_v15, 16  ;;  %v3927_v18 = vshrl.u32 %v3247_v15, 16  ;;  %v2700_v31 = vpack.c.b16 %v2646_v44, %v2643_v29  ;;  %v787_v53 = vld [vmem:[#allocation2 + $0x2a8] sm:$0x8] }
 0x25b   : > { %v4855_v48 = vadd.f32 %v4854_v5, %v4824_v49  ;;  %v4534_v51 = vadd.f32 %v4533_v60, %v4444_v58  ;;  %v7710_v13 = vpop.f32.mrf.mxu0  ;;  %v3902_v27 = vsel %vm7015_vm2, %v3897_v19, %v3901_v33  ;;  %v3921_v5 = vrot.slane %v3920_v61, 4 }
 0x25c   : > { %v4447_v16 = vpop.f32.mrf.mxu2  ;;  %v3910_v58 = vor.u32 %v3909_v56, %v3906_v25  ;;  %v3915_v41 = vrot.slane %v3913_v28, 5  ;;  %v3929_v6 = vrot.slane %v3927_v18, 4  ;;  %v3933_v57 = vshll.u32 %v3249_v1, 16  ;;  %v1086_v18 = vld [vmem:[#allocation2 + $0x2c0] sm:$0xf] }
 0x25d   : > { %v4623_v46 = vadd.f32 %v7646_v22, %v4534_v51  ;;  %v3107_v55 = vadd.f32 %v7690_v42, %v7948_v39  ;;  %v3926_v23 = vsel %vm7015_vm2, %v3921_v5, %v3925_v47  ;;  %v7949_v22 = vld [vmem:[#allocation20_spill] sm:$0xff]  ;;  %v4160_v49 = vunpack.c.l.b16 %v3902_v27 }
 0x25e   : > { %v7720_v44 = vadd.f32 %v3108_v54, %v7949_v22  ;;  %v4163_v33 = vunpack.c.l.b16 %v3926_v23  ;;  %v3911_v29 = vrot.slane %v3910_v58, 4  ;;  %v3930_v19 = vor.u32 %v3929_v6, %v3915_v41  ;;  %v887_v58 = vld [vmem:[#allocation2 + $0x2c4] sm:$0x11] }
 0x25f   : > { %v4692_v52 = vadd.f32 %v4623_v46, %v3104_v45  ;;  %4575 = vmatmul.bf16.gmra.mxu3 %v4215_v63  ;;  %v3111_v37 = vpop.f32.mrf.mxu1  ;;  %v4161_v42 = vunpack.c.h.b16 %v3902_v27  ;;  %v3935_v51 = vrot.slane %v3933_v57, 5  ;;  %v4164_v47 = vunpack.c.h.b16 %v3926_v23 }
 0x260   : > { %v7723_v3 = vadd.f32 %v3111_v37, %v7064_v9  ;;  %v3916_v63 = vsel %vm7015_vm2, %v3911_v29, %v3915_v41  ;;  %v3931_v1 = vrot.slane %v3930_v19, 4  ;;  %v4217_v45 = vpack.c.b16 %v4163_v33, %v4160_v49  ;;  %v890_v37 = vld [vmem:[#allocation2 + $0x2cc] sm:$0x1] }
 0x261   : > { %v5800_v7 = vpack.c.bf16 %v4692_v52, %v4691_v50  ;;  %v4787_v15 = vadd.f32 %v4786_v8, %v4692_v52  ;;  %v4825_v60 = vmul.f32 %v4692_v52, %v4692_v52  ;;  %v1084_v50 = vld [vmem:[#allocation2 + $0x2b4] sm:$0xf]  ;;  %v4162_v56 = vunpack.c.l.b16 %v3916_v63  ;;  %v3252_v52 = vld [vmem:[#allocation2 + $0x2b8] sm:$0xff] }
 0x262   : > { %v4536_v25 = vpop.f32.mrf.mxu3  ;;  %3150 = vmatmul.bf16.gmra.mxu1 %v2700_v31  ;;  %v788_v9 = vsel %vm6504_vm4, 0, %v787_v53  ;;  %v1730_v46 = vshrl.u32 %v1084_v50, 16  ;;  %v3250_v31 = vld [vmem:[#allocation2 + $0x2ac] sm:$0xff]  ;;  %v1751_v5 = vshll.u32 %v1086_v18, 16  ;;  %v888_v57 = vsel %vm6982_vm15, 0, %v887_v58 }
 0x263   : > { %5879 = vst [vmem:[%s7590_s29 + $0x18] sm:$0xff] %v5800_v7   ;;  %v4856_v54 = vadd.f32 %v4855_v48, %v4825_v60  ;;  %v4537_v61 = vadd.f32 %v4536_v25, %v4447_v16  ;;  %v7728_v28 = vpop.f32.mrf.mxu0  ;;  %v3936_v48 = vsel %vm7015_vm2, %v3931_v1, %v3935_v51  ;;  %v1748_v16 = vshrl.u32 %v1086_v18, 16  ;;  %v3251_v25 = vld [vmem:[#allocation2 + $0x2b4] sm:$0xf] }
 0x264   : > { %v4449_v8 = vpop.f32.mrf.mxu2  ;;  %789 = vst [vmem:[#allocation2 + $0x2a8] sm:$0x8] %v788_v9  ;;  %v4165_v41 = vunpack.c.l.b16 %v3936_v48  ;;  %v1732_v6 = vrot.slane %v1730_v46, 7  ;;  %v3938_v39 = vshrl.u32 %v3250_v31, 16  ;;  %v3941_v49 = vshll.u32 %v3250_v31, 16 }
 0x265   : > { %v4626_v27 = vadd.f32 %v7671_v32, %v4537_v61  ;;  %v1750_v32 = vrot.slane %v1748_v16, 7  ;;  %889 = vst [vmem:[#allocation2 + $0x2c4] sm:$0x11] %v888_v57  ;;  %v3947_v33 = vshll.u32 %v3252_v52, 16  ;;  %v4218_v29 = vpack.c.b16 %v4164_v47, %v4161_v42  ;;  %v3253_v47 = vld [vmem:[#allocation2 + $0x2c0] sm:$0xf] }
 0x266   : > { %v4219_v7 = vpack.c.b16 %v4165_v41, %v4162_v56  ;;  %v1733_v60 = vshll.u32 %v1084_v50, 16  ;;  %v1746_v19 = vrot.slane %v1732_v6, 4  ;;  %v3943_v53 = vrot.slane %v3941_v49, 5 }
 0x267   : > { %v7737_v23 = vadd.f32 %v4626_v27, %v3107_v55  ;;  %v7739_v22 = vpop.f32.mrf.mxu1  ;;  %v1753_v61 = vor.u32 %v1751_v5, %v1750_v32  ;;  %v3940_v55 = vrot.slane %v3938_v39, 4  ;;  %v3949_v9 = vrot.slane %v3947_v33, 5 }
 0x268   : > { %4669 = vmatmul.bf16.gmra.mxu0 %v4219_v7  ;;  %v3965_v18 = vshrl.u32 %v3252_v52, 16  ;;  %v891_v42 = vsel %vm6959_vm13, 0, %v890_v37  ;;  %v3952_v46 = vshrl.u32 %v3251_v25, 16  ;;  %v1735_v48 = vor.u32 %v1733_v60, %v1732_v6 }
 0x269   : > { %v4788_v63 = vadd.f32 %v4787_v15, %v7737_v23  ;;  %v4826_v51 = vmul.f32 %v7737_v23, %v7737_v23  ;;  %4491 = vmatmul.bf16.gmra.mxu2 %v4217_v45  ;;  %v1754_v15 = vsel %vm6552_vm9, %v1746_v19, %v1753_v61  ;;  %892 = vst [vmem:[#allocation2 + $0x2cc] sm:$0x1] %v891_v42  ;;  %v3955_v58 = vshll.u32 %v3251_v25, 16 }
 0x26a   : > { %v4538_v1 = vpop.f32.mrf.mxu3  ;;  %v3944_v16 = vor.u32 %v3943_v53, %v3940_v55  ;;  %v3967_v5 = vrot.slane %v3965_v18, 4  ;;  %v3954_v52 = vrot.slane %v3952_v46, 4  ;;  %v3961_v39 = vshll.u32 %v3253_v47, 16 }
 0x26b   : > { %v4857_v50 = vadd.f32 %v4856_v54, %v4826_v51  ;;  %v4539_v56 = vadd.f32 %v4538_v1, %v4449_v8  ;;  %v7748_v45 = vpop.f32.mrf.mxu0  ;;  %v1082_v27 = vld [vmem:[#allocation2 + $0x2a8] sm:$0x8]  ;;  %v2652_v54 = vunpack.c.l.b16 %v1754_v15  ;;  %v3957_v49 = vrot.slane %v3955_v58, 5 }
 0x26c   : > { %v4452_v31 = vpop.f32.mrf.mxu2  ;;  %v1725_v57 = vshrl.u32 %v1082_v27, 16  ;;  %v3254_v8 = vld [vmem:[#allocation2 + $0x2c4] sm:$0x11]  ;;  %v3945_v37 = vrot.slane %v3944_v16, 4  ;;  %v3968_v32 = vor.u32 %v3967_v5, %v3949_v9  ;;  %v3975_v60 = vshrl.u32 %v3253_v47, 16 }
 0x26d   : > { %v4628_v41 = vadd.f32 %v7696_v10, %v4539_v56  ;;  %v3971_v6 = vshll.u32 %v3254_v8, 16  ;;  %v3958_v51 = vor.u32 %v3957_v49, %v3954_v52  ;;  %v3963_v61 = vrot.slane %v3961_v39, 5  ;;  %v793_v5 = vld [vmem:[#allocation2 + $0x2d8] sm:$0x8]  ;;  %v1090_v52 = vld [vmem:[#allocation2 + $0x2e4] sm:$0xf] }
 0x26e   : > { %v5015_v19 = vrot.slane %v1725_v57, 11  ;;  %v3950_v10 = vsel %vm7015_vm2, %v3945_v37, %v3949_v9  ;;  %v3969_v25 = vrot.slane %v3968_v32, 4  ;;  %v3977_v16 = vrot.slane %v3975_v60, 4  ;;  %v1092_v37 = vld [vmem:[#allocation2 + $0x2f0] sm:$0xf] }
 0x26f   : > { %v4694_v33 = vadd.f32 %v4628_v41, %v7720_v44  ;;  %4580 = vmatmul.bf16.gmra.mxu3 %v4218_v29  ;;  %v7752_v7 = vpop.f32.mrf.mxu1  ;;  %v3973_v42 = vrot.slane %v3971_v6, 5  ;;  %v4166_v56 = vunpack.c.l.b16 %v3950_v10  ;;  %v4167_v15 = vunpack.c.h.b16 %v3950_v10 }
 0x270   : > { %v1736_v44 = vsel %vm6552_vm9, %v5015_v19, %v1735_v48  ;;  %v3255_v46 = vld [vmem:[#allocation2 + $0x2cc] sm:$0x1]  ;;  %v3959_v9 = vrot.slane %v3958_v51, 4  ;;  %v794_v48 = vsel %vm6504_vm4, 0, %v793_v5  ;;  %v3978_v32 = vor.u32 %v3977_v16, %v3963_v61  ;;  %v893_v19 = vld [vmem:[#allocation2 + $0x2f4] sm:$0x11] }
 0x271   : > { %v5805_v55 = vpack.c.bf16 %v4694_v33, %v7737_v23  ;;  %v4789_v1 = vadd.f32 %v4788_v63, %v4694_v33  ;;  %v4827_v53 = vmul.f32 %v4694_v33, %v4694_v33  ;;  %v2649_v18 = vunpack.c.l.b16 %v1736_v44  ;;  %795 = vst [vmem:[#allocation2 + $0x2d8] sm:$0x8] %v794_v48  ;;  %v3256_v44 = vld [vmem:[#allocation2 + $0x2dc] sm:$0xff] }
 0x272   : > { %v4541_v29 = vpop.f32.mrf.mxu3  ;;  %v3974_v23 = vsel %vm7015_vm2, %v3969_v25, %v3973_v42  ;;  %v3981_v63 = vshll.u32 %v3255_v46, 16  ;;  %v1774_v33 = vshrl.u32 %v1090_v52, 16  ;;  %v1777_v10 = vshll.u32 %v1090_v52, 16  ;;  %v896_v5 = vld [vmem:[#allocation2 + $0x2fc] sm:$0x1] }
 0x273   : > { %5880 = vst [vmem:[%s7590_s29 + $0x20] sm:$0xff] %v5805_v55   ;;  %v4858_v47 = vadd.f32 %v4857_v50, %v4827_v53  ;;  %v4542_v27 = vadd.f32 %v4541_v29, %v4452_v31  ;;  %v2703_v41 = vpack.c.b16 %v2652_v54, %v2649_v18  ;;  %v7762_v57 = vpop.f32.mrf.mxu0  ;;  %v4169_v8 = vunpack.c.l.b16 %v3974_v23  ;;  %v3258_v29 = vld [vmem:[#allocation2 + $0x2e8] sm:$0xff] }
 0x274   : > { %v4454_v58 = vpop.f32.mrf.mxu2  ;;  %v4170_v50 = vunpack.c.h.b16 %v3974_v23  ;;  %v3964_v31 = vsel %vm7015_vm2, %v3959_v9, %v3963_v61  ;;  %v3114_v54 = vadd.f32 %v7739_v22, %v7170_v62  ;;  %v3983_v49 = vrot.slane %v3981_v63, 5 }
 0x275   : > { %v4631_v39 = vadd.f32 %v7710_v13, %v4542_v27  ;;  %3155 = vmatmul.bf16.gmra.mxu1 %v2703_v41  ;;  %v4220_v6 = vpack.c.b16 %v4169_v8, %v4166_v56  ;;  %v4168_v13 = vunpack.c.l.b16 %v3964_v31  ;;  %v3979_v51 = vrot.slane %v3978_v32, 4  ;;  %v3257_v32 = vld [vmem:[#allocation2 + $0x2e4] sm:$0xf] }
 0x276   : > { %v4221_v25 = vpack.c.b16 %v4170_v50, %v4167_v15  ;;  %v1776_v55 = vrot.slane %v1774_v33, 7  ;;  %v1792_v53 = vshrl.u32 %v1092_v37, 16  ;;  %v1795_v61 = vshll.u32 %v1092_v37, 16 }
 0x277   : > { %v7772_v12 = vadd.f32 %v4631_v39, %v7723_v3  ;;  %v7774_v60 = vpop.f32.mrf.mxu1  ;;  %v894_v3 = vsel %vm6982_vm15, 0, %v893_v19  ;;  %v3984_v42 = vsel %vm7015_vm2, %v3979_v51, %v3983_v49  ;;  %v3986_v16 = vshrl.u32 %v3256_v44, 16 }
 0x278   : > { %v1779_v56 = vor.u32 %v1777_v10, %v1776_v55  ;;  %v1790_v15 = vrot.slane %v1776_v55, 4  ;;  %v1794_v46 = vrot.slane %v1792_v53, 7  ;;  %895 = vst [vmem:[#allocation2 + $0x2f4] sm:$0x11] %v894_v3  ;;  %v1088_v23 = vld [vmem:[#allocation2 + $0x2d8] sm:$0x8] }
 0x279   : > { %v4790_v62 = vadd.f32 %v4789_v1, %v7772_v12  ;;  %v4828_v22 = vmul.f32 %v7772_v12, %v7772_v12  ;;  %4496 = vmatmul.bf16.gmra.mxu2 %v4220_v6  ;;  %v4171_v1 = vunpack.c.l.b16 %v3984_v42  ;;  %v3989_v48 = vshll.u32 %v3256_v44, 16  ;;  %v3259_v3 = vld [vmem:[#allocation2 + $0x2f0] sm:$0xf] }
 0x27a   : > { %v4543_v18 = vpop.f32.mrf.mxu3  ;;  %v1797_v63 = vor.u32 %v1795_v61, %v1794_v46  ;;  %v3995_v34 = vshll.u32 %v3258_v29, 16  ;;  %v4013_v52 = vshrl.u32 %v3258_v29, 16  ;;  %v1769_v31 = vshrl.u32 %v1088_v23, 16 }
 0x27b   : > { %v4859_v27 = vadd.f32 %v4858_v47, %v4828_v22  ;;  %v4544_v9 = vadd.f32 %v4543_v18, %v4454_v58  ;;  %v4222_v8 = vpack.c.b16 %v4171_v1, %v4168_v13  ;;  %v3988_v37 = vrot.slane %v3986_v16, 4 }
 0x27c   : > { %v4457_v41 = vpop.f32.mrf.mxu2  ;;  %v7784_v50 = vpop.f32.mrf.mxu0  ;;  %v1798_v47 = vsel %vm6552_vm9, %v1790_v15, %v1797_v63  ;;  %v3991_v58 = vrot.slane %v3989_v48, 5  ;;  %v3997_v49 = vrot.slane %v3995_v34, 5  ;;  %v4015_v33 = vrot.slane %v4013_v52, 4 }
 0x27d   : > { %v4633_v39 = vadd.f32 %v7728_v28, %v4544_v9  ;;  %4674 = vmatmul.bf16.gmra.mxu0 %v4222_v8  ;;  %v5017_v10 = vrot.slane %v1769_v31, 11  ;;  %v897_v28 = vsel %vm6959_vm13, 0, %v896_v5  ;;  %v2658_v13 = vunpack.c.l.b16 %v1798_v47 }
 0x27e   : > { %v3992_v51 = vor.u32 %v3991_v58, %v3988_v37  ;;  %v4016_v55 = vor.u32 %v4015_v33, %v3997_v49  ;;  %898 = vst [vmem:[#allocation2 + $0x2fc] sm:$0x1] %v897_v28  ;;  %v4000_v53 = vshrl.u32 %v3257_v32, 16  ;;  %v4003_v16 = vshll.u32 %v3257_v32, 16 }
 0x27f   : > { %v4696_v19 = vadd.f32 %v4633_v39, %v3114_v54  ;;  %4585 = vmatmul.bf16.gmra.mxu3 %v4221_v25  ;;  %v7788_v6 = vpop.f32.mrf.mxu1  ;;  %v1780_v54 = vsel %vm6552_vm9, %v5017_v10, %v1779_v56  ;;  %v3260_v25 = vld [vmem:[#allocation2 + $0x2f4] sm:$0x11]  ;;  %v4009_v26 = vshll.u32 %v3259_v3, 16  ;;  %v3117_v56 = vadd.f32 %v7752_v7, %v7174_v17 }
 0x280   : > { %v2655_v18 = vunpack.c.l.b16 %v1780_v54  ;;  %v3993_v42 = vrot.slane %v3992_v51, 4  ;;  %v4017_v43 = vrot.slane %v4016_v55, 4  ;;  %v4019_v15 = vshll.u32 %v3260_v25, 16 }
 0x281   : > { %v5810_v44 = vpack.c.bf16 %v4696_v19, %v7772_v12  ;;  %v4791_v22 = vadd.f32 %v4790_v62, %v4696_v19  ;;  %v4829_v61 = vmul.f32 %v4696_v19, %v4696_v19  ;;  %v4002_v1 = vrot.slane %v4000_v53, 4 }
 0x282   : > { %v4546_v29 = vpop.f32.mrf.mxu3  ;;  %v2706_v23 = vpack.c.b16 %v2658_v13, %v2655_v18  ;;  %v3998_v12 = vsel %vm7015_vm2, %v3993_v42, %v3997_v49  ;;  %v4021_v62 = vrot.slane %v4019_v15, 5  ;;  %v4005_v34 = vrot.slane %v4003_v16, 5 }
 0x283   : > { %5881 = vst [vmem:[%s7590_s29 + $0x28] sm:$0xff] %v5810_v44   ;;  %v4860_v46 = vadd.f32 %v4859_v27, %v4829_v61  ;;  %v4547_v9 = vadd.f32 %v4546_v29, %v4457_v41  ;;  %v4172_v48 = vunpack.c.l.b16 %v3998_v12  ;;  %v4173_v41 = vunpack.c.h.b16 %v3998_v12 }
 0x284   : > { %v4459_v5 = vpop.f32.mrf.mxu2  ;;  %v4642_v52 = vpop.f32.mrf.mxu0  ;;  %v4022_v27 = vsel %vm7015_vm2, %v4017_v43, %v4021_v62  ;;  %v4011_v39 = vrot.slane %v4009_v26, 5  ;;  %v4023_v8 = vshrl.u32 %v3259_v3, 16  ;;  %v4006_v58 = vor.u32 %v4005_v34, %v4002_v1 }
 0x285   : > { %v4636_v63 = vadd.f32 %v7748_v45, %v4547_v9  ;;  %3160 = vmatmul.bf16.gmra.mxu1 %v2706_v23  ;;  %v4175_v37 = vunpack.c.l.b16 %v4022_v27  ;;  %v4176_v32 = vunpack.c.h.b16 %v4022_v27  ;;  %v3261_v47 = vld [vmem:[#allocation2 + $0x2fc] sm:$0x1]  ;;  %v3119_v3 = vadd.f32 %v7774_v60, %v7187_v40 }
 0x286   : > { %v4025_v33 = vrot.slane %v4023_v8, 4  ;;  %v4029_v17 = vshll.u32 %v3261_v47, 16  ;;  %v4007_v28 = vrot.slane %v4006_v58, 4 }
 0x287   : > { %v4697_v31 = vadd.f32 %v4636_v63, %v3117_v56  ;;  %v3123_v49 = vpop.f32.mrf.mxu1  ;;  %v4223_v19 = vpack.c.b16 %v4175_v37, %v4172_v48  ;;  %v4224_v44 = vpack.c.b16 %v4176_v32, %v4173_v41  ;;  %v3035_v41 = vadd.f32 %v7060_v59, %v7126_v38 }
 0x288   : > { %v4026_v13 = vor.u32 %v4025_v33, %v4011_v39  ;;  %v4031_v51 = vrot.slane %v4029_v17, 5  ;;  %v4012_v61 = vsel %vm7015_vm2, %v4007_v28, %v4011_v39 }
 0x289   : > { %v4792_v7 = vadd.f32 %v4791_v22, %v4697_v31  ;;  %v4830_v45 = vmul.f32 %v4697_v31, %v4697_v31  ;;  %4501 = vmatmul.bf16.gmra.mxu2 %v4223_v19  ;;  %v4174_v29 = vunpack.c.l.b16 %v4012_v61 }
 0x28a   : > { %v4548_v10 = vpop.f32.mrf.mxu3  ;;  %v4027_v54 = vrot.slane %v4026_v13, 4 }
 0x28b   : > { %v4861_v55 = vadd.f32 %v4860_v46, %v4830_v45  ;;  %v4549_v53 = vadd.f32 %v4548_v10, %v4459_v5 }
 0x28c   : > { %v4462_v25 = vpop.f32.mrf.mxu2  ;;  %v4645_v18 = vpop.f32.mrf.mxu0  ;;  %v4032_v42 = vsel %vm7015_vm2, %v4027_v54, %v4031_v51 }
 0x28d   : > { %v4638_v22 = vadd.f32 %v7762_v57, %v4549_v53  ;;  %v4177_v15 = vunpack.c.l.b16 %v4032_v42  ;;  %v3122_v57 = vadd.f32 %v7788_v6, %v7191_v35  ;;  %v3040_v53 = vadd.f32 %v7114_v14, %v7193_v2 }
 0x28f   : > { %v4698_v43 = vadd.f32 %v4638_v22, %v3119_v3  ;;  %4590 = vmatmul.bf16.gmra.mxu3 %v4224_v44  ;;  %v3126_v46 = vpop.f32.mrf.mxu1  ;;  %v4225_v5 = vpack.c.b16 %v4177_v15, %v4174_v29  ;;  %v3043_v15 = vadd.f32 %v7128_v21, %v7231_v4 }
 0x291   : > { %v5815_v9 = vpack.c.bf16 %v4698_v43, %v4697_v31  ;;  %v4793_v1 = vadd.f32 %v4792_v7, %v4698_v43  ;;  %v4831_v16 = vmul.f32 %v4698_v43, %v4698_v43  ;;  %4679 = vmatmul.bf16.gmra.mxu0 %v4225_v5  ;;  %v3124_v31 = vadd.f32 %v3123_v49, %v3035_v41 }
 0x292   : > { %v4551_v23 = vpop.f32.mrf.mxu3  ;;  %v3038_v7 = vadd.f32 %v7075_v24, %v7162_v0 }
 0x293   : > { %5882 = vst [vmem:[%s7590_s29 + $0x30] sm:$0xff] %v5815_v9   ;;  %v4862_v12 = vadd.f32 %v4861_v55, %v4831_v16  ;;  %v4552_v40 = vadd.f32 %v4551_v23, %v4462_v25 }
 0x294   : > { %v4464_v60 = vpop.f32.mrf.mxu2  ;;  %v4647_v62 = vpop.f32.mrf.mxu0  ;;  %v3127_v10 = vadd.f32 %v3126_v46, %v3038_v7  ;;  %v7952_v7 = vld [vmem:[#allocation22_spill] sm:$0xff] }
 0x295   : > { %v4641_v20 = vadd.f32 %v7784_v50, %v4552_v40 }
 0x297   : > { %v4699_v26 = vadd.f32 %v4641_v20, %v3122_v57  ;;  %v3128_v56 = vpop.f32.mrf.mxu1  ;;  %v3045_v57 = vadd.f32 %v7164_v11, %v7244_v30 }
 0x298   : > { %v3129_v54 = vadd.f32 %v3128_v56, %v3040_v53  ;;  %v7953_v53 = vld [vmem:[#allocation3_spill] sm:$0xff] }
 0x299   : > { %v4794_v63 = vadd.f32 %v4793_v1, %v4699_v26  ;;  %v4832_v48 = vmul.f32 %v4699_v26, %v4699_v26 }
 0x29a   : > { %v4553_v34 = vpop.f32.mrf.mxu3 }
 0x29b   : > { %v4863_v27 = vadd.f32 %v4862_v12, %v4832_v48  ;;  %v4554_v39 = vadd.f32 %v4553_v34, %v4464_v60 }
 0x29c   : > { %v4467_v8 = vpop.f32.mrf.mxu2  ;;  %v4650_v32 = vpop.f32.mrf.mxu0 }
 0x29d   : > { %v4643_v37 = vadd.f32 %v4642_v52, %v4554_v39 }
 0x29f   : > { %v4700_v47 = vadd.f32 %v4643_v37, %v3124_v31  ;;  %v3131_v35 = vpop.f32.mrf.mxu1 }
 0x2a0   : > { %v3132_v1 = vadd.f32 %v3131_v35, %v3043_v15 }
 0x2a1   : > { %v5820_v6 = vpack.c.bf16 %v4700_v47, %v4699_v26  ;;  %v4795_v50 = vadd.f32 %v4794_v63, %v4700_v47  ;;  %v4833_v58 = vmul.f32 %v4700_v47, %v4700_v47 }
 0x2a2   : > { %v4556_v33 = vpop.f32.mrf.mxu3 }
 0x2a3   : > { %5883 = vst [vmem:[%s7590_s29 + $0x38] sm:$0xff] %v5820_v6   ;;  %v4864_v17 = vadd.f32 %v4863_v27, %v4833_v58  ;;  %v4557_v45 = vadd.f32 %v4556_v33, %v4467_v8  ;;  %v7950_v8 = vld [vmem:[#allocation21_spill] sm:$0xff] }
 0x2a4   : > { %v4469_v19 = vpop.f32.mrf.mxu2  ;;  %v4652_v38 = vpop.f32.mrf.mxu0  ;;  %v3048_v31 = vadd.f32 %v7950_v8, %v7278_v36 }
 0x2a5   : > { %v4646_v59 = vadd.f32 %v4645_v18, %v4557_v45 }
 0x2a7   : > { %v4701_v28 = vadd.f32 %v4646_v59, %v3127_v10  ;;  %v3133_v49 = vpop.f32.mrf.mxu1 }
 0x2a8   : > { %v3134_v26 = vadd.f32 %v3133_v49, %v3045_v57 }
 0x2a9   : > { %v4796_v52 = vadd.f32 %v4795_v50, %v4701_v28  ;;  %v4834_v13 = vmul.f32 %v4701_v28, %v4701_v28 }
 0x2aa   : > { %v4558_v51 = vpop.f32.mrf.mxu3 }
 0x2ab   : > { %v4865_v55 = vadd.f32 %v4864_v17, %v4834_v13  ;;  %v4559_v44 = vadd.f32 %v4558_v51, %v4469_v19  ;;  %v7951_v17 = vld [vmem:[#allocation25_spill] sm:$0xff] }
 0x2ac   : > { %v4472_v61 = vpop.f32.mrf.mxu2  ;;  %v4655_v24 = vpop.f32.mrf.mxu0  ;;  %v3050_v45 = vadd.f32 %v7952_v7, %v7951_v17 }
 0x2ad   : > { %v4648_v25 = vadd.f32 %v4647_v62, %v4559_v44  ;;  %v7954_v44 = vld [vmem:[#allocation23_spill] sm:$0xff] }
 0x2af   : > { %v4702_v0 = vadd.f32 %v4648_v25, %v3129_v54  ;;  %v3136_v3 = vpop.f32.mrf.mxu1 }
 0x2b0   : > { %v3137_v47 = vadd.f32 %v3136_v3, %v3048_v31 }
 0x2b1   : > { %v5825_v22 = vpack.c.bf16 %v4702_v0, %v4701_v28  ;;  %v4797_v29 = vadd.f32 %v4796_v52, %v4702_v0  ;;  %v4835_v18 = vmul.f32 %v4702_v0, %v4702_v0 }
 0x2b2   : > { %v4561_v42 = vpop.f32.mrf.mxu3 }
 0x2b3   : > { %5884 = vst [vmem:[%s7590_s29 + $0x40] sm:$0xff] %v5825_v22   ;;  %v4866_v43 = vadd.f32 %v4865_v55, %v4835_v18  ;;  %v4562_v46 = vadd.f32 %v4561_v42, %v4472_v61  ;;  %v3053_v61 = vadd.f32 %v7954_v44, %v7953_v53 }
 0x2b4   : > { %v4474_v9 = vpop.f32.mrf.mxu2  ;;  %v4657_v5 = vpop.f32.mrf.mxu0 }
 0x2b5   : > { %v4651_v14 = vadd.f32 %v4650_v32, %v4562_v46  ;;  %v7955_v46 = vld [vmem:[#allocation28_spill] sm:$0xff] }
 0x2b7   : > { %v4703_v2 = vadd.f32 %v4651_v14, %v3132_v1  ;;  %v3138_v16 = vpop.f32.mrf.mxu1 }
 0x2b9   : > { %v4798_v23 = vadd.f32 %v4797_v29, %v4703_v2  ;;  %v4836_v12 = vmul.f32 %v4703_v2, %v4703_v2 }
 0x2ba   : > { %v4563_v40 = vpop.f32.mrf.mxu3 }
 0x2bb   : > { %v4867_v60 = vadd.f32 %v4866_v43, %v4836_v12  ;;  %v4564_v20 = vadd.f32 %v4563_v40, %v4474_v9  ;;  %v7956_v9 = vld [vmem:[#allocation24_spill] sm:$0xff] }
 0x2bc   : > { %v4477_v62 = vpop.f32.mrf.mxu2  ;;  %v3055_v1 = vadd.f32 %v7956_v9, %v7955_v46 }
 0x2bd   : > { %v4653_v56 = vadd.f32 %v4652_v38, %v4564_v20  ;;  %v3139_v38 = vadd.f32 %v3138_v16, %v3050_v45 }
 0x2be   : > { %v4660_v41 = vpop.f32.mrf.mxu0 }
 0x2bf   : > { %v4704_v21 = vadd.f32 %v4653_v56, %v3134_v26  ;;  %v3141_v4 = vpop.f32.mrf.mxu1  ;;  %v7957_v56 = vld [vmem:[#allocation30_spill] sm:$0xff] }
 0x2c0   : > { %v3142_v0 = vadd.f32 %v3141_v4, %v3053_v61 }
 0x2c1   : > { %v5830_v63 = vpack.c.bf16 %v4704_v21, %v4703_v2  ;;  %v4799_v48 = vadd.f32 %v4798_v23, %v4704_v21  ;;  %v4837_v34 = vmul.f32 %v4704_v21, %v4704_v21  ;;  %v7958_v21 = vld [vmem:[#allocation26_spill] sm:$0xff] }
 0x2c2   : > { %v4566_v27 = vpop.f32.mrf.mxu3  ;;  %v3058_v4 = vadd.f32 %v7958_v21, %v7957_v56 }
 0x2c3   : > { %5885 = vst [vmem:[%s7590_s29 + $0x48] sm:$0xff] %v5830_v63   ;;  %v4868_v39 = vadd.f32 %v4867_v60, %v4837_v34  ;;  %v4567_v37 = vadd.f32 %v4566_v27, %v4477_v62 }
 0x2c4   : > { %v4479_v32 = vpop.f32.mrf.mxu2 }
 0x2c5   : > { %v4656_v11 = vadd.f32 %v4655_v24, %v4567_v37 }
 0x2c6   : > { %v4662_v59 = vpop.f32.mrf.mxu0 }
 0x2c7   : > { %v4705_v30 = vadd.f32 %v4656_v11, %v3137_v47  ;;  %v3143_v58 = vpop.f32.mrf.mxu1  ;;  %v7959_v11 = vld [vmem:[#allocation5_spill] sm:$0xff] }
 0x2c8   : > { %v3144_v16 = vadd.f32 %v3143_v58, %v3055_v1 }
 0x2c9   : > { %v4800_v35 = vadd.f32 %v4799_v48, %v4705_v30  ;;  %v4838_v6 = vmul.f32 %v4705_v30, %v4705_v30 }
 0x2ca   : > { %v4568_v50 = vpop.f32.mrf.mxu3 }
 0x2cb   : > { %v4869_v33 = vadd.f32 %v4868_v39, %v4838_v6  ;;  %v4569_v19 = vadd.f32 %v4568_v50, %v4479_v32 }
 0x2cc   : > { %v4482_v10 = vpop.f32.mrf.mxu2 }
 0x2cd   : > { %v4658_v28 = vadd.f32 %v4657_v5, %v4569_v19 }
 0x2cf   : > { %v4706_v36 = vadd.f32 %v4658_v28, %v3139_v38  ;;  %v3146_v24 = vpop.f32.mrf.mxu1  ;;  %v7961_v28 = vld [vmem:[#allocation32_spill] sm:$0xff] }
 0x2d0   : > { %v3147_v34 = vadd.f32 %v3146_v24, %v3058_v4 }
 0x2d1   : > { %v5835_v49 = vpack.c.bf16 %v4706_v36, %v4705_v30  ;;  %v4801_v52 = vadd.f32 %v4800_v35, %v4706_v36  ;;  %v4839_v13 = vmul.f32 %v4706_v36, %v4706_v36  ;;  %v7960_v30 = vld [vmem:[#allocation27_spill] sm:$0xff]  ;;  %v7962_v36 = vld [vmem:[#allocation29_spill] sm:$0xff] }
 0x2d2   : > { %v4571_v51 = vpop.f32.mrf.mxu3  ;;  %v4665_v22 = vpop.f32.mrf.mxu0  ;;  %v3060_v35 = vadd.f32 %v7960_v30, %v7959_v11 }
 0x2d3   : > { %5886 = vst [vmem:[%s7590_s29 + $0x50] sm:$0xff] %v5835_v49   ;;  %v4870_v55 = vadd.f32 %v4869_v33, %v4839_v13  ;;  %v4572_v54 = vadd.f32 %v4571_v51, %v4482_v10  ;;  %v3063_v49 = vadd.f32 %v7962_v36, %v7961_v28 }
 0x2d4   : > { %v4484_v25 = vpop.f32.mrf.mxu2 }
 0x2d5   : > { %v4661_v3 = vadd.f32 %v4660_v41, %v4572_v54 }
 0x2d7   : > { %v4707_v29 = vadd.f32 %v4661_v3, %v3142_v0  ;;  %v3148_v23 = vpop.f32.mrf.mxu1  ;;  %v7963_v0 = vld [vmem:[#allocation7_spill] sm:$0xff]  ;;  %v7964_v3 = vld [vmem:[#allocation4_spill] sm:$0xff] }
 0x2d8   : > { %v3149_v58 = vadd.f32 %v3148_v23, %v3060_v35  ;;  %v7965_v23 = vld [vmem:[#allocation34_spill] sm:$0xff] }
 0x2d9   : > { %v4802_v18 = vadd.f32 %v4801_v52, %v4707_v29  ;;  %v4840_v42 = vmul.f32 %v4707_v29, %v4707_v29 }
 0x2da   : > { %v4573_v43 = vpop.f32.mrf.mxu3  ;;  %v4667_v40 = vpop.f32.mrf.mxu0 }
 0x2db   : > { %v4871_v15 = vadd.f32 %v4870_v55, %v4840_v42  ;;  %v4574_v14 = vadd.f32 %v4573_v43, %v4484_v25 }
 0x2dc   : > { %v4487_v2 = vpop.f32.mrf.mxu2 }
 0x2dd   : > { %v4663_v5 = vadd.f32 %v4662_v59, %v4574_v14 }
 0x2df   : > { %v4708_v12 = vadd.f32 %v4663_v5, %v3144_v16  ;;  %v3151_v39 = vpop.f32.mrf.mxu1 }
 0x2e0   : > { %v3152_v55 = vadd.f32 %v3151_v39, %v3063_v49 }
 0x2e1   : > { %v5840_v60 = vpack.c.bf16 %v4708_v12, %v4707_v29  ;;  %v4803_v57 = vadd.f32 %v4802_v18, %v4708_v12  ;;  %v4841_v20 = vmul.f32 %v4708_v12, %v4708_v12  ;;  %v7966_v12 = vld [vmem:[#allocation31_spill] sm:$0xff] }
 0x2e2   : > { %v4576_v62 = vpop.f32.mrf.mxu3 }
 0x2e3   : > { %5887 = vst [vmem:[%s7590_s29 + $0x58] sm:$0xff] %v5840_v60   ;;  %v4872_v26 = vadd.f32 %v4871_v15, %v4841_v20  ;;  %v4577_v63 = vadd.f32 %v4576_v62, %v4487_v2 }
 0x2e4   : > { %v4489_v48 = vpop.f32.mrf.mxu2 }
 0x2e5   : > { %v4666_v27 = vadd.f32 %v4665_v22, %v4577_v63  ;;  %v4670_v32 = vpop.f32.mrf.mxu0  ;;  %v3065_v22 = vadd.f32 %v7964_v3, %v7963_v0 }
 0x2e7   : > { %v4709_v41 = vadd.f32 %v4666_v27, %v3147_v34  ;;  %v3153_v59 = vpop.f32.mrf.mxu1  ;;  %v7967_v27 = vld [vmem:[#allocation9_spill] sm:$0xff] }
 0x2e8   : > { %v3154_v43 = vadd.f32 %v3153_v59, %v3065_v22 }
 0x2e9   : > { %v4804_v8 = vadd.f32 %v4803_v57, %v4709_v41  ;;  %v4842_v31 = vmul.f32 %v4709_v41, %v4709_v41 }
 0x2ea   : > { %v4578_v37 = vpop.f32.mrf.mxu3 }
 0x2eb   : > { %v4873_v47 = vadd.f32 %v4872_v26, %v4842_v31  ;;  %v4579_v6 = vadd.f32 %v4578_v37, %v4489_v48 }
 0x2ec   : > { %v4492_v50 = vpop.f32.mrf.mxu2 }
 0x2ed   : > { %v4668_v33 = vadd.f32 %v4667_v40, %v4579_v6  ;;  %v4672_v13 = vpop.f32.mrf.mxu0  ;;  %v3068_v40 = vadd.f32 %v7966_v12, %v7965_v23 }
 0x2ef   : > { %v4710_v17 = vadd.f32 %v4668_v33, %v3149_v58 }
 0x2f1   : > { %v5845_v7 = vpack.c.bf16 %v4710_v17, %v4709_v41  ;;  %v4805_v45 = vadd.f32 %v4804_v8, %v4710_v17  ;;  %v4843_v19 = vmul.f32 %v4710_v17, %v4710_v17  ;;  %v7968_v41 = vld [vmem:[#allocation6_spill] sm:$0xff] }
 0x2f2   : > { %v4581_v10 = vpop.f32.mrf.mxu3  ;;  %v3156_v18 = vpop.f32.mrf.mxu1  ;;  %v3070_v39 = vadd.f32 %v7968_v41, %v7967_v27  ;;  %v7969_v17 = vld [vmem:[#allocation10_spill] sm:$0xff] }
 0x2f3   : > { %5888 = vst [vmem:[%s7590_s29 + $0x60] sm:$0xff] %v5845_v7   ;;  %v4874_v38 = vadd.f32 %v4873_v47, %v4843_v19  ;;  %v4582_v52 = vadd.f32 %v4581_v10, %v4492_v50  ;;  %v3157_v20 = vadd.f32 %v3156_v18, %v3068_v40  ;;  %v7970_v7 = vld [vmem:[#allocation33_spill] sm:$0xff] }
 0x2f4   : > { %v4494_v51 = vpop.f32.mrf.mxu2 }
 0x2f5   : > { %v4671_v53 = vadd.f32 %v4670_v32, %v4582_v52 }
 0x2f7   : > { %v4711_v44 = vadd.f32 %v4671_v53, %v3152_v55  ;;  %v7971_v55 = vld [vmem:[#allocation11_spill] sm:$0xff]  ;;  %v7972_v53 = vld [vmem:[#allocation8_spill] sm:$0xff] }
 0x2f9   : > { %v4806_v61 = vadd.f32 %v4805_v45, %v4711_v44  ;;  %v4844_v54 = vmul.f32 %v4711_v44, %v4711_v44  ;;  %v3073_v45 = vadd.f32 %v7970_v7, %v7969_v17 }
 0x2fa   : > { %v4583_v25 = vpop.f32.mrf.mxu3  ;;  %v4675_v46 = vpop.f32.mrf.mxu0 }
 0x2fb   : > { %v4875_v24 = vadd.f32 %v4874_v38, %v4844_v54  ;;  %v4584_v29 = vadd.f32 %v4583_v25, %v4494_v51  ;;  %v3158_v26 = vpop.f32.mrf.mxu1 }
 0x2fc   : > { %v4497_v42 = vpop.f32.mrf.mxu2  ;;  %v3159_v31 = vadd.f32 %v3158_v26, %v3070_v39 }
 0x2fd   : > { %v4673_v15 = vadd.f32 %v4672_v13, %v4584_v29 }
 0x2ff   : > { %v4712_v9 = vadd.f32 %v4673_v15, %v3154_v43 }
 0x301   : > { %v5850_v1 = vpack.c.bf16 %v4712_v9, %v4711_v44  ;;  %v4807_v14 = vadd.f32 %v4806_v61, %v4712_v9  ;;  %v4845_v2 = vmul.f32 %v4712_v9, %v4712_v9  ;;  %v3075_v44 = vadd.f32 %v7972_v53, %v7971_v55 }
 0x302   : > { %v4586_v16 = vpop.f32.mrf.mxu3  ;;  %v4677_v21 = vpop.f32.mrf.mxu0 }
 0x303   : > { %5889 = vst [vmem:[%s7590_s29 + $0x68] sm:$0xff] %v5850_v1   ;;  %v4876_v5 = vadd.f32 %v4875_v24, %v4845_v2  ;;  %v4587_v60 = vadd.f32 %v4586_v16, %v4497_v42  ;;  %v3161_v11 = vpop.f32.mrf.mxu1 }
 0x304   : > { %v4499_v57 = vpop.f32.mrf.mxu2  ;;  %v3162_v10 = vadd.f32 %v3161_v11, %v3073_v45 }
 0x305   : > { %v4676_v62 = vadd.f32 %v4675_v46, %v4587_v60 }
 0x307   : > { %v4713_v56 = vadd.f32 %v4676_v62, %v3157_v20 }
 0x309   : > { %v4808_v4 = vadd.f32 %v4807_v14, %v4713_v56  ;;  %v4846_v63 = vmul.f32 %v4713_v56, %v4713_v56 }
 0x30a   : > { %v4588_v48 = vpop.f32.mrf.mxu3 }
 0x30b   : > { %v4877_v34 = vadd.f32 %v4876_v5, %v4846_v63  ;;  %v4589_v8 = vadd.f32 %v4588_v48, %v4499_v57  ;;  %v3163_v52 = vpop.f32.mrf.mxu1 }
 0x30c   : > { %v4502_v32 = vpop.f32.mrf.mxu2  ;;  %v3164_v25 = vadd.f32 %v3163_v52, %v3075_v44 }
 0x30d   : > { %v4678_v37 = vadd.f32 %v4677_v21, %v4589_v8 }
 0x30e   : > { %v4680_v50 = vpop.f32.mrf.mxu0 }
 0x30f   : > { %v4714_v47 = vadd.f32 %v4678_v37, %v3159_v31 }
 0x311   : > { %v5855_v30 = vpack.c.bf16 %v4714_v47, %v4713_v56  ;;  %v4809_v35 = vadd.f32 %v4808_v4, %v4714_v47  ;;  %v4847_v6 = vmul.f32 %v4714_v47, %v4714_v47 }
 0x312   : > { %v4591_v58 = vpop.f32.mrf.mxu3 }
 0x313   : > { %5890 = vst [vmem:[%s7590_s29 + $0x70] sm:$0xff] %v5855_v30   ;;  %v4878_v33 = vadd.f32 %v4877_v34, %v4847_v6  ;;  %v4592_v19 = vadd.f32 %v4591_v58, %v4502_v32 }
 0x314   : > { %v4504_v28 = vpop.f32.mrf.mxu2 }
 0x315   : > { %v4681_v59 = vadd.f32 %v4680_v50, %v4592_v19 }
 0x316   : > { %v4682_v54 = vpop.f32.mrf.mxu0 }
 0x317   : > { %v4715_v38 = vadd.f32 %v4681_v59, %v3162_v10 }
 0x319   : > { %v4810_v36 = vadd.f32 %v4809_v35, %v4715_v38  ;;  %v4848_v49 = vmul.f32 %v4715_v38, %v4715_v38 }
 0x31a   : > { %v4593_v13 = vpop.f32.mrf.mxu3 }
 0x31b   : > { %v4879_v51 = vadd.f32 %v4878_v33, %v4848_v49  ;;  %v4594_v61 = vadd.f32 %v4593_v13, %v4504_v28 }
 0x31d   : > { %v4683_v24 = vadd.f32 %v4682_v54, %v4594_v61 }
 0x31f   : > { %v4716_v0 = vadd.f32 %v4683_v24, %v3164_v25 }
 0x321   : > { %v5860_v3 = vpack.c.bf16 %v4716_v0, %v4715_v38  ;;  %v4811_v22 = vadd.f32 %v4810_v36, %v4716_v0  ;;  %v4849_v29 = vmul.f32 %v4716_v0, %v4716_v0 }
 0x323   : > { %5891 = vst [vmem:[%s7590_s29 + $0x78] sm:$0xff] %v5860_v3   ;;  %v4812_v18 = vrot.slane %v4811_v22, 4  ;;  %v4880_v42 = vadd.f32 %v4879_v51, %v4849_v29 }
 0x325   : > { %v4813_v43 = vadd.f32 %v4812_v18, %v4811_v22  ;;  %v4881_v15 = vrot.slane %v4880_v42, 4 }
 0x327   : > { %v4814_v46 = vrot.slane %v4813_v43, 2  ;;  %v4882_v9 = vadd.f32 %v4881_v15, %v4880_v42 }
 0x329   : > { %v4815_v1 = vadd.f32 %v4814_v46, %v4813_v43  ;;  %v4883_v14 = vrot.slane %v4882_v9, 2 }
 0x32b   : > { %v4816_v2 = vrot.slane %v4815_v1, 1  ;;  %v4884_v16 = vadd.f32 %v4883_v14, %v4882_v9 }
 0x32d   : > { %v4885_v5 = vrot.slane %v4884_v16, 1  ;;  %v4817_v23 = vadd.f32 %v4816_v2, %v4815_v1 }
 0x32f   : > { %v4886_v12 = vadd.f32 %v4885_v5, %v4884_v16 }
 0x331   : > { %v4888_v40 = vsel %vm796_vm10, %v4817_v23, %v4886_v12 }
 0x332   : > { %4889 = vst [vmem:[%s235_s11] sm:$0x3] %v4888_v40 }
 0x333 PF: > { %s16_s18 = sadd.s32 1, %s6001_s18  }
 0x334   : > { %p13_p4 = scmp.ge.s32.totalorder %s16_s18, 4  }
 0x336   :  { %15 = sbr.rel (!%p13_p4) target bundleno = 1 (0x1), region = 82 }

</bundles_post_ra>
